<compile_context>
chip_gen: v5e
topology: v5e:2x2
jax: 0.10.0
libtpu: 0.0.40
codegen_flags: <defaults>
</compile_context>

<pallas_src>
import jax
import jax.numpy as jnp
import numpy as np
from jax.experimental import pallas as pl
from jax.experimental.pallas import tpu as pltpu

K1, K2, K3 = 8, 5, 3
C_IN, H1, H2, H3 = 512, 128, 256, 128
EPS = 1e-5


def make_fcn_kernel(L, Bb):
    M = L * Bb                      # matmul M dimension (rows = l-major, b-minor)
    P2 = (K2 - 1) // 2              # conv2 left pad = 2 (right pad = 2)
    P3 = (K3 - 1) // 2              # conv3 left pad = 1 (right pad = 1)

    def kernel(x_ref, w1_ref, w2_ref, w3_ref,
               s1_ref, t1_ref, s2_ref, t2_ref, s3_ref, t3_ref,
               wl_ref, bl_ref, out_ref, y1p_ref, y2p_ref):
        # ---- conv1 (k=8, pad (3,4) done in wrapper) + folded BN1 + ReLU ----
        acc = jnp.dot(x_ref[0:M, :], w1_ref[0],
                      preferred_element_type=jnp.float32)
        for k in range(1, K1):
            acc = acc + jnp.dot(x_ref[k * Bb:k * Bb + M, :], w1_ref[k],
                                preferred_element_type=jnp.float32)
        y1 = jnp.maximum(acc * s1_ref[...] + t1_ref[...], 0.0)      # (M, H1) f32

        # ---- pad (2,2) into scratch (zero only pad rows) -> conv2 + BN2 + ReLU
        y1p_ref[0:P2 * Bb, :] = jnp.zeros((P2 * Bb, H1), jnp.bfloat16)
        y1p_ref[(P2 + L) * Bb:(2 * P2 + L) * Bb, :] = \
            jnp.zeros((P2 * Bb, H1), jnp.bfloat16)
        y1p_ref[P2 * Bb:(P2 + L) * Bb, :] = y1.astype(jnp.bfloat16)
        y1p = y1p_ref[...]                                          # load once
        acc = jnp.dot(y1p[0:M, :], w2_ref[0],
                      preferred_element_type=jnp.float32)
        for k in range(1, K2):
            acc = acc + jnp.dot(y1p[k * Bb:k * Bb + M, :], w2_ref[k],
                                preferred_element_type=jnp.float32)
        y2 = jnp.maximum(acc * s2_ref[...] + t2_ref[...], 0.0)      # (M, H2) f32

        # ---- pad (1,1) -> conv3 (k=3) + folded BN3 + ReLU ----
        y2p_ref[0:P3 * Bb, :] = jnp.zeros((P3 * Bb, H2), jnp.bfloat16)
        y2p_ref[(P3 + L) * Bb:(2 * P3 + L) * Bb, :] = \
            jnp.zeros((P3 * Bb, H2), jnp.bfloat16)
        y2p_ref[P3 * Bb:(P3 + L) * Bb, :] = y2.astype(jnp.bfloat16)
        y2p = y2p_ref[...]
        acc = jnp.dot(y2p[0:M, :], w3_ref[0],
                      preferred_element_type=jnp.float32)
        for k in range(1, K3):
            acc = acc + jnp.dot(y2p[k * Bb:k * Bb + M, :], w3_ref[k],
                                preferred_element_type=jnp.float32)
        y3 = jnp.maximum(acc * s3_ref[...] + t3_ref[...], 0.0)      # (M, H3) f32

        # ---- AvgPool1d(L) (rows are l-major, b-minor) + Linear head (f32) ----
        pooled = y3[0:Bb, :]
        for l in range(1, L):
            pooled = pooled + y3[l * Bb:(l + 1) * Bb, :]
        pooled = pooled * (1.0 / L)                                 # (Bb, H3)
        out_ref[...] = (jnp.dot(pooled, wl_ref[...],
                                preferred_element_type=jnp.float32)
                        + bl_ref[...])                              # (Bb, NCP)
    return kernel


def fcn_forward_pallas(x_ncw, folded, n_class, block_b=16):
    """x_ncw: (B, 512, L) f32.  Returns (B, n_class) f32."""
    B, C, L = x_ncw.shape
    assert C == C_IN
    assert block_b % 16 == 0, "block_b must be a multiple of 16 (bf16 tile rows)"
    w1, w2, w3, s1, t1, s2, t2, s3, t3, wl, bl = folded
    NCP = wl.shape[1]                       # n_class padded to a multiple of 128

    Bb = block_b
    G = -(-B // Bb)                         # cdiv
    B_pad = G * Bb
    Lp = L + K1 - 1                         # seq length after ConstantPad1d((3,4))
    M = L * Bb

    # ConstantPad1d((3, 4)) + pad batch to a multiple of Bb, then re-lay out so
    # that row index = ((g*Lp + l)*Bb + b_in): conv taps become aligned slices.
    xpad = jnp.pad(x_ncw, ((0, B_pad - B), (0, 0), (3, 4)))         # (B_pad, C, Lp)
    xt = jnp.transpose(xpad, (2, 0, 1))                             # (Lp, B_pad, C)
    xt = xt.reshape(Lp, G, Bb, C).transpose(1, 0, 2, 3)             # (G, Lp, Bb, C)
    xt = xt.reshape(G * Lp * Bb, C).astype(jnp.bfloat16)

    grid_spec = pltpu.PrefetchScalarGridSpec(
        num_scalar_prefetch=0,
        grid=(G,),
        in_specs=[
            pl.BlockSpec((Lp * Bb, C_IN), lambda g: (g, 0)),
            pl.BlockSpec((K1, C_IN, H1), lambda g: (0, 0, 0)),
            pl.BlockSpec((K2, H1, H2), lambda g: (0, 0, 0)),
            pl.BlockSpec((K3, H2, H3), lambda g: (0, 0, 0)),
            pl.BlockSpec((1, H1), lambda g: (0, 0)),
            pl.BlockSpec((1, H1), lambda g: (0, 0)),
            pl.BlockSpec((1, H2), lambda g: (0, 0)),
            pl.BlockSpec((1, H2), lambda g: (0, 0)),
            pl.BlockSpec((1, H3), lambda g: (0, 0)),
            pl.BlockSpec((1, H3), lambda g: (0, 0)),
            pl.BlockSpec((H3, NCP), lambda g: (0, 0)),
            pl.BlockSpec((1, NCP), lambda g: (0, 0)),
        ],
        out_specs=pl.BlockSpec((Bb, NCP), lambda g: (g, 0)),
        scratch_shapes=[
            pltpu.VMEM(((L + K2 - 1) * Bb, H1), jnp.bfloat16),   # padded conv2 input
            pltpu.VMEM(((L + K3 - 1) * Bb, H2), jnp.bfloat16),   # padded conv3 input
        ],
    )

    flops = (2 * B_pad * L * (C_IN * H1 * K1 + H1 * H2 * K2 + H2 * H3 * K3)
             + 2 * B_pad * H3 * NCP)
    args = (xt, w1, w2, w3, s1, t1, s2, t2, s3, t3, wl, bl)
    bytes_accessed = (sum(int(np.prod(a.shape)) * a.dtype.itemsize for a in args)
                      + B_pad * NCP * 4)

    out = pl.pallas_call(
        make_fcn_kernel(L, Bb),
        out_shape=jax.ShapeDtypeStruct((B_pad, NCP), jnp.float32),
        grid_spec=grid_spec,
        compiler_params=pltpu.CompilerParams(
            dimension_semantics=("parallel",)),
        cost_estimate=pl.CostEstimate(flops=int(flops), transcendentals=0,
                                      bytes_accessed=int(bytes_accessed)),
    )(*args)
    return out[:B, :n_class]


# ----------------------- parameter init (deterministic) -----------------------

def init_params(key, n_class):
    ks = jax.random.split(key, 11)

    def conv_w(k, cout, cin, ksz):
        return 0.05 * jax.random.normal(k, (cout, cin, ksz), jnp.float32)

    def bn(k, c):
        kk = jax.random.split(k, 4)
        gamma = 1.0 + 0.1 * jax.random.normal(kk[0], (c,), jnp.float32)
        beta = 0.1 * jax.random.normal(kk[1], (c,), jnp.float32)
        mean = 0.1 * jax.random.normal(kk[2], (c,), jnp.float32)
        var = jax.random.uniform(kk[3], (c,), jnp.float32, 0.5, 1.5)
        return gamma, beta, mean, var

    return dict(
        w1=conv_w(ks[0], H1, C_IN, K1), b1=0.05 * jax.random.normal(ks[1], (H1,), jnp.float32),
        w2=conv_w(ks[2], H2, H1, K2),   b2=0.05 * jax.random.normal(ks[3], (H2,), jnp.float32),
        w3=conv_w(ks[4], H3, H2, K3),   b3=0.05 * jax.random.normal(ks[5], (H3,), jnp.float32),
        bn1=bn(ks[6], H1), bn2=bn(ks[7], H2), bn3=bn(ks[8], H3),
        wl=0.05 * jax.random.normal(ks[9], (n_class, H3), jnp.float32),
        bl=0.05 * jax.random.normal(ks[10], (n_class,), jnp.float32),
    )


def fold_params(p, n_class):
    # Fold conv bias + eval-mode BatchNorm into per-channel scale/shift (f32);
    # conv weights go to bf16 (K, Cin, Cout); linear head stays f32 but is
    # lane-padded to a multiple of 128 classes for dense output stores.
    def fold(w, b, bn_p):
        gamma, beta, mean, var = bn_p
        scale = gamma / jnp.sqrt(var + EPS)
        shift = beta + scale * (b - mean)
        wk = jnp.transpose(w, (2, 1, 0)).astype(jnp.bfloat16)     # (K, Cin, Cout)
        return wk, scale[None, :], shift[None, :]

    w1k, s1, t1 = fold(p["w1"], p["b1"], p["bn1"])
    w2k, s2, t2 = fold(p["w2"], p["b2"], p["bn2"])
    w3k, s3, t3 = fold(p["w3"], p["b3"], p["bn3"])
    NCP = 128 * ((n_class + 127) // 128)
    wl = jnp.zeros((H3, NCP), jnp.float32).at[:, :n_class].set(jnp.transpose(p["wl"]))
    bl = jnp.zeros((1, NCP), jnp.float32).at[:, :n_class].set(p["bl"][None, :])
    return (w1k, w2k, w3k, s1, t1, s2, t2, s3, t3, wl, bl)


# ----------------------- pure-JAX reference (for checking) --------------------

def ref_forward(x, p):
    def block(h, w, b, bn_p, pad_l, pad_r):
        hp = jnp.pad(h, ((0, 0), (0, 0), (pad_l, pad_r)))
        y = jax.lax.conv_general_dilated(
            hp, w, (1,), 'VALID', dimension_numbers=('NCH', 'OIH', 'NCH'))
        y = y + b[None, :, None]
        gamma, beta, mean, var = bn_p
        y = (y - mean[None, :, None]) / jnp.sqrt(var + EPS)[None, :, None]
        y = y * gamma[None, :, None] + beta[None, :, None]
        return jnp.maximum(y, 0.0)

    y = block(x, p["w1"], p["b1"], p["bn1"], 3, 4)
    y = block(y, p["w2"], p["b2"], p["bn2"], 2, 2)
    y = block(y, p["w3"], p["b3"], p["bn3"], 1, 1)
    y = jnp.mean(y, axis=-1)                          # AvgPool1d(L) + squeeze
    return y @ p["wl"].T + p["bl"]


if __name__ == "__main__":
    B, L, n_class = 2, 16, 10                         # input_shape (= seq len) = 16
    key = jax.random.PRNGKey(0)
    kx, kp = jax.random.split(key)
    x = jax.random.normal(kx, (B, C_IN, L), jnp.float32)   # NCW, like PyTorch

    params = init_params(kp, n_class)
    folded = fold_params(params, n_class)

    out = fcn_forward_pallas(x, folded, n_class)
    out = jax.block_until_ready(out)

    ref = ref_forward(x, params)
    # bf16 activations/weights (f32 accumulation) -> loosened tolerance.
    np.testing.assert_allclose(np.asarray(out), np.asarray(ref),
                               rtol=5e-2, atol=5e-2)
    print("KERNEL_OK")
</pallas_src>

<mosaic_0001>
module attributes {stable_mosaic.version = 11 : i64} {
  func.func @kernel(%arg0: i32, %arg1: memref<368x512xbf16, #tpu.memory_space<vmem>>, %arg2: memref<8x512x128xbf16, #tpu.memory_space<vmem>>, %arg3: memref<5x128x256xbf16, #tpu.memory_space<vmem>>, %arg4: memref<3x256x128xbf16, #tpu.memory_space<vmem>>, %arg5: memref<1x128xf32, #tpu.memory_space<vmem>>, %arg6: memref<1x128xf32, #tpu.memory_space<vmem>>, %arg7: memref<1x256xf32, #tpu.memory_space<vmem>>, %arg8: memref<1x256xf32, #tpu.memory_space<vmem>>, %arg9: memref<1x128xf32, #tpu.memory_space<vmem>>, %arg10: memref<1x128xf32, #tpu.memory_space<vmem>>, %arg11: memref<128x128xf32, #tpu.memory_space<vmem>>, %arg12: memref<1x128xf32, #tpu.memory_space<vmem>>, %arg13: memref<16x128xf32, #tpu.memory_space<vmem>>, %arg14: memref<320x128xbf16, #tpu.memory_space<vmem>>, %arg15: memref<288x256xbf16, #tpu.memory_space<vmem>>) attributes {dimension_semantics = [#tpu.dimension_semantics<parallel>], iteration_bounds = array<i64: 1>, scalar_prefetch = 0 : i64, scratch_operands = 2 : i64, tpu.core_type = #tpu.core_type<tc>, window_params = [{transform_indices = @transform_0, window_bounds = array<i64: 368, 512>}, {pipeline_mode = #tpu.pipeline_mode<synchronous>, transform_indices = @transform_1, window_bounds = array<i64: 8, 512, 128>}, {pipeline_mode = #tpu.pipeline_mode<synchronous>, transform_indices = @transform_2, window_bounds = array<i64: 5, 128, 256>}, {pipeline_mode = #tpu.pipeline_mode<synchronous>, transform_indices = @transform_3, window_bounds = array<i64: 3, 256, 128>}, {pipeline_mode = #tpu.pipeline_mode<synchronous>, transform_indices = @transform_4, window_bounds = array<i64: 1, 128>}, {pipeline_mode = #tpu.pipeline_mode<synchronous>, transform_indices = @transform_5, window_bounds = array<i64: 1, 128>}, {pipeline_mode = #tpu.pipeline_mode<synchronous>, transform_indices = @transform_6, window_bounds = array<i64: 1, 256>}, {pipeline_mode = #tpu.pipeline_mode<synchronous>, transform_indices = @transform_7, window_bounds = array<i64: 1, 256>}, {pipeline_mode = #tpu.pipeline_mode<synchronous>, transform_indices = @transform_8, window_bounds = array<i64: 1, 128>}, {pipeline_mode = #tpu.pipeline_mode<synchronous>, transform_indices = @transform_9, window_bounds = array<i64: 1, 128>}, {pipeline_mode = #tpu.pipeline_mode<synchronous>, transform_indices = @transform_10, window_bounds = array<i64: 128, 128>}, {pipeline_mode = #tpu.pipeline_mode<synchronous>, transform_indices = @transform_11, window_bounds = array<i64: 1, 128>}, {transform_indices = @transform_12, window_bounds = array<i64: 16, 128>}]} {
    %c0 = arith.constant 0 : index
    %c0_0 = arith.constant 0 : index
    %0 = vector.load %arg1[%c0, %c0_0] : memref<368x512xbf16, #tpu.memory_space<vmem>>, vector<256x512xbf16>
    %c0_1 = arith.constant 0 : index
    %c0_2 = arith.constant 0 : index
    %c0_3 = arith.constant 0 : index
    %1 = vector.load %arg2[%c0_1, %c0_2, %c0_3] : memref<8x512x128xbf16, #tpu.memory_space<vmem>>, vector<1x512x128xbf16>
    %2 = vector.shape_cast %1 : vector<1x512x128xbf16> to vector<512x128xbf16>
    %cst = arith.constant dense<0.000000e+00> : vector<256x128xf32>
    %3 = tpu.matmul %0, %2, %cst {dimension_numbers = #tpu.dot_dimension_numbers<[1], [0], [0], [1], [0, 0, 1, 1], [], []>} : vector<256x512xbf16>, vector<512x128xbf16>, vector<256x128xf32> -> vector<256x128xf32>
    %c16 = arith.constant 16 : index
    %c0_4 = arith.constant 0 : index
    %4 = vector.load %arg1[%c16, %c0_4] : memref<368x512xbf16, #tpu.memory_space<vmem>>, vector<256x512xbf16>
    %c1 = arith.constant 1 : index
    %c0_5 = arith.constant 0 : index
    %c0_6 = arith.constant 0 : index
    %5 = vector.load %arg2[%c1, %c0_5, %c0_6] : memref<8x512x128xbf16, #tpu.memory_space<vmem>>, vector<1x512x128xbf16>
    %6 = vector.shape_cast %5 : vector<1x512x128xbf16> to vector<512x128xbf16>
    %cst_7 = arith.constant dense<0.000000e+00> : vector<256x128xf32>
    %7 = tpu.matmul %4, %6, %cst_7 {dimension_numbers = #tpu.dot_dimension_numbers<[1], [0], [0], [1], [0, 0, 1, 1], [], []>} : vector<256x512xbf16>, vector<512x128xbf16>, vector<256x128xf32> -> vector<256x128xf32>
    %8 = arith.addf %3, %7 : vector<256x128xf32>
    %c32 = arith.constant 32 : index
    %c0_8 = arith.constant 0 : index
    %9 = vector.load %arg1[%c32, %c0_8] : memref<368x512xbf16, #tpu.memory_space<vmem>>, vector<256x512xbf16>
    %c2 = arith.constant 2 : index
    %c0_9 = arith.constant 0 : index
    %c0_10 = arith.constant 0 : index
    %10 = vector.load %arg2[%c2, %c0_9, %c0_10] : memref<8x512x128xbf16, #tpu.memory_space<vmem>>, vector<1x512x128xbf16>
    %11 = vector.shape_cast %10 : vector<1x512x128xbf16> to vector<512x128xbf16>
    %cst_11 = arith.constant dense<0.000000e+00> : vector<256x128xf32>
    %12 = tpu.matmul %9, %11, %cst_11 {dimension_numbers = #tpu.dot_dimension_numbers<[1], [0], [0], [1], [0, 0, 1, 1], [], []>} : vector<256x512xbf16>, vector<512x128xbf16>, vector<256x128xf32> -> vector<256x128xf32>
    %13 = arith.addf %8, %12 : vector<256x128xf32>
    %c48 = arith.constant 48 : index
    %c0_12 = arith.constant 0 : index
    %14 = vector.load %arg1[%c48, %c0_12] : memref<368x512xbf16, #tpu.memory_space<vmem>>, vector<256x512xbf16>
    %c3 = arith.constant 3 : index
    %c0_13 = arith.constant 0 : index
    %c0_14 = arith.constant 0 : index
    %15 = vector.load %arg2[%c3, %c0_13, %c0_14] : memref<8x512x128xbf16, #tpu.memory_space<vmem>>, vector<1x512x128xbf16>
    %16 = vector.shape_cast %15 : vector<1x512x128xbf16> to vector<512x128xbf16>
    %cst_15 = arith.constant dense<0.000000e+00> : vector<256x128xf32>
    %17 = tpu.matmul %14, %16, %cst_15 {dimension_numbers = #tpu.dot_dimension_numbers<[1], [0], [0], [1], [0, 0, 1, 1], [], []>} : vector<256x512xbf16>, vector<512x128xbf16>, vector<256x128xf32> -> vector<256x128xf32>
    %18 = arith.addf %13, %17 : vector<256x128xf32>
    %c64 = arith.constant 64 : index
    %c0_16 = arith.constant 0 : index
    %19 = vector.load %arg1[%c64, %c0_16] : memref<368x512xbf16, #tpu.memory_space<vmem>>, vector<256x512xbf16>
    %c4 = arith.constant 4 : index
    %c0_17 = arith.constant 0 : index
    %c0_18 = arith.constant 0 : index
    %20 = vector.load %arg2[%c4, %c0_17, %c0_18] : memref<8x512x128xbf16, #tpu.memory_space<vmem>>, vector<1x512x128xbf16>
    %21 = vector.shape_cast %20 : vector<1x512x128xbf16> to vector<512x128xbf16>
    %cst_19 = arith.constant dense<0.000000e+00> : vector<256x128xf32>
    %22 = tpu.matmul %19, %21, %cst_19 {dimension_numbers = #tpu.dot_dimension_numbers<[1], [0], [0], [1], [0, 0, 1, 1], [], []>} : vector<256x512xbf16>, vector<512x128xbf16>, vector<256x128xf32> -> vector<256x128xf32>
    %23 = arith.addf %18, %22 : vector<256x128xf32>
    %c80 = arith.constant 80 : index
    %c0_20 = arith.constant 0 : index
    %24 = vector.load %arg1[%c80, %c0_20] : memref<368x512xbf16, #tpu.memory_space<vmem>>, vector<256x512xbf16>
    %c5 = arith.constant 5 : index
    %c0_21 = arith.constant 0 : index
    %c0_22 = arith.constant 0 : index
    %25 = vector.load %arg2[%c5, %c0_21, %c0_22] : memref<8x512x128xbf16, #tpu.memory_space<vmem>>, vector<1x512x128xbf16>
    %26 = vector.shape_cast %25 : vector<1x512x128xbf16> to vector<512x128xbf16>
    %cst_23 = arith.constant dense<0.000000e+00> : vector<256x128xf32>
    %27 = tpu.matmul %24, %26, %cst_23 {dimension_numbers = #tpu.dot_dimension_numbers<[1], [0], [0], [1], [0, 0, 1, 1], [], []>} : vector<256x512xbf16>, vector<512x128xbf16>, vector<256x128xf32> -> vector<256x128xf32>
    %28 = arith.addf %23, %27 : vector<256x128xf32>
    %c96 = arith.constant 96 : index
    %c0_24 = arith.constant 0 : index
    %29 = vector.load %arg1[%c96, %c0_24] : memref<368x512xbf16, #tpu.memory_space<vmem>>, vector<256x512xbf16>
    %c6 = arith.constant 6 : index
    %c0_25 = arith.constant 0 : index
    %c0_26 = arith.constant 0 : index
    %30 = vector.load %arg2[%c6, %c0_25, %c0_26] : memref<8x512x128xbf16, #tpu.memory_space<vmem>>, vector<1x512x128xbf16>
    %31 = vector.shape_cast %30 : vector<1x512x128xbf16> to vector<512x128xbf16>
    %cst_27 = arith.constant dense<0.000000e+00> : vector<256x128xf32>
    %32 = tpu.matmul %29, %31, %cst_27 {dimension_numbers = #tpu.dot_dimension_numbers<[1], [0], [0], [1], [0, 0, 1, 1], [], []>} : vector<256x512xbf16>, vector<512x128xbf16>, vector<256x128xf32> -> vector<256x128xf32>
    %33 = arith.addf %28, %32 : vector<256x128xf32>
    %c112 = arith.constant 112 : index
    %c0_28 = arith.constant 0 : index
    %34 = vector.load %arg1[%c112, %c0_28] : memref<368x512xbf16, #tpu.memory_space<vmem>>, vector<256x512xbf16>
    %c7 = arith.constant 7 : index
    %c0_29 = arith.constant 0 : index
    %c0_30 = arith.constant 0 : index
    %35 = vector.load %arg2[%c7, %c0_29, %c0_30] : memref<8x512x128xbf16, #tpu.memory_space<vmem>>, vector<1x512x128xbf16>
    %36 = vector.shape_cast %35 : vector<1x512x128xbf16> to vector<512x128xbf16>
    %cst_31 = arith.constant dense<0.000000e+00> : vector<256x128xf32>
    %37 = tpu.matmul %34, %36, %cst_31 {dimension_numbers = #tpu.dot_dimension_numbers<[1], [0], [0], [1], [0, 0, 1, 1], [], []>} : vector<256x512xbf16>, vector<512x128xbf16>, vector<256x128xf32> -> vector<256x128xf32>
    %38 = arith.addf %33, %37 : vector<256x128xf32>
    %c0_32 = arith.constant 0 : index
    %c0_33 = arith.constant 0 : index
    %39 = vector.load %arg5[%c0_32, %c0_33] : memref<1x128xf32, #tpu.memory_space<vmem>>, vector<1x128xf32>
    %40 = vector.broadcast %39 : vector<1x128xf32> to vector<256x128xf32>
    %41 = arith.mulf %38, %40 : vector<256x128xf32>
    %c0_34 = arith.constant 0 : index
    %c0_35 = arith.constant 0 : index
    %42 = vector.load %arg6[%c0_34, %c0_35] : memref<1x128xf32, #tpu.memory_space<vmem>>, vector<1x128xf32>
    %43 = vector.broadcast %42 : vector<1x128xf32> to vector<256x128xf32>
    %44 = arith.addf %41, %43 : vector<256x128xf32>
    %cst_36 = arith.constant 0.000000e+00 : f32
    %45 = vector.broadcast %cst_36 : f32 to vector<256x128xf32>
    %46 = arith.maximumf %44, %45 : vector<256x128xf32>
    %cst_37 = arith.constant 0.000000e+00 : bf16
    %47 = vector.broadcast %cst_37 : bf16 to vector<32x128xbf16>
    %c0_38 = arith.constant 0 : index
    %c0_39 = arith.constant 0 : index
    %48 = vector.load %arg14[%c0_38, %c0_39] : memref<320x128xbf16, #tpu.memory_space<vmem>>, vector<32x128xbf16>
    tpu.vector_store %arg14[%c0_38, %c0_39], %47 {strides = array<i32>} : memref<320x128xbf16, #tpu.memory_space<vmem>>, vector<32x128xbf16>,
    %cst_40 = arith.constant 0.000000e+00 : bf16
    %49 = vector.broadcast %cst_40 : bf16 to vector<32x128xbf16>
    %c288 = arith.constant 288 : index
    %c0_41 = arith.constant 0 : index
    %50 = vector.load %arg14[%c288, %c0_41] : memref<320x128xbf16, #tpu.memory_space<vmem>>, vector<32x128xbf16>
    tpu.vector_store %arg14[%c288, %c0_41], %49 {strides = array<i32>} : memref<320x128xbf16, #tpu.memory_space<vmem>>, vector<32x128xbf16>,
    %51 = arith.truncf %46 : vector<256x128xf32> to vector<256x128xbf16>
    %c32_42 = arith.constant 32 : index
    %c0_43 = arith.constant 0 : index
    %52 = vector.load %arg14[%c32_42, %c0_43] : memref<320x128xbf16, #tpu.memory_space<vmem>>, vector<256x128xbf16>
    tpu.vector_store %arg14[%c32_42, %c0_43], %51 {strides = array<i32>} : memref<320x128xbf16, #tpu.memory_space<vmem>>, vector<256x128xbf16>,
    %c0_44 = arith.constant 0 : index
    %c0_45 = arith.constant 0 : index
    %53 = vector.load %arg14[%c0_44, %c0_45] : memref<320x128xbf16, #tpu.memory_space<vmem>>, vector<320x128xbf16>
    %54 = vector.extract_strided_slice %53 {offsets = [0, 0], sizes = [256, 128], strides = [1, 1]} : vector<320x128xbf16> to vector<256x128xbf16>
    %c0_46 = arith.constant 0 : index
    %c0_47 = arith.constant 0 : index
    %c0_48 = arith.constant 0 : index
    %55 = vector.load %arg3[%c0_46, %c0_47, %c0_48] : memref<5x128x256xbf16, #tpu.memory_space<vmem>>, vector<1x128x256xbf16>
    %56 = vector.shape_cast %55 : vector<1x128x256xbf16> to vector<128x256xbf16>
    %cst_49 = arith.constant dense<0.000000e+00> : vector<256x256xf32>
    %57 = tpu.matmul %54, %56, %cst_49 {dimension_numbers = #tpu.dot_dimension_numbers<[1], [0], [0], [1], [0, 0, 1, 1], [], []>} : vector<256x128xbf16>, vector<128x256xbf16>, vector<256x256xf32> -> vector<256x256xf32>
    %58 = vector.extract_strided_slice %53 {offsets = [16, 0], sizes = [256, 128], strides = [1, 1]} : vector<320x128xbf16> to vector<256x128xbf16>
    %c1_50 = arith.constant 1 : index
    %c0_51 = arith.constant 0 : index
    %c0_52 = arith.constant 0 : index
    %59 = vector.load %arg3[%c1_50, %c0_51, %c0_52] : memref<5x128x256xbf16, #tpu.memory_space<vmem>>, vector<1x128x256xbf16>
    %60 = vector.shape_cast %59 : vector<1x128x256xbf16> to vector<128x256xbf16>
    %cst_53 = arith.constant dense<0.000000e+00> : vector<256x256xf32>
    %61 = tpu.matmul %58, %60, %cst_53 {dimension_numbers = #tpu.dot_dimension_numbers<[1], [0], [0], [1], [0, 0, 1, 1], [], []>} : vector<256x128xbf16>, vector<128x256xbf16>, vector<256x256xf32> -> vector<256x256xf32>
    %62 = arith.addf %57, %61 : vector<256x256xf32>
    %63 = vector.extract_strided_slice %53 {offsets = [32, 0], sizes = [256, 128], strides = [1, 1]} : vector<320x128xbf16> to vector<256x128xbf16>
    %c2_54 = arith.constant 2 : index
    %c0_55 = arith.constant 0 : index
    %c0_56 = arith.constant 0 : index
    %64 = vector.load %arg3[%c2_54, %c0_55, %c0_56] : memref<5x128x256xbf16, #tpu.memory_space<vmem>>, vector<1x128x256xbf16>
    %65 = vector.shape_cast %64 : vector<1x128x256xbf16> to vector<128x256xbf16>
    %cst_57 = arith.constant dense<0.000000e+00> : vector<256x256xf32>
    %66 = tpu.matmul %63, %65, %cst_57 {dimension_numbers = #tpu.dot_dimension_numbers<[1], [0], [0], [1], [0, 0, 1, 1], [], []>} : vector<256x128xbf16>, vector<128x256xbf16>, vector<256x256xf32> -> vector<256x256xf32>
    %67 = arith.addf %62, %66 : vector<256x256xf32>
    %68 = vector.extract_strided_slice %53 {offsets = [48, 0], sizes = [256, 128], strides = [1, 1]} : vector<320x128xbf16> to vector<256x128xbf16>
    %c3_58 = arith.constant 3 : index
    %c0_59 = arith.constant 0 : index
    %c0_60 = arith.constant 0 : index
    %69 = vector.load %arg3[%c3_58, %c0_59, %c0_60] : memref<5x128x256xbf16, #tpu.memory_space<vmem>>, vector<1x128x256xbf16>
    %70 = vector.shape_cast %69 : vector<1x128x256xbf16> to vector<128x256xbf16>
    %cst_61 = arith.constant dense<0.000000e+00> : vector<256x256xf32>
    %71 = tpu.matmul %68, %70, %cst_61 {dimension_numbers = #tpu.dot_dimension_numbers<[1], [0], [0], [1], [0, 0, 1, 1], [], []>} : vector<256x128xbf16>, vector<128x256xbf16>, vector<256x256xf32> -> vector<256x256xf32>
    %72 = arith.addf %67, %71 : vector<256x256xf32>
    %73 = vector.extract_strided_slice %53 {offsets = [64, 0], sizes = [256, 128], strides = [1, 1]} : vector<320x128xbf16> to vector<256x128xbf16>
    %c4_62 = arith.constant 4 : index
    %c0_63 = arith.constant 0 : index
    %c0_64 = arith.constant 0 : index
    %74 = vector.load %arg3[%c4_62, %c0_63, %c0_64] : memref<5x128x256xbf16, #tpu.memory_space<vmem>>, vector<1x128x256xbf16>
    %75 = vector.shape_cast %74 : vector<1x128x256xbf16> to vector<128x256xbf16>
    %cst_65 = arith.constant dense<0.000000e+00> : vector<256x256xf32>
    %76 = tpu.matmul %73, %75, %cst_65 {dimension_numbers = #tpu.dot_dimension_numbers<[1], [0], [0], [1], [0, 0, 1, 1], [], []>} : vector<256x128xbf16>, vector<128x256xbf16>, vector<256x256xf32> -> vector<256x256xf32>
    %77 = arith.addf %72, %76 : vector<256x256xf32>
    %c0_66 = arith.constant 0 : index
    %c0_67 = arith.constant 0 : index
    %78 = vector.load %arg7[%c0_66, %c0_67] : memref<1x256xf32, #tpu.memory_space<vmem>>, vector<1x256xf32>
    %79 = vector.broadcast %78 : vector<1x256xf32> to vector<256x256xf32>
    %80 = arith.mulf %77, %79 : vector<256x256xf32>
    %c0_68 = arith.constant 0 : index
    %c0_69 = arith.constant 0 : index
    %81 = vector.load %arg8[%c0_68, %c0_69] : memref<1x256xf32, #tpu.memory_space<vmem>>, vector<1x256xf32>
    %82 = vector.broadcast %81 : vector<1x256xf32> to vector<256x256xf32>
    %83 = arith.addf %80, %82 : vector<256x256xf32>
    %cst_70 = arith.constant 0.000000e+00 : f32
    %84 = vector.broadcast %cst_70 : f32 to vector<256x256xf32>
    %85 = arith.maximumf %83, %84 : vector<256x256xf32>
    %cst_71 = arith.constant 0.000000e+00 : bf16
    %86 = vector.broadcast %cst_71 : bf16 to vector<16x256xbf16>
    %c0_72 = arith.constant 0 : index
    %c0_73 = arith.constant 0 : index
    %87 = vector.load %arg15[%c0_72, %c0_73] : memref<288x256xbf16, #tpu.memory_space<vmem>>, vector<16x256xbf16>
    tpu.vector_store %arg15[%c0_72, %c0_73], %86 {strides = array<i32>} : memref<288x256xbf16, #tpu.memory_space<vmem>>, vector<16x256xbf16>,
    %cst_74 = arith.constant 0.000000e+00 : bf16
    %88 = vector.broadcast %cst_74 : bf16 to vector<16x256xbf16>
    %c272 = arith.constant 272 : index
    %c0_75 = arith.constant 0 : index
    %89 = vector.load %arg15[%c272, %c0_75] : memref<288x256xbf16, #tpu.memory_space<vmem>>, vector<16x256xbf16>
    tpu.vector_store %arg15[%c272, %c0_75], %88 {strides = array<i32>} : memref<288x256xbf16, #tpu.memory_space<vmem>>, vector<16x256xbf16>,
    %90 = arith.truncf %85 : vector<256x256xf32> to vector<256x256xbf16>
    %c16_76 = arith.constant 16 : index
    %c0_77 = arith.constant 0 : index
    %91 = vector.load %arg15[%c16_76, %c0_77] : memref<288x256xbf16, #tpu.memory_space<vmem>>, vector<256x256xbf16>
    tpu.vector_store %arg15[%c16_76, %c0_77], %90 {strides = array<i32>} : memref<288x256xbf16, #tpu.memory_space<vmem>>, vector<256x256xbf16>,
    %c0_78 = arith.constant 0 : index
    %c0_79 = arith.constant 0 : index
    %92 = vector.load %arg15[%c0_78, %c0_79] : memref<288x256xbf16, #tpu.memory_space<vmem>>, vector<288x256xbf16>
    %93 = vector.extract_strided_slice %92 {offsets = [0, 0], sizes = [256, 256], strides = [1, 1]} : vector<288x256xbf16> to vector<256x256xbf16>
    %c0_80 = arith.constant 0 : index
    %c0_81 = arith.constant 0 : index
    %c0_82 = arith.constant 0 : index
    %94 = vector.load %arg4[%c0_80, %c0_81, %c0_82] : memref<3x256x128xbf16, #tpu.memory_space<vmem>>, vector<1x256x128xbf16>
    %95 = vector.shape_cast %94 : vector<1x256x128xbf16> to vector<256x128xbf16>
    %cst_83 = arith.constant dense<0.000000e+00> : vector<256x128xf32>
    %96 = tpu.matmul %93, %95, %cst_83 {dimension_numbers = #tpu.dot_dimension_numbers<[1], [0], [0], [1], [0, 0, 1, 1], [], []>} : vector<256x256xbf16>, vector<256x128xbf16>, vector<256x128xf32> -> vector<256x128xf32>
    %97 = vector.extract_strided_slice %92 {offsets = [16, 0], sizes = [256, 256], strides = [1, 1]} : vector<288x256xbf16> to vector<256x256xbf16>
    %c1_84 = arith.constant 1 : index
    %c0_85 = arith.constant 0 : index
    %c0_86 = arith.constant 0 : index
    %98 = vector.load %arg4[%c1_84, %c0_85, %c0_86] : memref<3x256x128xbf16, #tpu.memory_space<vmem>>, vector<1x256x128xbf16>
    %99 = vector.shape_cast %98 : vector<1x256x128xbf16> to vector<256x128xbf16>
    %cst_87 = arith.constant dense<0.000000e+00> : vector<256x128xf32>
    %100 = tpu.matmul %97, %99, %cst_87 {dimension_numbers = #tpu.dot_dimension_numbers<[1], [0], [0], [1], [0, 0, 1, 1], [], []>} : vector<256x256xbf16>, vector<256x128xbf16>, vector<256x128xf32> -> vector<256x128xf32>
    %101 = arith.addf %96, %100 : vector<256x128xf32>
    %102 = vector.extract_strided_slice %92 {offsets = [32, 0], sizes = [256, 256], strides = [1, 1]} : vector<288x256xbf16> to vector<256x256xbf16>
    %c2_88 = arith.constant 2 : index
    %c0_89 = arith.constant 0 : index
    %c0_90 = arith.constant 0 : index
    %103 = vector.load %arg4[%c2_88, %c0_89, %c0_90] : memref<3x256x128xbf16, #tpu.memory_space<vmem>>, vector<1x256x128xbf16>
    %104 = vector.shape_cast %103 : vector<1x256x128xbf16> to vector<256x128xbf16>
    %cst_91 = arith.constant dense<0.000000e+00> : vector<256x128xf32>
    %105 = tpu.matmul %102, %104, %cst_91 {dimension_numbers = #tpu.dot_dimension_numbers<[1], [0], [0], [1], [0, 0, 1, 1], [], []>} : vector<256x256xbf16>, vector<256x128xbf16>, vector<256x128xf32> -> vector<256x128xf32>
    %106 = arith.addf %101, %105 : vector<256x128xf32>
    %c0_92 = arith.constant 0 : index
    %c0_93 = arith.constant 0 : index
    %107 = vector.load %arg9[%c0_92, %c0_93] : memref<1x128xf32, #tpu.memory_space<vmem>>, vector<1x128xf32>
    %108 = vector.broadcast %107 : vector<1x128xf32> to vector<256x128xf32>
    %109 = arith.mulf %106, %108 : vector<256x128xf32>
    %c0_94 = arith.constant 0 : index
    %c0_95 = arith.constant 0 : index
    %110 = vector.load %arg10[%c0_94, %c0_95] : memref<1x128xf32, #tpu.memory_space<vmem>>, vector<1x128xf32>
    %111 = vector.broadcast %110 : vector<1x128xf32> to vector<256x128xf32>
    %112 = arith.addf %109, %111 : vector<256x128xf32>
    %cst_96 = arith.constant 0.000000e+00 : f32
    %113 = vector.broadcast %cst_96 : f32 to vector<256x128xf32>
    %114 = arith.maximumf %112, %113 : vector<256x128xf32>
    %115 = vector.extract_strided_slice %114 {offsets = [0, 0], sizes = [16, 128], strides = [1, 1]} : vector<256x128xf32> to vector<16x128xf32>
    %116 = vector.extract_strided_slice %114 {offsets = [16, 0], sizes = [16, 128], strides = [1, 1]} : vector<256x128xf32> to vector<16x128xf32>
    %117 = arith.addf %115, %116 : vector<16x128xf32>
    %118 = vector.extract_strided_slice %114 {offsets = [32, 0], sizes = [16, 128], strides = [1, 1]} : vector<256x128xf32> to vector<16x128xf32>
    %119 = arith.addf %117, %118 : vector<16x128xf32>
    %120 = vector.extract_strided_slice %114 {offsets = [48, 0], sizes = [16, 128], strides = [1, 1]} : vector<256x128xf32> to vector<16x128xf32>
    %121 = arith.addf %119, %120 : vector<16x128xf32>
    %122 = vector.extract_strided_slice %114 {offsets = [64, 0], sizes = [16, 128], strides = [1, 1]} : vector<256x128xf32> to vector<16x128xf32>
    %123 = arith.addf %121, %122 : vector<16x128xf32>
    %124 = vector.extract_strided_slice %114 {offsets = [80, 0], sizes = [16, 128], strides = [1, 1]} : vector<256x128xf32> to vector<16x128xf32>
    %125 = arith.addf %123, %124 : vector<16x128xf32>
    %126 = vector.extract_strided_slice %114 {offsets = [96, 0], sizes = [16, 128], strides = [1, 1]} : vector<256x128xf32> to vector<16x128xf32>
    %127 = arith.addf %125, %126 : vector<16x128xf32>
    %128 = vector.extract_strided_slice %114 {offsets = [112, 0], sizes = [16, 128], strides = [1, 1]} : vector<256x128xf32> to vector<16x128xf32>
    %129 = arith.addf %127, %128 : vector<16x128xf32>
    %130 = vector.extract_strided_slice %114 {offsets = [128, 0], sizes = [16, 128], strides = [1, 1]} : vector<256x128xf32> to vector<16x128xf32>
    %131 = arith.addf %129, %130 : vector<16x128xf32>
    %132 = vector.extract_strided_slice %114 {offsets = [144, 0], sizes = [16, 128], strides = [1, 1]} : vector<256x128xf32> to vector<16x128xf32>
    %133 = arith.addf %131, %132 : vector<16x128xf32>
    %134 = vector.extract_strided_slice %114 {offsets = [160, 0], sizes = [16, 128], strides = [1, 1]} : vector<256x128xf32> to vector<16x128xf32>
    %135 = arith.addf %133, %134 : vector<16x128xf32>
    %136 = vector.extract_strided_slice %114 {offsets = [176, 0], sizes = [16, 128], strides = [1, 1]} : vector<256x128xf32> to vector<16x128xf32>
    %137 = arith.addf %135, %136 : vector<16x128xf32>
    %138 = vector.extract_strided_slice %114 {offsets = [192, 0], sizes = [16, 128], strides = [1, 1]} : vector<256x128xf32> to vector<16x128xf32>
    %139 = arith.addf %137, %138 : vector<16x128xf32>
    %140 = vector.extract_strided_slice %114 {offsets = [208, 0], sizes = [16, 128], strides = [1, 1]} : vector<256x128xf32> to vector<16x128xf32>
    %141 = arith.addf %139, %140 : vector<16x128xf32>
    %142 = vector.extract_strided_slice %114 {offsets = [224, 0], sizes = [16, 128], strides = [1, 1]} : vector<256x128xf32> to vector<16x128xf32>
    %143 = arith.addf %141, %142 : vector<16x128xf32>
    %144 = vector.extract_strided_slice %114 {offsets = [240, 0], sizes = [16, 128], strides = [1, 1]} : vector<256x128xf32> to vector<16x128xf32>
    %145 = arith.addf %143, %144 : vector<16x128xf32>
    %cst_97 = arith.constant 6.250000e-02 : f32
    %146 = vector.broadcast %cst_97 : f32 to vector<16x128xf32>
    %147 = arith.mulf %145, %146 : vector<16x128xf32>
    %c0_98 = arith.constant 0 : index
    %c0_99 = arith.constant 0 : index
    %148 = vector.load %arg11[%c0_98, %c0_99] : memref<128x128xf32, #tpu.memory_space<vmem>>, vector<128x128xf32>
    %cst_100 = arith.constant dense<0.000000e+00> : vector<16x128xf32>
    %149 = tpu.matmul %147, %148, %cst_100 {dimension_numbers = #tpu.dot_dimension_numbers<[1], [0], [0], [1], [0, 0, 1, 1], [], []>} : vector<16x128xf32>, vector<128x128xf32>, vector<16x128xf32> -> vector<16x128xf32>
    %c0_101 = arith.constant 0 : index
    %c0_102 = arith.constant 0 : index
    %150 = vector.load %arg12[%c0_101, %c0_102] : memref<1x128xf32, #tpu.memory_space<vmem>>, vector<1x128xf32>
    %151 = vector.broadcast %150 : vector<1x128xf32> to vector<16x128xf32>
    %152 = arith.addf %149, %151 : vector<16x128xf32>
    %c0_103 = arith.constant 0 : index
    %c0_104 = arith.constant 0 : index
    %153 = vector.load %arg13[%c0_103, %c0_104] : memref<16x128xf32, #tpu.memory_space<vmem>>, vector<16x128xf32>
    tpu.vector_store %arg13[%c0_103, %c0_104], %152 {strides = array<i32>} : memref<16x128xf32, #tpu.memory_space<vmem>>, vector<16x128xf32>,
    return
  }
  func.func @transform_0(%arg0: i32) -> (i32, i32) {
    %c0_i32 = arith.constant 0 : i32
    %c0_i32_0 = arith.constant 0 : i32
    return %arg0, %c0_i32 : i32, i32
  }
  func.func @transform_1(%arg0: i32) -> (i32, i32, i32) {
    %c0_i32 = arith.constant 0 : i32
    %c0_i32_0 = arith.constant 0 : i32
    %c0_i32_1 = arith.constant 0 : i32
    %c0_i32_2 = arith.constant 0 : i32
    return %c0_i32, %c0_i32_0, %c0_i32_1 : i32, i32, i32
  }
  func.func @transform_2(%arg0: i32) -> (i32, i32, i32) {
    %c0_i32 = arith.constant 0 : i32
    %c0_i32_0 = arith.constant 0 : i32
    %c0_i32_1 = arith.constant 0 : i32
    %c0_i32_2 = arith.constant 0 : i32
    return %c0_i32, %c0_i32_0, %c0_i32_1 : i32, i32, i32
  }
  func.func @transform_3(%arg0: i32) -> (i32, i32, i32) {
    %c0_i32 = arith.constant 0 : i32
    %c0_i32_0 = arith.constant 0 : i32
    %c0_i32_1 = arith.constant 0 : i32
    %c0_i32_2 = arith.constant 0 : i32
    return %c0_i32, %c0_i32_0, %c0_i32_1 : i32, i32, i32
  }
  func.func @transform_4(%arg0: i32) -> (i32, i32) {
    %c0_i32 = arith.constant 0 : i32
    %c0_i32_0 = arith.constant 0 : i32
    %c0_i32_1 = arith.constant 0 : i32
    return %c0_i32, %c0_i32_0 : i32, i32
  }
  func.func @transform_5(%arg0: i32) -> (i32, i32) {
    %c0_i32 = arith.constant 0 : i32
    %c0_i32_0 = arith.constant 0 : i32
    %c0_i32_1 = arith.constant 0 : i32
    return %c0_i32, %c0_i32_0 : i32, i32
  }
  func.func @transform_6(%arg0: i32) -> (i32, i32) {
    %c0_i32 = arith.constant 0 : i32
    %c0_i32_0 = arith.constant 0 : i32
    %c0_i32_1 = arith.constant 0 : i32
    return %c0_i32, %c0_i32_0 : i32, i32
  }
  func.func @transform_7(%arg0: i32) -> (i32, i32) {
    %c0_i32 = arith.constant 0 : i32
    %c0_i32_0 = arith.constant 0 : i32
    %c0_i32_1 = arith.constant 0 : i32
    return %c0_i32, %c0_i32_0 : i32, i32
  }
  func.func @transform_8(%arg0: i32) -> (i32, i32) {
    %c0_i32 = arith.constant 0 : i32
    %c0_i32_0 = arith.constant 0 : i32
    %c0_i32_1 = arith.constant 0 : i32
    return %c0_i32, %c0_i32_0 : i32, i32
  }
  func.func @transform_9(%arg0: i32) -> (i32, i32) {
    %c0_i32 = arith.constant 0 : i32
    %c0_i32_0 = arith.constant 0 : i32
    %c0_i32_1 = arith.constant 0 : i32
    return %c0_i32, %c0_i32_0 : i32, i32
  }
  func.func @transform_10(%arg0: i32) -> (i32, i32) {
    %c0_i32 = arith.constant 0 : i32
    %c0_i32_0 = arith.constant 0 : i32
    %c0_i32_1 = arith.constant 0 : i32
    return %c0_i32, %c0_i32_0 : i32, i32
  }
  func.func @transform_11(%arg0: i32) -> (i32, i32) {
    %c0_i32 = arith.constant 0 : i32
    %c0_i32_0 = arith.constant 0 : i32
    %c0_i32_1 = arith.constant 0 : i32
    return %c0_i32, %c0_i32_0 : i32, i32
  }
  func.func @transform_12(%arg0: i32) -> (i32, i32) {
    %c0_i32 = arith.constant 0 : i32
    %c0_i32_0 = arith.constant 0 : i32
    return %arg0, %c0_i32 : i32, i32
  }
}

</mosaic_0001>

<bundles_post_ra>
// kernel: tpu_custom_call.1
= control target key start
LH: loop header
LB: loop body
LE: loop exit
PB: predicated region body
PF: predicated region fallthrough
CT: control target
= control target key end

     0   :  { %17 = vsyncpa [#allocation5], 0  ;;  %s18562_s0 = inlined_call_operand.hbm [shape: bf16[368,512], index: 0, kind: input, shape index: {}]   ;;  %s18563_s1 = inlined_call_operand.hbm [shape: bf16[8,512,128], index: 1, kind: input, shape index: {}]   ;;  %s18564_s2 = inlined_call_operand.hbm [shape: bf16[5,128,256], index: 2, kind: input, shape index: {}]   ;;  %s18565_s3 = inlined_call_operand.hbm [shape: bf16[3,256,128], index: 3, kind: input, shape index: {}]   ;;  %s18566_s4 = inlined_call_operand.hbm [shape: f32[1,128], index: 4, kind: input, shape index: {}]   ;;  %s18567_s5 = inlined_call_operand.hbm [shape: f32[1,128], index: 5, kind: input, shape index: {}]   ;;  %s18568_s6 = inlined_call_operand.vmem [shape: f32[1,256], index: 6, kind: input, shape index: {}]   ;;  %s18569_s7 = inlined_call_operand.vmem [shape: f32[1,256], index: 7, kind: input, shape index: {}]   ;;  %s18570_s8 = inlined_call_operand.vmem [shape: f32[1,128], index: 8, kind: input, shape index: {}]   ;;  %s18571_s9 = inlined_call_operand.vmem [shape: f32[1,128], index: 9, kind: input, shape index: {}]   ;;  %s18572_s10 = inlined_call_operand.hbm [shape: f32[128,128], index: 10, kind: input, shape index: {}]   ;;  %s18573_s11 = inlined_call_operand.vmem [shape: f32[1,128], index: 11, kind: input, shape index: {}]   ;;  %s18574_s12 = inlined_call_operand.hbm [shape: f32[16,128], index: 12, kind: output, shape index: {}]  }
   0x1   :  { %18 = vsyncpa [#allocation8], 0 }
   0x2   :  { %19 = vsyncpa [#allocation11], 0 }
   0x3   :  { %20 = vsyncpa [#allocation14], 0  ;;  %s39_s23 = sshll.u32 %s18563_s1, 4  ;;  %s40_s23 = int_to_ptr.hbm [resolvable:$true] %s39_s23 }
   0x4   :  { %21 = vsyncpa [#allocation6], 0  ;;  %s16309_s24 = smov [#allocation7]   ;;  %s65_s28 = sshll.u32 %s18565_s3, 4  ;;  %s66_s28 = int_to_ptr.hbm [resolvable:$true] %s65_s28 }
   0x5   :  { %s41_s25 = sshll.u32 %s16309_s24, 4  ;;  %s16310_s29 = smov 64   ;;  %s42_s25 = int_to_ptr.vmem [resolvable:$true] %s41_s25 }
   0x6   :  { %s16311_s30 = smov 4   ;;  %s16312_s13 = smov [#allocation10]  }
   0x7   :  { %47 = dma.hbm_to_vmem [thread:$0]  %s40_s23, 32768, %s42_s25, [#allocation8], %s16310_s29, %s16310_s29, %s16311_s30  }
   0x8   :  { %s67_s14 = sshll.u32 %s16312_s13, 4  ;;  %s90_s17 = sshll.u32 %s18567_s5, 4  ;;  %s68_s14 = int_to_ptr.vmem [resolvable:$true] %s67_s14  ;;  %s91_s17 = int_to_ptr.hbm [resolvable:$true] %s90_s17 }
   0x9   :  { %73 = dma.hbm_to_vmem [thread:$0]  %s66_s28, 6144, %s68_s14, [#allocation11], %s16310_s29, %s16310_s29, %s16311_s30  }
   0xa   :  { %s26_s19 = sshll.u32 %s18562_s0, 4  ;;  %s16313_s20 = smov [#allocation13]   ;;  %s27_s19 = int_to_ptr.hbm [resolvable:$true] %s26_s19 }
   0xb   :  { %s92_s21 = sshll.u32 %s16313_s20, 4  ;;  %s16314_s3 = smov [#allocation4]   ;;  %s93_s21 = int_to_ptr.vmem [resolvable:$true] %s92_s21 }
   0xc   :  { %95 = dma.hbm_to_vmem [thread:$0]  %s91_s17, 16, %s93_s21, [#allocation14]  }
   0xd   :  { %s28_s22 = sshll.u32 %s16314_s3, 4  ;;  %s16315_s23 = smov 256   ;;  %s29_s22 = int_to_ptr.vmem [resolvable:$true] %s28_s22 }
   0xe   :  { %s16316_s24 = smov 16   ;;  %s52_s26 = sshll.u32 %s18564_s2, 4  ;;  %s53_s26 = int_to_ptr.hbm [resolvable:$true] %s52_s26 }
   0xf   :  { %34 = dma.hbm_to_vmem [thread:$0]  %s27_s19, 11776, %s29_s22, [#allocation5], %s16315_s23, %s16315_s23, %s16316_s24  }
  0x10   :  { %s16317_s27 = smov [#allocation9]   ;;  %s79_s30 = sshll.u32 %s18566_s4, 4  ;;  %s80_s30 = int_to_ptr.hbm [resolvable:$true] %s79_s30 }
  0x11   :  { %s54_s28 = sshll.u32 %s16317_s27, 4  ;;  %s16318_s13 = smov 128   ;;  %s55_s28 = int_to_ptr.vmem [resolvable:$true] %s54_s28 }
  0x12   :  { %s16319_s14 = smov 8   ;;  %s16320_s15 = smov [#allocation12]  }
  0x13   :  { %60 = dma.hbm_to_vmem [thread:$0]  %s53_s26, 10240, %s55_s28, [#allocation8], %s16318_s13, %s16318_s13, %s16319_s14  }
  0x14   :  { %s81_s16 = sshll.u32 %s16320_s15, 4  ;;  %s108_s2 = sshll.u32 %s18572_s10, 4  ;;  %s82_s16 = int_to_ptr.vmem [resolvable:$true] %s81_s16  ;;  %s109_s2 = int_to_ptr.hbm [resolvable:$true] %s108_s2 }
  0x15   :  { %84 = dma.hbm_to_vmem [thread:$0]  %s80_s30, 16, %s82_s16, [#allocation11]  }
  0x16   :  { %s16321_s18 = smov [#allocation15]  }
  0x17   :  { %s110_s19 = sshll.u32 %s16321_s18, 4  ;;  %s111_s19 = int_to_ptr.vmem [resolvable:$true] %s110_s19 }
  0x18   :  { %116 = dma.hbm_to_vmem [thread:$0]  %s109_s2, 2048, %s111_s19, [#allocation14], %s16318_s13, %s16318_s13, %s16319_s14  }
  0x19   :  { %16299 = dma.done.wait [#allocation5], 11776  }
  0x1a   :  { %16300 = vsyncadd [#allocation5], 4294955520 }
  0x1b   :  { %16301 = dma.done.wait [#allocation8], 43008  }
  0x1c   :  { %16302 = vsyncadd [#allocation8], 4294924288 }
  0x1d   :  { %16303 = dma.done.wait [#allocation11], 6160  }
  0x1e   :  { %16304 = vsyncadd [#allocation11], 4294961136 }
  0x1f   :  { %16305 = dma.done.wait [#allocation14], 2064  }
  0x20   :  { %16306 = vsyncadd [#allocation14], 4294965232  ;;  %v15175_v0 = vld [vmem:[#allocation7 + $0x138] sm:$0xff]  ;;  %v15174_v4 = vld [vmem:[#allocation7 + $0x130] sm:$0xff]  ;;  %s16323_s23 = smov [#allocation16]   ;;  %s11484_s26 = sshll.u32 %s18574_s12, 4  ;;  %s11485_s26 = int_to_ptr.hbm [resolvable:$true] %s11484_s26 }
  0x21   :  { %v15183_v1 = vld [vmem:[#allocation7 + $0x178] sm:$0xff]  ;;  %857 = vmatpush.bf16.msra.mxu0 %v15175_v0  ;;  %v15182_v5 = vld [vmem:[#allocation7 + $0x170] sm:$0xff]  ;;  %v15173_v8 = vld [vmem:[#allocation7 + $0x128] sm:$0xff]  ;;  %s11482_s24 = sshll.u32 %s16323_s23, 4  ;;  %s11483_s24 = int_to_ptr.vmem [resolvable:$true] %s11482_s24 }
  0x22   :  { %v15191_v2 = vld [vmem:[#allocation7 + $0x1b8] sm:$0xff]  ;;  %946 = vmatpush.bf16.msra.mxu1 %v15183_v1  ;;  %v15190_v6 = vld [vmem:[#allocation7 + $0x1b0] sm:$0xff]  ;;  %v15181_v9 = vld [vmem:[#allocation7 + $0x168] sm:$0xff] }
  0x23   :  { %v15199_v3 = vld [vmem:[#allocation7 + $0x1f8] sm:$0xff]  ;;  %1035 = vmatpush.bf16.msra.mxu2 %v15191_v2  ;;  %v15198_v7 = vld [vmem:[#allocation7 + $0x1f0] sm:$0xff]  ;;  %v15189_v10 = vld [vmem:[#allocation7 + $0x1a8] sm:$0xff] }
  0x24   :  { %1124 = vmatpush.bf16.msra.mxu3 %v15199_v3  ;;  %v15197_v11 = vld [vmem:[#allocation7 + $0x1e8] sm:$0xff]  ;;  %v15172_v12 = vld [vmem:[#allocation7 + $0x120] sm:$0xff]  ;;  %v15171_v16 = vld [vmem:[#allocation7 + $0x118] sm:$0xff] }
  0x25   :  { %858 = vmatpush.bf16.msra.mxu0 %v15174_v4  ;;  %v15180_v13 = vld [vmem:[#allocation7 + $0x160] sm:$0xff]  ;;  %v15179_v17 = vld [vmem:[#allocation7 + $0x158] sm:$0xff]  ;;  %v15170_v20 = vld [vmem:[#allocation7 + $0x110] sm:$0xff] }
  0x26   :  { %947 = vmatpush.bf16.msra.mxu1 %v15182_v5  ;;  %v15188_v14 = vld [vmem:[#allocation7 + $0x1a0] sm:$0xff]  ;;  %v15187_v18 = vld [vmem:[#allocation7 + $0x198] sm:$0xff]  ;;  %v15178_v21 = vld [vmem:[#allocation7 + $0x150] sm:$0xff] }
  0x27   :  { %1036 = vmatpush.bf16.msra.mxu2 %v15190_v6  ;;  %v15196_v15 = vld [vmem:[#allocation7 + $0x1e0] sm:$0xff]  ;;  %v15195_v19 = vld [vmem:[#allocation7 + $0x1d8] sm:$0xff]  ;;  %v15186_v22 = vld [vmem:[#allocation7 + $0x190] sm:$0xff] }
  0x28   :  { %1125 = vmatpush.bf16.msra.mxu3 %v15198_v7  ;;  %v15194_v23 = vld [vmem:[#allocation7 + $0x1d0] sm:$0xff]  ;;  %v15169_v24 = vld [vmem:[#allocation7 + $0x108] sm:$0xff]  ;;  %v15168_v28 = vld [vmem:[#allocation7 + $0x100] sm:$0xff] }
  0x29   :  { %859 = vmatpush.bf16.msra.mxu0 %v15173_v8  ;;  %v15177_v25 = vld [vmem:[#allocation7 + $0x148] sm:$0xff]  ;;  %v15176_v29 = vld [vmem:[#allocation7 + $0x140] sm:$0xff]  ;;  %v15074_v33 = vld [vmem:[#allocation4 + $0x2c] sm:$0xf0] }
  0x2a   :  { %948 = vmatpush.bf16.msra.mxu1 %v15181_v9  ;;  %v15185_v26 = vld [vmem:[#allocation7 + $0x188] sm:$0xff]  ;;  %v15184_v30 = vld [vmem:[#allocation7 + $0x180] sm:$0xff]  ;;  %v11504_v35 = vld [vmem:[#allocation4 + $0x30] sm:$0xf0] }
  0x2b   :  { %1037 = vmatpush.bf16.msra.mxu2 %v15189_v10  ;;  %v15193_v27 = vld [vmem:[#allocation7 + $0x1c8] sm:$0xff]  ;;  %v15192_v31 = vld [vmem:[#allocation7 + $0x1c0] sm:$0xff]  ;;  %v15075_v37 = vld [vmem:[#allocation4 + $0x34] sm:$0xf0] }
  0x2c   :  { %1126 = vmatpush.bf16.msra.mxu3 %v15197_v11  ;;  %v11502_v32 = vld [vmem:[#allocation4 + $0x20] sm:$0xf]  ;;  %v15072_v34 = vld [vmem:[#allocation4 + $0x24] sm:$0xf]  ;;  %v11510_v36 = vld [vmem:[#allocation4 + $0x28] sm:$0xf] }
  0x2d   :  { %860 = vmatpush.bf16.msra.mxu0 %v15172_v12  ;;  %v15073_v38 = vld [vmem:[#allocation4 + $0x2c] sm:$0xf]  ;;  %v11512_v39 = vld [vmem:[#allocation4 + $0x38] sm:$0xf0]  ;;  %v16416_v42 = vor.u32 %v15074_v33, %v11502_v32  ;;  %v16418_v43 = vor.u32 %v15072_v34, %v11504_v35  ;;  %v16420_v44 = vor.u32 %v15075_v37, %v11510_v36  ;;  %v15138_v46 = vld [vmem:[#allocation7 + $0x30] sm:$0xff] }
  0x2e   :  { %949 = vmatpush.bf16.msra.mxu1 %v15180_v13  ;;  %v15139_v40 = vld [vmem:[#allocation7 + $0x38] sm:$0xff]  ;;  %v16422_v45 = vor.u32 %v15073_v38, %v11512_v39  ;;  %v15146_v47 = vld [vmem:[#allocation7 + $0x70] sm:$0xff]  ;;  %v11518_v48 = vld [vmem:[#allocation4 + $0x40] sm:$0xf] }
  0x2f   :  { %1038 = vmatpush.bf16.msra.mxu2 %v15188_v14  ;;  %v15147_v41 = vld [vmem:[#allocation7 + $0x78] sm:$0xff]  ;;  %v15078_v49 = vld [vmem:[#allocation4 + $0x4c] sm:$0xf0]  ;;  %v15076_v50 = vld [vmem:[#allocation4 + $0x44] sm:$0xf] }
  0x30   :  { %1127 = vmatpush.bf16.msra.mxu3 %v15196_v15  ;;  %v11520_v51 = vld [vmem:[#allocation4 + $0x50] sm:$0xf0]  ;;  %v11526_v52 = vld [vmem:[#allocation4 + $0x48] sm:$0xf]  ;;  %v15079_v53 = vld [vmem:[#allocation4 + $0x54] sm:$0xf0]  ;;  %v16428_v56 = vor.u32 %v15078_v49, %v11518_v48 }
  0x31   :  { %861 = vmatpush.bf16.msra.mxu0 %v15171_v16  ;;  %v15077_v54 = vld [vmem:[#allocation4 + $0x4c] sm:$0xf]  ;;  %v11528_v55 = vld [vmem:[#allocation4 + $0x58] sm:$0xf0]  ;;  %v16430_v57 = vor.u32 %v15076_v50, %v11520_v51  ;;  %v16432_v58 = vor.u32 %v15079_v53, %v11526_v52  ;;  %v11534_v60 = vld [vmem:[#allocation4 + $0x60] sm:$0xf] }
  0x32   :  { %950 = vmatpush.bf16.msra.mxu1 %v15179_v17  ;;  %v16434_v59 = vor.u32 %v15077_v54, %v11528_v55  ;;  %v15082_v61 = vld [vmem:[#allocation4 + $0x6c] sm:$0xf0]  ;;  %v15080_v62 = vld [vmem:[#allocation4 + $0x64] sm:$0xf]  ;;  %v11536_v63 = vld [vmem:[#allocation4 + $0x70] sm:$0xf0] }
  0x33   :  { %1039 = vmatpush.bf16.msra.mxu2 %v15187_v18  ;;  %v11542_v0 = vld [vmem:[#allocation4 + $0x68] sm:$0xf]  ;;  %v15083_v1 = vld [vmem:[#allocation4 + $0x74] sm:$0xf0]  ;;  %v15081_v2 = vld [vmem:[#allocation4 + $0x6c] sm:$0xf]  ;;  %v16440_v4 = vor.u32 %v15082_v61, %v11534_v60  ;;  %v16442_v5 = vor.u32 %v15080_v62, %v11536_v63 }
  0x34   :  { %1128 = vmatpush.bf16.msra.mxu3 %v15195_v19  ;;  %v11544_v3 = vld [vmem:[#allocation4 + $0x78] sm:$0xf0]  ;;  %v16444_v6 = vor.u32 %v15083_v1, %v11542_v0  ;;  %v15137_v8 = vld [vmem:[#allocation7 + $0x28] sm:$0xff]  ;;  %v11550_v10 = vld [vmem:[#allocation4 + $0x80] sm:$0xf] }
  0x35   :  { %862 = vmatpush.bf16.msra.mxu0 %v15170_v20  ;;  %v16446_v7 = vor.u32 %v15081_v2, %v11544_v3  ;;  %v15145_v9 = vld [vmem:[#allocation7 + $0x68] sm:$0xff]  ;;  %v15086_v11 = vld [vmem:[#allocation4 + $0x8c] sm:$0xf0]  ;;  %v15084_v12 = vld [vmem:[#allocation4 + $0x84] sm:$0xf] }
  0x36   :  { %951 = vmatpush.bf16.msra.mxu1 %v15178_v21  ;;  %v11552_v13 = vld [vmem:[#allocation4 + $0x90] sm:$0xf0]  ;;  %v11558_v14 = vld [vmem:[#allocation4 + $0x88] sm:$0xf]  ;;  %v15087_v15 = vld [vmem:[#allocation4 + $0x94] sm:$0xf0]  ;;  %v16452_v18 = vor.u32 %v15086_v11, %v11550_v10 }
  0x37   :  { %1040 = vmatpush.bf16.msra.mxu2 %v15186_v22  ;;  %v15085_v16 = vld [vmem:[#allocation4 + $0x8c] sm:$0xf]  ;;  %v11560_v17 = vld [vmem:[#allocation4 + $0x98] sm:$0xf0]  ;;  %v16454_v19 = vor.u32 %v15084_v12, %v11552_v13  ;;  %v16456_v20 = vor.u32 %v15087_v15, %v11558_v14  ;;  %v11566_v22 = vld [vmem:[#allocation4 + $0xa0] sm:$0xf] }
  0x38   :  { %1129 = vmatpush.bf16.msra.mxu3 %v15194_v23  ;;  %v16458_v21 = vor.u32 %v15085_v16, %v11560_v17  ;;  %v15090_v23 = vld [vmem:[#allocation4 + $0xac] sm:$0xf0]  ;;  %v15136_v34 = vld [vmem:[#allocation7 + $0x20] sm:$0xff]  ;;  %v15155_v36 = vld [vmem:[#allocation7 + $0xb8] sm:$0xff] }
  0x39   :  { %863 = vmatpush.bf16.msra.mxu0 %v15169_v24  ;;  %v15088_v24 = vld [vmem:[#allocation4 + $0xa4] sm:$0xf]  ;;  %v15163_v37 = vld [vmem:[#allocation7 + $0xf8] sm:$0xff]  ;;  %v11582_v38 = vld [vmem:[#allocation4 + $0xc0] sm:$0xf] }
  0x3a   :  { %952 = vmatpush.bf16.msra.mxu1 %v15177_v25  ;;  %v11568_v25 = vld [vmem:[#allocation4 + $0xb0] sm:$0xf0]  ;;  %v15144_v35 = vld [vmem:[#allocation7 + $0x60] sm:$0xff]  ;;  %v15094_v39 = vld [vmem:[#allocation4 + $0xcc] sm:$0xf0] }
  0x3b   :  { %1041 = vmatpush.bf16.msra.mxu2 %v15185_v26  ;;  %v11574_v26 = vld [vmem:[#allocation4 + $0xa8] sm:$0xf]  ;;  %v15093_v48 = vld [vmem:[#allocation4 + $0xcc] sm:$0xf]  ;;  %v11592_v49 = vld [vmem:[#allocation4 + $0xd8] sm:$0xf0]  ;;  %v16476_v50 = vor.u32 %v15094_v39, %v11582_v38 }
  0x3c   :  { %1130 = vmatpush.bf16.msra.mxu3 %v15193_v27  ;;  %v15091_v27 = vld [vmem:[#allocation4 + $0xb4] sm:$0xf0]  ;;  %v16482_v53 = vor.u32 %v15093_v48, %v11592_v49  ;;  %v11598_v54 = vld [vmem:[#allocation4 + $0xe0] sm:$0xf]  ;;  %v15098_v55 = vld [vmem:[#allocation4 + $0xec] sm:$0xf0] }
  0x3d   :  { %864 = vmatpush.bf16.msra.mxu0 %v15168_v28  ;;  %v15089_v28 = vld [vmem:[#allocation4 + $0xac] sm:$0xf]  ;;  %v16468_v32 = vor.u32 %v15091_v27, %v11574_v26  ;;  %v15096_v60 = vld [vmem:[#allocation4 + $0xe4] sm:$0xf]  ;;  %v11600_v61 = vld [vmem:[#allocation4 + $0xf0] sm:$0xf0]  ;;  %v16488_v2 = vor.u32 %v15098_v55, %v11598_v54 }
  0x3e   :  { %953 = vmatpush.bf16.msra.mxu1 %v15176_v29  ;;  %v11576_v29 = vld [vmem:[#allocation4 + $0xb8] sm:$0xf0]  ;;  %v11606_v62 = vld [vmem:[#allocation4 + $0xe8] sm:$0xf]  ;;  %v15099_v63 = vld [vmem:[#allocation4 + $0xf4] sm:$0xf0]  ;;  %v16490_v3 = vor.u32 %v15096_v60, %v11600_v61 }
  0x3f   :  { %1042 = vmatpush.bf16.msra.mxu2 %v15184_v30  ;;  %v16464_v30 = vor.u32 %v15090_v23, %v11566_v22  ;;  %v16470_v33 = vor.u32 %v15089_v28, %v11576_v29  ;;  %v15097_v0 = vld [vmem:[#allocation4 + $0xec] sm:$0xf]  ;;  %v11608_v1 = vld [vmem:[#allocation4 + $0xf8] sm:$0xf0]  ;;  %v11614_v12 = vld [vmem:[#allocation4 + $0x100] sm:$0xf] }
  0x40   :  { %1131 = vmatpush.bf16.msra.mxu3 %v15192_v31  ;;  %865 = vmatmul.bf16.vlgmr.msra.gmra.mxu0 %v16416_v42  ;;  %v16466_v31 = vor.u32 %v15088_v24, %v11568_v25  ;;  %v15135_v10 = vld [vmem:[#allocation7 + $0x18] sm:$0xff]  ;;  %v15102_v13 = vld [vmem:[#allocation4 + $0x10c] sm:$0xf0]  ;;  %v15100_v14 = vld [vmem:[#allocation4 + $0x104] sm:$0xf] }
  0x41   :  { %1425 = vmatpush.bf16.msrb.mxu0 %v15139_v40  ;;  %954 = vmatmul.bf16.vlgmr.msra.gmra.mxu1 %v16418_v43  ;;  %v15092_v40 = vld [vmem:[#allocation4 + $0xc4] sm:$0xf]  ;;  %v15143_v11 = vld [vmem:[#allocation7 + $0x58] sm:$0xff]  ;;  %v11616_v15 = vld [vmem:[#allocation4 + $0x110] sm:$0xf0]  ;;  %v16500_v24 = vor.u32 %v15102_v13, %v11614_v12 }
  0x42   :  { %1514 = vmatpush.bf16.msrb.mxu1 %v15147_v41  ;;  %1043 = vmatmul.bf16.vlgmr.msra.gmra.mxu2 %v16420_v44  ;;  %v11584_v41 = vld [vmem:[#allocation4 + $0xd0] sm:$0xf0]  ;;  %v11622_v16 = vld [vmem:[#allocation4 + $0x108] sm:$0xf]  ;;  %v15103_v17 = vld [vmem:[#allocation4 + $0x114] sm:$0xf0]  ;;  %v16502_v25 = vor.u32 %v15100_v14, %v11616_v15 }
  0x43   :  { %1132 = vmatmul.bf16.vlgmr.msra.gmra.mxu3 %v16422_v45  ;;  %1603 = vmatpush.bf16.msrb.mxu2 %v15155_v36  ;;  %v16478_v51 = vor.u32 %v15092_v40, %v11584_v41  ;;  %v15101_v22 = vld [vmem:[#allocation4 + $0x10c] sm:$0xf]  ;;  %v11624_v23 = vld [vmem:[#allocation4 + $0x118] sm:$0xf0]  ;;  %v16504_v26 = vor.u32 %v15103_v17, %v11622_v16  ;;  %v15154_v28 = vld [vmem:[#allocation7 + $0xb0] sm:$0xff] }
  0x44   :  { %1692 = vmatpush.bf16.msrb.mxu3 %v15163_v37  ;;  %v16506_v27 = vor.u32 %v15101_v22, %v11624_v23  ;;  %v15162_v29 = vld [vmem:[#allocation7 + $0xf0] sm:$0xff]  ;;  %v15104_v36 = vld [vmem:[#allocation4 + $0x124] sm:$0xf]  ;;  %v11638_v38 = vld [vmem:[#allocation4 + $0x128] sm:$0xf] }
  0x45   :  { %1426 = vmatpush.bf16.msrb.mxu0 %v15138_v46  ;;  %v11590_v46 = vld [vmem:[#allocation4 + $0xc8] sm:$0xf]  ;;  %v11632_v37 = vld [vmem:[#allocation4 + $0x130] sm:$0xf0]  ;;  %v15107_v39 = vld [vmem:[#allocation4 + $0x134] sm:$0xf0] }
  0x46   :  { %1515 = vmatpush.bf16.msrb.mxu1 %v15146_v47  ;;  %v15095_v47 = vld [vmem:[#allocation4 + $0xd4] sm:$0xf0]  ;;  %v15105_v40 = vld [vmem:[#allocation4 + $0x12c] sm:$0xf]  ;;  %v11640_v41 = vld [vmem:[#allocation4 + $0x138] sm:$0xf0]  ;;  %v16516_v54 = vor.u32 %v15107_v39, %v11638_v38 }
  0x47   :  { %v16480_v52 = vor.u32 %v15095_v47, %v11590_v46  ;;  %1604 = vmatpush.bf16.msrb.mxu2 %v15154_v28  ;;  %v16514_v47 = vor.u32 %v15104_v36, %v11632_v37  ;;  %v16518_v55 = vor.u32 %v15105_v40, %v11640_v41  ;;  %v15134_v61 = vld [vmem:[#allocation7 + $0x10] sm:$0xff]  ;;  %v11646_v14 = vld [vmem:[#allocation4 + $0x140] sm:$0xf]  ;;  %v15108_v16 = vld [vmem:[#allocation4 + $0x144] sm:$0xf] }
  0x48   :  { %1693 = vmatpush.bf16.msrb.mxu3 %v15162_v29  ;;  %v15110_v15 = vld [vmem:[#allocation4 + $0x14c] sm:$0xf0]  ;;  %v11648_v17 = vld [vmem:[#allocation4 + $0x150] sm:$0xf0]  ;;  %v11654_v22 = vld [vmem:[#allocation4 + $0x148] sm:$0xf] }
  0x49   :  { %1427 = vmatpush.bf16.msrb.mxu0 %v15137_v8  ;;  %v16492_v8 = vor.u32 %v15099_v63, %v11606_v62  ;;  %18600 = vst [vmem:[#allocation22_spill] sm:$0xff] %v16518_v55  ;;  %v15142_v62 = vld [vmem:[#allocation7 + $0x50] sm:$0xff]  ;;  %v15111_v23 = vld [vmem:[#allocation4 + $0x154] sm:$0xf0]  ;;  %v15109_v28 = vld [vmem:[#allocation4 + $0x14c] sm:$0xf]  ;;  %v16526_v36 = vor.u32 %v15110_v15, %v11646_v14  ;;  %v16528_v37 = vor.u32 %v15108_v16, %v11648_v17 }
  0x4a   :  { %1516 = vmatpush.bf16.msrb.mxu1 %v15145_v9  ;;  %v16494_v9 = vor.u32 %v15097_v0, %v11608_v1  ;;  %v11656_v29 = vld [vmem:[#allocation4 + $0x158] sm:$0xf0]  ;;  %v16530_v41 = vor.u32 %v15111_v23, %v11654_v22  ;;  %v11662_v15 = vld [vmem:[#allocation4 + $0x160] sm:$0xf]  ;;  %v15114_v16 = vld [vmem:[#allocation4 + $0x16c] sm:$0xf0] }
  0x4b   :  { %18601 = vst [vmem:[#allocation23_spill] sm:$0xff] %v16526_v36  ;;  %v15112_v17 = vld [vmem:[#allocation4 + $0x164] sm:$0xf]  ;;  %v11664_v22 = vld [vmem:[#allocation4 + $0x170] sm:$0xf0] }
  0x4c   :  { %18602 = vst [vmem:[#allocation24_spill] sm:$0xff] %v16528_v37  ;;  %v11670_v23 = vld [vmem:[#allocation4 + $0x168] sm:$0xf] }
  0x4d   :  { %1428 = vmatpush.bf16.msrb.mxu0 %v15136_v34  ;;  %v11630_v34 = vld [vmem:[#allocation4 + $0x120] sm:$0xf]  ;;  %18603 = vst [vmem:[#allocation25_spill] sm:$0xff] %v16530_v41 }
  0x4e   :  { %1517 = vmatpush.bf16.msrb.mxu1 %v15144_v35  ;;  %v15106_v35 = vld [vmem:[#allocation4 + $0x12c] sm:$0xf0] }
  0x4f   :  { %v16512_v46 = vor.u32 %v15106_v35, %v11630_v34 }
  0x50   :  { %870 = vmatmul.bf16.gmra.mxu0 %v16428_v56 }
  0x51   :  { %959 = vmatmul.bf16.gmra.mxu1 %v16430_v57  ;;  %1429 = vmatpush.bf16.msrb.mxu0 %v15135_v10 }
  0x52   :  { %1048 = vmatmul.bf16.gmra.mxu2 %v16432_v58  ;;  %1518 = vmatpush.bf16.msrb.mxu1 %v15143_v11 }
  0x53   :  { %1137 = vmatmul.bf16.gmra.mxu3 %v16434_v59 }
  0x55   :  { %1430 = vmatpush.bf16.msrb.mxu0 %v15134_v61  ;;  %v15153_v61 = vld [vmem:[#allocation7 + $0xa8] sm:$0xff] }
  0x56   :  { %1519 = vmatpush.bf16.msrb.mxu1 %v15142_v62  ;;  %v15161_v62 = vld [vmem:[#allocation7 + $0xe8] sm:$0xff]  ;;  %1605 = vmatpush.bf16.msrb.mxu2 %v15153_v61 }
  0x57   :  { %1694 = vmatpush.bf16.msrb.mxu3 %v15161_v62 }
  0x60   :  { %875 = vmatmul.bf16.gmra.mxu0 %v16440_v4 }
  0x61   :  { %964 = vmatmul.bf16.gmra.mxu1 %v16442_v5 }
  0x62   :  { %1053 = vmatmul.bf16.gmra.mxu2 %v16444_v6 }
  0x63   :  { %1142 = vmatmul.bf16.gmra.mxu3 %v16446_v7 }
  0x70   :  { %880 = vmatmul.bf16.gmra.mxu0 %v16452_v18 }
  0x71   :  { %969 = vmatmul.bf16.gmra.mxu1 %v16454_v19 }
  0x72   :  { %1058 = vmatmul.bf16.gmra.mxu2 %v16456_v20 }
  0x73   :  { %1147 = vmatmul.bf16.gmra.mxu3 %v16458_v21 }
  0x80   :  { %885 = vmatmul.bf16.gmra.mxu0 %v16464_v30 }
  0x81   :  { %974 = vmatmul.bf16.gmra.mxu1 %v16466_v31 }
  0x82   :  { %1063 = vmatmul.bf16.gmra.mxu2 %v16468_v32 }
  0x83   :  { %1152 = vmatmul.bf16.gmra.mxu3 %v16470_v33 }
  0x90   :  { %890 = vmatmul.bf16.gmra.mxu0 %v16476_v50 }
  0x91   :  { %979 = vmatmul.bf16.gmra.mxu1 %v16478_v51 }
  0x92   :  { %1068 = vmatmul.bf16.gmra.mxu2 %v16480_v52 }
  0x93   :  { %1157 = vmatmul.bf16.gmra.mxu3 %v16482_v53 }
  0xa0   :  { %895 = vmatmul.bf16.gmra.mxu0 %v16488_v2 }
  0xa1   :  { %984 = vmatmul.bf16.gmra.mxu1 %v16490_v3 }
  0xa2   :  { %1073 = vmatmul.bf16.gmra.mxu2 %v16492_v8 }
  0xa3   :  { %1162 = vmatmul.bf16.gmra.mxu3 %v16494_v9 }
  0xb0   :  { %900 = vmatmul.bf16.gmra.mxu0 %v16500_v24 }
  0xb1   :  { %989 = vmatmul.bf16.gmra.mxu1 %v16502_v25 }
  0xb2   :  { %1078 = vmatmul.bf16.gmra.mxu2 %v16504_v26 }
  0xb3   :  { %1167 = vmatmul.bf16.gmra.mxu3 %v16506_v27 }
  0xbd   :  { %v866_v48 = vpop.f32.mrf.mxu0 }
  0xbe   :  { %v955_v49 = vpop.f32.mrf.mxu1 }
  0xbf   :  { %v956_v60 = vadd.f32 %v955_v49, %v866_v48  ;;  %v16532_v48 = vor.u32 %v15109_v28, %v11656_v29  ;;  %v15115_v28 = vld [vmem:[#allocation4 + $0x174] sm:$0xf0]  ;;  %v15113_v29 = vld [vmem:[#allocation4 + $0x16c] sm:$0xf] }
  0xc0   :  { %905 = vmatmul.bf16.gmra.mxu0 %v16512_v46 }
  0xc1   :  { %994 = vmatmul.bf16.gmra.mxu1 %v16514_v47  ;;  %18604 = vst [vmem:[#allocation26_spill] sm:$0xff] %v16532_v48 }
  0xc2   :  { %1083 = vmatmul.bf16.gmra.mxu2 %v16516_v54 }
  0xc3   :  { %1172 = vmatmul.bf16.gmra.mxu3 %v16518_v55 }
  0xc5   :  { %v1044_v63 = vpop.f32.mrf.mxu2  ;;  %v868_v10 = vpop.f32.mrf.mxu0 }
  0xc6   :  { %v1133_v0 = vpop.f32.mrf.mxu3  ;;  %v1045_v1 = vadd.f32 %v1044_v63, %v956_v60  ;;  %v957_v11 = vpop.f32.mrf.mxu1 }
  0xc7   :  { %v958_v12 = vadd.f32 %v957_v11, %v868_v10 }
  0xc8   :  { %v16524_v13 = vadd.f32 %v1133_v0, %v1045_v1 }
  0xcd   :  { %v1046_v34 = vpop.f32.mrf.mxu2  ;;  %v871_v39 = vpop.f32.mrf.mxu0 }
  0xce   :  { %v1135_v35 = vpop.f32.mrf.mxu3  ;;  %v1047_v38 = vadd.f32 %v1046_v34, %v958_v12  ;;  %v960_v40 = vpop.f32.mrf.mxu1  ;;  %v11672_v34 = vld [vmem:[#allocation4 + $0x178] sm:$0xf0] }
  0xcf   :  { %v961_v49 = vadd.f32 %v960_v40, %v871_v39  ;;  %v16542_v39 = vor.u32 %v15114_v16, %v11662_v15  ;;  %v16544_v40 = vor.u32 %v15112_v17, %v11664_v22  ;;  %v15141_v15 = vld [vmem:[#allocation7 + $0x48] sm:$0xff] }
  0xd0   :  { %v16534_v60 = vadd.f32 %v1135_v35, %v1047_v38  ;;  %910 = vmatmul.bf16.gmra.mxu0 %v16526_v36  ;;  %1520 = vmatpush.bf16.msrb.mxu1 %v15141_v15 }
  0xd1   :  { %999 = vmatmul.bf16.gmra.mxu1 %v16528_v37  ;;  %18605 = vst [vmem:[#allocation27_spill] sm:$0xff] %v16542_v39  ;;  %v15160_v37 = vld [vmem:[#allocation7 + $0xe0] sm:$0xff] }
  0xd2   :  { %1088 = vmatmul.bf16.gmra.mxu2 %v16530_v41  ;;  %18606 = vst [vmem:[#allocation28_spill] sm:$0xff] %v16544_v40  ;;  %v15152_v41 = vld [vmem:[#allocation7 + $0xa0] sm:$0xff]  ;;  %1695 = vmatpush.bf16.msrb.mxu3 %v15160_v37 }
  0xd3   :  { %1177 = vmatmul.bf16.gmra.mxu3 %v16532_v48  ;;  %1606 = vmatpush.bf16.msrb.mxu2 %v15152_v41 }
  0xd5   :  { %v1049_v63 = vpop.f32.mrf.mxu2  ;;  %v873_v10 = vpop.f32.mrf.mxu0 }
  0xd6   :  { %v1138_v0 = vpop.f32.mrf.mxu3  ;;  %v1050_v1 = vadd.f32 %v1049_v63, %v961_v49  ;;  %v962_v11 = vpop.f32.mrf.mxu1  ;;  %v16546_v63 = vor.u32 %v15115_v28, %v11670_v23 }
  0xd7   :  { %v963_v12 = vadd.f32 %v962_v11, %v873_v10  ;;  %v15133_v11 = vld [vmem:[#allocation7 + $0x8] sm:$0xff] }
  0xd8   :  { %v16540_v14 = vadd.f32 %v1138_v0, %v1050_v1  ;;  %18607 = vst [vmem:[#allocation29_spill] sm:$0xff] %v16546_v63  ;;  %v16548_v0 = vor.u32 %v15113_v29, %v11672_v34  ;;  %1431 = vmatpush.bf16.msrb.mxu0 %v15133_v11  ;;  %v11678_v34 = vld [vmem:[#allocation4 + $0x180] sm:$0xf] }
  0xda   :  { %18608 = vst [vmem:[#allocation30_spill] sm:$0xff] %v16548_v0 }
  0xdd   :  { %v1051_v35 = vpop.f32.mrf.mxu2  ;;  %v876_v61 = vpop.f32.mrf.mxu0 }
  0xde   :  { %v1140_v38 = vpop.f32.mrf.mxu3  ;;  %v1052_v49 = vadd.f32 %v1051_v35, %v963_v12  ;;  %v965_v62 = vpop.f32.mrf.mxu1  ;;  %v15118_v35 = vld [vmem:[#allocation4 + $0x18c] sm:$0xf0] }
  0xdf   :  { %v966_v1 = vadd.f32 %v965_v62, %v876_v61  ;;  %v11686_v61 = vld [vmem:[#allocation4 + $0x188] sm:$0xf]  ;;  %v15119_v62 = vld [vmem:[#allocation4 + $0x194] sm:$0xf0]  ;;  %v16558_v11 = vor.u32 %v15118_v35, %v11678_v34  ;;  %v11694_v35 = vld [vmem:[#allocation4 + $0x1a0] sm:$0xf] }
  0xe0   :  { %v16550_v10 = vadd.f32 %v1140_v38, %v1052_v49  ;;  %915 = vmatmul.bf16.gmra.mxu0 %v16542_v39  ;;  %v15116_v38 = vld [vmem:[#allocation4 + $0x184] sm:$0xf]  ;;  %v11680_v49 = vld [vmem:[#allocation4 + $0x190] sm:$0xf0] }
  0xe1   :  { %1004 = vmatmul.bf16.gmra.mxu1 %v16544_v40  ;;  %18611 = vst [vmem:[#allocation33_spill] sm:$0xff] %v16558_v11  ;;  %v16560_v15 = vor.u32 %v15116_v38, %v11680_v49  ;;  %v15122_v38 = vld [vmem:[#allocation4 + $0x1ac] sm:$0xf0]  ;;  %v15120_v49 = vld [vmem:[#allocation4 + $0x1a4] sm:$0xf] }
  0xe2   :  { %18609 = vst [vmem:[#allocation31_spill] sm:$0xff] %v16550_v10  ;;  %1093 = vmatmul.bf16.gmra.mxu2 %v16546_v63  ;;  %v15117_v63 = vld [vmem:[#allocation4 + $0x18c] sm:$0xf]  ;;  %v16574_v41 = vor.u32 %v15122_v38, %v11694_v35  ;;  %v15132_v35 = vld [vmem:[#allocation7] sm:$0xff] }
  0xe3   :  { %1182 = vmatmul.bf16.gmra.mxu3 %v16548_v0  ;;  %v11688_v0 = vld [vmem:[#allocation4 + $0x198] sm:$0xf0]  ;;  %18612 = vst [vmem:[#allocation34_spill] sm:$0xff] %v16560_v15  ;;  %v15140_v38 = vld [vmem:[#allocation7 + $0x40] sm:$0xff]  ;;  %1432 = vmatpush.bf16.msrb.mxu0 %v15132_v35 }
  0xe4   :  { %18617 = vst [vmem:[#allocation39_spill] sm:$0xff] %v16574_v41  ;;  %1521 = vmatpush.bf16.msrb.mxu1 %v15140_v38 }
  0xe5   :  { %v1054_v12 = vpop.f32.mrf.mxu2  ;;  %v878_v22 = vpop.f32.mrf.mxu0 }
  0xe6   :  { %v1143_v16 = vpop.f32.mrf.mxu3  ;;  %v1055_v17 = vadd.f32 %v1054_v12, %v966_v1  ;;  %v967_v23 = vpop.f32.mrf.mxu1 }
  0xe7   :  { %v968_v28 = vadd.f32 %v967_v23, %v878_v22  ;;  %v16562_v22 = vor.u32 %v15119_v62, %v11686_v61  ;;  %v11696_v61 = vld [vmem:[#allocation4 + $0x1b0] sm:$0xf0]  ;;  %v11702_v62 = vld [vmem:[#allocation4 + $0x1a8] sm:$0xf] }
  0xe8   :  { %v16556_v29 = vadd.f32 %v1143_v16, %v1055_v17  ;;  %v16564_v16 = vor.u32 %v15117_v63, %v11688_v0  ;;  %v16576_v37 = vor.u32 %v15120_v49, %v11696_v61 }
  0xe9   :  { %18613 = vst [vmem:[#allocation35_spill] sm:$0xff] %v16562_v22 }
  0xea   :  { %18610 = vst [vmem:[#allocation32_spill] sm:$0xff] %v16556_v29 }
  0xeb   :  { %18614 = vst [vmem:[#allocation36_spill] sm:$0xff] %v16564_v16 }
  0xec   :  { %18618 = vst [vmem:[#allocation40_spill] sm:$0xff] %v16576_v37 }
  0xed   :  { %v1056_v40 = vpop.f32.mrf.mxu2  ;;  %v881_v12 = vpop.f32.mrf.mxu0 }
  0xee   :  { %v1145_v39 = vpop.f32.mrf.mxu3  ;;  %v1057_v1 = vadd.f32 %v1056_v40, %v968_v28  ;;  %v970_v48 = vpop.f32.mrf.mxu1 }
  0xef   :  { %v971_v17 = vadd.f32 %v970_v48, %v881_v12  ;;  %v15121_v12 = vld [vmem:[#allocation4 + $0x1ac] sm:$0xf] }
  0xf0   :  { %v16566_v23 = vadd.f32 %v1145_v39, %v1057_v1  ;;  %920 = vmatmul.bf16.gmra.mxu0 %v16558_v11  ;;  %v15123_v1 = vld [vmem:[#allocation4 + $0x1b4] sm:$0xf0] }
  0xf1   :  { %1009 = vmatmul.bf16.gmra.mxu1 %v16560_v15 }
  0xf2   :  { %18615 = vst [vmem:[#allocation37_spill] sm:$0xff] %v16566_v23  ;;  %1098 = vmatmul.bf16.gmra.mxu2 %v16562_v22  ;;  %v11704_v22 = vld [vmem:[#allocation4 + $0x1b8] sm:$0xf0] }
  0xf3   :  { %1187 = vmatmul.bf16.gmra.mxu3 %v16564_v16  ;;  %v15159_v23 = vld [vmem:[#allocation7 + $0xd8] sm:$0xff] }
  0xf4   :  { %1696 = vmatpush.bf16.msrb.mxu3 %v15159_v23  ;;  %v15131_v23 = vld [vmem:[#allocation4 + $0x1f4] sm:$0xf0] }
  0xf5   :  { %v1059_v40 = vpop.f32.mrf.mxu2  ;;  %v883_v63 = vpop.f32.mrf.mxu0 }
  0xf6   :  { %v1148_v28 = vpop.f32.mrf.mxu3  ;;  %v1060_v34 = vadd.f32 %v1059_v40, %v971_v17  ;;  %v972_v0 = vpop.f32.mrf.mxu1 }
  0xf7   :  { %v973_v48 = vadd.f32 %v972_v0, %v883_v63  ;;  %v16578_v63 = vor.u32 %v15123_v1, %v11702_v62  ;;  %v11710_v62 = vld [vmem:[#allocation4 + $0x1c0] sm:$0xf]  ;;  %v15126_v1 = vld [vmem:[#allocation4 + $0x1cc] sm:$0xf0] }
  0xf8   :  { %v16572_v39 = vadd.f32 %v1148_v28, %v1060_v34  ;;  %v16580_v28 = vor.u32 %v15121_v12, %v11704_v22  ;;  %v15124_v12 = vld [vmem:[#allocation4 + $0x1c4] sm:$0xf]  ;;  %v16590_v35 = vor.u32 %v15126_v1, %v11710_v62 }
  0xf9   :  { %18619 = vst [vmem:[#allocation41_spill] sm:$0xff] %v16578_v63 }
  0xfa   :  { %18616 = vst [vmem:[#allocation38_spill] sm:$0xff] %v16572_v39 }
  0xfb   :  { %18620 = vst [vmem:[#allocation42_spill] sm:$0xff] %v16580_v28 }
  0xfc   :  { %18623 = vst [vmem:[#allocation45_spill] sm:$0xff] %v16590_v35 }
  0xfd   :  { %v1061_v15 = vpop.f32.mrf.mxu2  ;;  %v886_v40 = vpop.f32.mrf.mxu0 }
  0xfe   :  { %v1150_v16 = vpop.f32.mrf.mxu3  ;;  %v1062_v17 = vadd.f32 %v1061_v15, %v973_v48  ;;  %v975_v11 = vpop.f32.mrf.mxu1 }
  0xff   :  { %v976_v34 = vadd.f32 %v975_v11, %v886_v40  ;;  %v11718_v40 = vld [vmem:[#allocation4 + $0x1c8] sm:$0xf] }
 0x100   :  { %v16582_v0 = vadd.f32 %v1150_v16, %v1062_v17  ;;  %925 = vmatmul.bf16.gmra.mxu0 %v16574_v41  ;;  %v11712_v17 = vld [vmem:[#allocation4 + $0x1d0] sm:$0xf0] }
 0x101   :  { %1014 = vmatmul.bf16.gmra.mxu1 %v16576_v37  ;;  %v15125_v37 = vld [vmem:[#allocation4 + $0x1cc] sm:$0xf]  ;;  %v16592_v38 = vor.u32 %v15124_v12, %v11712_v17 }
 0x102   :  { %18621 = vst [vmem:[#allocation43_spill] sm:$0xff] %v16582_v0  ;;  %1103 = vmatmul.bf16.gmra.mxu2 %v16578_v63  ;;  %v15127_v63 = vld [vmem:[#allocation4 + $0x1d4] sm:$0xf0]  ;;  %v15149_v12 = vld [vmem:[#allocation7 + $0x88] sm:$0xff] }
 0x103   :  { %1192 = vmatmul.bf16.gmra.mxu3 %v16580_v28  ;;  %v11720_v28 = vld [vmem:[#allocation4 + $0x1d8] sm:$0xf0]  ;;  %18624 = vst [vmem:[#allocation46_spill] sm:$0xff] %v16592_v38  ;;  %v15157_v17 = vld [vmem:[#allocation7 + $0xc8] sm:$0xff] }
 0x105   :  { %v1064_v15 = vpop.f32.mrf.mxu2  ;;  %v888_v22 = vpop.f32.mrf.mxu0 }
 0x106   :  { %v1153_v48 = vpop.f32.mrf.mxu3  ;;  %v1065_v49 = vadd.f32 %v1064_v15, %v976_v34  ;;  %v977_v61 = vpop.f32.mrf.mxu1 }
 0x107   :  { %v978_v11 = vadd.f32 %v977_v61, %v888_v22  ;;  %v16594_v22 = vor.u32 %v15127_v63, %v11718_v40  ;;  %v11726_v40 = vld [vmem:[#allocation4 + $0x1e0] sm:$0xf] }
 0x108   :  { %v16588_v16 = vadd.f32 %v1153_v48, %v1065_v49  ;;  %v16596_v48 = vor.u32 %v15125_v37, %v11720_v28  ;;  %v15158_v37 = vld [vmem:[#allocation7 + $0xd0] sm:$0xff] }
 0x109   :  { %18625 = vst [vmem:[#allocation47_spill] sm:$0xff] %v16594_v22  ;;  %1697 = vmatpush.bf16.msrb.mxu3 %v15158_v37  ;;  %v15156_v37 = vld [vmem:[#allocation7 + $0xc0] sm:$0xff] }
 0x10a   :  { %18622 = vst [vmem:[#allocation44_spill] sm:$0xff] %v16588_v16  ;;  %v15151_v16 = vld [vmem:[#allocation7 + $0x98] sm:$0xff] }
 0x10b   :  { %18626 = vst [vmem:[#allocation48_spill] sm:$0xff] %v16596_v48  ;;  %1607 = vmatpush.bf16.msrb.mxu2 %v15151_v16  ;;  %v11734_v16 = vld [vmem:[#allocation4 + $0x1e8] sm:$0xf] }
 0x10d   :  { %v1066_v41 = vpop.f32.mrf.mxu2  ;;  %v891_v15 = vpop.f32.mrf.mxu0  ;;  %1698 = vmatpush.bf16.msrb.mxu3 %v15157_v17 }
 0x10e   :  { %v1155_v0 = vpop.f32.mrf.mxu3  ;;  %v1067_v34 = vadd.f32 %v1066_v41, %v978_v11  ;;  %v980_v39 = vpop.f32.mrf.mxu1  ;;  %v15150_v11 = vld [vmem:[#allocation7 + $0x90] sm:$0xff] }
 0x10f   :  { %v981_v49 = vadd.f32 %v980_v39, %v891_v15  ;;  %1608 = vmatpush.bf16.msrb.mxu2 %v15150_v11  ;;  %v15128_v15 = vld [vmem:[#allocation4 + $0x1e4] sm:$0xf] }
 0x110   :  { %v16598_v61 = vadd.f32 %v1155_v0, %v1067_v34  ;;  %930 = vmatmul.bf16.gmra.mxu0 %v16590_v35  ;;  %v15130_v34 = vld [vmem:[#allocation4 + $0x1ec] sm:$0xf0] }
 0x111   :  { %1019 = vmatmul.bf16.gmra.mxu1 %v16592_v38  ;;  %v11736_v38 = vld [vmem:[#allocation4 + $0x1f8] sm:$0xf0]  ;;  %v16606_v35 = vor.u32 %v15130_v34, %v11726_v40  ;;  %1699 = vmatpush.bf16.msrb.mxu3 %v15156_v37  ;;  %v11750_v37 = vld [vmem:[#allocation4 + $0x208] sm:$0xf] }
 0x112   :  { %18627 = vst [vmem:[#allocation49_spill] sm:$0xff] %v16598_v61  ;;  %1108 = vmatmul.bf16.gmra.mxu2 %v16594_v22  ;;  %v15129_v22 = vld [vmem:[#allocation4 + $0x1ec] sm:$0xf] }
 0x113   :  { %1197 = vmatmul.bf16.gmra.mxu3 %v16596_v48  ;;  %v11728_v48 = vld [vmem:[#allocation4 + $0x1f0] sm:$0xf0]  ;;  %1609 = vmatpush.bf16.msrb.mxu2 %v15149_v12  ;;  %18629 = vst [vmem:[#allocation51_spill] sm:$0xff] %v16606_v35  ;;  %v16612_v61 = vor.u32 %v15129_v22, %v11736_v38 }
 0x114   :  { %v16608_v11 = vor.u32 %v15128_v15, %v11728_v48  ;;  %v15271_v48 = vld [vmem:[#allocation7 + $0x238] sm:$0xff] }
 0x115   :  { %v1069_v41 = vpop.f32.mrf.mxu2  ;;  %v893_v39 = vpop.f32.mrf.mxu0  ;;  %18632 = vst [vmem:[#allocation54_spill] sm:$0xff] %v16612_v61  ;;  %2422 = vmatpush.bf16.msra.mxu0 %v15271_v48 }
 0x116   :  { %v1158_v63 = vpop.f32.mrf.mxu3  ;;  %v1070_v28 = vadd.f32 %v1069_v41, %v981_v49  ;;  %v982_v0 = vpop.f32.mrf.mxu1  ;;  %18630 = vst [vmem:[#allocation52_spill] sm:$0xff] %v16608_v11 }
 0x117   :  { %v983_v62 = vadd.f32 %v982_v0, %v893_v39 }
 0x118   :  { %v16604_v1 = vadd.f32 %v1158_v63, %v1070_v28  ;;  %v15148_v63 = vld [vmem:[#allocation7 + $0x80] sm:$0xff] }
 0x119   :  { %1610 = vmatpush.bf16.msrb.mxu2 %v15148_v63  ;;  %v11744_v63 = vld [vmem:[#allocation4 + $0x210] sm:$0xf0] }
 0x11a   :  { %18628 = vst [vmem:[#allocation50_spill] sm:$0xff] %v16604_v1  ;;  %v16610_v1 = vor.u32 %v15131_v23, %v11734_v16  ;;  %v11742_v23 = vld [vmem:[#allocation4 + $0x200] sm:$0xf] }
 0x11c   :  { %18631 = vst [vmem:[#allocation53_spill] sm:$0xff] %v16610_v1 }
 0x11d   :  { %v1071_v49 = vpop.f32.mrf.mxu2  ;;  %v896_v39 = vpop.f32.mrf.mxu0 }
 0x11e   :  { %v1160_v41 = vpop.f32.mrf.mxu3  ;;  %v1072_v28 = vadd.f32 %v1071_v49, %v983_v62  ;;  %v985_v0 = vpop.f32.mrf.mxu1  ;;  %v15279_v62 = vld [vmem:[#allocation7 + $0x278] sm:$0xff]  ;;  %v15166_v49 = vld [vmem:[#allocation4 + $0x20c] sm:$0xf0] }
 0x11f   :  { %v986_v36 = vadd.f32 %v985_v0, %v896_v39  ;;  %2511 = vmatpush.bf16.msra.mxu1 %v15279_v62  ;;  %v15165_v39 = vld [vmem:[#allocation4 + $0x20c] sm:$0xf]  ;;  %v11752_v0 = vld [vmem:[#allocation4 + $0x218] sm:$0xf0]  ;;  %v11743_v48 = vor.u32 %v15166_v49, %v11742_v23  ;;  %v15068_v49 = vld [vmem:[#allocation4 + $0x4] sm:$0xf] }
 0x120   :  { %v16614_v12 = vadd.f32 %v1160_v41, %v1072_v28  ;;  %935 = vmatmul.bf16.gmra.mxu0 %v16606_v35  ;;  %v15164_v41 = vld [vmem:[#allocation4 + $0x204] sm:$0xf]  ;;  %v15167_v28 = vld [vmem:[#allocation4 + $0x214] sm:$0xf0] }
 0x121   :  { %1024 = vmatmul.bf16.gmra.mxu1 %v16608_v11  ;;  %v11747_v62 = vor.u32 %v15164_v41, %v11744_v63  ;;  %v11888_v41 = vld [vmem:[#allocation4 + $0x10] sm:$0xf0]  ;;  %v11894_v63 = vld [vmem:[#allocation4 + $0x8] sm:$0xf] }
 0x122   :  { %18633 = vst [vmem:[#allocation55_spill] sm:$0xff] %v16614_v12  ;;  %1113 = vmatmul.bf16.gmra.mxu2 %v16610_v1  ;;  %v11755_v12 = vor.u32 %v15165_v39, %v11752_v0 }
 0x123   :  { %1202 = vmatmul.bf16.gmra.mxu3 %v16612_v61 }
 0x125   :  { %v1074_v17 = vpop.f32.mrf.mxu2  ;;  %v898_v40 = vpop.f32.mrf.mxu0 }
 0x126   :  { %v1163_v38 = vpop.f32.mrf.mxu3  ;;  %v1075_v22 = vadd.f32 %v1074_v17, %v986_v36  ;;  %v987_v34 = vpop.f32.mrf.mxu1  ;;  %v11751_v17 = vor.u32 %v15167_v28, %v11750_v37 }
 0x127   :  { %v988_v15 = vadd.f32 %v987_v34, %v898_v40 }
 0x128   :  { %v16620_v16 = vadd.f32 %v1163_v38, %v1075_v22 }
 0x12a   :  { %18634 = vst [vmem:[#allocation56_spill] sm:$0xff] %v16620_v16 }
 0x12d   :  { %v1076_v61 = vpop.f32.mrf.mxu2  ;;  %v901_v35 = vpop.f32.mrf.mxu0 }
 0x12e   :  { %v1165_v1 = vpop.f32.mrf.mxu3  ;;  %v1077_v11 = vadd.f32 %v1076_v61, %v988_v15  ;;  %v990_v36 = vpop.f32.mrf.mxu1  ;;  %v11886_v61 = vld [vmem:[#allocation4] sm:$0xf]  ;;  %v15070_v15 = vld [vmem:[#allocation4 + $0xc] sm:$0xf0] }
 0x12f   :  { %v991_v40 = vadd.f32 %v990_v36, %v901_v35  ;;  %v15071_v35 = vld [vmem:[#allocation4 + $0x14] sm:$0xf0]  ;;  %v11887_v39 = vor.u32 %v15070_v15, %v11886_v61 }
 0x130   :  { %v16622_v38 = vadd.f32 %v1165_v1, %v1077_v11  ;;  %940 = vmatmul.bf16.gmra.mxu0 %v11743_v48  ;;  %v15069_v1 = vld [vmem:[#allocation4 + $0xc] sm:$0xf]  ;;  %v11896_v11 = vld [vmem:[#allocation4 + $0x18] sm:$0xf0]  ;;  %v11895_v36 = vor.u32 %v15071_v35, %v11894_v63 }
 0x131   :  { %1029 = vmatmul.bf16.gmra.mxu1 %v11747_v62 }
 0x132   :  { %1118 = vmatmul.bf16.gmra.mxu2 %v11751_v17  ;;  %v11899_v17 = vor.u32 %v15069_v1, %v11896_v11 }
 0x133   :  { %1207 = vmatmul.bf16.gmra.mxu3 %v11755_v12  ;;  %v11891_v12 = vor.u32 %v15068_v49, %v11888_v41 }
 0x135   :  { %v1079_v22 = vpop.f32.mrf.mxu2  ;;  %v903_v29 = vpop.f32.mrf.mxu0 }
 0x136   :  { %v1168_v34 = vpop.f32.mrf.mxu3  ;;  %v1080_v16 = vadd.f32 %v1079_v22, %v991_v40  ;;  %v992_v10 = vpop.f32.mrf.mxu1  ;;  %v15278_v40 = vld [vmem:[#allocation7 + $0x270] sm:$0xff] }
 0x137   :  { %v993_v55 = vadd.f32 %v992_v10, %v903_v29  ;;  %2512 = vmatpush.bf16.msra.mxu1 %v15278_v40 }
 0x138   :  { %v16624_v23 = vadd.f32 %v1168_v34, %v1080_v16  ;;  %v15270_v16 = vld [vmem:[#allocation7 + $0x230] sm:$0xff] }
 0x139   :  { %2423 = vmatpush.bf16.msra.mxu0 %v15270_v16 }
 0x13d   :  { %v1081_v37 = vpop.f32.mrf.mxu2  ;;  %v906_v48 = vpop.f32.mrf.mxu0 }
 0x13e   :  { %v1170_v28 = vpop.f32.mrf.mxu3  ;;  %v1082_v0 = vadd.f32 %v1081_v37, %v993_v55  ;;  %v995_v62 = vpop.f32.mrf.mxu1 }
 0x13f   :  { %v996_v10 = vadd.f32 %v995_v62, %v906_v48 }
 0x140   :  { %v16626_v29 = vadd.f32 %v1170_v28, %v1082_v0  ;;  %1433 = vmatmul.bf16.vlgmr.msrb.gmra.mxu0 %v11887_v39 }
 0x141   :  { %1522 = vmatmul.bf16.vlgmr.msrb.gmra.mxu1 %v11891_v12 }
 0x142   :  { %1611 = vmatmul.bf16.vlgmr.msrb.gmra.mxu2 %v11895_v36 }
 0x143   :  { %1700 = vmatmul.bf16.vlgmr.msrb.gmra.mxu3 %v11899_v17 }
 0x145   :  { %v1084_v22 = vpop.f32.mrf.mxu2  ;;  %v908_v15 = vpop.f32.mrf.mxu0 }
 0x146   :  { %v1173_v34 = vpop.f32.mrf.mxu3  ;;  %v1085_v61 = vadd.f32 %v1084_v22, %v996_v10  ;;  %v997_v55 = vpop.f32.mrf.mxu1 }
 0x147   :  { %v998_v49 = vadd.f32 %v997_v55, %v908_v15 }
 0x148   :  { %v16628_v41 = vadd.f32 %v1173_v34, %v1085_v61 }
 0x14d   :  { %v1086_v63 = vpop.f32.mrf.mxu2  ;;  %v911_v11 = vpop.f32.mrf.mxu0 }
 0x14e   :  { %v1175_v35 = vpop.f32.mrf.mxu3  ;;  %v1087_v1 = vadd.f32 %v1086_v63, %v998_v49  ;;  %v1000_v37 = vpop.f32.mrf.mxu1 }
 0x14f   :  { %v1001_v28 = vadd.f32 %v1000_v37, %v911_v11 }
 0x150   :  { %v16630_v39 = vadd.f32 %v1175_v35, %v1087_v1  ;;  %1438 = vmatmul.bf16.gmra.mxu0 %v16416_v42 }
 0x151   :  { %1527 = vmatmul.bf16.gmra.mxu1 %v16418_v43  ;;  %v15269_v43 = vld [vmem:[#allocation7 + $0x228] sm:$0xff] }
 0x152   :  { %1616 = vmatmul.bf16.gmra.mxu2 %v16420_v44  ;;  %v15277_v44 = vld [vmem:[#allocation7 + $0x268] sm:$0xff]  ;;  %2424 = vmatpush.bf16.msra.mxu0 %v15269_v43 }
 0x153   :  { %1705 = vmatmul.bf16.gmra.mxu3 %v16422_v45  ;;  %2513 = vmatpush.bf16.msra.mxu1 %v15277_v44 }
 0x155   :  { %v1089_v12 = vpop.f32.mrf.mxu2  ;;  %v913_v62 = vpop.f32.mrf.mxu0 }
 0x156   :  { %v1178_v0 = vpop.f32.mrf.mxu3  ;;  %v1090_v48 = vadd.f32 %v1089_v12, %v1001_v28  ;;  %v1002_v36 = vpop.f32.mrf.mxu1 }
 0x157   :  { %v1003_v17 = vadd.f32 %v1002_v36, %v913_v62 }
 0x158   :  { %v16636_v10 = vadd.f32 %v1178_v0, %v1090_v48 }
 0x15d   :  { %v1091_v16 = vpop.f32.mrf.mxu2  ;;  %v916_v34 = vpop.f32.mrf.mxu0 }
 0x15e   :  { %v1180_v40 = vpop.f32.mrf.mxu3  ;;  %v1092_v22 = vadd.f32 %v1091_v16, %v1003_v17  ;;  %v1005_v61 = vpop.f32.mrf.mxu1 }
 0x15f   :  { %v1006_v42 = vadd.f32 %v1005_v61, %v916_v34 }
 0x160   :  { %v16638_v15 = vadd.f32 %v1180_v40, %v1092_v22  ;;  %1443 = vmatmul.bf16.gmra.mxu0 %v16428_v56 }
 0x161   :  { %1532 = vmatmul.bf16.gmra.mxu1 %v16430_v57 }
 0x162   :  { %1621 = vmatmul.bf16.gmra.mxu2 %v16432_v58 }
 0x163   :  { %1710 = vmatmul.bf16.gmra.mxu3 %v16434_v59 }
 0x165   :  { %v1094_v45 = vpop.f32.mrf.mxu2  ;;  %v918_v63 = vpop.f32.mrf.mxu0 }
 0x166   :  { %v1183_v55 = vpop.f32.mrf.mxu3  ;;  %v1095_v49 = vadd.f32 %v1094_v45, %v1006_v42  ;;  %v1007_v35 = vpop.f32.mrf.mxu1 }
 0x167   :  { %v1008_v1 = vadd.f32 %v1007_v35, %v918_v63 }
 0x168   :  { %v16644_v11 = vadd.f32 %v1183_v55, %v1095_v49 }
 0x16d   :  { %v1096_v37 = vpop.f32.mrf.mxu2  ;;  %v921_v57 = vpop.f32.mrf.mxu0 }
 0x16e   :  { %v1185_v56 = vpop.f32.mrf.mxu3  ;;  %v1097_v28 = vadd.f32 %v1096_v37, %v1008_v1  ;;  %v1010_v12 = vpop.f32.mrf.mxu1 }
 0x16f   :  { %v1011_v58 = vadd.f32 %v1010_v12, %v921_v57  ;;  %v15295_v12 = vld [vmem:[#allocation7 + $0x2f8] sm:$0xff] }
 0x170   :  { %v16646_v0 = vadd.f32 %v1185_v56, %v1097_v28  ;;  %1448 = vmatmul.bf16.gmra.mxu0 %v16440_v4  ;;  %2689 = vmatpush.bf16.msra.mxu3 %v15295_v12 }
 0x171   :  { %1537 = vmatmul.bf16.gmra.mxu1 %v16442_v5  ;;  %v15268_v5 = vld [vmem:[#allocation7 + $0x220] sm:$0xff] }
 0x172   :  { %1626 = vmatmul.bf16.gmra.mxu2 %v16444_v6  ;;  %v15276_v6 = vld [vmem:[#allocation7 + $0x260] sm:$0xff]  ;;  %2425 = vmatpush.bf16.msra.mxu0 %v15268_v5 }
 0x173   :  { %1715 = vmatmul.bf16.gmra.mxu3 %v16446_v7  ;;  %2514 = vmatpush.bf16.msra.mxu1 %v15276_v6 }
 0x175   :  { %v1099_v59 = vpop.f32.mrf.mxu2  ;;  %v923_v36 = vpop.f32.mrf.mxu0 }
 0x176   :  { %v1188_v48 = vpop.f32.mrf.mxu3  ;;  %v1100_v62 = vadd.f32 %v1099_v59, %v1011_v58  ;;  %v1012_v17 = vpop.f32.mrf.mxu1 }
 0x177   :  { %v1013_v16 = vadd.f32 %v1012_v17, %v923_v36 }
 0x178   :  { %v16652_v40 = vadd.f32 %v1188_v48, %v1100_v62 }
 0x17d   :  { %v1101_v22 = vpop.f32.mrf.mxu2  ;;  %v926_v42 = vpop.f32.mrf.mxu0 }
 0x17e   :  { %v1190_v34 = vpop.f32.mrf.mxu3  ;;  %v1102_v61 = vadd.f32 %v1101_v22, %v1013_v16  ;;  %v1015_v43 = vpop.f32.mrf.mxu1 }
 0x17f   :  { %v1016_v4 = vadd.f32 %v1015_v43, %v926_v42 }
 0x180   :  { %v16654_v44 = vadd.f32 %v1190_v34, %v1102_v61  ;;  %1453 = vmatmul.bf16.gmra.mxu0 %v16452_v18 }
 0x181   :  { %1542 = vmatmul.bf16.gmra.mxu1 %v16454_v19 }
 0x182   :  { %1631 = vmatmul.bf16.gmra.mxu2 %v16456_v20 }
 0x183   :  { %1720 = vmatmul.bf16.gmra.mxu3 %v16458_v21  ;;  %v15287_v21 = vld [vmem:[#allocation7 + $0x2b8] sm:$0xff] }
 0x184   :  { %2600 = vmatpush.bf16.msra.mxu2 %v15287_v21 }
 0x185   :  { %v1104_v7 = vpop.f32.mrf.mxu2  ;;  %v928_v49 = vpop.f32.mrf.mxu0 }
 0x186   :  { %v1193_v45 = vpop.f32.mrf.mxu3  ;;  %v1105_v55 = vadd.f32 %v1104_v7, %v1016_v4  ;;  %v1017_v63 = vpop.f32.mrf.mxu1 }
 0x187   :  { %v1018_v35 = vadd.f32 %v1017_v63, %v928_v49 }
 0x188   :  { %v16660_v1 = vadd.f32 %v1193_v45, %v1105_v55 }
 0x18d   :  { %v1106_v37 = vpop.f32.mrf.mxu2  ;;  %v931_v19 = vpop.f32.mrf.mxu0 }
 0x18e   :  { %v1195_v18 = vpop.f32.mrf.mxu3  ;;  %v1107_v56 = vadd.f32 %v1106_v37, %v1018_v35  ;;  %v1020_v28 = vpop.f32.mrf.mxu1 }
 0x18f   :  { %v1021_v20 = vadd.f32 %v1020_v28, %v931_v19 }
 0x190   :  { %v16662_v57 = vadd.f32 %v1195_v18, %v1107_v56  ;;  %1458 = vmatmul.bf16.gmra.mxu0 %v16464_v30  ;;  %v15294_v56 = vld [vmem:[#allocation7 + $0x2f0] sm:$0xff] }
 0x191   :  { %1547 = vmatmul.bf16.gmra.mxu1 %v16466_v31  ;;  %2690 = vmatpush.bf16.msra.mxu3 %v15294_v56 }
 0x192   :  { %1636 = vmatmul.bf16.gmra.mxu2 %v16468_v32  ;;  %v15267_v32 = vld [vmem:[#allocation7 + $0x218] sm:$0xff] }
 0x193   :  { %1725 = vmatmul.bf16.gmra.mxu3 %v16470_v33  ;;  %v15275_v33 = vld [vmem:[#allocation7 + $0x258] sm:$0xff]  ;;  %2426 = vmatpush.bf16.msra.mxu0 %v15267_v32 }
 0x194   :  { %2515 = vmatpush.bf16.msra.mxu1 %v15275_v33 }
 0x195   :  { %v1109_v58 = vpop.f32.mrf.mxu2  ;;  %v933_v62 = vpop.f32.mrf.mxu0 }
 0x196   :  { %v1198_v59 = vpop.f32.mrf.mxu3  ;;  %v1110_v48 = vadd.f32 %v1109_v58, %v1021_v20  ;;  %v1022_v36 = vpop.f32.mrf.mxu1 }
 0x197   :  { %v1023_v17 = vadd.f32 %v1022_v36, %v933_v62 }
 0x198   :  { %v16668_v16 = vadd.f32 %v1198_v59, %v1110_v48 }
 0x19d   :  { %v1111_v22 = vpop.f32.mrf.mxu2  ;;  %v936_v30 = vpop.f32.mrf.mxu0 }
 0x19e   :  { %v1200_v34 = vpop.f32.mrf.mxu3  ;;  %v1112_v61 = vadd.f32 %v1111_v22, %v1023_v17  ;;  %v1025_v42 = vpop.f32.mrf.mxu1  ;;  %v15266_v22 = vld [vmem:[#allocation7 + $0x210] sm:$0xff] }
 0x19f   :  { %v1026_v31 = vadd.f32 %v1025_v42, %v936_v30  ;;  %2427 = vmatpush.bf16.msra.mxu0 %v15266_v22 }
 0x1a0   :  { %v16670_v43 = vadd.f32 %v1200_v34, %v1112_v61  ;;  %1463 = vmatmul.bf16.gmra.mxu0 %v16476_v50  ;;  %v15274_v34 = vld [vmem:[#allocation7 + $0x250] sm:$0xff] }
 0x1a1   :  { %1552 = vmatmul.bf16.gmra.mxu1 %v16478_v51 }
 0x1a2   :  { %1641 = vmatmul.bf16.gmra.mxu2 %v16480_v52  ;;  %2516 = vmatpush.bf16.msra.mxu1 %v15274_v34 }
 0x1a3   :  { %1730 = vmatmul.bf16.gmra.mxu3 %v16482_v53  ;;  %v15286_v53 = vld [vmem:[#allocation7 + $0x2b0] sm:$0xff] }
 0x1a4   :  { %2601 = vmatpush.bf16.msra.mxu2 %v15286_v53 }
 0x1a5   :  { %v1114_v4 = vpop.f32.mrf.mxu2  ;;  %v938_v7 = vpop.f32.mrf.mxu0 }
 0x1a6   :  { %v1203_v5 = vpop.f32.mrf.mxu3  ;;  %v1115_v6 = vadd.f32 %v1114_v4, %v1026_v31  ;;  %v1027_v45 = vpop.f32.mrf.mxu1 }
 0x1a7   :  { %v1028_v55 = vadd.f32 %v1027_v45, %v938_v7  ;;  %v15285_v45 = vld [vmem:[#allocation7 + $0x2a8] sm:$0xff] }
 0x1a8   :  { %v16676_v49 = vadd.f32 %v1203_v5, %v1115_v6  ;;  %2602 = vmatpush.bf16.msra.mxu2 %v15285_v45 }
 0x1ad   :  { %v1116_v63 = vpop.f32.mrf.mxu2  ;;  %v941_v51 = vpop.f32.mrf.mxu0 }
 0x1ae   :  { %v1205_v50 = vpop.f32.mrf.mxu3  ;;  %v1117_v35 = vadd.f32 %v1116_v63, %v1028_v55  ;;  %v1030_v37 = vpop.f32.mrf.mxu1  ;;  %v15293_v63 = vld [vmem:[#allocation7 + $0x2e8] sm:$0xff] }
 0x1af   :  { %v1031_v52 = vadd.f32 %v1030_v37, %v941_v51  ;;  %2691 = vmatpush.bf16.msra.mxu3 %v15293_v63  ;;  %v15284_v63 = vld [vmem:[#allocation7 + $0x2a0] sm:$0xff] }
 0x1b0   :  { %v16678_v18 = vadd.f32 %v1205_v50, %v1117_v35  ;;  %1468 = vmatmul.bf16.gmra.mxu0 %v16488_v2  ;;  %2603 = vmatpush.bf16.msra.mxu2 %v15284_v63 }
 0x1b1   :  { %1557 = vmatmul.bf16.gmra.mxu1 %v16490_v3 }
 0x1b2   :  { %1646 = vmatmul.bf16.gmra.mxu2 %v16492_v8 }
 0x1b3   :  { %1735 = vmatmul.bf16.gmra.mxu3 %v16494_v9 }
 0x1b5   :  { %v1119_v19 = vpop.f32.mrf.mxu2  ;;  %v943_v21 = vpop.f32.mrf.mxu0 }
 0x1b6   :  { %v1208_v28 = vpop.f32.mrf.mxu3  ;;  %v1120_v20 = vadd.f32 %v1119_v19, %v1031_v52  ;;  %v1032_v12 = vpop.f32.mrf.mxu1  ;;  %v18636_v52 = vld [vmem:[#allocation31_spill] sm:$0xff] }
 0x1b7   :  { %v1033_v58 = vadd.f32 %v1032_v12, %v943_v21 }
 0x1b8   :  { %v16684_v59 = vadd.f32 %v1208_v28, %v1120_v20 }
 0x1bd   :  { %v1121_v48 = vpop.f32.mrf.mxu2  ;;  %v1434_v36 = vpop.f32.mrf.mxu0 }
 0x1be   :  { %v1210_v62 = vpop.f32.mrf.mxu3  ;;  %v1122_v2 = vadd.f32 %v1121_v48, %v1033_v58  ;;  %v1523_v3 = vpop.f32.mrf.mxu1  ;;  %v1435_v17 = vadd.f32 %v1434_v36, %v16524_v13  ;;  %v18640_v36 = vld [vmem:[#allocation25_spill] sm:$0xff] }
 0x1c0   :  { %v16687_v8 = vadd.f32 %v1210_v62, %v1122_v2  ;;  %v1524_v9 = vadd.f32 %v1523_v3, %v1435_v17  ;;  %1473 = vmatmul.bf16.gmra.mxu0 %v16500_v24  ;;  %v18638_v62 = vld [vmem:[#allocation23_spill] sm:$0xff]  ;;  %v18639_v2 = vld [vmem:[#allocation24_spill] sm:$0xff]  ;;  %v18641_v3 = vld [vmem:[#allocation26_spill] sm:$0xff] }
 0x1c1   :  { %1562 = vmatmul.bf16.gmra.mxu1 %v16502_v25  ;;  %v15265_v17 = vld [vmem:[#allocation7 + $0x208] sm:$0xff] }
 0x1c2   :  { %1651 = vmatmul.bf16.gmra.mxu2 %v16504_v26  ;;  %2428 = vmatpush.bf16.msra.mxu0 %v15265_v17 }
 0x1c3   :  { %1740 = vmatmul.bf16.gmra.mxu3 %v16506_v27 }
 0x1c5   :  { %v1612_v61 = vpop.f32.mrf.mxu2  ;;  %v1436_v31 = vpop.f32.mrf.mxu0 }
 0x1c6   :  { %v1701_v30 = vpop.f32.mrf.mxu3  ;;  %v1613_v42 = vadd.f32 %v1612_v61, %v1524_v9  ;;  %v1525_v13 = vpop.f32.mrf.mxu1  ;;  %v1437_v32 = vadd.f32 %v1436_v31, %v16534_v60  ;;  %v18635_v60 = vld [vmem:[#allocation22_spill] sm:$0xff]  ;;  %v15273_v9 = vld [vmem:[#allocation7 + $0x248] sm:$0xff] }
 0x1c7   :  { %2517 = vmatpush.bf16.msra.mxu1 %v15273_v9  ;;  %v18642_v31 = vld [vmem:[#allocation37_spill] sm:$0xff] }
 0x1c8   :  { %v16694_v33 = vadd.f32 %v1701_v30, %v1613_v42  ;;  %v1526_v24 = vadd.f32 %v1525_v13, %v1437_v32 }
 0x1cd   :  { %v1614_v4 = vpop.f32.mrf.mxu2  ;;  %v1439_v26 = vpop.f32.mrf.mxu0 }
 0x1ce   :  { %v1703_v25 = vpop.f32.mrf.mxu3  ;;  %v1615_v5 = vadd.f32 %v1614_v4, %v1526_v24  ;;  %v1528_v6 = vpop.f32.mrf.mxu1  ;;  %v1440_v27 = vadd.f32 %v1439_v26, %v16540_v14 }
 0x1d0   :  { %v16697_v7 = vadd.f32 %v1703_v25, %v1615_v5  ;;  %v1529_v55 = vadd.f32 %v1528_v6, %v1440_v27  ;;  %1478 = vmatmul.bf16.gmra.mxu0 %v16512_v46  ;;  %v18643_v27 = vld [vmem:[#allocation38_spill] sm:$0xff] }
 0x1d1   :  { %1567 = vmatmul.bf16.gmra.mxu1 %v16514_v47 }
 0x1d2   :  { %1656 = vmatmul.bf16.gmra.mxu2 %v16516_v54  ;;  %v18637_v54 = vld [vmem:[#allocation32_spill] sm:$0xff] }
 0x1d3   :  { %1745 = vmatmul.bf16.gmra.mxu3 %v18635_v60 }
 0x1d5   :  { %v1617_v50 = vpop.f32.mrf.mxu2  ;;  %v1441_v37 = vpop.f32.mrf.mxu0 }
 0x1d6   :  { %v1706_v35 = vpop.f32.mrf.mxu3  ;;  %v1618_v51 = vadd.f32 %v1617_v50, %v1529_v55  ;;  %v1530_v14 = vpop.f32.mrf.mxu1  ;;  %v1442_v53 = vadd.f32 %v1441_v37, %v18636_v52  ;;  %v18644_v50 = vld [vmem:[#allocation27_spill] sm:$0xff]  ;;  %v18646_v37 = vld [vmem:[#allocation29_spill] sm:$0xff] }
 0x1d8   :  { %v16704_v56 = vadd.f32 %v1706_v35, %v1618_v51  ;;  %v1531_v19 = vadd.f32 %v1530_v14, %v1442_v53  ;;  %v18645_v35 = vld [vmem:[#allocation28_spill] sm:$0xff]  ;;  %v18647_v14 = vld [vmem:[#allocation30_spill] sm:$0xff] }
 0x1d9   :  { %v15292_v51 = vld [vmem:[#allocation7 + $0x2e0] sm:$0xff] }
 0x1da   :  { %2692 = vmatpush.bf16.msra.mxu3 %v15292_v51 }
 0x1dd   :  { %v1619_v46 = vpop.f32.mrf.mxu2  ;;  %v1444_v20 = vpop.f32.mrf.mxu0 }
 0x1de   :  { %v1708_v28 = vpop.f32.mrf.mxu3  ;;  %v1620_v47 = vadd.f32 %v1619_v46, %v1531_v19  ;;  %v1533_v21 = vpop.f32.mrf.mxu1  ;;  %v1445_v12 = vadd.f32 %v1444_v20, %v18637_v54 }
 0x1e0   :  { %v16707_v58 = vadd.f32 %v1708_v28, %v1620_v47  ;;  %v1534_v48 = vadd.f32 %v1533_v21, %v1445_v12  ;;  %1483 = vmatmul.bf16.gmra.mxu0 %v18638_v62  ;;  %v18648_v47 = vld [vmem:[#allocation43_spill] sm:$0xff] }
 0x1e1   :  { %1572 = vmatmul.bf16.gmra.mxu1 %v18639_v2 }
 0x1e2   :  { %1661 = vmatmul.bf16.gmra.mxu2 %v18640_v36 }
 0x1e3   :  { %1750 = vmatmul.bf16.gmra.mxu3 %v18641_v3  ;;  %v18649_v3 = vld [vmem:[#allocation44_spill] sm:$0xff] }
 0x1e5   :  { %v1622_v22 = vpop.f32.mrf.mxu2  ;;  %v1446_v30 = vpop.f32.mrf.mxu0 }
 0x1e6   :  { %v1711_v34 = vpop.f32.mrf.mxu3  ;;  %v1623_v61 = vadd.f32 %v1622_v22, %v1534_v48  ;;  %v1535_v42 = vpop.f32.mrf.mxu1  ;;  %v1447_v13 = vadd.f32 %v1446_v30, %v18642_v31  ;;  %v18652_v30 = vld [vmem:[#allocation35_spill] sm:$0xff] }
 0x1e7   :  { %v15264_v31 = vld [vmem:[#allocation7 + $0x200] sm:$0xff] }
 0x1e8   :  { %v16714_v32 = vadd.f32 %v1711_v34, %v1623_v61  ;;  %v1536_v24 = vadd.f32 %v1535_v42, %v1447_v13  ;;  %v18650_v34 = vld [vmem:[#allocation33_spill] sm:$0xff]  ;;  %v18651_v61 = vld [vmem:[#allocation34_spill] sm:$0xff]  ;;  %v18653_v42 = vld [vmem:[#allocation36_spill] sm:$0xff]  ;;  %2429 = vmatpush.bf16.msra.mxu0 %v15264_v31 }
 0x1e9   :  { %v15272_v13 = vld [vmem:[#allocation7 + $0x240] sm:$0xff]  ;;  %v15281_v31 = vld [vmem:[#allocation7 + $0x288] sm:$0xff] }
 0x1ea   :  { %2518 = vmatpush.bf16.msra.mxu1 %v15272_v13  ;;  %v15289_v13 = vld [vmem:[#allocation7 + $0x2c8] sm:$0xff] }
 0x1ed   :  { %v1624_v4 = vpop.f32.mrf.mxu2  ;;  %v1449_v26 = vpop.f32.mrf.mxu0 }
 0x1ee   :  { %v1713_v25 = vpop.f32.mrf.mxu3  ;;  %v1625_v5 = vadd.f32 %v1624_v4, %v1536_v24  ;;  %v1538_v6 = vpop.f32.mrf.mxu1  ;;  %v1450_v45 = vadd.f32 %v1449_v26, %v18643_v27 }
 0x1f0   :  { %v16717_v55 = vadd.f32 %v1713_v25, %v1625_v5  ;;  %v1539_v60 = vadd.f32 %v1538_v6, %v1450_v45  ;;  %1488 = vmatmul.bf16.gmra.mxu0 %v18644_v50  ;;  %v18654_v6 = vld [vmem:[#allocation49_spill] sm:$0xff] }
 0x1f1   :  { %1577 = vmatmul.bf16.gmra.mxu1 %v18645_v35 }
 0x1f2   :  { %1666 = vmatmul.bf16.gmra.mxu2 %v18646_v37 }
 0x1f3   :  { %1755 = vmatmul.bf16.gmra.mxu3 %v18647_v14  ;;  %v18655_v14 = vld [vmem:[#allocation50_spill] sm:$0xff] }
 0x1f5   :  { %v1627_v52 = vpop.f32.mrf.mxu2  ;;  %v1451_v46 = vpop.f32.mrf.mxu0 }
 0x1f6   :  { %v1716_v53 = vpop.f32.mrf.mxu3  ;;  %v1628_v19 = vadd.f32 %v1627_v52, %v1539_v60  ;;  %v1540_v28 = vpop.f32.mrf.mxu1  ;;  %v1452_v20 = vadd.f32 %v1451_v46, %v18648_v47  ;;  %v18657_v47 = vld [vmem:[#allocation40_spill] sm:$0xff] }
 0x1f8   :  { %v16724_v21 = vadd.f32 %v1716_v53, %v1628_v19  ;;  %v1541_v54 = vadd.f32 %v1540_v28, %v1452_v20  ;;  %v15283_v19 = vld [vmem:[#allocation7 + $0x298] sm:$0xff] }
 0x1f9   :  { %v18656_v28 = vld [vmem:[#allocation39_spill] sm:$0xff]  ;;  %2604 = vmatpush.bf16.msra.mxu2 %v15283_v19 }
 0x1fa   :  { %v15291_v20 = vld [vmem:[#allocation7 + $0x2d8] sm:$0xff] }
 0x1fb   :  { %2693 = vmatpush.bf16.msra.mxu3 %v15291_v20  ;;  %v15367_v19 = vld [vmem:[#allocation7 + $0x338] sm:$0xff] }
 0x1fc   :  { %3451 = vmatpush.bf16.msrb.mxu0 %v15367_v19  ;;  %v15203_v19 = vld [vmem:[#allocation4 + $0x54] sm:$0xf0] }
 0x1fd   :  { %v1629_v12 = vpop.f32.mrf.mxu2  ;;  %v1454_v2 = vpop.f32.mrf.mxu0 }
 0x1fe   :  { %v1718_v48 = vpop.f32.mrf.mxu3  ;;  %v1630_v62 = vadd.f32 %v1629_v12, %v1541_v54  ;;  %v1543_v36 = vpop.f32.mrf.mxu1  ;;  %v1455_v17 = vadd.f32 %v1454_v2, %v18649_v3  ;;  %v18658_v54 = vld [vmem:[#allocation41_spill] sm:$0xff]  ;;  %v18659_v12 = vld [vmem:[#allocation42_spill] sm:$0xff] }
 0x1ff   :  { %v15282_v2 = vld [vmem:[#allocation7 + $0x290] sm:$0xff] }
 0x200   :  { %v16727_v9 = vadd.f32 %v1718_v48, %v1630_v62  ;;  %v1544_v22 = vadd.f32 %v1543_v36, %v1455_v17  ;;  %1493 = vmatmul.bf16.gmra.mxu0 %v18650_v34  ;;  %v15290_v36 = vld [vmem:[#allocation7 + $0x2d0] sm:$0xff]  ;;  %v18660_v34 = vld [vmem:[#allocation55_spill] sm:$0xff]  ;;  %2605 = vmatpush.bf16.msra.mxu2 %v15282_v2 }
 0x201   :  { %1582 = vmatmul.bf16.gmra.mxu1 %v18651_v61  ;;  %2694 = vmatpush.bf16.msra.mxu3 %v15290_v36 }
 0x202   :  { %1671 = vmatmul.bf16.gmra.mxu2 %v18652_v30 }
 0x203   :  { %1760 = vmatmul.bf16.gmra.mxu3 %v18653_v42 }
 0x204   :  { %2606 = vmatpush.bf16.msra.mxu2 %v15281_v31 }
 0x205   :  { %v1632_v24 = vpop.f32.mrf.mxu2  ;;  %v1456_v5 = vpop.f32.mrf.mxu0  ;;  %2695 = vmatpush.bf16.msra.mxu3 %v15289_v13  ;;  %v18666_v13 = vld [vmem:[#allocation51_spill] sm:$0xff] }
 0x206   :  { %v1721_v4 = vpop.f32.mrf.mxu3  ;;  %v1633_v25 = vadd.f32 %v1632_v24, %v1544_v22  ;;  %v1545_v26 = vpop.f32.mrf.mxu1  ;;  %v1457_v27 = vadd.f32 %v1456_v5, %v18654_v6  ;;  %v15288_v5 = vld [vmem:[#allocation7 + $0x2c0] sm:$0xff] }
 0x208   :  { %v16734_v45 = vadd.f32 %v1721_v4, %v1633_v25  ;;  %v1546_v63 = vadd.f32 %v1545_v26, %v1457_v27  ;;  %v15280_v25 = vld [vmem:[#allocation7 + $0x280] sm:$0xff] }
 0x209   :  { %2607 = vmatpush.bf16.msra.mxu2 %v15280_v25  ;;  %2696 = vmatpush.bf16.msra.mxu3 %v15288_v5 }
 0x20d   :  { %v1634_v60 = vpop.f32.mrf.mxu2  ;;  %v1459_v51 = vpop.f32.mrf.mxu0 }
 0x20e   :  { %v1723_v50 = vpop.f32.mrf.mxu3  ;;  %v1635_v35 = vadd.f32 %v1634_v60, %v1546_v63  ;;  %v1548_v37 = vpop.f32.mrf.mxu1  ;;  %v1460_v52 = vadd.f32 %v1459_v51, %v18655_v14  ;;  %v18661_v63 = vld [vmem:[#allocation56_spill] sm:$0xff]  ;;  %v18662_v51 = vld [vmem:[#allocation45_spill] sm:$0xff]  ;;  %v18664_v14 = vld [vmem:[#allocation47_spill] sm:$0xff] }
 0x210   :  { %v16737_v53 = vadd.f32 %v1723_v50, %v1635_v35  ;;  %v1549_v46 = vadd.f32 %v1548_v37, %v1460_v52  ;;  %1498 = vmatmul.bf16.gmra.mxu0 %v18656_v28  ;;  %v18663_v37 = vld [vmem:[#allocation46_spill] sm:$0xff]  ;;  %v18665_v52 = vld [vmem:[#allocation48_spill] sm:$0xff] }
 0x211   :  { %1587 = vmatmul.bf16.gmra.mxu1 %v18657_v47 }
 0x212   :  { %1676 = vmatmul.bf16.gmra.mxu2 %v18658_v54 }
 0x213   :  { %1765 = vmatmul.bf16.gmra.mxu3 %v18659_v12 }
 0x215   :  { %v1637_v48 = vpop.f32.mrf.mxu2  ;;  %v1461_v17 = vpop.f32.mrf.mxu0 }
 0x216   :  { %v1726_v62 = vpop.f32.mrf.mxu3  ;;  %v1638_v3 = vadd.f32 %v1637_v48, %v1549_v46  ;;  %v1550_v22 = vpop.f32.mrf.mxu1  ;;  %v1462_v61 = vadd.f32 %v1461_v17, %v18660_v34  ;;  %v15375_v46 = vld [vmem:[#allocation7 + $0x378] sm:$0xff] }
 0x217   :  { %3540 = vmatpush.bf16.msrb.mxu1 %v15375_v46  ;;  %v15201_v46 = vld [vmem:[#allocation4 + $0x4c] sm:$0xf] }
 0x218   :  { %v16744_v30 = vadd.f32 %v1726_v62, %v1638_v3  ;;  %v1551_v42 = vadd.f32 %v1550_v22, %v1462_v61 }
 0x21d   :  { %v1639_v24 = vpop.f32.mrf.mxu2  ;;  %v1464_v6 = vpop.f32.mrf.mxu0 }
 0x21e   :  { %v1728_v4 = vpop.f32.mrf.mxu3  ;;  %v1640_v26 = vadd.f32 %v1639_v24, %v1551_v42  ;;  %v1553_v27 = vpop.f32.mrf.mxu1  ;;  %v1465_v60 = vadd.f32 %v1464_v6, %v18661_v63  ;;  %v18667_v24 = vld [vmem:[#allocation52_spill] sm:$0xff] }
 0x220   :  { %v16747_v50 = vadd.f32 %v1728_v4, %v1640_v26  ;;  %v1554_v35 = vadd.f32 %v1553_v27, %v1465_v60  ;;  %1503 = vmatmul.bf16.gmra.mxu0 %v18662_v51  ;;  %v18668_v4 = vld [vmem:[#allocation53_spill] sm:$0xff] }
 0x221   :  { %1592 = vmatmul.bf16.gmra.mxu1 %v18663_v37  ;;  %v15202_v51 = vld [vmem:[#allocation4 + $0x4c] sm:$0xf0]  ;;  %v15200_v37 = vld [vmem:[#allocation4 + $0x44] sm:$0xf] }
 0x222   :  { %1681 = vmatmul.bf16.gmra.mxu2 %v18664_v14  ;;  %v12032_v14 = vld [vmem:[#allocation4 + $0x50] sm:$0xf0] }
 0x223   :  { %1770 = vmatmul.bf16.gmra.mxu3 %v18665_v52  ;;  %v12038_v52 = vld [vmem:[#allocation4 + $0x48] sm:$0xf] }
 0x225   :  { %v1642_v28 = vpop.f32.mrf.mxu2  ;;  %v1466_v54 = vpop.f32.mrf.mxu0 }
 0x226   :  { %v1731_v47 = vpop.f32.mrf.mxu3  ;;  %v1643_v20 = vadd.f32 %v1642_v28, %v1554_v35  ;;  %v1555_v12 = vpop.f32.mrf.mxu1  ;;  %v1467_v48 = vadd.f32 %v1466_v54, %v16622_v38  ;;  %v18669_v38 = vld [vmem:[#allocation54_spill] sm:$0xff]  ;;  %v12030_v35 = vld [vmem:[#allocation4 + $0x40] sm:$0xf]  ;;  %v12040_v28 = vld [vmem:[#allocation4 + $0x58] sm:$0xf0] }
 0x227   :  { %v12031_v54 = vor.u32 %v15202_v51, %v12030_v35  ;;  %v12054_v35 = vld [vmem:[#allocation4 + $0x68] sm:$0xf]  ;;  %v15207_v51 = vld [vmem:[#allocation4 + $0x74] sm:$0xf0] }
 0x228   :  { %v16754_v62 = vadd.f32 %v1731_v47, %v1643_v20  ;;  %v1556_v2 = vadd.f32 %v1555_v12, %v1467_v48  ;;  %v12035_v12 = vor.u32 %v15200_v37, %v12032_v14  ;;  %v15205_v37 = vld [vmem:[#allocation4 + $0x6c] sm:$0xf]  ;;  %v12056_v14 = vld [vmem:[#allocation4 + $0x78] sm:$0xf0] }
 0x22d   :  { %v1644_v36 = vpop.f32.mrf.mxu2  ;;  %v1469_v22 = vpop.f32.mrf.mxu0 }
 0x22e   :  { %v1733_v3 = vpop.f32.mrf.mxu3  ;;  %v1645_v17 = vadd.f32 %v1644_v36, %v1556_v2  ;;  %v1558_v34 = vpop.f32.mrf.mxu1  ;;  %v1470_v61 = vadd.f32 %v1469_v22, %v16624_v23 }
 0x230   :  { %v16757_v42 = vadd.f32 %v1733_v3, %v1645_v17  ;;  %v1559_v31 = vadd.f32 %v1558_v34, %v1470_v61  ;;  %1508 = vmatmul.bf16.gmra.mxu0 %v18666_v13  ;;  %v12039_v3 = vor.u32 %v15203_v19, %v12038_v52  ;;  %v15366_v61 = vld [vmem:[#allocation7 + $0x330] sm:$0xff] }
 0x231   :  { %1597 = vmatmul.bf16.gmra.mxu1 %v18667_v24  ;;  %3452 = vmatpush.bf16.msrb.mxu0 %v15366_v61 }
 0x232   :  { %1686 = vmatmul.bf16.gmra.mxu2 %v18668_v4 }
 0x233   :  { %1775 = vmatmul.bf16.gmra.mxu3 %v18669_v38 }
 0x235   :  { %v1647_v25 = vpop.f32.mrf.mxu2  ;;  %v1471_v6 = vpop.f32.mrf.mxu0 }
 0x236   :  { %v1736_v5 = vpop.f32.mrf.mxu3  ;;  %v1648_v26 = vadd.f32 %v1647_v25, %v1559_v31  ;;  %v1560_v27 = vpop.f32.mrf.mxu1  ;;  %v1472_v63 = vadd.f32 %v1471_v6, %v16626_v29  ;;  %v12043_v29 = vor.u32 %v15201_v46, %v12040_v28  ;;  %v15374_v31 = vld [vmem:[#allocation7 + $0x370] sm:$0xff]  ;;  %v12046_v6 = vld [vmem:[#allocation4 + $0x60] sm:$0xf] }
 0x237   :  { %3541 = vmatpush.bf16.msrb.mxu1 %v15374_v31 }
 0x238   :  { %v16764_v60 = vadd.f32 %v1736_v5, %v1648_v26  ;;  %v1561_v23 = vadd.f32 %v1560_v27, %v1472_v63  ;;  %v15206_v27 = vld [vmem:[#allocation4 + $0x6c] sm:$0xf0]  ;;  %v15204_v63 = vld [vmem:[#allocation4 + $0x64] sm:$0xf] }
 0x239   :  { %v12047_v46 = vor.u32 %v15206_v27, %v12046_v6  ;;  %v15209_v6 = vld [vmem:[#allocation4 + $0x8c] sm:$0xf]  ;;  %v12072_v27 = vld [vmem:[#allocation4 + $0x98] sm:$0xf0] }
 0x23d   :  { %v1649_v47 = vpop.f32.mrf.mxu2  ;;  %v1474_v2 = vpop.f32.mrf.mxu0 }
 0x23e   :  { %v1738_v20 = vpop.f32.mrf.mxu3  ;;  %v1650_v48 = vadd.f32 %v1649_v47, %v1561_v23  ;;  %v1563_v36 = vpop.f32.mrf.mxu1  ;;  %v1475_v17 = vadd.f32 %v1474_v2, %v16628_v41  ;;  %v12048_v23 = vld [vmem:[#allocation4 + $0x70] sm:$0xf0] }
 0x23f   :  { %v12051_v28 = vor.u32 %v15204_v63, %v12048_v23 }
 0x240   :  { %v16767_v22 = vadd.f32 %v1738_v20, %v1650_v48  ;;  %v1564_v34 = vadd.f32 %v1563_v36, %v1475_v17  ;;  %2430 = vmatmul.bf16.vlgmr.msra.gmra.mxu0 %v12031_v54 }
 0x241   :  { %2519 = vmatmul.bf16.vlgmr.msra.gmra.mxu1 %v12035_v12  ;;  %v12055_v12 = vor.u32 %v15207_v51, %v12054_v35 }
 0x242   :  { %2608 = vmatmul.bf16.vlgmr.msra.gmra.mxu2 %v12039_v3 }
 0x243   :  { %2697 = vmatmul.bf16.vlgmr.msra.gmra.mxu3 %v12043_v29 }
 0x245   :  { %v1652_v13 = vpop.f32.mrf.mxu2  ;;  %v1476_v38 = vpop.f32.mrf.mxu0 }
 0x246   :  { %v1741_v24 = vpop.f32.mrf.mxu3  ;;  %v1653_v4 = vadd.f32 %v1652_v13, %v1564_v34  ;;  %v1565_v25 = vpop.f32.mrf.mxu1  ;;  %v1477_v5 = vadd.f32 %v1476_v38, %v16630_v39  ;;  %v12059_v39 = vor.u32 %v15205_v37, %v12056_v14  ;;  %v15210_v38 = vld [vmem:[#allocation4 + $0x8c] sm:$0xf0] }
 0x248   :  { %v16770_v26 = vadd.f32 %v1741_v24, %v1653_v4  ;;  %v1566_v41 = vadd.f32 %v1565_v25, %v1477_v5  ;;  %v12062_v4 = vld [vmem:[#allocation4 + $0x80] sm:$0xf]  ;;  %v12064_v25 = vld [vmem:[#allocation4 + $0x90] sm:$0xf0]  ;;  %v12070_v5 = vld [vmem:[#allocation4 + $0x88] sm:$0xf] }
 0x249   :  { %v12063_v35 = vor.u32 %v15210_v38, %v12062_v4  ;;  %v12086_v4 = vld [vmem:[#allocation4 + $0xa8] sm:$0xf]  ;;  %v15215_v38 = vld [vmem:[#allocation4 + $0xb4] sm:$0xf0] }
 0x24d   :  { %v1654_v52 = vpop.f32.mrf.mxu2  ;;  %v1479_v20 = vpop.f32.mrf.mxu0 }
 0x24e   :  { %v1743_v19 = vpop.f32.mrf.mxu3  ;;  %v1655_v47 = vadd.f32 %v1654_v52, %v1566_v41  ;;  %v1568_v54 = vpop.f32.mrf.mxu1  ;;  %v1480_v48 = vadd.f32 %v1479_v20, %v16636_v10  ;;  %v15208_v10 = vld [vmem:[#allocation4 + $0x84] sm:$0xf]  ;;  %v15211_v41 = vld [vmem:[#allocation4 + $0x94] sm:$0xf0]  ;;  %v15365_v20 = vld [vmem:[#allocation7 + $0x328] sm:$0xff] }
 0x24f   :  { %v12067_v51 = vor.u32 %v15208_v10, %v12064_v25  ;;  %3453 = vmatpush.bf16.msrb.mxu0 %v15365_v20  ;;  %v15213_v10 = vld [vmem:[#allocation4 + $0xac] sm:$0xf]  ;;  %v12088_v25 = vld [vmem:[#allocation4 + $0xb8] sm:$0xf0] }
 0x250   :  { %v16773_v2 = vadd.f32 %v1743_v19, %v1655_v47  ;;  %v1569_v36 = vadd.f32 %v1568_v54, %v1480_v48  ;;  %2435 = vmatmul.bf16.gmra.mxu0 %v12047_v46  ;;  %v12071_v19 = vor.u32 %v15211_v41, %v12070_v5  ;;  %v15373_v54 = vld [vmem:[#allocation7 + $0x368] sm:$0xff] }
 0x251   :  { %2524 = vmatmul.bf16.gmra.mxu1 %v12051_v28 }
 0x252   :  { %2613 = vmatmul.bf16.gmra.mxu2 %v12055_v12  ;;  %3542 = vmatpush.bf16.msrb.mxu1 %v15373_v54 }
 0x253   :  { %2702 = vmatmul.bf16.gmra.mxu3 %v12059_v39 }
 0x255   :  { %v1657_v3 = vpop.f32.mrf.mxu2  ;;  %v1481_v34 = vpop.f32.mrf.mxu0 }
 0x256   :  { %v1746_v29 = vpop.f32.mrf.mxu3  ;;  %v1658_v17 = vadd.f32 %v1657_v3, %v1569_v36  ;;  %v1570_v61 = vpop.f32.mrf.mxu1  ;;  %v1482_v31 = vadd.f32 %v1481_v34, %v16638_v15  ;;  %v12075_v15 = vor.u32 %v15209_v6, %v12072_v27  ;;  %v12078_v34 = vld [vmem:[#allocation4 + $0xa0] sm:$0xf] }
 0x258   :  { %v16776_v13 = vadd.f32 %v1746_v29, %v1658_v17  ;;  %v1571_v24 = vadd.f32 %v1570_v61, %v1482_v31  ;;  %v15214_v61 = vld [vmem:[#allocation4 + $0xac] sm:$0xf0]  ;;  %v15212_v31 = vld [vmem:[#allocation4 + $0xa4] sm:$0xf] }
 0x259   :  { %v12079_v6 = vor.u32 %v15214_v61, %v12078_v34  ;;  %v15217_v34 = vld [vmem:[#allocation4 + $0xcc] sm:$0xf]  ;;  %v12104_v61 = vld [vmem:[#allocation4 + $0xd8] sm:$0xf0] }
 0x25d   :  { %v1659_v63 = vpop.f32.mrf.mxu2  ;;  %v1484_v14 = vpop.f32.mrf.mxu0 }
 0x25e   :  { %v1748_v23 = vpop.f32.mrf.mxu3  ;;  %v1660_v37 = vadd.f32 %v1659_v63, %v1571_v24  ;;  %v1573_v52 = vpop.f32.mrf.mxu1  ;;  %v1485_v46 = vadd.f32 %v1484_v14, %v16644_v11  ;;  %v12080_v24 = vld [vmem:[#allocation4 + $0xb0] sm:$0xf0] }
 0x25f   :  { %v12083_v27 = vor.u32 %v15212_v31, %v12080_v24 }
 0x260   :  { %v16779_v28 = vadd.f32 %v1748_v23, %v1660_v37  ;;  %v1574_v47 = vadd.f32 %v1573_v52, %v1485_v46  ;;  %2440 = vmatmul.bf16.gmra.mxu0 %v12063_v35 }
 0x261   :  { %2529 = vmatmul.bf16.gmra.mxu1 %v12067_v51  ;;  %v12087_v51 = vor.u32 %v15215_v38, %v12086_v4 }
 0x262   :  { %2618 = vmatmul.bf16.gmra.mxu2 %v12071_v19 }
 0x263   :  { %2707 = vmatmul.bf16.gmra.mxu3 %v12075_v15 }
 0x265   :  { %v1662_v12 = vpop.f32.mrf.mxu2  ;;  %v1486_v36 = vpop.f32.mrf.mxu0 }
 0x266   :  { %v1751_v39 = vpop.f32.mrf.mxu3  ;;  %v1663_v48 = vadd.f32 %v1662_v12, %v1574_v47  ;;  %v1575_v3 = vpop.f32.mrf.mxu1  ;;  %v1487_v29 = vadd.f32 %v1486_v36, %v16646_v0  ;;  %v12091_v0 = vor.u32 %v15213_v10, %v12088_v25  ;;  %v15218_v36 = vld [vmem:[#allocation4 + $0xcc] sm:$0xf0] }
 0x268   :  { %v16782_v17 = vadd.f32 %v1751_v39, %v1663_v48  ;;  %v1576_v11 = vadd.f32 %v1575_v3, %v1487_v29  ;;  %v12094_v48 = vld [vmem:[#allocation4 + $0xc0] sm:$0xf]  ;;  %v12096_v3 = vld [vmem:[#allocation4 + $0xd0] sm:$0xf0]  ;;  %v12102_v29 = vld [vmem:[#allocation4 + $0xc8] sm:$0xf] }
 0x269   :  { %v12095_v4 = vor.u32 %v15218_v36, %v12094_v48  ;;  %v12118_v48 = vld [vmem:[#allocation4 + $0xe8] sm:$0xf]  ;;  %v15223_v36 = vld [vmem:[#allocation4 + $0xf4] sm:$0xf0] }
 0x26d   :  { %v1664_v5 = vpop.f32.mrf.mxu2  ;;  %v1489_v23 = vpop.f32.mrf.mxu0 }
 0x26e   :  { %v1753_v41 = vpop.f32.mrf.mxu3  ;;  %v1665_v63 = vadd.f32 %v1664_v5, %v1576_v11  ;;  %v1578_v35 = vpop.f32.mrf.mxu1  ;;  %v1490_v37 = vadd.f32 %v1489_v23, %v16652_v40  ;;  %v15216_v40 = vld [vmem:[#allocation4 + $0xc4] sm:$0xf]  ;;  %v15219_v11 = vld [vmem:[#allocation4 + $0xd4] sm:$0xf0] }
 0x26f   :  { %v12099_v38 = vor.u32 %v15216_v40, %v12096_v3  ;;  %v15364_v23 = vld [vmem:[#allocation7 + $0x320] sm:$0xff]  ;;  %v15221_v40 = vld [vmem:[#allocation4 + $0xec] sm:$0xf]  ;;  %v12120_v3 = vld [vmem:[#allocation4 + $0xf8] sm:$0xf0] }
 0x270   :  { %v16785_v14 = vadd.f32 %v1753_v41, %v1665_v63  ;;  %v1579_v52 = vadd.f32 %v1578_v35, %v1490_v37  ;;  %2445 = vmatmul.bf16.gmra.mxu0 %v12079_v6  ;;  %v12103_v41 = vor.u32 %v15219_v11, %v12102_v29  ;;  %v15372_v35 = vld [vmem:[#allocation7 + $0x360] sm:$0xff] }
 0x271   :  { %2534 = vmatmul.bf16.gmra.mxu1 %v12083_v27  ;;  %3454 = vmatpush.bf16.msrb.mxu0 %v15364_v23 }
 0x272   :  { %2623 = vmatmul.bf16.gmra.mxu2 %v12087_v51  ;;  %3543 = vmatpush.bf16.msrb.mxu1 %v15372_v35 }
 0x273   :  { %2712 = vmatmul.bf16.gmra.mxu3 %v12091_v0 }
 0x275   :  { %v1667_v19 = vpop.f32.mrf.mxu2  ;;  %v1491_v47 = vpop.f32.mrf.mxu0 }
 0x276   :  { %v1756_v15 = vpop.f32.mrf.mxu3  ;;  %v1668_v46 = vadd.f32 %v1667_v19, %v1579_v52  ;;  %v1580_v20 = vpop.f32.mrf.mxu1  ;;  %v1492_v54 = vadd.f32 %v1491_v47, %v16654_v44  ;;  %v12107_v44 = vor.u32 %v15217_v34, %v12104_v61  ;;  %v12110_v47 = vld [vmem:[#allocation4 + $0xe0] sm:$0xf] }
 0x278   :  { %v16788_v12 = vadd.f32 %v1756_v15, %v1668_v46  ;;  %v1581_v39 = vadd.f32 %v1580_v20, %v1492_v54  ;;  %v15222_v20 = vld [vmem:[#allocation4 + $0xec] sm:$0xf0]  ;;  %v15220_v54 = vld [vmem:[#allocation4 + $0xe4] sm:$0xf] }
 0x279   :  { %v12111_v34 = vor.u32 %v15222_v20, %v12110_v47  ;;  %v12134_v47 = vld [vmem:[#allocation4 + $0x108] sm:$0xf]  ;;  %v15227_v20 = vld [vmem:[#allocation4 + $0x114] sm:$0xf0] }
 0x27d   :  { %v1669_v31 = vpop.f32.mrf.mxu2  ;;  %v1494_v25 = vpop.f32.mrf.mxu0 }
 0x27e   :  { %v1758_v24 = vpop.f32.mrf.mxu3  ;;  %v1670_v10 = vadd.f32 %v1669_v31, %v1581_v39  ;;  %v1583_v5 = vpop.f32.mrf.mxu1  ;;  %v1495_v6 = vadd.f32 %v1494_v25, %v16660_v1  ;;  %v12112_v39 = vld [vmem:[#allocation4 + $0xf0] sm:$0xf0] }
 0x27f   :  { %v12115_v61 = vor.u32 %v15220_v54, %v12112_v39  ;;  %v15225_v54 = vld [vmem:[#allocation4 + $0x10c] sm:$0xf]  ;;  %v12136_v39 = vld [vmem:[#allocation4 + $0x118] sm:$0xf0] }
 0x280   :  { %v16791_v27 = vadd.f32 %v1758_v24, %v1670_v10  ;;  %v1584_v63 = vadd.f32 %v1583_v5, %v1495_v6  ;;  %2450 = vmatmul.bf16.gmra.mxu0 %v12095_v4  ;;  %v15383_v5 = vld [vmem:[#allocation7 + $0x3b8] sm:$0xff] }
 0x281   :  { %2539 = vmatmul.bf16.gmra.mxu1 %v12099_v38  ;;  %v12119_v38 = vor.u32 %v15223_v36, %v12118_v48  ;;  %3629 = vmatpush.bf16.msrb.mxu2 %v15383_v5 }
 0x282   :  { %2628 = vmatmul.bf16.gmra.mxu2 %v12103_v41 }
 0x283   :  { %2717 = vmatmul.bf16.gmra.mxu3 %v12107_v44  ;;  %v15391_v44 = vld [vmem:[#allocation7 + $0x3f8] sm:$0xff] }
 0x284   :  { %3718 = vmatpush.bf16.msrb.mxu3 %v15391_v44 }
 0x285   :  { %v1672_v51 = vpop.f32.mrf.mxu2  ;;  %v1496_v52 = vpop.f32.mrf.mxu0 }
 0x286   :  { %v1761_v0 = vpop.f32.mrf.mxu3  ;;  %v1673_v37 = vadd.f32 %v1672_v51, %v1584_v63  ;;  %v1585_v19 = vpop.f32.mrf.mxu1  ;;  %v1497_v15 = vadd.f32 %v1496_v52, %v16662_v57  ;;  %v12123_v57 = vor.u32 %v15221_v40, %v12120_v3  ;;  %v12126_v52 = vld [vmem:[#allocation4 + $0x100] sm:$0xf] }
 0x288   :  { %v16794_v46 = vadd.f32 %v1761_v0, %v1673_v37  ;;  %v1586_v1 = vadd.f32 %v1585_v19, %v1497_v15  ;;  %v15226_v19 = vld [vmem:[#allocation4 + $0x10c] sm:$0xf0]  ;;  %v15224_v15 = vld [vmem:[#allocation4 + $0x104] sm:$0xf] }
 0x289   :  { %v12127_v40 = vor.u32 %v15226_v19, %v12126_v52  ;;  %v12150_v52 = vld [vmem:[#allocation4 + $0x128] sm:$0xf]  ;;  %v15231_v19 = vld [vmem:[#allocation4 + $0x134] sm:$0xf0] }
 0x28d   :  { %v1674_v29 = vpop.f32.mrf.mxu2  ;;  %v1499_v24 = vpop.f32.mrf.mxu0 }
 0x28e   :  { %v1763_v11 = vpop.f32.mrf.mxu3  ;;  %v1675_v31 = vadd.f32 %v1674_v29, %v1586_v1  ;;  %v1588_v4 = vpop.f32.mrf.mxu1  ;;  %v1500_v10 = vadd.f32 %v1499_v24, %v16668_v16  ;;  %v12128_v1 = vld [vmem:[#allocation4 + $0x110] sm:$0xf0] }
 0x28f   :  { %v12131_v3 = vor.u32 %v15224_v15, %v12128_v1  ;;  %v15229_v15 = vld [vmem:[#allocation4 + $0x12c] sm:$0xf]  ;;  %v12152_v1 = vld [vmem:[#allocation4 + $0x138] sm:$0xf0] }
 0x290   :  { %v16797_v25 = vadd.f32 %v1763_v11, %v1675_v31  ;;  %v1589_v41 = vadd.f32 %v1588_v4, %v1500_v10  ;;  %2455 = vmatmul.bf16.gmra.mxu0 %v12111_v34 }
 0x291   :  { %2544 = vmatmul.bf16.gmra.mxu1 %v12115_v61  ;;  %v12135_v61 = vor.u32 %v15227_v20, %v12134_v47 }
 0x292   :  { %2633 = vmatmul.bf16.gmra.mxu2 %v12119_v38  ;;  %v15363_v38 = vld [vmem:[#allocation7 + $0x318] sm:$0xff] }
 0x293   :  { %2722 = vmatmul.bf16.gmra.mxu3 %v12123_v57  ;;  %v15371_v57 = vld [vmem:[#allocation7 + $0x358] sm:$0xff]  ;;  %3455 = vmatpush.bf16.msrb.mxu0 %v15363_v38 }
 0x294   :  { %3544 = vmatpush.bf16.msrb.mxu1 %v15371_v57 }
 0x295   :  { %v1677_v6 = vpop.f32.mrf.mxu2  ;;  %v1501_v35 = vpop.f32.mrf.mxu0 }
 0x296   :  { %v1766_v63 = vpop.f32.mrf.mxu3  ;;  %v1678_v23 = vadd.f32 %v1677_v6, %v1589_v41  ;;  %v1590_v51 = vpop.f32.mrf.mxu1  ;;  %v1502_v0 = vadd.f32 %v1501_v35, %v16670_v43  ;;  %v12139_v43 = vor.u32 %v15225_v54, %v12136_v39  ;;  %v12142_v35 = vld [vmem:[#allocation4 + $0x120] sm:$0xf] }
 0x298   :  { %v16800_v37 = vadd.f32 %v1766_v63, %v1678_v23  ;;  %v1591_v16 = vadd.f32 %v1590_v51, %v1502_v0  ;;  %v15230_v51 = vld [vmem:[#allocation4 + $0x12c] sm:$0xf0]  ;;  %v15228_v0 = vld [vmem:[#allocation4 + $0x124] sm:$0xf] }
 0x299   :  { %v12143_v54 = vor.u32 %v15230_v51, %v12142_v35  ;;  %v12166_v35 = vld [vmem:[#allocation4 + $0x148] sm:$0xf]  ;;  %v15235_v51 = vld [vmem:[#allocation4 + $0x154] sm:$0xf0] }
 0x29d   :  { %v1679_v48 = vpop.f32.mrf.mxu2  ;;  %v1504_v11 = vpop.f32.mrf.mxu0 }
 0x29e   :  { %v1768_v36 = vpop.f32.mrf.mxu3  ;;  %v1680_v29 = vadd.f32 %v1679_v48, %v1591_v16  ;;  %v1593_v34 = vpop.f32.mrf.mxu1  ;;  %v1505_v31 = vadd.f32 %v1504_v11, %v16676_v49  ;;  %v12144_v16 = vld [vmem:[#allocation4 + $0x130] sm:$0xf0] }
 0x29f   :  { %v12147_v39 = vor.u32 %v15228_v0, %v12144_v16  ;;  %v15233_v0 = vld [vmem:[#allocation4 + $0x14c] sm:$0xf]  ;;  %v12168_v16 = vld [vmem:[#allocation4 + $0x158] sm:$0xf0] }
 0x2a0   :  { %v16803_v24 = vadd.f32 %v1768_v36, %v1680_v29  ;;  %v1594_v4 = vadd.f32 %v1593_v34, %v1505_v31  ;;  %2460 = vmatmul.bf16.gmra.mxu0 %v12127_v40 }
 0x2a1   :  { %2549 = vmatmul.bf16.gmra.mxu1 %v12131_v3  ;;  %v12151_v3 = vor.u32 %v15231_v19, %v12150_v52 }
 0x2a2   :  { %2638 = vmatmul.bf16.gmra.mxu2 %v12135_v61  ;;  %v15382_v61 = vld [vmem:[#allocation7 + $0x3b0] sm:$0xff] }
 0x2a3   :  { %2727 = vmatmul.bf16.gmra.mxu3 %v12139_v43  ;;  %v15390_v43 = vld [vmem:[#allocation7 + $0x3f0] sm:$0xff]  ;;  %3630 = vmatpush.bf16.msrb.mxu2 %v15382_v61 }
 0x2a4   :  { %3719 = vmatpush.bf16.msrb.mxu3 %v15390_v43 }
 0x2a5   :  { %v1682_v10 = vpop.f32.mrf.mxu2  ;;  %v1506_v44 = vpop.f32.mrf.mxu0 }
 0x2a6   :  { %v1771_v5 = vpop.f32.mrf.mxu3  ;;  %v1683_v41 = vadd.f32 %v1682_v10, %v1594_v4  ;;  %v1595_v6 = vpop.f32.mrf.mxu1  ;;  %v1507_v63 = vadd.f32 %v1506_v44, %v16678_v18  ;;  %v12155_v18 = vor.u32 %v15229_v15, %v12152_v1  ;;  %v12158_v44 = vld [vmem:[#allocation4 + $0x140] sm:$0xf] }
 0x2a8   :  { %v16806_v23 = vadd.f32 %v1771_v5, %v1683_v41  ;;  %v1596_v49 = vadd.f32 %v1595_v6, %v1507_v63  ;;  %v15234_v6 = vld [vmem:[#allocation4 + $0x14c] sm:$0xf0]  ;;  %v15232_v63 = vld [vmem:[#allocation4 + $0x144] sm:$0xf] }
 0x2a9   :  { %v12159_v15 = vor.u32 %v15234_v6, %v12158_v44  ;;  %v12182_v44 = vld [vmem:[#allocation4 + $0x168] sm:$0xf]  ;;  %v15239_v6 = vld [vmem:[#allocation4 + $0x174] sm:$0xf0] }
 0x2ad   :  { %v1684_v47 = vpop.f32.mrf.mxu2  ;;  %v1509_v36 = vpop.f32.mrf.mxu0 }
 0x2ae   :  { %v1773_v20 = vpop.f32.mrf.mxu3  ;;  %v1685_v48 = vadd.f32 %v1684_v47, %v1596_v49  ;;  %v1598_v40 = vpop.f32.mrf.mxu1  ;;  %v1510_v29 = vadd.f32 %v1509_v36, %v16684_v59  ;;  %v12160_v49 = vld [vmem:[#allocation4 + $0x150] sm:$0xf0] }
 0x2af   :  { %v12163_v1 = vor.u32 %v15232_v63, %v12160_v49  ;;  %v15237_v63 = vld [vmem:[#allocation4 + $0x16c] sm:$0xf]  ;;  %v12184_v49 = vld [vmem:[#allocation4 + $0x178] sm:$0xf0] }
 0x2b0   :  { %v16809_v11 = vadd.f32 %v1773_v20, %v1685_v48  ;;  %v1599_v34 = vadd.f32 %v1598_v40, %v1510_v29  ;;  %2465 = vmatmul.bf16.gmra.mxu0 %v12143_v54  ;;  %v15362_v40 = vld [vmem:[#allocation7 + $0x310] sm:$0xff] }
 0x2b1   :  { %2554 = vmatmul.bf16.gmra.mxu1 %v12147_v39  ;;  %v12167_v39 = vor.u32 %v15235_v51, %v12166_v35  ;;  %3456 = vmatpush.bf16.msrb.mxu0 %v15362_v40 }
 0x2b2   :  { %2643 = vmatmul.bf16.gmra.mxu2 %v12151_v3  ;;  %v15370_v3 = vld [vmem:[#allocation7 + $0x350] sm:$0xff] }
 0x2b3   :  { %2732 = vmatmul.bf16.gmra.mxu3 %v12155_v18  ;;  %3545 = vmatpush.bf16.msrb.mxu1 %v15370_v3 }
 0x2b5   :  { %v1687_v31 = vpop.f32.mrf.mxu2  ;;  %v1511_v57 = vpop.f32.mrf.mxu0 }
 0x2b6   :  { %v1776_v4 = vpop.f32.mrf.mxu3  ;;  %v1688_v38 = vadd.f32 %v1687_v31, %v1599_v34  ;;  %v1600_v10 = vpop.f32.mrf.mxu1  ;;  %v1512_v5 = vadd.f32 %v1511_v57, %v16687_v8  ;;  %v12171_v8 = vor.u32 %v15233_v0, %v12168_v16  ;;  %v15238_v57 = vld [vmem:[#allocation4 + $0x16c] sm:$0xf0] }
 0x2b8   :  { %v16812_v41 = vadd.f32 %v1776_v4, %v1688_v38  ;;  %v1601_v59 = vadd.f32 %v1600_v10, %v1512_v5  ;;  %v12174_v38 = vld [vmem:[#allocation4 + $0x160] sm:$0xf]  ;;  %v15236_v5 = vld [vmem:[#allocation4 + $0x164] sm:$0xf] }
 0x2b9   :  { %v12175_v0 = vor.u32 %v15238_v57, %v12174_v38  ;;  %v12192_v38 = vld [vmem:[#allocation4 + $0x190] sm:$0xf0]  ;;  %v12198_v57 = vld [vmem:[#allocation4 + $0x188] sm:$0xf] }
 0x2bd   :  { %v1689_v52 = vpop.f32.mrf.mxu2  ;;  %v2431_v20 = vpop.f32.mrf.mxu0 }
 0x2be   :  { %v1778_v19 = vpop.f32.mrf.mxu3  ;;  %v1690_v47 = vadd.f32 %v1689_v52, %v1601_v59  ;;  %v2520_v54 = vpop.f32.mrf.mxu1  ;;  %v12176_v59 = vld [vmem:[#allocation4 + $0x170] sm:$0xf0] }
 0x2bf   :  { %v2521_v48 = vadd.f32 %v2520_v54, %v2431_v20  ;;  %v12179_v16 = vor.u32 %v15236_v5, %v12176_v59  ;;  %v15243_v5 = vld [vmem:[#allocation4 + $0x194] sm:$0xf0]  ;;  %v15241_v59 = vld [vmem:[#allocation4 + $0x18c] sm:$0xf] }
 0x2c0   :  { %v16814_v36 = vadd.f32 %v1778_v19, %v1690_v47  ;;  %2470 = vmatmul.bf16.gmra.mxu0 %v12159_v15  ;;  %v12187_v47 = vor.u32 %v15237_v63, %v12184_v49 }
 0x2c1   :  { %2559 = vmatmul.bf16.gmra.mxu1 %v12163_v1  ;;  %v12183_v1 = vor.u32 %v15239_v6, %v12182_v44  ;;  %v12200_v44 = vld [vmem:[#allocation4 + $0x198] sm:$0xf0] }
 0x2c2   :  { %2648 = vmatmul.bf16.gmra.mxu2 %v12167_v39  ;;  %v15381_v39 = vld [vmem:[#allocation7 + $0x3a8] sm:$0xff] }
 0x2c3   :  { %2737 = vmatmul.bf16.gmra.mxu3 %v12171_v8  ;;  %v15389_v8 = vld [vmem:[#allocation7 + $0x3e8] sm:$0xff]  ;;  %3631 = vmatpush.bf16.msrb.mxu2 %v15381_v39 }
 0x2c4   :  { %3720 = vmatpush.bf16.msrb.mxu3 %v15389_v8 }
 0x2c5   :  { %v2609_v18 = vpop.f32.mrf.mxu2  ;;  %v2433_v61 = vpop.f32.mrf.mxu0 }
 0x2c6   :  { %v2698_v29 = vpop.f32.mrf.mxu3  ;;  %v2610_v34 = vadd.f32 %v2609_v18, %v2521_v48  ;;  %v2522_v43 = vpop.f32.mrf.mxu1 }
 0x2c7   :  { %v2523_v31 = vadd.f32 %v2522_v43, %v2433_v61  ;;  %v12190_v43 = vld [vmem:[#allocation4 + $0x180] sm:$0xf] }
 0x2c8   :  { %v2699_v4 = vadd.f32 %v2698_v29, %v2610_v34 }
 0x2ca   :  { %v16817_v10 = vadd.f32 %v2699_v4, %v16694_v33 }
 0x2cd   :  { %v2611_v35 = vpop.f32.mrf.mxu2  ;;  %v2436_v19 = vpop.f32.mrf.mxu0 }
 0x2ce   :  { %v2700_v51 = vpop.f32.mrf.mxu3  ;;  %v2612_v52 = vadd.f32 %v2611_v35, %v2523_v31  ;;  %v2525_v15 = vpop.f32.mrf.mxu1  ;;  %v15242_v31 = vld [vmem:[#allocation4 + $0x18c] sm:$0xf0] }
 0x2cf   :  { %v2526_v20 = vadd.f32 %v2525_v15, %v2436_v19  ;;  %v12191_v49 = vor.u32 %v15242_v31, %v12190_v43  ;;  %v12203_v19 = vor.u32 %v15241_v59, %v12200_v44  ;;  %v12208_v43 = vld [vmem:[#allocation4 + $0x1b0] sm:$0xf0]  ;;  %v12214_v31 = vld [vmem:[#allocation4 + $0x1a8] sm:$0xf] }
 0x2d0   :  { %v2701_v54 = vadd.f32 %v2700_v51, %v2612_v52  ;;  %2475 = vmatmul.bf16.gmra.mxu0 %v12175_v0  ;;  %v12199_v52 = vor.u32 %v15243_v5, %v12198_v57  ;;  %v12216_v57 = vld [vmem:[#allocation4 + $0x1b8] sm:$0xf0] }
 0x2d1   :  { %2564 = vmatmul.bf16.gmra.mxu1 %v12179_v16 }
 0x2d2   :  { %v16820_v33 = vadd.f32 %v2701_v54, %v16697_v7  ;;  %2653 = vmatmul.bf16.gmra.mxu2 %v12183_v1  ;;  %v15240_v7 = vld [vmem:[#allocation4 + $0x184] sm:$0xf] }
 0x2d3   :  { %2742 = vmatmul.bf16.gmra.mxu3 %v12187_v47  ;;  %v12195_v35 = vor.u32 %v15240_v7, %v12192_v38  ;;  %v15361_v47 = vld [vmem:[#allocation7 + $0x308] sm:$0xff]  ;;  %v15247_v7 = vld [vmem:[#allocation4 + $0x1b4] sm:$0xf0] }
 0x2d4   :  { %3457 = vmatpush.bf16.msrb.mxu0 %v15361_v47  ;;  %v15245_v38 = vld [vmem:[#allocation4 + $0x1ac] sm:$0xf] }
 0x2d5   :  { %v2614_v48 = vpop.f32.mrf.mxu2  ;;  %v2438_v18 = vpop.f32.mrf.mxu0 }
 0x2d6   :  { %v2703_v40 = vpop.f32.mrf.mxu3  ;;  %v2615_v3 = vadd.f32 %v2614_v48, %v2526_v20  ;;  %v2527_v29 = vpop.f32.mrf.mxu1  ;;  %v15369_v20 = vld [vmem:[#allocation7 + $0x348] sm:$0xff] }
 0x2d7   :  { %v2528_v34 = vadd.f32 %v2527_v29, %v2438_v18  ;;  %3546 = vmatpush.bf16.msrb.mxu1 %v15369_v20  ;;  %v12206_v29 = vld [vmem:[#allocation4 + $0x1a0] sm:$0xf] }
 0x2d8   :  { %v2704_v61 = vadd.f32 %v2703_v40, %v2615_v3 }
 0x2da   :  { %v16823_v4 = vadd.f32 %v2704_v61, %v16704_v56 }
 0x2dd   :  { %v2616_v6 = vpop.f32.mrf.mxu2  ;;  %v2441_v0 = vpop.f32.mrf.mxu0 }
 0x2de   :  { %v2705_v63 = vpop.f32.mrf.mxu3  ;;  %v2617_v51 = vadd.f32 %v2616_v6, %v2528_v34  ;;  %v2530_v16 = vpop.f32.mrf.mxu1  ;;  %v15246_v34 = vld [vmem:[#allocation4 + $0x1ac] sm:$0xf0] }
 0x2df   :  { %v2531_v15 = vadd.f32 %v2530_v16, %v2441_v0  ;;  %v12207_v44 = vor.u32 %v15246_v34, %v12206_v29  ;;  %v12219_v0 = vor.u32 %v15245_v38, %v12216_v57  ;;  %v12224_v29 = vld [vmem:[#allocation4 + $0x1d0] sm:$0xf0]  ;;  %v12230_v34 = vld [vmem:[#allocation4 + $0x1c8] sm:$0xf] }
 0x2e0   :  { %v2706_v1 = vadd.f32 %v2705_v63, %v2617_v51  ;;  %2480 = vmatmul.bf16.gmra.mxu0 %v12191_v49  ;;  %v12215_v51 = vor.u32 %v15247_v7, %v12214_v31  ;;  %v12232_v31 = vld [vmem:[#allocation4 + $0x1d8] sm:$0xf0] }
 0x2e1   :  { %2569 = vmatmul.bf16.gmra.mxu1 %v12195_v35 }
 0x2e2   :  { %v16826_v56 = vadd.f32 %v2706_v1, %v16707_v58  ;;  %2658 = vmatmul.bf16.gmra.mxu2 %v12199_v52  ;;  %v15244_v58 = vld [vmem:[#allocation4 + $0x1a4] sm:$0xf] }
 0x2e3   :  { %2747 = vmatmul.bf16.gmra.mxu3 %v12203_v19  ;;  %v12211_v6 = vor.u32 %v15244_v58, %v12208_v43  ;;  %v15380_v19 = vld [vmem:[#allocation7 + $0x3a0] sm:$0xff]  ;;  %v15251_v58 = vld [vmem:[#allocation4 + $0x1d4] sm:$0xf0]  ;;  %v15249_v43 = vld [vmem:[#allocation4 + $0x1cc] sm:$0xf] }
 0x2e4   :  { %3632 = vmatpush.bf16.msrb.mxu2 %v15380_v19 }
 0x2e5   :  { %v2619_v54 = vpop.f32.mrf.mxu2  ;;  %v2443_v48 = vpop.f32.mrf.mxu0 }
 0x2e6   :  { %v2708_v39 = vpop.f32.mrf.mxu3  ;;  %v2620_v8 = vadd.f32 %v2619_v54, %v2531_v15  ;;  %v2532_v40 = vpop.f32.mrf.mxu1  ;;  %v15388_v15 = vld [vmem:[#allocation7 + $0x3e0] sm:$0xff] }
 0x2e7   :  { %v2533_v3 = vadd.f32 %v2532_v40, %v2443_v48  ;;  %3721 = vmatpush.bf16.msrb.mxu3 %v15388_v15  ;;  %v12222_v40 = vld [vmem:[#allocation4 + $0x1c0] sm:$0xf] }
 0x2e8   :  { %v2709_v18 = vadd.f32 %v2708_v39, %v2620_v8 }
 0x2ea   :  { %v16829_v61 = vadd.f32 %v2709_v18, %v16714_v32 }
 0x2ed   :  { %v2621_v5 = vpop.f32.mrf.mxu2  ;;  %v2446_v49 = vpop.f32.mrf.mxu0 }
 0x2ee   :  { %v2710_v59 = vpop.f32.mrf.mxu3  ;;  %v2622_v63 = vadd.f32 %v2621_v5, %v2533_v3  ;;  %v2535_v35 = vpop.f32.mrf.mxu1  ;;  %v15250_v3 = vld [vmem:[#allocation4 + $0x1cc] sm:$0xf0] }
 0x2ef   :  { %v2536_v16 = vadd.f32 %v2535_v35, %v2446_v49  ;;  %v12223_v57 = vor.u32 %v15250_v3, %v12222_v40  ;;  %v12235_v49 = vor.u32 %v15249_v43, %v12232_v31  ;;  %v12240_v40 = vld [vmem:[#allocation4 + $0x1f0] sm:$0xf0]  ;;  %v12246_v3 = vld [vmem:[#allocation4 + $0x1e8] sm:$0xf] }
 0x2f0   :  { %v2711_v52 = vadd.f32 %v2710_v59, %v2622_v63  ;;  %2485 = vmatmul.bf16.gmra.mxu0 %v12207_v44  ;;  %v12231_v63 = vor.u32 %v15251_v58, %v12230_v34  ;;  %v12248_v34 = vld [vmem:[#allocation4 + $0x1f8] sm:$0xf0] }
 0x2f1   :  { %2574 = vmatmul.bf16.gmra.mxu1 %v12211_v6 }
 0x2f2   :  { %v16832_v32 = vadd.f32 %v2711_v52, %v16717_v55  ;;  %2663 = vmatmul.bf16.gmra.mxu2 %v12215_v51  ;;  %v15248_v55 = vld [vmem:[#allocation4 + $0x1c4] sm:$0xf] }
 0x2f3   :  { %2752 = vmatmul.bf16.gmra.mxu3 %v12219_v0  ;;  %v12227_v5 = vor.u32 %v15248_v55, %v12224_v29  ;;  %v15360_v0 = vld [vmem:[#allocation7 + $0x300] sm:$0xff]  ;;  %v15255_v55 = vld [vmem:[#allocation4 + $0x1f4] sm:$0xf0]  ;;  %v15253_v29 = vld [vmem:[#allocation4 + $0x1ec] sm:$0xf] }
 0x2f4   :  { %3458 = vmatpush.bf16.msrb.mxu0 %v15360_v0 }
 0x2f5   :  { %v2624_v1 = vpop.f32.mrf.mxu2  ;;  %v2448_v54 = vpop.f32.mrf.mxu0 }
 0x2f6   :  { %v2713_v47 = vpop.f32.mrf.mxu3  ;;  %v2625_v20 = vadd.f32 %v2624_v1, %v2536_v16  ;;  %v2537_v39 = vpop.f32.mrf.mxu1  ;;  %v15368_v16 = vld [vmem:[#allocation7 + $0x340] sm:$0xff] }
 0x2f7   :  { %v2538_v8 = vadd.f32 %v2537_v39, %v2448_v54  ;;  %3547 = vmatpush.bf16.msrb.mxu1 %v15368_v16  ;;  %v12238_v39 = vld [vmem:[#allocation4 + $0x1e0] sm:$0xf]  ;;  %v15378_v16 = vld [vmem:[#allocation7 + $0x390] sm:$0xff] }
 0x2f8   :  { %v2714_v48 = vadd.f32 %v2713_v47, %v2625_v20 }
 0x2fa   :  { %v16835_v18 = vadd.f32 %v2714_v48, %v16724_v21 }
 0x2fd   :  { %v2626_v7 = vpop.f32.mrf.mxu2  ;;  %v2451_v44 = vpop.f32.mrf.mxu0 }
 0x2fe   :  { %v2715_v38 = vpop.f32.mrf.mxu3  ;;  %v2627_v59 = vadd.f32 %v2626_v7, %v2538_v8  ;;  %v2540_v6 = vpop.f32.mrf.mxu1  ;;  %v15254_v8 = vld [vmem:[#allocation4 + $0x1ec] sm:$0xf0] }
 0x2ff   :  { %v2541_v35 = vadd.f32 %v2540_v6, %v2451_v44  ;;  %v12239_v31 = vor.u32 %v15254_v8, %v12238_v39  ;;  %v12251_v44 = vor.u32 %v15253_v29, %v12248_v34  ;;  %v15258_v39 = vld [vmem:[#allocation4 + $0x20c] sm:$0xf0]  ;;  %v15377_v8 = vld [vmem:[#allocation7 + $0x388] sm:$0xff]  ;;  %v15259_v29 = vld [vmem:[#allocation4 + $0x214] sm:$0xf0] }
 0x300   :  { %v2716_v51 = vadd.f32 %v2715_v38, %v2627_v59  ;;  %2490 = vmatmul.bf16.gmra.mxu0 %v12223_v57  ;;  %v12247_v59 = vor.u32 %v15255_v55, %v12246_v3  ;;  %v12256_v3 = vld [vmem:[#allocation4 + $0x210] sm:$0xf0]  ;;  %v12262_v55 = vld [vmem:[#allocation4 + $0x208] sm:$0xf]  ;;  %v15257_v34 = vld [vmem:[#allocation4 + $0x20c] sm:$0xf] }
 0x301   :  { %2579 = vmatmul.bf16.gmra.mxu1 %v12227_v5 }
 0x302   :  { %v16838_v21 = vadd.f32 %v2716_v51, %v16727_v9  ;;  %2668 = vmatmul.bf16.gmra.mxu2 %v12231_v63  ;;  %v15252_v9 = vld [vmem:[#allocation4 + $0x1e4] sm:$0xf] }
 0x303   :  { %2757 = vmatmul.bf16.gmra.mxu3 %v12235_v49  ;;  %v12243_v7 = vor.u32 %v15252_v9, %v12240_v40  ;;  %v15387_v49 = vld [vmem:[#allocation7 + $0x3d8] sm:$0xff]  ;;  %v15256_v40 = vld [vmem:[#allocation4 + $0x204] sm:$0xf] }
 0x304   :  { %3722 = vmatpush.bf16.msrb.mxu3 %v15387_v49 }
 0x305   :  { %v2629_v52 = vpop.f32.mrf.mxu2  ;;  %v2453_v1 = vpop.f32.mrf.mxu0 }
 0x306   :  { %v2718_v19 = vpop.f32.mrf.mxu3  ;;  %v2630_v15 = vadd.f32 %v2629_v52, %v2541_v35  ;;  %v2542_v47 = vpop.f32.mrf.mxu1  ;;  %v15386_v52 = vld [vmem:[#allocation7 + $0x3d0] sm:$0xff] }
 0x307   :  { %v2543_v20 = vadd.f32 %v2542_v47, %v2453_v1 }
 0x308   :  { %v2719_v54 = vadd.f32 %v2718_v19, %v2630_v15  ;;  %3723 = vmatpush.bf16.msrb.mxu3 %v15386_v52 }
 0x30a   :  { %v16841_v48 = vadd.f32 %v2719_v54, %v16734_v45  ;;  %v15379_v45 = vld [vmem:[#allocation7 + $0x398] sm:$0xff]  ;;  %v12254_v54 = vld [vmem:[#allocation4 + $0x200] sm:$0xf] }
 0x30b   :  { %3633 = vmatpush.bf16.msrb.mxu2 %v15379_v45 }
 0x30d   :  { %v2631_v58 = vpop.f32.mrf.mxu2  ;;  %v2456_v57 = vpop.f32.mrf.mxu0 }
 0x30e   :  { %v2720_v43 = vpop.f32.mrf.mxu3  ;;  %v2632_v38 = vadd.f32 %v2631_v58, %v2543_v20  ;;  %v2545_v5 = vpop.f32.mrf.mxu1  ;;  %v12264_v58 = vld [vmem:[#allocation4 + $0x218] sm:$0xf0] }
 0x30f   :  { %v2546_v6 = vadd.f32 %v2545_v5, %v2456_v57  ;;  %3634 = vmatpush.bf16.msrb.mxu2 %v15378_v16  ;;  %v15376_v57 = vld [vmem:[#allocation7 + $0x380] sm:$0xff]  ;;  %v15471_v16 = vld [vmem:[#allocation7 + $0x478] sm:$0xff] }
 0x310   :  { %v2721_v63 = vadd.f32 %v2720_v43, %v2632_v38  ;;  %2495 = vmatmul.bf16.gmra.mxu0 %v12239_v31  ;;  %v12259_v38 = vor.u32 %v15256_v40, %v12256_v3  ;;  %v15384_v5 = vld [vmem:[#allocation7 + $0x3c0] sm:$0xff]  ;;  %4569 = vmatpush.bf16.msra.mxu1 %v15471_v16  ;;  %v12272_v40 = vld [vmem:[#allocation4 + $0x230] sm:$0xf0]  ;;  %v12278_v3 = vld [vmem:[#allocation4 + $0x228] sm:$0xf] }
 0x311   :  { %2584 = vmatmul.bf16.gmra.mxu1 %v12243_v7  ;;  %v12255_v7 = vor.u32 %v15258_v39, %v12254_v54  ;;  %v12270_v39 = vld [vmem:[#allocation4 + $0x220] sm:$0xf] }
 0x312   :  { %v16844_v35 = vadd.f32 %v2721_v63, %v16737_v53  ;;  %2673 = vmatmul.bf16.gmra.mxu2 %v12247_v59  ;;  %v15385_v53 = vld [vmem:[#allocation7 + $0x3c8] sm:$0xff]  ;;  %v12263_v63 = vor.u32 %v15259_v29, %v12262_v55  ;;  %v15263_v55 = vld [vmem:[#allocation4 + $0x234] sm:$0xf0] }
 0x313   :  { %2762 = vmatmul.bf16.gmra.mxu3 %v12251_v44  ;;  %3635 = vmatpush.bf16.msrb.mxu2 %v15377_v8  ;;  %v15262_v8 = vld [vmem:[#allocation4 + $0x22c] sm:$0xf0]  ;;  %v15261_v29 = vld [vmem:[#allocation4 + $0x22c] sm:$0xf] }
 0x314   :  { %3724 = vmatpush.bf16.msrb.mxu3 %v15385_v53 }
 0x315   :  { %v2634_v51 = vpop.f32.mrf.mxu2  ;;  %v2458_v15 = vpop.f32.mrf.mxu0 }
 0x316   :  { %v2723_v0 = vpop.f32.mrf.mxu3  ;;  %v2635_v19 = vadd.f32 %v2634_v51, %v2546_v6  ;;  %v2547_v1 = vpop.f32.mrf.mxu1 }
 0x317   :  { %v2548_v47 = vadd.f32 %v2547_v1, %v2458_v15  ;;  %3636 = vmatpush.bf16.msrb.mxu2 %v15376_v57 }
 0x318   :  { %v2724_v20 = vadd.f32 %v2723_v0, %v2635_v19  ;;  %3725 = vmatpush.bf16.msrb.mxu3 %v15384_v5  ;;  %v15463_v0 = vld [vmem:[#allocation7 + $0x438] sm:$0xff] }
 0x319   :  { %4480 = vmatpush.bf16.msra.mxu0 %v15463_v0 }
 0x31a   :  { %v16847_v9 = vadd.f32 %v2724_v20, %v16744_v30  ;;  %v12267_v30 = vor.u32 %v15257_v34, %v12264_v58  ;;  %v12280_v34 = vld [vmem:[#allocation4 + $0x238] sm:$0xf0] }
 0x31d   :  { %v2636_v43 = vpop.f32.mrf.mxu2  ;;  %v2461_v44 = vpop.f32.mrf.mxu0 }
 0x31e   :  { %v2725_v31 = vpop.f32.mrf.mxu3  ;;  %v2637_v59 = vadd.f32 %v2636_v43, %v2548_v47  ;;  %v2550_v6 = vpop.f32.mrf.mxu1 }
 0x31f   :  { %v2551_v45 = vadd.f32 %v2550_v6, %v2461_v44  ;;  %v12283_v44 = vor.u32 %v15261_v29, %v12280_v34 }
 0x320   :  { %v2726_v49 = vadd.f32 %v2725_v31, %v2637_v59  ;;  %2500 = vmatmul.bf16.gmra.mxu0 %v12255_v7  ;;  %v12271_v31 = vor.u32 %v15262_v8, %v12270_v39  ;;  %v12279_v59 = vor.u32 %v15263_v55, %v12278_v3  ;;  %v12422_v39 = vld [vmem:[#allocation4 + $0x68] sm:$0xf]  ;;  %v15299_v8 = vld [vmem:[#allocation4 + $0x74] sm:$0xf0] }
 0x321   :  { %2589 = vmatmul.bf16.gmra.mxu1 %v12259_v38 }
 0x322   :  { %v16850_v51 = vadd.f32 %v2726_v49, %v16747_v50  ;;  %2678 = vmatmul.bf16.gmra.mxu2 %v12263_v63  ;;  %v15260_v50 = vld [vmem:[#allocation4 + $0x224] sm:$0xf] }
 0x323   :  { %2767 = vmatmul.bf16.gmra.mxu3 %v12267_v30  ;;  %v12275_v7 = vor.u32 %v15260_v50, %v12272_v40  ;;  %v12424_v50 = vld [vmem:[#allocation4 + $0x78] sm:$0xf0] }
 0x325   :  { %v2639_v52 = vpop.f32.mrf.mxu2  ;;  %v2463_v1 = vpop.f32.mrf.mxu0 }
 0x326   :  { %v2728_v19 = vpop.f32.mrf.mxu3  ;;  %v2640_v15 = vadd.f32 %v2639_v52, %v2551_v45  ;;  %v2552_v47 = vpop.f32.mrf.mxu1 }
 0x327   :  { %v2553_v20 = vadd.f32 %v2552_v47, %v2463_v1  ;;  %v15298_v1 = vld [vmem:[#allocation4 + $0x6c] sm:$0xf0] }
 0x328   :  { %v2729_v54 = vadd.f32 %v2728_v19, %v2640_v15  ;;  %v12414_v15 = vld [vmem:[#allocation4 + $0x60] sm:$0xf] }
 0x329   :  { %v12415_v55 = vor.u32 %v15298_v1, %v12414_v15  ;;  %v12432_v15 = vld [vmem:[#allocation4 + $0x90] sm:$0xf0]  ;;  %v12438_v1 = vld [vmem:[#allocation4 + $0x88] sm:$0xf] }
 0x32a   :  { %v16853_v53 = vadd.f32 %v2729_v54, %v16754_v62  ;;  %v12416_v54 = vld [vmem:[#allocation4 + $0x70] sm:$0xf0] }
 0x32d   :  { %v2641_v58 = vpop.f32.mrf.mxu2  ;;  %v2466_v57 = vpop.f32.mrf.mxu0 }
 0x32e   :  { %v2730_v43 = vpop.f32.mrf.mxu3  ;;  %v2642_v38 = vadd.f32 %v2641_v58, %v2553_v20  ;;  %v2555_v5 = vpop.f32.mrf.mxu1  ;;  %v15296_v20 = vld [vmem:[#allocation4 + $0x64] sm:$0xf] }
 0x32f   :  { %v2556_v6 = vadd.f32 %v2555_v5, %v2466_v57  ;;  %v12419_v29 = vor.u32 %v15296_v20, %v12416_v54  ;;  %v15462_v5 = vld [vmem:[#allocation7 + $0x430] sm:$0xff]  ;;  %v15303_v20 = vld [vmem:[#allocation4 + $0x94] sm:$0xf0]  ;;  %v15301_v54 = vld [vmem:[#allocation4 + $0x8c] sm:$0xf] }
 0x330   :  { %v2731_v63 = vadd.f32 %v2730_v43, %v2642_v38  ;;  %2505 = vmatmul.bf16.gmra.mxu0 %v12271_v31  ;;  %v12423_v31 = vor.u32 %v15299_v8, %v12422_v39  ;;  %v12440_v39 = vld [vmem:[#allocation4 + $0x98] sm:$0xf0] }
 0x331   :  { %2594 = vmatmul.bf16.gmra.mxu1 %v12275_v7  ;;  %4481 = vmatpush.bf16.msra.mxu0 %v15462_v5 }
 0x332   :  { %v16856_v62 = vadd.f32 %v2731_v63, %v16757_v42  ;;  %2683 = vmatmul.bf16.gmra.mxu2 %v12279_v59  ;;  %v15297_v42 = vld [vmem:[#allocation4 + $0x6c] sm:$0xf]  ;;  %v15470_v59 = vld [vmem:[#allocation7 + $0x470] sm:$0xff] }
 0x333   :  { %2772 = vmatmul.bf16.gmra.mxu3 %v12283_v44  ;;  %v12427_v7 = vor.u32 %v15297_v42, %v12424_v50  ;;  %4570 = vmatpush.bf16.msra.mxu1 %v15470_v59 }
 0x335   :  { %v2644_v30 = vpop.f32.mrf.mxu2  ;;  %v2468_v0 = vpop.f32.mrf.mxu0 }
 0x336   :  { %v2733_v45 = vpop.f32.mrf.mxu3  ;;  %v2645_v49 = vadd.f32 %v2644_v30, %v2556_v6  ;;  %v2557_v16 = vpop.f32.mrf.mxu1 }
 0x337   :  { %v2558_v52 = vadd.f32 %v2557_v16, %v2468_v0  ;;  %v12430_v16 = vld [vmem:[#allocation4 + $0x80] sm:$0xf] }
 0x338   :  { %v2734_v19 = vadd.f32 %v2733_v45, %v2645_v49 }
 0x33a   :  { %v16859_v47 = vadd.f32 %v2734_v19, %v16764_v60 }
 0x33d   :  { %v2646_v40 = vpop.f32.mrf.mxu2  ;;  %v2471_v58 = vpop.f32.mrf.mxu0 }
 0x33e   :  { %v2735_v3 = vpop.f32.mrf.mxu3  ;;  %v2647_v34 = vadd.f32 %v2646_v40, %v2558_v52  ;;  %v2560_v43 = vpop.f32.mrf.mxu1  ;;  %v15302_v52 = vld [vmem:[#allocation4 + $0x8c] sm:$0xf0] }
 0x33f   :  { %v2561_v38 = vadd.f32 %v2560_v43, %v2471_v58  ;;  %v12431_v50 = vor.u32 %v15302_v52, %v12430_v16  ;;  %v12443_v58 = vor.u32 %v15301_v54, %v12440_v39  ;;  %v12454_v16 = vld [vmem:[#allocation4 + $0xa8] sm:$0xf]  ;;  %v15307_v52 = vld [vmem:[#allocation4 + $0xb4] sm:$0xf0] }
 0x340   :  { %v2736_v57 = vadd.f32 %v2735_v3, %v2647_v34  ;;  %3459 = vmatmul.bf16.vlgmr.msrb.gmra.mxu0 %v12415_v55  ;;  %v12439_v34 = vor.u32 %v15303_v20, %v12438_v1 }
 0x341   :  { %3548 = vmatmul.bf16.vlgmr.msrb.gmra.mxu1 %v12419_v29 }
 0x342   :  { %v16862_v60 = vadd.f32 %v2736_v57, %v16767_v22  ;;  %3637 = vmatmul.bf16.vlgmr.msrb.gmra.mxu2 %v12423_v31  ;;  %v15300_v22 = vld [vmem:[#allocation4 + $0x84] sm:$0xf] }
 0x343   :  { %3726 = vmatmul.bf16.vlgmr.msrb.gmra.mxu3 %v12427_v7  ;;  %v12435_v40 = vor.u32 %v15300_v22, %v12432_v15  ;;  %v12456_v22 = vld [vmem:[#allocation4 + $0xb8] sm:$0xf0] }
 0x345   :  { %v2649_v44 = vpop.f32.mrf.mxu2  ;;  %v2473_v30 = vpop.f32.mrf.mxu0 }
 0x346   :  { %v2738_v6 = vpop.f32.mrf.mxu3  ;;  %v2650_v63 = vadd.f32 %v2649_v44, %v2561_v38  ;;  %v2562_v45 = vpop.f32.mrf.mxu1 }
 0x347   :  { %v2563_v49 = vadd.f32 %v2562_v45, %v2473_v30  ;;  %v15306_v30 = vld [vmem:[#allocation4 + $0xac] sm:$0xf0] }
 0x348   :  { %v2739_v0 = vadd.f32 %v2738_v6, %v2650_v63  ;;  %v12446_v63 = vld [vmem:[#allocation4 + $0xa0] sm:$0xf] }
 0x349   :  { %v12447_v20 = vor.u32 %v15306_v30, %v12446_v63  ;;  %v12464_v63 = vld [vmem:[#allocation4 + $0xd0] sm:$0xf0]  ;;  %v12470_v30 = vld [vmem:[#allocation4 + $0xc8] sm:$0xf] }
 0x34a   :  { %v16865_v19 = vadd.f32 %v2739_v0, %v16770_v26  ;;  %v12448_v0 = vld [vmem:[#allocation4 + $0xb0] sm:$0xf0] }
 0x34d   :  { %v2651_v8 = vpop.f32.mrf.mxu2  ;;  %v2476_v55 = vpop.f32.mrf.mxu0 }
 0x34e   :  { %v2740_v42 = vpop.f32.mrf.mxu3  ;;  %v2652_v3 = vadd.f32 %v2651_v8, %v2563_v49  ;;  %v2565_v29 = vpop.f32.mrf.mxu1  ;;  %v15304_v49 = vld [vmem:[#allocation4 + $0xa4] sm:$0xf] }
 0x34f   :  { %v2566_v43 = vadd.f32 %v2565_v29, %v2476_v55  ;;  %v12451_v54 = vor.u32 %v15304_v49, %v12448_v0  ;;  %v15461_v29 = vld [vmem:[#allocation7 + $0x428] sm:$0xff]  ;;  %v15311_v49 = vld [vmem:[#allocation4 + $0xd4] sm:$0xf0] }
 0x350   :  { %v2741_v31 = vadd.f32 %v2740_v42, %v2652_v3  ;;  %3464 = vmatmul.bf16.gmra.mxu0 %v12431_v50  ;;  %v12455_v50 = vor.u32 %v15307_v52, %v12454_v16  ;;  %v15309_v0 = vld [vmem:[#allocation4 + $0xcc] sm:$0xf]  ;;  %v12472_v16 = vld [vmem:[#allocation4 + $0xd8] sm:$0xf0] }
 0x351   :  { %3553 = vmatmul.bf16.gmra.mxu1 %v12435_v40  ;;  %4482 = vmatpush.bf16.msra.mxu0 %v15461_v29 }
 0x352   :  { %v16868_v26 = vadd.f32 %v2741_v31, %v16773_v2  ;;  %3642 = vmatmul.bf16.gmra.mxu2 %v12439_v34  ;;  %v15305_v2 = vld [vmem:[#allocation4 + $0xac] sm:$0xf] }
 0x353   :  { %3731 = vmatmul.bf16.gmra.mxu3 %v12443_v58  ;;  %v12459_v40 = vor.u32 %v15305_v2, %v12456_v22  ;;  %v15469_v34 = vld [vmem:[#allocation7 + $0x468] sm:$0xff] }
 0x354   :  { %4571 = vmatpush.bf16.msra.mxu1 %v15469_v34 }
 0x355   :  { %v2654_v7 = vpop.f32.mrf.mxu2  ;;  %v2478_v5 = vpop.f32.mrf.mxu0 }
 0x356   :  { %v2743_v38 = vpop.f32.mrf.mxu3  ;;  %v2655_v57 = vadd.f32 %v2654_v7, %v2566_v43  ;;  %v2567_v59 = vpop.f32.mrf.mxu1 }
 0x357   :  { %v2568_v44 = vadd.f32 %v2567_v59, %v2478_v5  ;;  %v12462_v59 = vld [vmem:[#allocation4 + $0xc0] sm:$0xf] }
 0x358   :  { %v2744_v6 = vadd.f32 %v2743_v38, %v2655_v57 }
 0x35a   :  { %v16871_v45 = vadd.f32 %v2744_v6, %v16776_v13 }
 0x35d   :  { %v2656_v15 = vpop.f32.mrf.mxu2  ;;  %v2481_v8 = vpop.f32.mrf.mxu0 }
 0x35e   :  { %v2745_v1 = vpop.f32.mrf.mxu3  ;;  %v2657_v39 = vadd.f32 %v2656_v15, %v2568_v44  ;;  %v2570_v42 = vpop.f32.mrf.mxu1  ;;  %v15310_v44 = vld [vmem:[#allocation4 + $0xcc] sm:$0xf0] }
 0x35f   :  { %v2571_v3 = vadd.f32 %v2570_v42, %v2481_v8  ;;  %v12463_v22 = vor.u32 %v15310_v44, %v12462_v59  ;;  %v12475_v8 = vor.u32 %v15309_v0, %v12472_v16  ;;  %v12486_v59 = vld [vmem:[#allocation4 + $0xe8] sm:$0xf]  ;;  %v15315_v44 = vld [vmem:[#allocation4 + $0xf4] sm:$0xf0] }
 0x360   :  { %v2746_v55 = vadd.f32 %v2745_v1, %v2657_v39  ;;  %3469 = vmatmul.bf16.gmra.mxu0 %v12447_v20  ;;  %v12471_v39 = vor.u32 %v15311_v49, %v12470_v30 }
 0x361   :  { %3558 = vmatmul.bf16.gmra.mxu1 %v12451_v54 }
 0x362   :  { %v16874_v13 = vadd.f32 %v2746_v55, %v16779_v28  ;;  %3647 = vmatmul.bf16.gmra.mxu2 %v12455_v50  ;;  %v15308_v28 = vld [vmem:[#allocation4 + $0xc4] sm:$0xf] }
 0x363   :  { %3736 = vmatmul.bf16.gmra.mxu3 %v12459_v40  ;;  %v12467_v15 = vor.u32 %v15308_v28, %v12464_v63  ;;  %v12488_v28 = vld [vmem:[#allocation4 + $0xf8] sm:$0xf0] }
 0x365   :  { %v2659_v58 = vpop.f32.mrf.mxu2  ;;  %v2483_v7 = vpop.f32.mrf.mxu0 }
 0x366   :  { %v2748_v43 = vpop.f32.mrf.mxu3  ;;  %v2660_v31 = vadd.f32 %v2659_v58, %v2571_v3  ;;  %v2572_v38 = vpop.f32.mrf.mxu1 }
 0x367   :  { %v2573_v57 = vadd.f32 %v2572_v38, %v2483_v7  ;;  %v15314_v7 = vld [vmem:[#allocation4 + $0xec] sm:$0xf0] }
 0x368   :  { %v2749_v5 = vadd.f32 %v2748_v43, %v2660_v31  ;;  %v12478_v31 = vld [vmem:[#allocation4 + $0xe0] sm:$0xf] }
 0x369   :  { %v12479_v49 = vor.u32 %v15314_v7, %v12478_v31  ;;  %v12496_v31 = vld [vmem:[#allocation4 + $0x110] sm:$0xf0]  ;;  %v12502_v7 = vld [vmem:[#allocation4 + $0x108] sm:$0xf] }
 0x36a   :  { %v16877_v6 = vadd.f32 %v2749_v5, %v16782_v17  ;;  %v12480_v5 = vld [vmem:[#allocation4 + $0xf0] sm:$0xf0] }
 0x36d   :  { %v2661_v52 = vpop.f32.mrf.mxu2  ;;  %v2486_v20 = vpop.f32.mrf.mxu0 }
 0x36e   :  { %v2750_v2 = vpop.f32.mrf.mxu3  ;;  %v2662_v1 = vadd.f32 %v2661_v52, %v2573_v57  ;;  %v2575_v54 = vpop.f32.mrf.mxu1  ;;  %v15312_v57 = vld [vmem:[#allocation4 + $0xe4] sm:$0xf] }
 0x36f   :  { %v2576_v42 = vadd.f32 %v2575_v54, %v2486_v20  ;;  %v12483_v0 = vor.u32 %v15312_v57, %v12480_v5  ;;  %v15460_v54 = vld [vmem:[#allocation7 + $0x420] sm:$0xff]  ;;  %v15319_v57 = vld [vmem:[#allocation4 + $0x114] sm:$0xf0]  ;;  %v15317_v5 = vld [vmem:[#allocation4 + $0x10c] sm:$0xf] }
 0x370   :  { %v2751_v50 = vadd.f32 %v2750_v2, %v2662_v1  ;;  %3474 = vmatmul.bf16.gmra.mxu0 %v12463_v22  ;;  %v12487_v22 = vor.u32 %v15315_v44, %v12486_v59  ;;  %v12504_v59 = vld [vmem:[#allocation4 + $0x118] sm:$0xf0] }
 0x371   :  { %3563 = vmatmul.bf16.gmra.mxu1 %v12467_v15  ;;  %4483 = vmatpush.bf16.msra.mxu0 %v15460_v54 }
 0x372   :  { %v16880_v17 = vadd.f32 %v2751_v50, %v16785_v14  ;;  %3652 = vmatmul.bf16.gmra.mxu2 %v12471_v39  ;;  %v15313_v14 = vld [vmem:[#allocation4 + $0xec] sm:$0xf]  ;;  %v15468_v39 = vld [vmem:[#allocation7 + $0x460] sm:$0xff] }
 0x373   :  { %3741 = vmatmul.bf16.gmra.mxu3 %v12475_v8  ;;  %v12491_v15 = vor.u32 %v15313_v14, %v12488_v28  ;;  %4572 = vmatpush.bf16.msra.mxu1 %v15468_v39 }
 0x375   :  { %v2664_v40 = vpop.f32.mrf.mxu2  ;;  %v2488_v29 = vpop.f32.mrf.mxu0 }
 0x376   :  { %v2753_v3 = vpop.f32.mrf.mxu3  ;;  %v2665_v55 = vadd.f32 %v2664_v40, %v2576_v42  ;;  %v2577_v34 = vpop.f32.mrf.mxu1 }
 0x377   :  { %v2578_v58 = vadd.f32 %v2577_v34, %v2488_v29  ;;  %v12494_v34 = vld [vmem:[#allocation4 + $0x100] sm:$0xf] }
 0x378   :  { %v2754_v43 = vadd.f32 %v2753_v3, %v2665_v55 }
 0x37a   :  { %v16883_v38 = vadd.f32 %v2754_v43, %v16788_v12 }
 0x37d   :  { %v2666_v63 = vpop.f32.mrf.mxu2  ;;  %v2491_v52 = vpop.f32.mrf.mxu0 }
 0x37e   :  { %v2755_v30 = vpop.f32.mrf.mxu3  ;;  %v2667_v16 = vadd.f32 %v2666_v63, %v2578_v58  ;;  %v2580_v2 = vpop.f32.mrf.mxu1  ;;  %v15318_v58 = vld [vmem:[#allocation4 + $0x10c] sm:$0xf0] }
 0x37f   :  { %v2581_v1 = vadd.f32 %v2580_v2, %v2491_v52  ;;  %v12495_v28 = vor.u32 %v15318_v58, %v12494_v34  ;;  %v12507_v52 = vor.u32 %v15317_v5, %v12504_v59  ;;  %v12512_v34 = vld [vmem:[#allocation4 + $0x130] sm:$0xf0]  ;;  %v12518_v58 = vld [vmem:[#allocation4 + $0x128] sm:$0xf] }
 0x380   :  { %v2756_v20 = vadd.f32 %v2755_v30, %v2667_v16  ;;  %3479 = vmatmul.bf16.gmra.mxu0 %v12479_v49  ;;  %v12503_v16 = vor.u32 %v15319_v57, %v12502_v7  ;;  %v12520_v7 = vld [vmem:[#allocation4 + $0x138] sm:$0xf0] }
 0x381   :  { %3568 = vmatmul.bf16.gmra.mxu1 %v12483_v0 }
 0x382   :  { %v16886_v12 = vadd.f32 %v2756_v20, %v16791_v27  ;;  %3657 = vmatmul.bf16.gmra.mxu2 %v12487_v22  ;;  %v15316_v27 = vld [vmem:[#allocation4 + $0x104] sm:$0xf] }
 0x383   :  { %3746 = vmatmul.bf16.gmra.mxu3 %v12491_v15  ;;  %v12499_v63 = vor.u32 %v15316_v27, %v12496_v31  ;;  %v15479_v15 = vld [vmem:[#allocation7 + $0x4b8] sm:$0xff]  ;;  %v15321_v31 = vld [vmem:[#allocation4 + $0x12c] sm:$0xf] }
 0x384   :  { %4658 = vmatpush.bf16.msra.mxu2 %v15479_v15  ;;  %v15323_v27 = vld [vmem:[#allocation4 + $0x134] sm:$0xf0] }
 0x385   :  { %v2669_v8 = vpop.f32.mrf.mxu2  ;;  %v2493_v40 = vpop.f32.mrf.mxu0 }
 0x386   :  { %v2758_v42 = vpop.f32.mrf.mxu3  ;;  %v2670_v50 = vadd.f32 %v2669_v8, %v2581_v1  ;;  %v2582_v3 = vpop.f32.mrf.mxu1  ;;  %v15487_v1 = vld [vmem:[#allocation7 + $0x4f8] sm:$0xff] }
 0x387   :  { %v2583_v55 = vadd.f32 %v2582_v3, %v2493_v40  ;;  %4747 = vmatpush.bf16.msra.mxu3 %v15487_v1  ;;  %v12510_v3 = vld [vmem:[#allocation4 + $0x120] sm:$0xf] }
 0x388   :  { %v2759_v29 = vadd.f32 %v2758_v42, %v2670_v50 }
 0x38a   :  { %v16889_v43 = vadd.f32 %v2759_v29, %v16794_v46 }
 0x38d   :  { %v2671_v44 = vpop.f32.mrf.mxu2  ;;  %v2496_v49 = vpop.f32.mrf.mxu0 }
 0x38e   :  { %v2760_v14 = vpop.f32.mrf.mxu3  ;;  %v2672_v30 = vadd.f32 %v2671_v44, %v2583_v55  ;;  %v2585_v0 = vpop.f32.mrf.mxu1  ;;  %v15322_v55 = vld [vmem:[#allocation4 + $0x12c] sm:$0xf0] }
 0x38f   :  { %v2586_v2 = vadd.f32 %v2585_v0, %v2496_v49  ;;  %v12511_v59 = vor.u32 %v15322_v55, %v12510_v3  ;;  %v12523_v49 = vor.u32 %v15321_v31, %v12520_v7  ;;  %v12528_v3 = vld [vmem:[#allocation4 + $0x150] sm:$0xf0]  ;;  %v12534_v55 = vld [vmem:[#allocation4 + $0x148] sm:$0xf] }
 0x390   :  { %v2761_v22 = vadd.f32 %v2760_v14, %v2672_v30  ;;  %3484 = vmatmul.bf16.gmra.mxu0 %v12495_v28  ;;  %v12519_v30 = vor.u32 %v15323_v27, %v12518_v58  ;;  %v12536_v58 = vld [vmem:[#allocation4 + $0x158] sm:$0xf0] }
 0x391   :  { %3573 = vmatmul.bf16.gmra.mxu1 %v12499_v63 }
 0x392   :  { %v16892_v46 = vadd.f32 %v2761_v22, %v16797_v25  ;;  %3662 = vmatmul.bf16.gmra.mxu2 %v12503_v16  ;;  %v15320_v25 = vld [vmem:[#allocation4 + $0x124] sm:$0xf] }
 0x393   :  { %3751 = vmatmul.bf16.gmra.mxu3 %v12507_v52  ;;  %v12515_v44 = vor.u32 %v15320_v25, %v12512_v34  ;;  %v15459_v52 = vld [vmem:[#allocation7 + $0x418] sm:$0xff]  ;;  %v15325_v34 = vld [vmem:[#allocation4 + $0x14c] sm:$0xf] }
 0x394   :  { %4484 = vmatpush.bf16.msra.mxu0 %v15459_v52  ;;  %v15327_v25 = vld [vmem:[#allocation4 + $0x154] sm:$0xf0] }
 0x395   :  { %v2674_v20 = vpop.f32.mrf.mxu2  ;;  %v2498_v8 = vpop.f32.mrf.mxu0 }
 0x396   :  { %v2763_v54 = vpop.f32.mrf.mxu3  ;;  %v2675_v39 = vadd.f32 %v2674_v20, %v2586_v2  ;;  %v2587_v42 = vpop.f32.mrf.mxu1  ;;  %v15467_v2 = vld [vmem:[#allocation7 + $0x458] sm:$0xff] }
 0x397   :  { %v2588_v50 = vadd.f32 %v2587_v42, %v2498_v8  ;;  %4573 = vmatpush.bf16.msra.mxu1 %v15467_v2  ;;  %v12526_v42 = vld [vmem:[#allocation4 + $0x140] sm:$0xf] }
 0x398   :  { %v2764_v40 = vadd.f32 %v2763_v54, %v2675_v39 }
 0x39a   :  { %v16895_v29 = vadd.f32 %v2764_v40, %v16800_v37 }
 0x39d   :  { %v2676_v57 = vpop.f32.mrf.mxu2  ;;  %v2501_v28 = vpop.f32.mrf.mxu0 }
 0x39e   :  { %v2765_v5 = vpop.f32.mrf.mxu3  ;;  %v2677_v14 = vadd.f32 %v2676_v57, %v2588_v50  ;;  %v2590_v63 = vpop.f32.mrf.mxu1  ;;  %v15326_v50 = vld [vmem:[#allocation4 + $0x14c] sm:$0xf0] }
 0x39f   :  { %v2591_v0 = vadd.f32 %v2590_v63, %v2501_v28  ;;  %v12527_v7 = vor.u32 %v15326_v50, %v12526_v42  ;;  %v12539_v28 = vor.u32 %v15325_v34, %v12536_v58  ;;  %v12544_v42 = vld [vmem:[#allocation4 + $0x170] sm:$0xf0]  ;;  %v12550_v50 = vld [vmem:[#allocation4 + $0x168] sm:$0xf] }
 0x3a0   :  { %v2766_v16 = vadd.f32 %v2765_v5, %v2677_v14  ;;  %3489 = vmatmul.bf16.gmra.mxu0 %v12511_v59  ;;  %v12535_v14 = vor.u32 %v15327_v25, %v12534_v55  ;;  %v12552_v55 = vld [vmem:[#allocation4 + $0x178] sm:$0xf0] }
 0x3a1   :  { %3578 = vmatmul.bf16.gmra.mxu1 %v12515_v44 }
 0x3a2   :  { %v16898_v37 = vadd.f32 %v2766_v16, %v16803_v24  ;;  %3667 = vmatmul.bf16.gmra.mxu2 %v12519_v30  ;;  %v15324_v24 = vld [vmem:[#allocation4 + $0x144] sm:$0xf] }
 0x3a3   :  { %3756 = vmatmul.bf16.gmra.mxu3 %v12523_v49  ;;  %v12531_v57 = vor.u32 %v15324_v24, %v12528_v3  ;;  %v15478_v49 = vld [vmem:[#allocation7 + $0x4b0] sm:$0xff]  ;;  %v15331_v24 = vld [vmem:[#allocation4 + $0x174] sm:$0xf0]  ;;  %v15329_v3 = vld [vmem:[#allocation4 + $0x16c] sm:$0xf] }
 0x3a4   :  { %4659 = vmatpush.bf16.msra.mxu2 %v15478_v49 }
 0x3a5   :  { %v2679_v22 = vpop.f32.mrf.mxu2  ;;  %v2503_v20 = vpop.f32.mrf.mxu0 }
 0x3a6   :  { %v2768_v15 = vpop.f32.mrf.mxu3  ;;  %v2680_v1 = vadd.f32 %v2679_v22, %v2591_v0  ;;  %v2592_v54 = vpop.f32.mrf.mxu1  ;;  %v15486_v0 = vld [vmem:[#allocation7 + $0x4f0] sm:$0xff] }
 0x3a7   :  { %v2593_v39 = vadd.f32 %v2592_v54, %v2503_v20  ;;  %4748 = vmatpush.bf16.msra.mxu3 %v15486_v0  ;;  %v12542_v54 = vld [vmem:[#allocation4 + $0x160] sm:$0xf] }
 0x3a8   :  { %v2769_v8 = vadd.f32 %v2768_v15, %v2680_v1 }
 0x3aa   :  { %v16901_v40 = vadd.f32 %v2769_v8, %v16806_v23 }
 0x3ad   :  { %v2681_v27 = vpop.f32.mrf.mxu2  ;;  %v2506_v59 = vpop.f32.mrf.mxu0 }
 0x3ae   :  { %v2770_v31 = vpop.f32.mrf.mxu3  ;;  %v2682_v5 = vadd.f32 %v2681_v27, %v2593_v39  ;;  %v2595_v44 = vpop.f32.mrf.mxu1  ;;  %v15330_v39 = vld [vmem:[#allocation4 + $0x16c] sm:$0xf0] }
 0x3af   :  { %v2596_v63 = vadd.f32 %v2595_v44, %v2506_v59  ;;  %v12543_v58 = vor.u32 %v15330_v39, %v12542_v54  ;;  %v12555_v59 = vor.u32 %v15329_v3, %v12552_v55  ;;  %v12560_v54 = vld [vmem:[#allocation4 + $0x190] sm:$0xf0]  ;;  %v12566_v39 = vld [vmem:[#allocation4 + $0x188] sm:$0xf] }
 0x3b0   :  { %v2771_v30 = vadd.f32 %v2770_v31, %v2682_v5  ;;  %3494 = vmatmul.bf16.gmra.mxu0 %v12527_v7  ;;  %v12551_v5 = vor.u32 %v15331_v24, %v12550_v50  ;;  %v12568_v50 = vld [vmem:[#allocation4 + $0x198] sm:$0xf0] }
 0x3b1   :  { %3583 = vmatmul.bf16.gmra.mxu1 %v12531_v57 }
 0x3b2   :  { %v16904_v23 = vadd.f32 %v2771_v30, %v16809_v11  ;;  %3672 = vmatmul.bf16.gmra.mxu2 %v12535_v14  ;;  %v15328_v11 = vld [vmem:[#allocation4 + $0x164] sm:$0xf] }
 0x3b3   :  { %3761 = vmatmul.bf16.gmra.mxu3 %v12539_v28  ;;  %v12547_v27 = vor.u32 %v15328_v11, %v12544_v42  ;;  %v15458_v28 = vld [vmem:[#allocation7 + $0x410] sm:$0xff]  ;;  %v15335_v11 = vld [vmem:[#allocation4 + $0x194] sm:$0xf0]  ;;  %v15333_v42 = vld [vmem:[#allocation4 + $0x18c] sm:$0xf] }
 0x3b4   :  { %4485 = vmatpush.bf16.msra.mxu0 %v15458_v28 }
 0x3b5   :  { %v2684_v16 = vpop.f32.mrf.mxu2  ;;  %v2508_v22 = vpop.f32.mrf.mxu0 }
 0x3b6   :  { %v2773_v52 = vpop.f32.mrf.mxu3  ;;  %v2685_v2 = vadd.f32 %v2684_v16, %v2596_v63  ;;  %v2597_v15 = vpop.f32.mrf.mxu1  ;;  %v15466_v63 = vld [vmem:[#allocation7 + $0x450] sm:$0xff] }
 0x3b7   :  { %v2598_v1 = vadd.f32 %v2597_v15, %v2508_v22  ;;  %4574 = vmatpush.bf16.msra.mxu1 %v15466_v63  ;;  %v12558_v15 = vld [vmem:[#allocation4 + $0x180] sm:$0xf] }
 0x3b8   :  { %v2774_v20 = vadd.f32 %v2773_v52, %v2685_v2 }
 0x3ba   :  { %v16907_v8 = vadd.f32 %v2774_v20, %v16812_v41 }
 0x3bd   :  { %v2686_v25 = vpop.f32.mrf.mxu2  ;;  %v3460_v7 = vpop.f32.mrf.mxu0 }
 0x3be   :  { %v2775_v34 = vpop.f32.mrf.mxu3  ;;  %v2687_v31 = vadd.f32 %v2686_v25, %v2598_v1  ;;  %v3549_v57 = vpop.f32.mrf.mxu1  ;;  %v15334_v1 = vld [vmem:[#allocation4 + $0x18c] sm:$0xf0] }
 0x3bf   :  { %v3550_v44 = vadd.f32 %v3549_v57, %v3460_v7  ;;  %v12559_v55 = vor.u32 %v15334_v1, %v12558_v15  ;;  %v12571_v7 = vor.u32 %v15333_v42, %v12568_v50  ;;  %v12576_v15 = vld [vmem:[#allocation4 + $0x1b0] sm:$0xf0]  ;;  %v12582_v1 = vld [vmem:[#allocation4 + $0x1a8] sm:$0xf] }
 0x3c0   :  { %v2776_v14 = vadd.f32 %v2775_v34, %v2687_v31  ;;  %3499 = vmatmul.bf16.gmra.mxu0 %v12543_v58  ;;  %v12567_v31 = vor.u32 %v15335_v11, %v12566_v39  ;;  %v12584_v39 = vld [vmem:[#allocation4 + $0x1b8] sm:$0xf0] }
 0x3c1   :  { %3588 = vmatmul.bf16.gmra.mxu1 %v12547_v27 }
 0x3c2   :  { %v16910_v41 = vadd.f32 %v2776_v14, %v16814_v36  ;;  %3677 = vmatmul.bf16.gmra.mxu2 %v12551_v5  ;;  %v15332_v36 = vld [vmem:[#allocation4 + $0x184] sm:$0xf] }
 0x3c3   :  { %3766 = vmatmul.bf16.gmra.mxu3 %v12555_v59  ;;  %v12563_v25 = vor.u32 %v15332_v36, %v12560_v54  ;;  %v15477_v59 = vld [vmem:[#allocation7 + $0x4a8] sm:$0xff]  ;;  %v15339_v36 = vld [vmem:[#allocation4 + $0x1b4] sm:$0xf0] }
 0x3c4   :  { %4660 = vmatpush.bf16.msra.mxu2 %v15477_v59  ;;  %v15337_v54 = vld [vmem:[#allocation4 + $0x1ac] sm:$0xf] }
 0x3c5   :  { %v3638_v30 = vpop.f32.mrf.mxu2  ;;  %v3462_v16 = vpop.f32.mrf.mxu0 }
 0x3c6   :  { %v3727_v49 = vpop.f32.mrf.mxu3  ;;  %v3639_v0 = vadd.f32 %v3638_v30, %v3550_v44  ;;  %v3551_v52 = vpop.f32.mrf.mxu1  ;;  %v15485_v44 = vld [vmem:[#allocation7 + $0x4e8] sm:$0xff] }
 0x3c7   :  { %v3552_v2 = vadd.f32 %v3551_v52, %v3462_v16  ;;  %4749 = vmatpush.bf16.msra.mxu3 %v15485_v44  ;;  %v12574_v52 = vld [vmem:[#allocation4 + $0x1a0] sm:$0xf] }
 0x3c8   :  { %v3728_v22 = vadd.f32 %v3727_v49, %v3639_v0 }
 0x3ca   :  { %v16913_v20 = vadd.f32 %v3728_v22, %v16817_v10 }
 0x3cd   :  { %v3640_v24 = vpop.f32.mrf.mxu2  ;;  %v3465_v58 = vpop.f32.mrf.mxu0 }
 0x3ce   :  { %v3729_v3 = vpop.f32.mrf.mxu3  ;;  %v3641_v34 = vadd.f32 %v3640_v24, %v3552_v2  ;;  %v3554_v27 = vpop.f32.mrf.mxu1  ;;  %v15338_v2 = vld [vmem:[#allocation4 + $0x1ac] sm:$0xf0] }
 0x3cf   :  { %v3555_v57 = vadd.f32 %v3554_v27, %v3465_v58  ;;  %v12575_v50 = vor.u32 %v15338_v2, %v12574_v52  ;;  %v12587_v58 = vor.u32 %v15337_v54, %v12584_v39  ;;  %v12592_v52 = vld [vmem:[#allocation4 + $0x1d0] sm:$0xf0]  ;;  %v12598_v2 = vld [vmem:[#allocation4 + $0x1c8] sm:$0xf] }
 0x3d0   :  { %v3730_v5 = vadd.f32 %v3729_v3, %v3641_v34  ;;  %3504 = vmatmul.bf16.gmra.mxu0 %v12559_v55  ;;  %v12583_v34 = vor.u32 %v15339_v36, %v12582_v1  ;;  %v12600_v1 = vld [vmem:[#allocation4 + $0x1d8] sm:$0xf0] }
 0x3d1   :  { %3593 = vmatmul.bf16.gmra.mxu1 %v12563_v25 }
 0x3d2   :  { %v16916_v10 = vadd.f32 %v3730_v5, %v16820_v33  ;;  %3682 = vmatmul.bf16.gmra.mxu2 %v12567_v31  ;;  %v15336_v33 = vld [vmem:[#allocation4 + $0x1a4] sm:$0xf] }
 0x3d3   :  { %3771 = vmatmul.bf16.gmra.mxu3 %v12571_v7  ;;  %v12579_v24 = vor.u32 %v15336_v33, %v12576_v15  ;;  %v15457_v7 = vld [vmem:[#allocation7 + $0x408] sm:$0xff]  ;;  %v15343_v33 = vld [vmem:[#allocation4 + $0x1d4] sm:$0xf0] }
 0x3d4   :  { %4486 = vmatpush.bf16.msra.mxu0 %v15457_v7  ;;  %v15341_v15 = vld [vmem:[#allocation4 + $0x1cc] sm:$0xf] }
 0x3d5   :  { %v3643_v14 = vpop.f32.mrf.mxu2  ;;  %v3467_v30 = vpop.f32.mrf.mxu0 }
 0x3d6   :  { %v3732_v28 = vpop.f32.mrf.mxu3  ;;  %v3644_v63 = vadd.f32 %v3643_v14, %v3555_v57  ;;  %v3556_v49 = vpop.f32.mrf.mxu1  ;;  %v15465_v57 = vld [vmem:[#allocation7 + $0x448] sm:$0xff] }
 0x3d7   :  { %v3557_v0 = vadd.f32 %v3556_v49, %v3467_v30  ;;  %4575 = vmatpush.bf16.msra.mxu1 %v15465_v57  ;;  %v12590_v49 = vld [vmem:[#allocation4 + $0x1c0] sm:$0xf] }
 0x3d8   :  { %v3733_v16 = vadd.f32 %v3732_v28, %v3644_v63 }
 0x3da   :  { %v16919_v22 = vadd.f32 %v3733_v16, %v16823_v4 }
 0x3dd   :  { %v3645_v11 = vpop.f32.mrf.mxu2  ;;  %v3470_v55 = vpop.f32.mrf.mxu0 }
 0x3de   :  { %v3734_v42 = vpop.f32.mrf.mxu3  ;;  %v3646_v3 = vadd.f32 %v3645_v11, %v3557_v0  ;;  %v3559_v25 = vpop.f32.mrf.mxu1  ;;  %v15342_v0 = vld [vmem:[#allocation4 + $0x1cc] sm:$0xf0] }
 0x3df   :  { %v3560_v27 = vadd.f32 %v3559_v25, %v3470_v55  ;;  %v12591_v39 = vor.u32 %v15342_v0, %v12590_v49  ;;  %v12603_v55 = vor.u32 %v15341_v15, %v12600_v1  ;;  %v12608_v49 = vld [vmem:[#allocation4 + $0x1f0] sm:$0xf0]  ;;  %v12614_v0 = vld [vmem:[#allocation4 + $0x1e8] sm:$0xf] }
 0x3e0   :  { %v3735_v31 = vadd.f32 %v3734_v42, %v3646_v3  ;;  %3509 = vmatmul.bf16.gmra.mxu0 %v12575_v50  ;;  %v12599_v3 = vor.u32 %v15343_v33, %v12598_v2  ;;  %v12616_v2 = vld [vmem:[#allocation4 + $0x1f8] sm:$0xf0] }
 0x3e1   :  { %3598 = vmatmul.bf16.gmra.mxu1 %v12579_v24 }
 0x3e2   :  { %v16922_v4 = vadd.f32 %v3735_v31, %v16826_v56  ;;  %3687 = vmatmul.bf16.gmra.mxu2 %v12583_v34  ;;  %v15340_v56 = vld [vmem:[#allocation4 + $0x1c4] sm:$0xf] }
 0x3e3   :  { %3776 = vmatmul.bf16.gmra.mxu3 %v12587_v58  ;;  %v12595_v11 = vor.u32 %v15340_v56, %v12592_v52  ;;  %v15476_v58 = vld [vmem:[#allocation7 + $0x4a0] sm:$0xff]  ;;  %v15347_v56 = vld [vmem:[#allocation4 + $0x1f4] sm:$0xf0]  ;;  %v15345_v52 = vld [vmem:[#allocation4 + $0x1ec] sm:$0xf] }
 0x3e4   :  { %4661 = vmatpush.bf16.msra.mxu2 %v15476_v58 }
 0x3e5   :  { %v3648_v5 = vpop.f32.mrf.mxu2  ;;  %v3472_v14 = vpop.f32.mrf.mxu0 }
 0x3e6   :  { %v3737_v59 = vpop.f32.mrf.mxu3  ;;  %v3649_v44 = vadd.f32 %v3648_v5, %v3560_v27  ;;  %v3561_v28 = vpop.f32.mrf.mxu1  ;;  %v15484_v27 = vld [vmem:[#allocation7 + $0x4e0] sm:$0xff] }
 0x3e7   :  { %v3562_v63 = vadd.f32 %v3561_v28, %v3472_v14  ;;  %4750 = vmatpush.bf16.msra.mxu3 %v15484_v27  ;;  %v12606_v28 = vld [vmem:[#allocation4 + $0x1e0] sm:$0xf] }
 0x3e8   :  { %v3738_v30 = vadd.f32 %v3737_v59, %v3649_v44 }
 0x3ea   :  { %v16925_v16 = vadd.f32 %v3738_v30, %v16829_v61 }
 0x3ed   :  { %v3650_v36 = vpop.f32.mrf.mxu2  ;;  %v3475_v50 = vpop.f32.mrf.mxu0 }
 0x3ee   :  { %v3739_v54 = vpop.f32.mrf.mxu3  ;;  %v3651_v42 = vadd.f32 %v3650_v36, %v3562_v63  ;;  %v3564_v24 = vpop.f32.mrf.mxu1  ;;  %v15346_v63 = vld [vmem:[#allocation4 + $0x1ec] sm:$0xf0] }
 0x3ef   :  { %v3565_v25 = vadd.f32 %v3564_v24, %v3475_v50  ;;  %v12607_v1 = vor.u32 %v15346_v63, %v12606_v28  ;;  %v12619_v50 = vor.u32 %v15345_v52, %v12616_v2  ;;  %v12624_v28 = vld [vmem:[#allocation4 + $0x210] sm:$0xf0]  ;;  %v12630_v63 = vld [vmem:[#allocation4 + $0x208] sm:$0xf] }
 0x3f0   :  { %v3740_v34 = vadd.f32 %v3739_v54, %v3651_v42  ;;  %3514 = vmatmul.bf16.gmra.mxu0 %v12591_v39  ;;  %v12615_v42 = vor.u32 %v15347_v56, %v12614_v0  ;;  %v12632_v0 = vld [vmem:[#allocation4 + $0x218] sm:$0xf0] }
 0x3f1   :  { %3603 = vmatmul.bf16.gmra.mxu1 %v12595_v11 }
 0x3f2   :  { %v16928_v61 = vadd.f32 %v3740_v34, %v16832_v32  ;;  %3692 = vmatmul.bf16.gmra.mxu2 %v12599_v3  ;;  %v15344_v32 = vld [vmem:[#allocation4 + $0x1e4] sm:$0xf] }
 0x3f3   :  { %3781 = vmatmul.bf16.gmra.mxu3 %v12603_v55  ;;  %v12611_v36 = vor.u32 %v15344_v32, %v12608_v49  ;;  %v15456_v55 = vld [vmem:[#allocation7 + $0x400] sm:$0xff]  ;;  %v15351_v32 = vld [vmem:[#allocation4 + $0x214] sm:$0xf0]  ;;  %v15349_v49 = vld [vmem:[#allocation4 + $0x20c] sm:$0xf] }
 0x3f4   :  { %4487 = vmatpush.bf16.msra.mxu0 %v15456_v55 }
 0x3f5   :  { %v3653_v31 = vpop.f32.mrf.mxu2  ;;  %v3477_v5 = vpop.f32.mrf.mxu0 }
 0x3f6   :  { %v3742_v7 = vpop.f32.mrf.mxu3  ;;  %v3654_v57 = vadd.f32 %v3653_v31, %v3565_v25  ;;  %v3566_v59 = vpop.f32.mrf.mxu1  ;;  %v15464_v25 = vld [vmem:[#allocation7 + $0x440] sm:$0xff] }
 0x3f7   :  { %v3567_v44 = vadd.f32 %v3566_v59, %v3477_v5  ;;  %4576 = vmatpush.bf16.msra.mxu1 %v15464_v25  ;;  %v12622_v59 = vld [vmem:[#allocation4 + $0x200] sm:$0xf]  ;;  %v15474_v25 = vld [vmem:[#allocation7 + $0x490] sm:$0xff] }
 0x3f8   :  { %v3743_v14 = vadd.f32 %v3742_v7, %v3654_v57 }
 0x3fa   :  { %v16931_v30 = vadd.f32 %v3743_v14, %v16835_v18 }
 0x3fd   :  { %v3655_v33 = vpop.f32.mrf.mxu2  ;;  %v3480_v39 = vpop.f32.mrf.mxu0 }
 0x3fe   :  { %v3744_v15 = vpop.f32.mrf.mxu3  ;;  %v3656_v54 = vadd.f32 %v3655_v33, %v3567_v44  ;;  %v3569_v11 = vpop.f32.mrf.mxu1  ;;  %v15350_v44 = vld [vmem:[#allocation4 + $0x20c] sm:$0xf0] }
 0x3ff   :  { %v3570_v24 = vadd.f32 %v3569_v11, %v3480_v39  ;;  %v12623_v2 = vor.u32 %v15350_v44, %v12622_v59  ;;  %v12635_v39 = vor.u32 %v15349_v49, %v12632_v0  ;;  %v15354_v59 = vld [vmem:[#allocation4 + $0x22c] sm:$0xf0]  ;;  %v15473_v44 = vld [vmem:[#allocation7 + $0x488] sm:$0xff]  ;;  %v15355_v49 = vld [vmem:[#allocation4 + $0x234] sm:$0xf0] }
 0x400   :  { %v3745_v3 = vadd.f32 %v3744_v15, %v3656_v54  ;;  %3519 = vmatmul.bf16.gmra.mxu0 %v12607_v1  ;;  %v12631_v54 = vor.u32 %v15351_v32, %v12630_v63  ;;  %v12640_v63 = vld [vmem:[#allocation4 + $0x230] sm:$0xf0]  ;;  %v12646_v32 = vld [vmem:[#allocation4 + $0x228] sm:$0xf]  ;;  %v15353_v0 = vld [vmem:[#allocation4 + $0x22c] sm:$0xf] }
 0x401   :  { %3608 = vmatmul.bf16.gmra.mxu1 %v12611_v36 }
 0x402   :  { %v16934_v18 = vadd.f32 %v3745_v3, %v16838_v21  ;;  %3697 = vmatmul.bf16.gmra.mxu2 %v12615_v42  ;;  %v15348_v21 = vld [vmem:[#allocation4 + $0x204] sm:$0xf] }
 0x403   :  { %3786 = vmatmul.bf16.gmra.mxu3 %v12619_v50  ;;  %v12627_v33 = vor.u32 %v15348_v21, %v12624_v28  ;;  %v15483_v50 = vld [vmem:[#allocation7 + $0x4d8] sm:$0xff]  ;;  %v15352_v28 = vld [vmem:[#allocation4 + $0x224] sm:$0xf] }
 0x404   :  { %4751 = vmatpush.bf16.msra.mxu3 %v15483_v50 }
 0x405   :  { %v3658_v34 = vpop.f32.mrf.mxu2  ;;  %v3482_v31 = vpop.f32.mrf.mxu0 }
 0x406   :  { %v3747_v58 = vpop.f32.mrf.mxu3  ;;  %v3659_v27 = vadd.f32 %v3658_v34, %v3570_v24  ;;  %v3571_v7 = vpop.f32.mrf.mxu1  ;;  %v15482_v34 = vld [vmem:[#allocation7 + $0x4d0] sm:$0xff] }
 0x407   :  { %v3572_v57 = vadd.f32 %v3571_v7, %v3482_v31 }
 0x408   :  { %v3748_v5 = vadd.f32 %v3747_v58, %v3659_v27  ;;  %4752 = vmatpush.bf16.msra.mxu3 %v15482_v34 }
 0x40a   :  { %v16937_v14 = vadd.f32 %v3748_v5, %v16841_v48  ;;  %v15475_v48 = vld [vmem:[#allocation7 + $0x498] sm:$0xff]  ;;  %v12638_v5 = vld [vmem:[#allocation4 + $0x220] sm:$0xf] }
 0x40b   :  { %4662 = vmatpush.bf16.msra.mxu2 %v15475_v48 }
 0x40d   :  { %v3660_v56 = vpop.f32.mrf.mxu2  ;;  %v3485_v1 = vpop.f32.mrf.mxu0 }
 0x40e   :  { %v3749_v52 = vpop.f32.mrf.mxu3  ;;  %v3661_v15 = vadd.f32 %v3660_v56, %v3572_v57  ;;  %v3574_v36 = vpop.f32.mrf.mxu1  ;;  %v12648_v56 = vld [vmem:[#allocation4 + $0x238] sm:$0xf0] }
 0x40f   :  { %v3575_v11 = vadd.f32 %v3574_v36, %v3485_v1  ;;  %4663 = vmatpush.bf16.msra.mxu2 %v15474_v25  ;;  %v15472_v1 = vld [vmem:[#allocation7 + $0x480] sm:$0xff]  ;;  %v15567_v25 = vld [vmem:[#allocation7 + $0x578] sm:$0xff] }
 0x410   :  { %v3750_v42 = vadd.f32 %v3749_v52, %v3661_v15  ;;  %3524 = vmatmul.bf16.gmra.mxu0 %v12623_v2  ;;  %v12643_v15 = vor.u32 %v15352_v28, %v12640_v63  ;;  %v15480_v36 = vld [vmem:[#allocation7 + $0x4c0] sm:$0xff]  ;;  %5598 = vmatpush.bf16.msrb.mxu1 %v15567_v25  ;;  %v12656_v28 = vld [vmem:[#allocation4 + $0x250] sm:$0xf0]  ;;  %v12662_v63 = vld [vmem:[#allocation4 + $0x248] sm:$0xf] }
 0x411   :  { %3613 = vmatmul.bf16.gmra.mxu1 %v12627_v33  ;;  %v12639_v33 = vor.u32 %v15354_v59, %v12638_v5  ;;  %v12654_v59 = vld [vmem:[#allocation4 + $0x240] sm:$0xf] }
 0x412   :  { %v16940_v24 = vadd.f32 %v3750_v42, %v16844_v35  ;;  %3702 = vmatmul.bf16.gmra.mxu2 %v12631_v54  ;;  %v15481_v35 = vld [vmem:[#allocation7 + $0x4c8] sm:$0xff]  ;;  %v12647_v42 = vor.u32 %v15355_v49, %v12646_v32  ;;  %v15359_v32 = vld [vmem:[#allocation4 + $0x254] sm:$0xf0] }
 0x413   :  { %3791 = vmatmul.bf16.gmra.mxu3 %v12635_v39  ;;  %4664 = vmatpush.bf16.msra.mxu2 %v15473_v44  ;;  %v15358_v44 = vld [vmem:[#allocation4 + $0x24c] sm:$0xf0]  ;;  %v15357_v49 = vld [vmem:[#allocation4 + $0x24c] sm:$0xf] }
 0x414   :  { %4753 = vmatpush.bf16.msra.mxu3 %v15481_v35 }
 0x415   :  { %v3663_v3 = vpop.f32.mrf.mxu2  ;;  %v3487_v27 = vpop.f32.mrf.mxu0 }
 0x416   :  { %v3752_v55 = vpop.f32.mrf.mxu3  ;;  %v3664_v58 = vadd.f32 %v3663_v3, %v3575_v11  ;;  %v3576_v31 = vpop.f32.mrf.mxu1 }
 0x417   :  { %v3577_v7 = vadd.f32 %v3576_v31, %v3487_v27  ;;  %4665 = vmatpush.bf16.msra.mxu2 %v15472_v1 }
 0x418   :  { %v3753_v57 = vadd.f32 %v3752_v55, %v3664_v58  ;;  %4754 = vmatpush.bf16.msra.mxu3 %v15480_v36  ;;  %v15559_v55 = vld [vmem:[#allocation7 + $0x538] sm:$0xff] }
 0x419   :  { %5509 = vmatpush.bf16.msrb.mxu0 %v15559_v55 }
 0x41a   :  { %v16943_v21 = vadd.f32 %v3753_v57, %v16847_v9  ;;  %v12651_v9 = vor.u32 %v15353_v0, %v12648_v56  ;;  %v12664_v0 = vld [vmem:[#allocation4 + $0x258] sm:$0xf0] }
 0x41d   :  { %v3665_v52 = vpop.f32.mrf.mxu2  ;;  %v3490_v39 = vpop.f32.mrf.mxu0 }
 0x41e   :  { %v3754_v2 = vpop.f32.mrf.mxu3  ;;  %v3666_v54 = vadd.f32 %v3665_v52, %v3577_v7  ;;  %v3579_v11 = vpop.f32.mrf.mxu1 }
 0x41f   :  { %v3580_v48 = vadd.f32 %v3579_v11, %v3490_v39  ;;  %v12667_v39 = vor.u32 %v15357_v49, %v12664_v0 }
 0x420   :  { %v3755_v50 = vadd.f32 %v3754_v2, %v3666_v54  ;;  %3529 = vmatmul.bf16.gmra.mxu0 %v12639_v33  ;;  %v12655_v2 = vor.u32 %v15358_v44, %v12654_v59  ;;  %v12663_v54 = vor.u32 %v15359_v32, %v12662_v63  ;;  %v12806_v59 = vld [vmem:[#allocation4 + $0x88] sm:$0xf]  ;;  %v15395_v44 = vld [vmem:[#allocation4 + $0x94] sm:$0xf0] }
 0x421   :  { %3618 = vmatmul.bf16.gmra.mxu1 %v12643_v15 }
 0x422   :  { %v16946_v3 = vadd.f32 %v3755_v50, %v16850_v51  ;;  %3707 = vmatmul.bf16.gmra.mxu2 %v12647_v42  ;;  %v15356_v51 = vld [vmem:[#allocation4 + $0x244] sm:$0xf] }
 0x423   :  { %3796 = vmatmul.bf16.gmra.mxu3 %v12651_v9  ;;  %v12659_v33 = vor.u32 %v15356_v51, %v12656_v28  ;;  %v12808_v51 = vld [vmem:[#allocation4 + $0x98] sm:$0xf0] }
 0x425   :  { %v3668_v34 = vpop.f32.mrf.mxu2  ;;  %v3492_v31 = vpop.f32.mrf.mxu0 }
 0x426   :  { %v3757_v58 = vpop.f32.mrf.mxu3  ;;  %v3669_v27 = vadd.f32 %v3668_v34, %v3580_v48  ;;  %v3581_v7 = vpop.f32.mrf.mxu1 }
 0x427   :  { %v3582_v57 = vadd.f32 %v3581_v7, %v3492_v31  ;;  %v15394_v31 = vld [vmem:[#allocation4 + $0x8c] sm:$0xf0] }
 0x428   :  { %v3758_v5 = vadd.f32 %v3757_v58, %v3669_v27  ;;  %v12798_v27 = vld [vmem:[#allocation4 + $0x80] sm:$0xf] }
 0x429   :  { %v12799_v32 = vor.u32 %v15394_v31, %v12798_v27  ;;  %v12816_v27 = vld [vmem:[#allocation4 + $0xb0] sm:$0xf0]  ;;  %v12822_v31 = vld [vmem:[#allocation4 + $0xa8] sm:$0xf] }
 0x42a   :  { %v16949_v35 = vadd.f32 %v3758_v5, %v16853_v53  ;;  %v12800_v5 = vld [vmem:[#allocation4 + $0x90] sm:$0xf0] }
 0x42d   :  { %v3670_v56 = vpop.f32.mrf.mxu2  ;;  %v3495_v1 = vpop.f32.mrf.mxu0 }
 0x42e   :  { %v3759_v52 = vpop.f32.mrf.mxu3  ;;  %v3671_v15 = vadd.f32 %v3670_v56, %v3582_v57  ;;  %v3584_v36 = vpop.f32.mrf.mxu1  ;;  %v15392_v57 = vld [vmem:[#allocation4 + $0x84] sm:$0xf] }
 0x42f   :  { %v3585_v11 = vadd.f32 %v3584_v36, %v3495_v1  ;;  %v12803_v49 = vor.u32 %v15392_v57, %v12800_v5  ;;  %v15558_v36 = vld [vmem:[#allocation7 + $0x530] sm:$0xff]  ;;  %v15399_v57 = vld [vmem:[#allocation4 + $0xb4] sm:$0xf0]  ;;  %v15397_v5 = vld [vmem:[#allocation4 + $0xac] sm:$0xf] }
 0x430   :  { %v3760_v42 = vadd.f32 %v3759_v52, %v3671_v15  ;;  %3534 = vmatmul.bf16.gmra.mxu0 %v12655_v2  ;;  %v12807_v2 = vor.u32 %v15395_v44, %v12806_v59  ;;  %v12824_v59 = vld [vmem:[#allocation4 + $0xb8] sm:$0xf0] }
 0x431   :  { %3623 = vmatmul.bf16.gmra.mxu1 %v12659_v33  ;;  %5510 = vmatpush.bf16.msrb.mxu0 %v15558_v36 }
 0x432   :  { %v16952_v53 = vadd.f32 %v3760_v42, %v16856_v62  ;;  %3712 = vmatmul.bf16.gmra.mxu2 %v12663_v54  ;;  %v15393_v62 = vld [vmem:[#allocation4 + $0x8c] sm:$0xf]  ;;  %v15566_v54 = vld [vmem:[#allocation7 + $0x570] sm:$0xff] }
 0x433   :  { %3801 = vmatmul.bf16.gmra.mxu3 %v12667_v39  ;;  %v12811_v33 = vor.u32 %v15393_v62, %v12808_v51  ;;  %5599 = vmatpush.bf16.msrb.mxu1 %v15566_v54 }
 0x435   :  { %v3673_v9 = vpop.f32.mrf.mxu2  ;;  %v3497_v55 = vpop.f32.mrf.mxu0 }
 0x436   :  { %v3762_v48 = vpop.f32.mrf.mxu3  ;;  %v3674_v50 = vadd.f32 %v3673_v9, %v3585_v11  ;;  %v3586_v25 = vpop.f32.mrf.mxu1 }
 0x437   :  { %v3587_v34 = vadd.f32 %v3586_v25, %v3497_v55  ;;  %v12814_v25 = vld [vmem:[#allocation4 + $0xa0] sm:$0xf] }
 0x438   :  { %v3763_v58 = vadd.f32 %v3762_v48, %v3674_v50 }
 0x43a   :  { %v16955_v7 = vadd.f32 %v3763_v58, %v16859_v47 }
 0x43d   :  { %v3675_v28 = vpop.f32.mrf.mxu2  ;;  %v3500_v56 = vpop.f32.mrf.mxu0 }
 0x43e   :  { %v3764_v63 = vpop.f32.mrf.mxu3  ;;  %v3676_v0 = vadd.f32 %v3675_v28, %v3587_v34  ;;  %v3589_v52 = vpop.f32.mrf.mxu1  ;;  %v15398_v34 = vld [vmem:[#allocation4 + $0xac] sm:$0xf0] }
 0x43f   :  { %v3590_v15 = vadd.f32 %v3589_v52, %v3500_v56  ;;  %v12815_v51 = vor.u32 %v15398_v34, %v12814_v25  ;;  %v12827_v56 = vor.u32 %v15397_v5, %v12824_v59  ;;  %v12838_v25 = vld [vmem:[#allocation4 + $0xc8] sm:$0xf]  ;;  %v15403_v34 = vld [vmem:[#allocation4 + $0xd4] sm:$0xf0] }
 0x440   :  { %v3765_v1 = vadd.f32 %v3764_v63, %v3676_v0  ;;  %4488 = vmatmul.bf16.vlgmr.msra.gmra.mxu0 %v12799_v32  ;;  %v12823_v0 = vor.u32 %v15399_v57, %v12822_v31 }
 0x441   :  { %4577 = vmatmul.bf16.vlgmr.msra.gmra.mxu1 %v12803_v49 }
 0x442   :  { %v16958_v47 = vadd.f32 %v3765_v1, %v16862_v60  ;;  %4666 = vmatmul.bf16.vlgmr.msra.gmra.mxu2 %v12807_v2  ;;  %v15396_v60 = vld [vmem:[#allocation4 + $0xa4] sm:$0xf] }
 0x443   :  { %4755 = vmatmul.bf16.vlgmr.msra.gmra.mxu3 %v12811_v33  ;;  %v12819_v28 = vor.u32 %v15396_v60, %v12816_v27  ;;  %v12840_v60 = vld [vmem:[#allocation4 + $0xd8] sm:$0xf0] }
 0x445   :  { %v3678_v39 = vpop.f32.mrf.mxu2  ;;  %v3502_v9 = vpop.f32.mrf.mxu0 }
 0x446   :  { %v3767_v11 = vpop.f32.mrf.mxu3  ;;  %v3679_v42 = vadd.f32 %v3678_v39, %v3590_v15  ;;  %v3591_v48 = vpop.f32.mrf.mxu1 }
 0x447   :  { %v3592_v50 = vadd.f32 %v3591_v48, %v3502_v9  ;;  %v15402_v9 = vld [vmem:[#allocation4 + $0xcc] sm:$0xf0] }
 0x448   :  { %v3768_v55 = vadd.f32 %v3767_v11, %v3679_v42  ;;  %v12830_v42 = vld [vmem:[#allocation4 + $0xc0] sm:$0xf] }
 0x449   :  { %v12831_v57 = vor.u32 %v15402_v9, %v12830_v42  ;;  %v12848_v42 = vld [vmem:[#allocation4 + $0xf0] sm:$0xf0]  ;;  %v12854_v9 = vld [vmem:[#allocation4 + $0xe8] sm:$0xf] }
 0x44a   :  { %v16961_v58 = vadd.f32 %v3768_v55, %v16865_v19  ;;  %v12832_v55 = vld [vmem:[#allocation4 + $0xd0] sm:$0xf0] }
 0x44d   :  { %v3680_v44 = vpop.f32.mrf.mxu2  ;;  %v3505_v32 = vpop.f32.mrf.mxu0 }
 0x44e   :  { %v3769_v62 = vpop.f32.mrf.mxu3  ;;  %v3681_v63 = vadd.f32 %v3680_v44, %v3592_v50  ;;  %v3594_v49 = vpop.f32.mrf.mxu1  ;;  %v15400_v50 = vld [vmem:[#allocation4 + $0xc4] sm:$0xf] }
 0x44f   :  { %v3595_v52 = vadd.f32 %v3594_v49, %v3505_v32  ;;  %v12835_v5 = vor.u32 %v15400_v50, %v12832_v55  ;;  %v15557_v49 = vld [vmem:[#allocation7 + $0x528] sm:$0xff]  ;;  %v15407_v50 = vld [vmem:[#allocation4 + $0xf4] sm:$0xf0] }
 0x450   :  { %v3770_v2 = vadd.f32 %v3769_v62, %v3681_v63  ;;  %4493 = vmatmul.bf16.gmra.mxu0 %v12815_v51  ;;  %v12839_v51 = vor.u32 %v15403_v34, %v12838_v25  ;;  %v15405_v55 = vld [vmem:[#allocation4 + $0xec] sm:$0xf]  ;;  %v12856_v25 = vld [vmem:[#allocation4 + $0xf8] sm:$0xf0] }
 0x451   :  { %4582 = vmatmul.bf16.gmra.mxu1 %v12819_v28  ;;  %5511 = vmatpush.bf16.msrb.mxu0 %v15557_v49 }
 0x452   :  { %v16964_v19 = vadd.f32 %v3770_v2, %v16868_v26  ;;  %4671 = vmatmul.bf16.gmra.mxu2 %v12823_v0  ;;  %v15401_v26 = vld [vmem:[#allocation4 + $0xcc] sm:$0xf] }
 0x453   :  { %4760 = vmatmul.bf16.gmra.mxu3 %v12827_v56  ;;  %v12843_v28 = vor.u32 %v15401_v26, %v12840_v60  ;;  %v15565_v0 = vld [vmem:[#allocation7 + $0x568] sm:$0xff] }
 0x454   :  { %5600 = vmatpush.bf16.msrb.mxu1 %v15565_v0 }
 0x455   :  { %v3683_v33 = vpop.f32.mrf.mxu2  ;;  %v3507_v36 = vpop.f32.mrf.mxu0 }
 0x456   :  { %v3772_v15 = vpop.f32.mrf.mxu3  ;;  %v3684_v1 = vadd.f32 %v3683_v33, %v3595_v52  ;;  %v3596_v54 = vpop.f32.mrf.mxu1 }
 0x457   :  { %v3597_v39 = vadd.f32 %v3596_v54, %v3507_v36  ;;  %v12846_v54 = vld [vmem:[#allocation4 + $0xe0] sm:$0xf] }
 0x458   :  { %v3773_v11 = vadd.f32 %v3772_v15, %v3684_v1 }
 0x45a   :  { %v16967_v48 = vadd.f32 %v3773_v11, %v16871_v45 }
 0x45d   :  { %v3685_v27 = vpop.f32.mrf.mxu2  ;;  %v3510_v44 = vpop.f32.mrf.mxu0 }
 0x45e   :  { %v3774_v31 = vpop.f32.mrf.mxu3  ;;  %v3686_v59 = vadd.f32 %v3685_v27, %v3597_v39  ;;  %v3599_v62 = vpop.f32.mrf.mxu1  ;;  %v15406_v39 = vld [vmem:[#allocation4 + $0xec] sm:$0xf0] }
 0x45f   :  { %v3600_v63 = vadd.f32 %v3599_v62, %v3510_v44  ;;  %v12847_v60 = vor.u32 %v15406_v39, %v12846_v54  ;;  %v12859_v44 = vor.u32 %v15405_v55, %v12856_v25  ;;  %v12870_v54 = vld [vmem:[#allocation4 + $0x108] sm:$0xf]  ;;  %v15411_v39 = vld [vmem:[#allocation4 + $0x114] sm:$0xf0] }
 0x460   :  { %v3775_v32 = vadd.f32 %v3774_v31, %v3686_v59  ;;  %4498 = vmatmul.bf16.gmra.mxu0 %v12831_v57  ;;  %v12855_v59 = vor.u32 %v15407_v50, %v12854_v9 }
 0x461   :  { %4587 = vmatmul.bf16.gmra.mxu1 %v12835_v5 }
 0x462   :  { %v16970_v45 = vadd.f32 %v3775_v32, %v16874_v13  ;;  %4676 = vmatmul.bf16.gmra.mxu2 %v12839_v51  ;;  %v15404_v13 = vld [vmem:[#allocation4 + $0xe4] sm:$0xf] }
 0x463   :  { %4765 = vmatmul.bf16.gmra.mxu3 %v12843_v28  ;;  %v12851_v27 = vor.u32 %v15404_v13, %v12848_v42  ;;  %v12872_v13 = vld [vmem:[#allocation4 + $0x118] sm:$0xf0] }
 0x465   :  { %v3688_v56 = vpop.f32.mrf.mxu2  ;;  %v3512_v33 = vpop.f32.mrf.mxu0 }
 0x466   :  { %v3777_v52 = vpop.f32.mrf.mxu3  ;;  %v3689_v2 = vadd.f32 %v3688_v56, %v3600_v63  ;;  %v3601_v15 = vpop.f32.mrf.mxu1 }
 0x467   :  { %v3602_v1 = vadd.f32 %v3601_v15, %v3512_v33  ;;  %v15410_v33 = vld [vmem:[#allocation4 + $0x10c] sm:$0xf0] }
 0x468   :  { %v3778_v36 = vadd.f32 %v3777_v52, %v3689_v2  ;;  %v12862_v2 = vld [vmem:[#allocation4 + $0x100] sm:$0xf] }
 0x469   :  { %v12863_v50 = vor.u32 %v15410_v33, %v12862_v2  ;;  %v12880_v2 = vld [vmem:[#allocation4 + $0x130] sm:$0xf0]  ;;  %v12886_v33 = vld [vmem:[#allocation4 + $0x128] sm:$0xf] }
 0x46a   :  { %v16973_v11 = vadd.f32 %v3778_v36, %v16877_v6  ;;  %v12864_v36 = vld [vmem:[#allocation4 + $0x110] sm:$0xf0] }
 0x46d   :  { %v3690_v34 = vpop.f32.mrf.mxu2  ;;  %v3515_v57 = vpop.f32.mrf.mxu0 }
 0x46e   :  { %v3779_v26 = vpop.f32.mrf.mxu3  ;;  %v3691_v31 = vadd.f32 %v3690_v34, %v3602_v1  ;;  %v3604_v5 = vpop.f32.mrf.mxu1  ;;  %v15408_v1 = vld [vmem:[#allocation4 + $0x104] sm:$0xf] }
 0x46f   :  { %v3605_v62 = vadd.f32 %v3604_v5, %v3515_v57  ;;  %v12867_v55 = vor.u32 %v15408_v1, %v12864_v36  ;;  %v15556_v5 = vld [vmem:[#allocation7 + $0x520] sm:$0xff]  ;;  %v15415_v1 = vld [vmem:[#allocation4 + $0x134] sm:$0xf0]  ;;  %v15413_v36 = vld [vmem:[#allocation4 + $0x12c] sm:$0xf] }
 0x470   :  { %v3780_v51 = vadd.f32 %v3779_v26, %v3691_v31  ;;  %4503 = vmatmul.bf16.gmra.mxu0 %v12847_v60  ;;  %v12871_v60 = vor.u32 %v15411_v39, %v12870_v54  ;;  %v12888_v54 = vld [vmem:[#allocation4 + $0x138] sm:$0xf0] }
 0x471   :  { %4592 = vmatmul.bf16.gmra.mxu1 %v12851_v27  ;;  %5512 = vmatpush.bf16.msrb.mxu0 %v15556_v5 }
 0x472   :  { %v16976_v6 = vadd.f32 %v3780_v51, %v16880_v17  ;;  %4681 = vmatmul.bf16.gmra.mxu2 %v12855_v59  ;;  %v15409_v17 = vld [vmem:[#allocation4 + $0x10c] sm:$0xf]  ;;  %v15564_v59 = vld [vmem:[#allocation7 + $0x560] sm:$0xff] }
 0x473   :  { %4770 = vmatmul.bf16.gmra.mxu3 %v12859_v44  ;;  %v12875_v27 = vor.u32 %v15409_v17, %v12872_v13  ;;  %5601 = vmatpush.bf16.msrb.mxu1 %v15564_v59 }
 0x475   :  { %v3693_v28 = vpop.f32.mrf.mxu2  ;;  %v3517_v49 = vpop.f32.mrf.mxu0 }
 0x476   :  { %v3782_v63 = vpop.f32.mrf.mxu3  ;;  %v3694_v32 = vadd.f32 %v3693_v28, %v3605_v62  ;;  %v3606_v0 = vpop.f32.mrf.mxu1 }
 0x477   :  { %v3607_v56 = vadd.f32 %v3606_v0, %v3517_v49  ;;  %v12878_v0 = vld [vmem:[#allocation4 + $0x120] sm:$0xf] }
 0x478   :  { %v3783_v52 = vadd.f32 %v3782_v63, %v3694_v32 }
 0x47a   :  { %v16979_v15 = vadd.f32 %v3783_v52, %v16883_v38 }
 0x47d   :  { %v3695_v42 = vpop.f32.mrf.mxu2  ;;  %v3520_v34 = vpop.f32.mrf.mxu0 }
 0x47e   :  { %v3784_v9 = vpop.f32.mrf.mxu3  ;;  %v3696_v25 = vadd.f32 %v3695_v42, %v3607_v56  ;;  %v3609_v26 = vpop.f32.mrf.mxu1  ;;  %v15414_v56 = vld [vmem:[#allocation4 + $0x12c] sm:$0xf0] }
 0x47f   :  { %v3610_v31 = vadd.f32 %v3609_v26, %v3520_v34  ;;  %v12879_v13 = vor.u32 %v15414_v56, %v12878_v0  ;;  %v12891_v34 = vor.u32 %v15413_v36, %v12888_v54  ;;  %v12896_v0 = vld [vmem:[#allocation4 + $0x150] sm:$0xf0]  ;;  %v12902_v56 = vld [vmem:[#allocation4 + $0x148] sm:$0xf] }
 0x480   :  { %v3785_v57 = vadd.f32 %v3784_v9, %v3696_v25  ;;  %4508 = vmatmul.bf16.gmra.mxu0 %v12863_v50  ;;  %v12887_v25 = vor.u32 %v15415_v1, %v12886_v33  ;;  %v12904_v33 = vld [vmem:[#allocation4 + $0x158] sm:$0xf0] }
 0x481   :  { %4597 = vmatmul.bf16.gmra.mxu1 %v12867_v55 }
 0x482   :  { %v16982_v38 = vadd.f32 %v3785_v57, %v16886_v12  ;;  %4686 = vmatmul.bf16.gmra.mxu2 %v12871_v60  ;;  %v15412_v12 = vld [vmem:[#allocation4 + $0x124] sm:$0xf] }
 0x483   :  { %4775 = vmatmul.bf16.gmra.mxu3 %v12875_v27  ;;  %v12883_v42 = vor.u32 %v15412_v12, %v12880_v2  ;;  %v15575_v27 = vld [vmem:[#allocation7 + $0x5b8] sm:$0xff]  ;;  %v15417_v2 = vld [vmem:[#allocation4 + $0x14c] sm:$0xf] }
 0x484   :  { %5687 = vmatpush.bf16.msrb.mxu2 %v15575_v27  ;;  %v15419_v12 = vld [vmem:[#allocation4 + $0x154] sm:$0xf0] }
 0x485   :  { %v3698_v44 = vpop.f32.mrf.mxu2  ;;  %v3522_v28 = vpop.f32.mrf.mxu0 }
 0x486   :  { %v3787_v62 = vpop.f32.mrf.mxu3  ;;  %v3699_v51 = vadd.f32 %v3698_v44, %v3610_v31  ;;  %v3611_v63 = vpop.f32.mrf.mxu1  ;;  %v15583_v31 = vld [vmem:[#allocation7 + $0x5f8] sm:$0xff] }
 0x487   :  { %v3612_v32 = vadd.f32 %v3611_v63, %v3522_v28  ;;  %5776 = vmatpush.bf16.msrb.mxu3 %v15583_v31  ;;  %v12894_v63 = vld [vmem:[#allocation4 + $0x140] sm:$0xf] }
 0x488   :  { %v3788_v49 = vadd.f32 %v3787_v62, %v3699_v51 }
 0x48a   :  { %v16985_v52 = vadd.f32 %v3788_v49, %v16889_v43 }
 0x48d   :  { %v3700_v39 = vpop.f32.mrf.mxu2  ;;  %v3525_v50 = vpop.f32.mrf.mxu0 }
 0x48e   :  { %v3789_v17 = vpop.f32.mrf.mxu3  ;;  %v3701_v9 = vadd.f32 %v3700_v39, %v3612_v32  ;;  %v3614_v55 = vpop.f32.mrf.mxu1  ;;  %v15418_v32 = vld [vmem:[#allocation4 + $0x14c] sm:$0xf0] }
 0x48f   :  { %v3615_v26 = vadd.f32 %v3614_v55, %v3525_v50  ;;  %v12895_v54 = vor.u32 %v15418_v32, %v12894_v63  ;;  %v12907_v50 = vor.u32 %v15417_v2, %v12904_v33  ;;  %v12912_v63 = vld [vmem:[#allocation4 + $0x170] sm:$0xf0]  ;;  %v12918_v32 = vld [vmem:[#allocation4 + $0x168] sm:$0xf] }
 0x490   :  { %v3790_v60 = vadd.f32 %v3789_v17, %v3701_v9  ;;  %4513 = vmatmul.bf16.gmra.mxu0 %v12879_v13  ;;  %v12903_v9 = vor.u32 %v15419_v12, %v12902_v56  ;;  %v12920_v56 = vld [vmem:[#allocation4 + $0x178] sm:$0xf0] }
 0x491   :  { %4602 = vmatmul.bf16.gmra.mxu1 %v12883_v42 }
 0x492   :  { %v16988_v43 = vadd.f32 %v3790_v60, %v16892_v46  ;;  %4691 = vmatmul.bf16.gmra.mxu2 %v12887_v25  ;;  %v15416_v46 = vld [vmem:[#allocation4 + $0x144] sm:$0xf] }
 0x493   :  { %4780 = vmatmul.bf16.gmra.mxu3 %v12891_v34  ;;  %v12899_v39 = vor.u32 %v15416_v46, %v12896_v0  ;;  %v15555_v34 = vld [vmem:[#allocation7 + $0x518] sm:$0xff]  ;;  %v15421_v0 = vld [vmem:[#allocation4 + $0x16c] sm:$0xf] }
 0x494   :  { %5513 = vmatpush.bf16.msrb.mxu0 %v15555_v34  ;;  %v15423_v46 = vld [vmem:[#allocation4 + $0x174] sm:$0xf0] }
 0x495   :  { %v3703_v57 = vpop.f32.mrf.mxu2  ;;  %v3527_v44 = vpop.f32.mrf.mxu0 }
 0x496   :  { %v3792_v5 = vpop.f32.mrf.mxu3  ;;  %v3704_v59 = vadd.f32 %v3703_v57, %v3615_v26  ;;  %v3616_v62 = vpop.f32.mrf.mxu1  ;;  %v15563_v26 = vld [vmem:[#allocation7 + $0x558] sm:$0xff] }
 0x497   :  { %v3617_v51 = vadd.f32 %v3616_v62, %v3527_v44  ;;  %5602 = vmatpush.bf16.msrb.mxu1 %v15563_v26  ;;  %v12910_v62 = vld [vmem:[#allocation4 + $0x160] sm:$0xf] }
 0x498   :  { %v3793_v28 = vadd.f32 %v3792_v5, %v3704_v59 }
 0x49a   :  { %v16991_v49 = vadd.f32 %v3793_v28, %v16895_v29 }
 0x49d   :  { %v3705_v1 = vpop.f32.mrf.mxu2  ;;  %v3530_v13 = vpop.f32.mrf.mxu0 }
 0x49e   :  { %v3794_v36 = vpop.f32.mrf.mxu3  ;;  %v3706_v17 = vadd.f32 %v3705_v1, %v3617_v51  ;;  %v3619_v42 = vpop.f32.mrf.mxu1  ;;  %v15422_v51 = vld [vmem:[#allocation4 + $0x16c] sm:$0xf0] }
 0x49f   :  { %v3620_v55 = vadd.f32 %v3619_v42, %v3530_v13  ;;  %v12911_v33 = vor.u32 %v15422_v51, %v12910_v62  ;;  %v12923_v13 = vor.u32 %v15421_v0, %v12920_v56  ;;  %v12928_v62 = vld [vmem:[#allocation4 + $0x190] sm:$0xf0]  ;;  %v12934_v51 = vld [vmem:[#allocation4 + $0x188] sm:$0xf] }
 0x4a0   :  { %v3795_v25 = vadd.f32 %v3794_v36, %v3706_v17  ;;  %4518 = vmatmul.bf16.gmra.mxu0 %v12895_v54  ;;  %v12919_v17 = vor.u32 %v15423_v46, %v12918_v32  ;;  %v12936_v32 = vld [vmem:[#allocation4 + $0x198] sm:$0xf0] }
 0x4a1   :  { %4607 = vmatmul.bf16.gmra.mxu1 %v12899_v39 }
 0x4a2   :  { %v16994_v29 = vadd.f32 %v3795_v25, %v16898_v37  ;;  %4696 = vmatmul.bf16.gmra.mxu2 %v12903_v9  ;;  %v15420_v37 = vld [vmem:[#allocation4 + $0x164] sm:$0xf] }
 0x4a3   :  { %4785 = vmatmul.bf16.gmra.mxu3 %v12907_v50  ;;  %v12915_v1 = vor.u32 %v15420_v37, %v12912_v63  ;;  %v15574_v50 = vld [vmem:[#allocation7 + $0x5b0] sm:$0xff]  ;;  %v15427_v37 = vld [vmem:[#allocation4 + $0x194] sm:$0xf0]  ;;  %v15425_v63 = vld [vmem:[#allocation4 + $0x18c] sm:$0xf] }
 0x4a4   :  { %5688 = vmatpush.bf16.msrb.mxu2 %v15574_v50 }
 0x4a5   :  { %v3708_v60 = vpop.f32.mrf.mxu2  ;;  %v3532_v57 = vpop.f32.mrf.mxu0 }
 0x4a6   :  { %v3797_v27 = vpop.f32.mrf.mxu3  ;;  %v3709_v31 = vadd.f32 %v3708_v60, %v3620_v55  ;;  %v3621_v5 = vpop.f32.mrf.mxu1  ;;  %v15582_v55 = vld [vmem:[#allocation7 + $0x5f0] sm:$0xff] }
 0x4a7   :  { %v3622_v59 = vadd.f32 %v3621_v5, %v3532_v57  ;;  %5777 = vmatpush.bf16.msrb.mxu3 %v15582_v55  ;;  %v12926_v5 = vld [vmem:[#allocation4 + $0x180] sm:$0xf] }
 0x4a8   :  { %v3798_v44 = vadd.f32 %v3797_v27, %v3709_v31 }
 0x4aa   :  { %v16997_v28 = vadd.f32 %v3798_v44, %v16901_v40 }
 0x4ad   :  { %v3710_v12 = vpop.f32.mrf.mxu2  ;;  %v3535_v54 = vpop.f32.mrf.mxu0 }
 0x4ae   :  { %v3799_v2 = vpop.f32.mrf.mxu3  ;;  %v3711_v36 = vadd.f32 %v3710_v12, %v3622_v59  ;;  %v3624_v39 = vpop.f32.mrf.mxu1  ;;  %v15426_v59 = vld [vmem:[#allocation4 + $0x18c] sm:$0xf0] }
 0x4af   :  { %v3625_v42 = vadd.f32 %v3624_v39, %v3535_v54  ;;  %v12927_v56 = vor.u32 %v15426_v59, %v12926_v5  ;;  %v12939_v54 = vor.u32 %v15425_v63, %v12936_v32  ;;  %v12944_v5 = vld [vmem:[#allocation4 + $0x1b0] sm:$0xf0]  ;;  %v12950_v59 = vld [vmem:[#allocation4 + $0x1a8] sm:$0xf] }
 0x4b0   :  { %v3800_v9 = vadd.f32 %v3799_v2, %v3711_v36  ;;  %4523 = vmatmul.bf16.gmra.mxu0 %v12911_v33  ;;  %v12935_v36 = vor.u32 %v15427_v37, %v12934_v51  ;;  %v12952_v51 = vld [vmem:[#allocation4 + $0x1b8] sm:$0xf0] }
 0x4b1   :  { %4612 = vmatmul.bf16.gmra.mxu1 %v12915_v1 }
 0x4b2   :  { %v17000_v40 = vadd.f32 %v3800_v9, %v16904_v23  ;;  %4701 = vmatmul.bf16.gmra.mxu2 %v12919_v17  ;;  %v15424_v23 = vld [vmem:[#allocation4 + $0x184] sm:$0xf] }
 0x4b3   :  { %4790 = vmatmul.bf16.gmra.mxu3 %v12923_v13  ;;  %v12931_v12 = vor.u32 %v15424_v23, %v12928_v62  ;;  %v15554_v13 = vld [vmem:[#allocation7 + $0x510] sm:$0xff]  ;;  %v15431_v23 = vld [vmem:[#allocation4 + $0x1b4] sm:$0xf0]  ;;  %v15429_v62 = vld [vmem:[#allocation4 + $0x1ac] sm:$0xf] }
 0x4b4   :  { %5514 = vmatpush.bf16.msrb.mxu0 %v15554_v13 }
 0x4b5   :  { %v3713_v25 = vpop.f32.mrf.mxu2  ;;  %v3537_v60 = vpop.f32.mrf.mxu0 }
 0x4b6   :  { %v3802_v34 = vpop.f32.mrf.mxu3  ;;  %v3714_v26 = vadd.f32 %v3713_v25, %v3625_v42  ;;  %v3626_v27 = vpop.f32.mrf.mxu1  ;;  %v15562_v42 = vld [vmem:[#allocation7 + $0x550] sm:$0xff] }
 0x4b7   :  { %v3627_v31 = vadd.f32 %v3626_v27, %v3537_v60  ;;  %5603 = vmatpush.bf16.msrb.mxu1 %v15562_v42  ;;  %v12942_v27 = vld [vmem:[#allocation4 + $0x1a0] sm:$0xf] }
 0x4b8   :  { %v3803_v57 = vadd.f32 %v3802_v34, %v3714_v26 }
 0x4ba   :  { %v17003_v44 = vadd.f32 %v3803_v57, %v16907_v8 }
 0x4bd   :  { %v3715_v46 = vpop.f32.mrf.mxu2  ;;  %v4489_v33 = vpop.f32.mrf.mxu0 }
 0x4be   :  { %v3804_v0 = vpop.f32.mrf.mxu3  ;;  %v3716_v2 = vadd.f32 %v3715_v46, %v3627_v31  ;;  %v4578_v1 = vpop.f32.mrf.mxu1  ;;  %v15430_v31 = vld [vmem:[#allocation4 + $0x1ac] sm:$0xf0] }
 0x4bf   :  { %v4579_v39 = vadd.f32 %v4578_v1, %v4489_v33  ;;  %v12943_v32 = vor.u32 %v15430_v31, %v12942_v27  ;;  %v12955_v33 = vor.u32 %v15429_v62, %v12952_v51  ;;  %v12960_v27 = vld [vmem:[#allocation4 + $0x1d0] sm:$0xf0]  ;;  %v12966_v31 = vld [vmem:[#allocation4 + $0x1c8] sm:$0xf] }
 0x4c0   :  { %v3805_v17 = vadd.f32 %v3804_v0, %v3716_v2  ;;  %4528 = vmatmul.bf16.gmra.mxu0 %v12927_v56  ;;  %v12951_v2 = vor.u32 %v15431_v23, %v12950_v59  ;;  %v12968_v59 = vld [vmem:[#allocation4 + $0x1d8] sm:$0xf0] }
 0x4c1   :  { %4617 = vmatmul.bf16.gmra.mxu1 %v12931_v12 }
 0x4c2   :  { %v17006_v8 = vadd.f32 %v3805_v17, %v16910_v41  ;;  %4706 = vmatmul.bf16.gmra.mxu2 %v12935_v36  ;;  %v15428_v41 = vld [vmem:[#allocation4 + $0x1a4] sm:$0xf] }
 0x4c3   :  { %4795 = vmatmul.bf16.gmra.mxu3 %v12939_v54  ;;  %v12947_v46 = vor.u32 %v15428_v41, %v12944_v5  ;;  %v15573_v54 = vld [vmem:[#allocation7 + $0x5a8] sm:$0xff]  ;;  %v15435_v41 = vld [vmem:[#allocation4 + $0x1d4] sm:$0xf0] }
 0x4c4   :  { %5689 = vmatpush.bf16.msrb.mxu2 %v15573_v54  ;;  %v15433_v5 = vld [vmem:[#allocation4 + $0x1cc] sm:$0xf] }
 0x4c5   :  { %v4667_v9 = vpop.f32.mrf.mxu2  ;;  %v4491_v25 = vpop.f32.mrf.mxu0 }
 0x4c6   :  { %v4756_v50 = vpop.f32.mrf.mxu3  ;;  %v4668_v55 = vadd.f32 %v4667_v9, %v4579_v39  ;;  %v4580_v34 = vpop.f32.mrf.mxu1  ;;  %v15581_v39 = vld [vmem:[#allocation7 + $0x5e8] sm:$0xff] }
 0x4c7   :  { %v4581_v26 = vadd.f32 %v4580_v34, %v4491_v25  ;;  %5778 = vmatpush.bf16.msrb.mxu3 %v15581_v39  ;;  %v12958_v34 = vld [vmem:[#allocation4 + $0x1c0] sm:$0xf] }
 0x4c8   :  { %v4757_v60 = vadd.f32 %v4756_v50, %v4668_v55 }
 0x4ca   :  { %v17009_v57 = vadd.f32 %v4757_v60, %v16913_v20 }
 0x4cd   :  { %v4669_v37 = vpop.f32.mrf.mxu2  ;;  %v4494_v56 = vpop.f32.mrf.mxu0 }
 0x4ce   :  { %v4758_v63 = vpop.f32.mrf.mxu3  ;;  %v4670_v0 = vadd.f32 %v4669_v37, %v4581_v26  ;;  %v4583_v12 = vpop.f32.mrf.mxu1  ;;  %v15434_v26 = vld [vmem:[#allocation4 + $0x1cc] sm:$0xf0] }
 0x4cf   :  { %v4584_v1 = vadd.f32 %v4583_v12, %v4494_v56  ;;  %v12959_v51 = vor.u32 %v15434_v26, %v12958_v34  ;;  %v12971_v56 = vor.u32 %v15433_v5, %v12968_v59  ;;  %v12976_v34 = vld [vmem:[#allocation4 + $0x1f0] sm:$0xf0]  ;;  %v12982_v26 = vld [vmem:[#allocation4 + $0x1e8] sm:$0xf] }
 0x4d0   :  { %v4759_v36 = vadd.f32 %v4758_v63, %v4670_v0  ;;  %4533 = vmatmul.bf16.gmra.mxu0 %v12943_v32  ;;  %v12967_v0 = vor.u32 %v15435_v41, %v12966_v31  ;;  %v12984_v31 = vld [vmem:[#allocation4 + $0x1f8] sm:$0xf0] }
 0x4d1   :  { %4622 = vmatmul.bf16.gmra.mxu1 %v12947_v46 }
 0x4d2   :  { %v17012_v20 = vadd.f32 %v4759_v36, %v16916_v10  ;;  %4711 = vmatmul.bf16.gmra.mxu2 %v12951_v2  ;;  %v15432_v10 = vld [vmem:[#allocation4 + $0x1c4] sm:$0xf] }
 0x4d3   :  { %4800 = vmatmul.bf16.gmra.mxu3 %v12955_v33  ;;  %v12963_v37 = vor.u32 %v15432_v10, %v12960_v27  ;;  %v15553_v33 = vld [vmem:[#allocation7 + $0x508] sm:$0xff]  ;;  %v15439_v10 = vld [vmem:[#allocation4 + $0x1f4] sm:$0xf0] }
 0x4d4   :  { %5515 = vmatpush.bf16.msrb.mxu0 %v15553_v33  ;;  %v15437_v27 = vld [vmem:[#allocation4 + $0x1ec] sm:$0xf] }
 0x4d5   :  { %v4672_v17 = vpop.f32.mrf.mxu2  ;;  %v4496_v9 = vpop.f32.mrf.mxu0 }
 0x4d6   :  { %v4761_v13 = vpop.f32.mrf.mxu3  ;;  %v4673_v42 = vadd.f32 %v4672_v17, %v4584_v1  ;;  %v4585_v50 = vpop.f32.mrf.mxu1  ;;  %v15561_v1 = vld [vmem:[#allocation7 + $0x548] sm:$0xff] }
 0x4d7   :  { %v4586_v55 = vadd.f32 %v4585_v50, %v4496_v9  ;;  %5604 = vmatpush.bf16.msrb.mxu1 %v15561_v1  ;;  %v12974_v50 = vld [vmem:[#allocation4 + $0x1e0] sm:$0xf] }
 0x4d8   :  { %v4762_v25 = vadd.f32 %v4761_v13, %v4673_v42 }
 0x4da   :  { %v17015_v60 = vadd.f32 %v4762_v25, %v16919_v22 }
 0x4dd   :  { %v4674_v23 = vpop.f32.mrf.mxu2  ;;  %v4499_v32 = vpop.f32.mrf.mxu0 }
 0x4de   :  { %v4763_v62 = vpop.f32.mrf.mxu3  ;;  %v4675_v63 = vadd.f32 %v4674_v23, %v4586_v55  ;;  %v4588_v46 = vpop.f32.mrf.mxu1  ;;  %v15438_v55 = vld [vmem:[#allocation4 + $0x1ec] sm:$0xf0] }
 0x4df   :  { %v4589_v12 = vadd.f32 %v4588_v46, %v4499_v32  ;;  %v12975_v59 = vor.u32 %v15438_v55, %v12974_v50  ;;  %v12987_v32 = vor.u32 %v15437_v27, %v12984_v31  ;;  %v12992_v50 = vld [vmem:[#allocation4 + $0x210] sm:$0xf0]  ;;  %v12998_v55 = vld [vmem:[#allocation4 + $0x208] sm:$0xf] }
 0x4e0   :  { %v4764_v2 = vadd.f32 %v4763_v62, %v4675_v63  ;;  %4538 = vmatmul.bf16.gmra.mxu0 %v12959_v51  ;;  %v12983_v63 = vor.u32 %v15439_v10, %v12982_v26  ;;  %v13000_v26 = vld [vmem:[#allocation4 + $0x218] sm:$0xf0] }
 0x4e1   :  { %4627 = vmatmul.bf16.gmra.mxu1 %v12963_v37 }
 0x4e2   :  { %v17018_v22 = vadd.f32 %v4764_v2, %v16922_v4  ;;  %4716 = vmatmul.bf16.gmra.mxu2 %v12967_v0  ;;  %v15436_v4 = vld [vmem:[#allocation4 + $0x1e4] sm:$0xf] }
 0x4e3   :  { %4805 = vmatmul.bf16.gmra.mxu3 %v12971_v56  ;;  %v12979_v23 = vor.u32 %v15436_v4, %v12976_v34  ;;  %v15572_v56 = vld [vmem:[#allocation7 + $0x5a0] sm:$0xff]  ;;  %v15443_v4 = vld [vmem:[#allocation4 + $0x214] sm:$0xf0]  ;;  %v15441_v34 = vld [vmem:[#allocation4 + $0x20c] sm:$0xf] }
 0x4e4   :  { %5690 = vmatpush.bf16.msrb.mxu2 %v15572_v56 }
 0x4e5   :  { %v4677_v36 = vpop.f32.mrf.mxu2  ;;  %v4501_v17 = vpop.f32.mrf.mxu0 }
 0x4e6   :  { %v4766_v54 = vpop.f32.mrf.mxu3  ;;  %v4678_v39 = vadd.f32 %v4677_v36, %v4589_v12  ;;  %v4590_v13 = vpop.f32.mrf.mxu1  ;;  %v15580_v12 = vld [vmem:[#allocation7 + $0x5e0] sm:$0xff] }
 0x4e7   :  { %v4591_v42 = vadd.f32 %v4590_v13, %v4501_v17  ;;  %5779 = vmatpush.bf16.msrb.mxu3 %v15580_v12  ;;  %v12990_v13 = vld [vmem:[#allocation4 + $0x200] sm:$0xf] }
 0x4e8   :  { %v4767_v9 = vadd.f32 %v4766_v54, %v4678_v39 }
 0x4ea   :  { %v17021_v25 = vadd.f32 %v4767_v9, %v16925_v16 }
 0x4ed   :  { %v4679_v41 = vpop.f32.mrf.mxu2  ;;  %v4504_v51 = vpop.f32.mrf.mxu0 }
 0x4ee   :  { %v4768_v5 = vpop.f32.mrf.mxu3  ;;  %v4680_v62 = vadd.f32 %v4679_v41, %v4591_v42  ;;  %v4593_v37 = vpop.f32.mrf.mxu1  ;;  %v15442_v42 = vld [vmem:[#allocation4 + $0x20c] sm:$0xf0] }
 0x4ef   :  { %v4594_v46 = vadd.f32 %v4593_v37, %v4504_v51  ;;  %v12991_v31 = vor.u32 %v15442_v42, %v12990_v13  ;;  %v13003_v51 = vor.u32 %v15441_v34, %v13000_v26  ;;  %v13008_v13 = vld [vmem:[#allocation4 + $0x230] sm:$0xf0]  ;;  %v13014_v42 = vld [vmem:[#allocation4 + $0x228] sm:$0xf] }
 0x4f0   :  { %v4769_v0 = vadd.f32 %v4768_v5, %v4680_v62  ;;  %4543 = vmatmul.bf16.gmra.mxu0 %v12975_v59  ;;  %v12999_v62 = vor.u32 %v15443_v4, %v12998_v55  ;;  %v13016_v55 = vld [vmem:[#allocation4 + $0x238] sm:$0xf0] }
 0x4f1   :  { %4632 = vmatmul.bf16.gmra.mxu1 %v12979_v23 }
 0x4f2   :  { %v17024_v16 = vadd.f32 %v4769_v0, %v16928_v61  ;;  %4721 = vmatmul.bf16.gmra.mxu2 %v12983_v63  ;;  %v15440_v61 = vld [vmem:[#allocation4 + $0x204] sm:$0xf] }
 0x4f3   :  { %4810 = vmatmul.bf16.gmra.mxu3 %v12987_v32  ;;  %v12995_v41 = vor.u32 %v15440_v61, %v12992_v50  ;;  %v15552_v32 = vld [vmem:[#allocation7 + $0x500] sm:$0xff]  ;;  %v15447_v61 = vld [vmem:[#allocation4 + $0x234] sm:$0xf0]  ;;  %v15445_v50 = vld [vmem:[#allocation4 + $0x22c] sm:$0xf] }
 0x4f4   :  { %5516 = vmatpush.bf16.msrb.mxu0 %v15552_v32 }
 0x4f5   :  { %v4682_v2 = vpop.f32.mrf.mxu2  ;;  %v4506_v36 = vpop.f32.mrf.mxu0 }
 0x4f6   :  { %v4771_v33 = vpop.f32.mrf.mxu3  ;;  %v4683_v1 = vadd.f32 %v4682_v2, %v4594_v46  ;;  %v4595_v54 = vpop.f32.mrf.mxu1  ;;  %v15560_v46 = vld [vmem:[#allocation7 + $0x540] sm:$0xff] }
 0x4f7   :  { %v4596_v39 = vadd.f32 %v4595_v54, %v4506_v36  ;;  %5605 = vmatpush.bf16.msrb.mxu1 %v15560_v46  ;;  %v13006_v54 = vld [vmem:[#allocation4 + $0x220] sm:$0xf]  ;;  %v15570_v46 = vld [vmem:[#allocation7 + $0x590] sm:$0xff] }
 0x4f8   :  { %v4772_v17 = vadd.f32 %v4771_v33, %v4683_v1 }
 0x4fa   :  { %v17027_v9 = vadd.f32 %v4772_v17, %v16931_v30 }
 0x4fd   :  { %v4684_v10 = vpop.f32.mrf.mxu2  ;;  %v4509_v59 = vpop.f32.mrf.mxu0 }
 0x4fe   :  { %v4773_v27 = vpop.f32.mrf.mxu3  ;;  %v4685_v5 = vadd.f32 %v4684_v10, %v4596_v39  ;;  %v4598_v23 = vpop.f32.mrf.mxu1  ;;  %v15446_v39 = vld [vmem:[#allocation4 + $0x22c] sm:$0xf0] }
 0x4ff   :  { %v4599_v37 = vadd.f32 %v4598_v23, %v4509_v59  ;;  %v13007_v26 = vor.u32 %v15446_v39, %v13006_v54  ;;  %v13019_v59 = vor.u32 %v15445_v50, %v13016_v55  ;;  %v15450_v54 = vld [vmem:[#allocation4 + $0x24c] sm:$0xf0]  ;;  %v15569_v39 = vld [vmem:[#allocation7 + $0x588] sm:$0xff]  ;;  %v15451_v50 = vld [vmem:[#allocation4 + $0x254] sm:$0xf0] }
 0x500   :  { %v4774_v63 = vadd.f32 %v4773_v27, %v4685_v5  ;;  %4548 = vmatmul.bf16.gmra.mxu0 %v12991_v31  ;;  %v13015_v5 = vor.u32 %v15447_v61, %v13014_v42  ;;  %v13024_v42 = vld [vmem:[#allocation4 + $0x250] sm:$0xf0]  ;;  %v13030_v61 = vld [vmem:[#allocation4 + $0x248] sm:$0xf]  ;;  %v15449_v55 = vld [vmem:[#allocation4 + $0x24c] sm:$0xf] }
 0x501   :  { %4637 = vmatmul.bf16.gmra.mxu1 %v12995_v41 }
 0x502   :  { %v17030_v30 = vadd.f32 %v4774_v63, %v16934_v18  ;;  %4726 = vmatmul.bf16.gmra.mxu2 %v12999_v62  ;;  %v15444_v18 = vld [vmem:[#allocation4 + $0x224] sm:$0xf] }
 0x503   :  { %4815 = vmatmul.bf16.gmra.mxu3 %v13003_v51  ;;  %v13011_v10 = vor.u32 %v15444_v18, %v13008_v13  ;;  %v15579_v51 = vld [vmem:[#allocation7 + $0x5d8] sm:$0xff]  ;;  %v15448_v13 = vld [vmem:[#allocation4 + $0x244] sm:$0xf] }
 0x504   :  { %5780 = vmatpush.bf16.msrb.mxu3 %v15579_v51 }
 0x505   :  { %v4687_v0 = vpop.f32.mrf.mxu2  ;;  %v4511_v2 = vpop.f32.mrf.mxu0 }
 0x506   :  { %v4776_v56 = vpop.f32.mrf.mxu3  ;;  %v4688_v12 = vadd.f32 %v4687_v0, %v4599_v37  ;;  %v4600_v33 = vpop.f32.mrf.mxu1  ;;  %v15578_v0 = vld [vmem:[#allocation7 + $0x5d0] sm:$0xff] }
 0x507   :  { %v4601_v1 = vadd.f32 %v4600_v33, %v4511_v2 }
 0x508   :  { %v4777_v36 = vadd.f32 %v4776_v56, %v4688_v12  ;;  %5781 = vmatpush.bf16.msrb.mxu3 %v15578_v0 }
 0x50a   :  { %v17033_v17 = vadd.f32 %v4777_v36, %v16937_v14  ;;  %v15571_v14 = vld [vmem:[#allocation7 + $0x598] sm:$0xff]  ;;  %v13022_v36 = vld [vmem:[#allocation4 + $0x240] sm:$0xf] }
 0x50b   :  { %5691 = vmatpush.bf16.msrb.mxu2 %v15571_v14 }
 0x50d   :  { %v4689_v4 = vpop.f32.mrf.mxu2  ;;  %v4514_v31 = vpop.f32.mrf.mxu0 }
 0x50e   :  { %v4778_v34 = vpop.f32.mrf.mxu3  ;;  %v4690_v27 = vadd.f32 %v4689_v4, %v4601_v1  ;;  %v4603_v41 = vpop.f32.mrf.mxu1  ;;  %v13032_v4 = vld [vmem:[#allocation4 + $0x258] sm:$0xf0] }
 0x50f   :  { %v4604_v23 = vadd.f32 %v4603_v41, %v4514_v31  ;;  %5692 = vmatpush.bf16.msrb.mxu2 %v15570_v46  ;;  %v15568_v31 = vld [vmem:[#allocation7 + $0x580] sm:$0xff]  ;;  %v15663_v46 = vld [vmem:[#allocation7 + $0x678] sm:$0xff] }
 0x510   :  { %v4779_v62 = vadd.f32 %v4778_v34, %v4690_v27  ;;  %4553 = vmatmul.bf16.gmra.mxu0 %v13007_v26  ;;  %v13027_v27 = vor.u32 %v15448_v13, %v13024_v42  ;;  %v15576_v41 = vld [vmem:[#allocation7 + $0x5c0] sm:$0xff]  ;;  %6627 = vmatpush.bf16.msra.mxu1 %v15663_v46  ;;  %v13040_v13 = vld [vmem:[#allocation4 + $0x270] sm:$0xf0]  ;;  %v13046_v42 = vld [vmem:[#allocation4 + $0x268] sm:$0xf] }
 0x511   :  { %4642 = vmatmul.bf16.gmra.mxu1 %v13011_v10  ;;  %v13023_v10 = vor.u32 %v15450_v54, %v13022_v36  ;;  %v13038_v54 = vld [vmem:[#allocation4 + $0x260] sm:$0xf] }
 0x512   :  { %v17036_v37 = vadd.f32 %v4779_v62, %v16940_v24  ;;  %4731 = vmatmul.bf16.gmra.mxu2 %v13015_v5  ;;  %v15577_v24 = vld [vmem:[#allocation7 + $0x5c8] sm:$0xff]  ;;  %v13031_v62 = vor.u32 %v15451_v50, %v13030_v61  ;;  %v15455_v61 = vld [vmem:[#allocation4 + $0x274] sm:$0xf0] }
 0x513   :  { %4820 = vmatmul.bf16.gmra.mxu3 %v13019_v59  ;;  %5693 = vmatpush.bf16.msrb.mxu2 %v15569_v39  ;;  %v15454_v39 = vld [vmem:[#allocation4 + $0x26c] sm:$0xf0]  ;;  %v15453_v50 = vld [vmem:[#allocation4 + $0x26c] sm:$0xf] }
 0x514   :  { %5782 = vmatpush.bf16.msrb.mxu3 %v15577_v24 }
 0x515   :  { %v4692_v63 = vpop.f32.mrf.mxu2  ;;  %v4516_v12 = vpop.f32.mrf.mxu0 }
 0x516   :  { %v4781_v32 = vpop.f32.mrf.mxu3  ;;  %v4693_v56 = vadd.f32 %v4692_v63, %v4604_v23  ;;  %v4605_v2 = vpop.f32.mrf.mxu1 }
 0x517   :  { %v4606_v33 = vadd.f32 %v4605_v2, %v4516_v12  ;;  %5694 = vmatpush.bf16.msrb.mxu2 %v15568_v31 }
 0x518   :  { %v4782_v1 = vadd.f32 %v4781_v32, %v4693_v56  ;;  %5783 = vmatpush.bf16.msrb.mxu3 %v15576_v41  ;;  %v15655_v32 = vld [vmem:[#allocation7 + $0x638] sm:$0xff] }
 0x519   :  { %6538 = vmatpush.bf16.msra.mxu0 %v15655_v32 }
 0x51a   :  { %v17039_v18 = vadd.f32 %v4782_v1, %v16943_v21  ;;  %v13035_v21 = vor.u32 %v15449_v55, %v13032_v4  ;;  %v13048_v55 = vld [vmem:[#allocation4 + $0x278] sm:$0xf0] }
 0x51d   :  { %v4694_v34 = vpop.f32.mrf.mxu2  ;;  %v4519_v59 = vpop.f32.mrf.mxu0 }
 0x51e   :  { %v4783_v26 = vpop.f32.mrf.mxu3  ;;  %v4695_v5 = vadd.f32 %v4694_v34, %v4606_v33  ;;  %v4608_v23 = vpop.f32.mrf.mxu1 }
 0x51f   :  { %v4609_v14 = vadd.f32 %v4608_v23, %v4519_v59  ;;  %v13051_v59 = vor.u32 %v15453_v50, %v13048_v55 }
 0x520   :  { %v4784_v51 = vadd.f32 %v4783_v26, %v4695_v5  ;;  %4558 = vmatmul.bf16.gmra.mxu0 %v13023_v10  ;;  %v13039_v26 = vor.u32 %v15454_v39, %v13038_v54  ;;  %v13047_v5 = vor.u32 %v15455_v61, %v13046_v42  ;;  %v13190_v54 = vld [vmem:[#allocation4 + $0xa8] sm:$0xf]  ;;  %v15491_v39 = vld [vmem:[#allocation4 + $0xb4] sm:$0xf0] }
 0x521   :  { %4647 = vmatmul.bf16.gmra.mxu1 %v13027_v27 }
 0x522   :  { %v17042_v63 = vadd.f32 %v4784_v51, %v16946_v3  ;;  %4736 = vmatmul.bf16.gmra.mxu2 %v13031_v62  ;;  %v15452_v3 = vld [vmem:[#allocation4 + $0x264] sm:$0xf] }
 0x523   :  { %4825 = vmatmul.bf16.gmra.mxu3 %v13035_v21  ;;  %v13043_v10 = vor.u32 %v15452_v3, %v13040_v13  ;;  %v13192_v3 = vld [vmem:[#allocation4 + $0xb8] sm:$0xf0] }
 0x525   :  { %v4697_v0 = vpop.f32.mrf.mxu2  ;;  %v4521_v2 = vpop.f32.mrf.mxu0 }
 0x526   :  { %v4786_v56 = vpop.f32.mrf.mxu3  ;;  %v4698_v12 = vadd.f32 %v4697_v0, %v4609_v14  ;;  %v4610_v33 = vpop.f32.mrf.mxu1 }
 0x527   :  { %v4611_v1 = vadd.f32 %v4610_v33, %v4521_v2  ;;  %v15490_v2 = vld [vmem:[#allocation4 + $0xac] sm:$0xf0] }
 0x528   :  { %v4787_v36 = vadd.f32 %v4786_v56, %v4698_v12  ;;  %v13182_v12 = vld [vmem:[#allocation4 + $0xa0] sm:$0xf] }
 0x529   :  { %v13183_v61 = vor.u32 %v15490_v2, %v13182_v12  ;;  %v13200_v12 = vld [vmem:[#allocation4 + $0xd0] sm:$0xf0]  ;;  %v13206_v2 = vld [vmem:[#allocation4 + $0xc8] sm:$0xf] }
 0x52a   :  { %v17045_v24 = vadd.f32 %v4787_v36, %v16949_v35  ;;  %v13184_v36 = vld [vmem:[#allocation4 + $0xb0] sm:$0xf0] }
 0x52d   :  { %v4699_v4 = vpop.f32.mrf.mxu2  ;;  %v4524_v31 = vpop.f32.mrf.mxu0 }
 0x52e   :  { %v4788_v34 = vpop.f32.mrf.mxu3  ;;  %v4700_v27 = vadd.f32 %v4699_v4, %v4611_v1  ;;  %v4613_v41 = vpop.f32.mrf.mxu1  ;;  %v15488_v1 = vld [vmem:[#allocation4 + $0xa4] sm:$0xf] }
 0x52f   :  { %v4614_v23 = vadd.f32 %v4613_v41, %v4524_v31  ;;  %v13187_v50 = vor.u32 %v15488_v1, %v13184_v36  ;;  %v15654_v41 = vld [vmem:[#allocation7 + $0x630] sm:$0xff]  ;;  %v15495_v1 = vld [vmem:[#allocation4 + $0xd4] sm:$0xf0]  ;;  %v15493_v36 = vld [vmem:[#allocation4 + $0xcc] sm:$0xf] }
 0x530   :  { %v4789_v62 = vadd.f32 %v4788_v34, %v4700_v27  ;;  %4563 = vmatmul.bf16.gmra.mxu0 %v13039_v26  ;;  %v13191_v26 = vor.u32 %v15491_v39, %v13190_v54  ;;  %v13208_v54 = vld [vmem:[#allocation4 + $0xd8] sm:$0xf0] }
 0x531   :  { %4652 = vmatmul.bf16.gmra.mxu1 %v13043_v10  ;;  %6539 = vmatpush.bf16.msra.mxu0 %v15654_v41 }
 0x532   :  { %v17048_v35 = vadd.f32 %v4789_v62, %v16952_v53  ;;  %4741 = vmatmul.bf16.gmra.mxu2 %v13047_v5  ;;  %v15489_v53 = vld [vmem:[#allocation4 + $0xac] sm:$0xf]  ;;  %v15662_v5 = vld [vmem:[#allocation7 + $0x670] sm:$0xff] }
 0x533   :  { %4830 = vmatmul.bf16.gmra.mxu3 %v13051_v59  ;;  %v13195_v10 = vor.u32 %v15489_v53, %v13192_v3  ;;  %6628 = vmatpush.bf16.msra.mxu1 %v15662_v5 }
 0x535   :  { %v4702_v21 = vpop.f32.mrf.mxu2  ;;  %v4526_v32 = vpop.f32.mrf.mxu0 }
 0x536   :  { %v4791_v14 = vpop.f32.mrf.mxu3  ;;  %v4703_v51 = vadd.f32 %v4702_v21, %v4614_v23  ;;  %v4615_v46 = vpop.f32.mrf.mxu1 }
 0x537   :  { %v4616_v0 = vadd.f32 %v4615_v46, %v4526_v32  ;;  %v13198_v46 = vld [vmem:[#allocation4 + $0xc0] sm:$0xf] }
 0x538   :  { %v4792_v56 = vadd.f32 %v4791_v14, %v4703_v51 }
 0x53a   :  { %v17051_v33 = vadd.f32 %v4792_v56, %v16955_v7 }
 0x53d   :  { %v4704_v13 = vpop.f32.mrf.mxu2  ;;  %v4529_v4 = vpop.f32.mrf.mxu0 }
 0x53e   :  { %v4793_v42 = vpop.f32.mrf.mxu3  ;;  %v4705_v55 = vadd.f32 %v4704_v13, %v4616_v0  ;;  %v4618_v34 = vpop.f32.mrf.mxu1  ;;  %v15494_v0 = vld [vmem:[#allocation4 + $0xcc] sm:$0xf0] }
 0x53f   :  { %v4619_v27 = vadd.f32 %v4618_v34, %v4529_v4  ;;  %v13199_v3 = vor.u32 %v15494_v0, %v13198_v46  ;;  %v13211_v4 = vor.u32 %v15493_v36, %v13208_v54  ;;  %v13222_v46 = vld [vmem:[#allocation4 + $0xe8] sm:$0xf]  ;;  %v15499_v0 = vld [vmem:[#allocation4 + $0xf4] sm:$0xf0] }
 0x540   :  { %v4794_v31 = vadd.f32 %v4793_v42, %v4705_v55  ;;  %5517 = vmatmul.bf16.vlgmr.msrb.gmra.mxu0 %v13183_v61  ;;  %v13207_v55 = vor.u32 %v15495_v1, %v13206_v2 }
 0x541   :  { %5606 = vmatmul.bf16.vlgmr.msrb.gmra.mxu1 %v13187_v50 }
 0x542   :  { %v17054_v7 = vadd.f32 %v4794_v31, %v16958_v47  ;;  %5695 = vmatmul.bf16.vlgmr.msrb.gmra.mxu2 %v13191_v26  ;;  %v15492_v47 = vld [vmem:[#allocation4 + $0xc4] sm:$0xf] }
 0x543   :  { %5784 = vmatmul.bf16.vlgmr.msrb.gmra.mxu3 %v13195_v10  ;;  %v13203_v13 = vor.u32 %v15492_v47, %v13200_v12  ;;  %v13224_v47 = vld [vmem:[#allocation4 + $0xf8] sm:$0xf0] }
 0x545   :  { %v4707_v59 = vpop.f32.mrf.mxu2  ;;  %v4531_v21 = vpop.f32.mrf.mxu0 }
 0x546   :  { %v4796_v23 = vpop.f32.mrf.mxu3  ;;  %v4708_v62 = vadd.f32 %v4707_v59, %v4619_v27  ;;  %v4620_v14 = vpop.f32.mrf.mxu1 }
 0x547   :  { %v4621_v51 = vadd.f32 %v4620_v14, %v4531_v21  ;;  %v15498_v21 = vld [vmem:[#allocation4 + $0xec] sm:$0xf0] }
 0x548   :  { %v4797_v32 = vadd.f32 %v4796_v23, %v4708_v62  ;;  %v13214_v62 = vld [vmem:[#allocation4 + $0xe0] sm:$0xf] }
 0x549   :  { %v13215_v1 = vor.u32 %v15498_v21, %v13214_v62  ;;  %v13232_v62 = vld [vmem:[#allocation4 + $0x110] sm:$0xf0]  ;;  %v13238_v21 = vld [vmem:[#allocation4 + $0x108] sm:$0xf] }
 0x54a   :  { %v17057_v56 = vadd.f32 %v4797_v32, %v16961_v58  ;;  %v13216_v32 = vld [vmem:[#allocation4 + $0xf0] sm:$0xf0] }
 0x54d   :  { %v4709_v39 = vpop.f32.mrf.mxu2  ;;  %v4534_v61 = vpop.f32.mrf.mxu0 }
 0x54e   :  { %v4798_v53 = vpop.f32.mrf.mxu3  ;;  %v4710_v42 = vadd.f32 %v4709_v39, %v4621_v51  ;;  %v4623_v50 = vpop.f32.mrf.mxu1  ;;  %v15496_v51 = vld [vmem:[#allocation4 + $0xe4] sm:$0xf] }
 0x54f   :  { %v4624_v34 = vadd.f32 %v4623_v50, %v4534_v61  ;;  %v13219_v36 = vor.u32 %v15496_v51, %v13216_v32  ;;  %v15653_v50 = vld [vmem:[#allocation7 + $0x628] sm:$0xff]  ;;  %v15503_v51 = vld [vmem:[#allocation4 + $0x114] sm:$0xf0] }
 0x550   :  { %v4799_v26 = vadd.f32 %v4798_v53, %v4710_v42  ;;  %5522 = vmatmul.bf16.gmra.mxu0 %v13199_v3  ;;  %v13223_v3 = vor.u32 %v15499_v0, %v13222_v46  ;;  %v15501_v32 = vld [vmem:[#allocation4 + $0x10c] sm:$0xf]  ;;  %v13240_v46 = vld [vmem:[#allocation4 + $0x118] sm:$0xf0] }
 0x551   :  { %5611 = vmatmul.bf16.gmra.mxu1 %v13203_v13  ;;  %6540 = vmatpush.bf16.msra.mxu0 %v15653_v50 }
 0x552   :  { %v17060_v58 = vadd.f32 %v4799_v26, %v16964_v19  ;;  %5700 = vmatmul.bf16.gmra.mxu2 %v13207_v55  ;;  %v15497_v19 = vld [vmem:[#allocation4 + $0xec] sm:$0xf] }
 0x553   :  { %5789 = vmatmul.bf16.gmra.mxu3 %v13211_v4  ;;  %v13227_v13 = vor.u32 %v15497_v19, %v13224_v47  ;;  %v15661_v55 = vld [vmem:[#allocation7 + $0x668] sm:$0xff] }
 0x554   :  { %6629 = vmatpush.bf16.msra.mxu1 %v15661_v55 }
 0x555   :  { %v4712_v10 = vpop.f32.mrf.mxu2  ;;  %v4536_v41 = vpop.f32.mrf.mxu0 }
 0x556   :  { %v4801_v27 = vpop.f32.mrf.mxu3  ;;  %v4713_v31 = vadd.f32 %v4712_v10, %v4624_v34  ;;  %v4625_v5 = vpop.f32.mrf.mxu1 }
 0x557   :  { %v4626_v59 = vadd.f32 %v4625_v5, %v4536_v41  ;;  %v13230_v5 = vld [vmem:[#allocation4 + $0x100] sm:$0xf] }
 0x558   :  { %v4802_v23 = vadd.f32 %v4801_v27, %v4713_v31 }
 0x55a   :  { %v17063_v14 = vadd.f32 %v4802_v23, %v16967_v48 }
 0x55d   :  { %v4714_v12 = vpop.f32.mrf.mxu2  ;;  %v4539_v39 = vpop.f32.mrf.mxu0 }
 0x55e   :  { %v4803_v2 = vpop.f32.mrf.mxu3  ;;  %v4715_v54 = vadd.f32 %v4714_v12, %v4626_v59  ;;  %v4628_v53 = vpop.f32.mrf.mxu1  ;;  %v15502_v59 = vld [vmem:[#allocation4 + $0x10c] sm:$0xf0] }
 0x55f   :  { %v4629_v42 = vadd.f32 %v4628_v53, %v4539_v39  ;;  %v13231_v47 = vor.u32 %v15502_v59, %v13230_v5  ;;  %v13243_v39 = vor.u32 %v15501_v32, %v13240_v46  ;;  %v13254_v5 = vld [vmem:[#allocation4 + $0x128] sm:$0xf]  ;;  %v15507_v59 = vld [vmem:[#allocation4 + $0x134] sm:$0xf0] }
 0x560   :  { %v4804_v61 = vadd.f32 %v4803_v2, %v4715_v54  ;;  %5527 = vmatmul.bf16.gmra.mxu0 %v13215_v1  ;;  %v13239_v54 = vor.u32 %v15503_v51, %v13238_v21 }
 0x561   :  { %5616 = vmatmul.bf16.gmra.mxu1 %v13219_v36 }
 0x562   :  { %v17066_v48 = vadd.f32 %v4804_v61, %v16970_v45  ;;  %5705 = vmatmul.bf16.gmra.mxu2 %v13223_v3  ;;  %v15500_v45 = vld [vmem:[#allocation4 + $0x104] sm:$0xf] }
 0x563   :  { %5794 = vmatmul.bf16.gmra.mxu3 %v13227_v13  ;;  %v13235_v12 = vor.u32 %v15500_v45, %v13232_v62  ;;  %v13256_v45 = vld [vmem:[#allocation4 + $0x138] sm:$0xf0] }
 0x565   :  { %v4717_v4 = vpop.f32.mrf.mxu2  ;;  %v4541_v10 = vpop.f32.mrf.mxu0 }
 0x566   :  { %v4806_v34 = vpop.f32.mrf.mxu3  ;;  %v4718_v26 = vadd.f32 %v4717_v4, %v4629_v42  ;;  %v4630_v27 = vpop.f32.mrf.mxu1 }
 0x567   :  { %v4631_v31 = vadd.f32 %v4630_v27, %v4541_v10  ;;  %v15506_v10 = vld [vmem:[#allocation4 + $0x12c] sm:$0xf0] }
 0x568   :  { %v4807_v41 = vadd.f32 %v4806_v34, %v4718_v26  ;;  %v13246_v26 = vld [vmem:[#allocation4 + $0x120] sm:$0xf] }
 0x569   :  { %v13247_v51 = vor.u32 %v15506_v10, %v13246_v26  ;;  %v13264_v26 = vld [vmem:[#allocation4 + $0x150] sm:$0xf0]  ;;  %v13270_v10 = vld [vmem:[#allocation4 + $0x148] sm:$0xf] }
 0x56a   :  { %v17069_v23 = vadd.f32 %v4807_v41, %v16973_v11  ;;  %v13248_v41 = vld [vmem:[#allocation4 + $0x130] sm:$0xf0] }
 0x56d   :  { %v4719_v0 = vpop.f32.mrf.mxu2  ;;  %v4544_v1 = vpop.f32.mrf.mxu0 }
 0x56e   :  { %v4808_v19 = vpop.f32.mrf.mxu3  ;;  %v4720_v2 = vadd.f32 %v4719_v0, %v4631_v31  ;;  %v4633_v36 = vpop.f32.mrf.mxu1  ;;  %v15504_v31 = vld [vmem:[#allocation4 + $0x124] sm:$0xf] }
 0x56f   :  { %v4634_v53 = vadd.f32 %v4633_v36, %v4544_v1  ;;  %v13251_v32 = vor.u32 %v15504_v31, %v13248_v41  ;;  %v15652_v36 = vld [vmem:[#allocation7 + $0x620] sm:$0xff]  ;;  %v15511_v31 = vld [vmem:[#allocation4 + $0x154] sm:$0xf0]  ;;  %v15509_v41 = vld [vmem:[#allocation4 + $0x14c] sm:$0xf] }
 0x570   :  { %v4809_v3 = vadd.f32 %v4808_v19, %v4720_v2  ;;  %5532 = vmatmul.bf16.gmra.mxu0 %v13231_v47  ;;  %v13255_v47 = vor.u32 %v15507_v59, %v13254_v5  ;;  %v13272_v5 = vld [vmem:[#allocation4 + $0x158] sm:$0xf0] }
 0x571   :  { %5621 = vmatmul.bf16.gmra.mxu1 %v13235_v12  ;;  %6541 = vmatpush.bf16.msra.mxu0 %v15652_v36 }
 0x572   :  { %v17072_v11 = vadd.f32 %v4809_v3, %v16976_v6  ;;  %5710 = vmatmul.bf16.gmra.mxu2 %v13239_v54  ;;  %v15505_v6 = vld [vmem:[#allocation4 + $0x12c] sm:$0xf]  ;;  %v15660_v54 = vld [vmem:[#allocation7 + $0x660] sm:$0xff] }
 0x573   :  { %5799 = vmatmul.bf16.gmra.mxu3 %v13243_v39  ;;  %v13259_v12 = vor.u32 %v15505_v6, %v13256_v45  ;;  %6630 = vmatpush.bf16.msra.mxu1 %v15660_v54 }
 0x575   :  { %v4722_v13 = vpop.f32.mrf.mxu2  ;;  %v4546_v50 = vpop.f32.mrf.mxu0 }
 0x576   :  { %v4811_v42 = vpop.f32.mrf.mxu3  ;;  %v4723_v61 = vadd.f32 %v4722_v13, %v4634_v53  ;;  %v4635_v55 = vpop.f32.mrf.mxu1 }
 0x577   :  { %v4636_v4 = vadd.f32 %v4635_v55, %v4546_v50  ;;  %v13262_v55 = vld [vmem:[#allocation4 + $0x140] sm:$0xf] }
 0x578   :  { %v4812_v34 = vadd.f32 %v4811_v42, %v4723_v61 }
 0x57a   :  { %v17075_v27 = vadd.f32 %v4812_v34, %v16979_v15 }
 0x57d   :  { %v4724_v62 = vpop.f32.mrf.mxu2  ;;  %v4549_v0 = vpop.f32.mrf.mxu0 }
 0x57e   :  { %v4813_v21 = vpop.f32.mrf.mxu3  ;;  %v4725_v46 = vadd.f32 %v4724_v62, %v4636_v4  ;;  %v4638_v19 = vpop.f32.mrf.mxu1  ;;  %v15510_v4 = vld [vmem:[#allocation4 + $0x14c] sm:$0xf0] }
 0x57f   :  { %v4639_v2 = vadd.f32 %v4638_v19, %v4549_v0  ;;  %v13263_v45 = vor.u32 %v15510_v4, %v13262_v55  ;;  %v13275_v0 = vor.u32 %v15509_v41, %v13272_v5  ;;  %v13280_v55 = vld [vmem:[#allocation4 + $0x170] sm:$0xf0]  ;;  %v13286_v4 = vld [vmem:[#allocation4 + $0x168] sm:$0xf] }
 0x580   :  { %v4814_v1 = vadd.f32 %v4813_v21, %v4725_v46  ;;  %5537 = vmatmul.bf16.gmra.mxu0 %v13247_v51  ;;  %v13271_v46 = vor.u32 %v15511_v31, %v13270_v10  ;;  %v13288_v10 = vld [vmem:[#allocation4 + $0x178] sm:$0xf0] }
 0x581   :  { %5626 = vmatmul.bf16.gmra.mxu1 %v13251_v32 }
 0x582   :  { %v17078_v15 = vadd.f32 %v4814_v1, %v16982_v38  ;;  %5715 = vmatmul.bf16.gmra.mxu2 %v13255_v47  ;;  %v15508_v38 = vld [vmem:[#allocation4 + $0x144] sm:$0xf] }
 0x583   :  { %5804 = vmatmul.bf16.gmra.mxu3 %v13259_v12  ;;  %v13267_v62 = vor.u32 %v15508_v38, %v13264_v26  ;;  %v15671_v12 = vld [vmem:[#allocation7 + $0x6b8] sm:$0xff]  ;;  %v15513_v26 = vld [vmem:[#allocation4 + $0x16c] sm:$0xf] }
 0x584   :  { %6716 = vmatpush.bf16.msra.mxu2 %v15671_v12  ;;  %v15515_v38 = vld [vmem:[#allocation4 + $0x174] sm:$0xf0] }
 0x585   :  { %v4727_v39 = vpop.f32.mrf.mxu2  ;;  %v4551_v13 = vpop.f32.mrf.mxu0 }
 0x586   :  { %v4816_v53 = vpop.f32.mrf.mxu3  ;;  %v4728_v3 = vadd.f32 %v4727_v39, %v4639_v2  ;;  %v4640_v42 = vpop.f32.mrf.mxu1  ;;  %v15679_v2 = vld [vmem:[#allocation7 + $0x6f8] sm:$0xff] }
 0x587   :  { %v4641_v61 = vadd.f32 %v4640_v42, %v4551_v13  ;;  %6805 = vmatpush.bf16.msra.mxu3 %v15679_v2  ;;  %v13278_v42 = vld [vmem:[#allocation4 + $0x160] sm:$0xf] }
 0x588   :  { %v4817_v50 = vadd.f32 %v4816_v53, %v4728_v3 }
 0x58a   :  { %v17081_v34 = vadd.f32 %v4817_v50, %v16985_v52 }
 0x58d   :  { %v4729_v59 = vpop.f32.mrf.mxu2  ;;  %v4554_v51 = vpop.f32.mrf.mxu0 }
 0x58e   :  { %v4818_v6 = vpop.f32.mrf.mxu3  ;;  %v4730_v21 = vadd.f32 %v4729_v59, %v4641_v61  ;;  %v4643_v32 = vpop.f32.mrf.mxu1  ;;  %v15514_v61 = vld [vmem:[#allocation4 + $0x16c] sm:$0xf0] }
 0x58f   :  { %v4644_v19 = vadd.f32 %v4643_v32, %v4554_v51  ;;  %v13279_v5 = vor.u32 %v15514_v61, %v13278_v42  ;;  %v13291_v51 = vor.u32 %v15513_v26, %v13288_v10  ;;  %v13296_v42 = vld [vmem:[#allocation4 + $0x190] sm:$0xf0]  ;;  %v13302_v61 = vld [vmem:[#allocation4 + $0x188] sm:$0xf] }
 0x590   :  { %v4819_v47 = vadd.f32 %v4818_v6, %v4730_v21  ;;  %5542 = vmatmul.bf16.gmra.mxu0 %v13263_v45  ;;  %v13287_v21 = vor.u32 %v15515_v38, %v13286_v4  ;;  %v13304_v4 = vld [vmem:[#allocation4 + $0x198] sm:$0xf0] }
 0x591   :  { %5631 = vmatmul.bf16.gmra.mxu1 %v13267_v62 }
 0x592   :  { %v17084_v52 = vadd.f32 %v4819_v47, %v16988_v43  ;;  %5720 = vmatmul.bf16.gmra.mxu2 %v13271_v46  ;;  %v15512_v43 = vld [vmem:[#allocation4 + $0x164] sm:$0xf] }
 0x593   :  { %5809 = vmatmul.bf16.gmra.mxu3 %v13275_v0  ;;  %v13283_v59 = vor.u32 %v15512_v43, %v13280_v55  ;;  %v15651_v0 = vld [vmem:[#allocation7 + $0x618] sm:$0xff]  ;;  %v15517_v55 = vld [vmem:[#allocation4 + $0x18c] sm:$0xf] }
 0x594   :  { %6542 = vmatpush.bf16.msra.mxu0 %v15651_v0  ;;  %v15519_v43 = vld [vmem:[#allocation4 + $0x194] sm:$0xf0] }
 0x595   :  { %v4732_v1 = vpop.f32.mrf.mxu2  ;;  %v4556_v39 = vpop.f32.mrf.mxu0 }
 0x596   :  { %v4821_v36 = vpop.f32.mrf.mxu3  ;;  %v4733_v54 = vadd.f32 %v4732_v1, %v4644_v19  ;;  %v4645_v53 = vpop.f32.mrf.mxu1  ;;  %v15659_v19 = vld [vmem:[#allocation7 + $0x658] sm:$0xff] }
 0x597   :  { %v4646_v3 = vadd.f32 %v4645_v53, %v4556_v39  ;;  %6631 = vmatpush.bf16.msra.mxu1 %v15659_v19  ;;  %v13294_v53 = vld [vmem:[#allocation4 + $0x180] sm:$0xf] }
 0x598   :  { %v4822_v13 = vadd.f32 %v4821_v36, %v4733_v54 }
 0x59a   :  { %v17087_v50 = vadd.f32 %v4822_v13, %v16991_v49 }
 0x59d   :  { %v4734_v31 = vpop.f32.mrf.mxu2  ;;  %v4559_v45 = vpop.f32.mrf.mxu0 }
 0x59e   :  { %v4823_v41 = vpop.f32.mrf.mxu3  ;;  %v4735_v6 = vadd.f32 %v4734_v31, %v4646_v3  ;;  %v4648_v62 = vpop.f32.mrf.mxu1  ;;  %v15518_v3 = vld [vmem:[#allocation4 + $0x18c] sm:$0xf0] }
 0x59f   :  { %v4649_v32 = vadd.f32 %v4648_v62, %v4559_v45  ;;  %v13295_v10 = vor.u32 %v15518_v3, %v13294_v53  ;;  %v13307_v45 = vor.u32 %v15517_v55, %v13304_v4  ;;  %v13312_v53 = vld [vmem:[#allocation4 + $0x1b0] sm:$0xf0]  ;;  %v13318_v3 = vld [vmem:[#allocation4 + $0x1a8] sm:$0xf] }
 0x5a0   :  { %v4824_v46 = vadd.f32 %v4823_v41, %v4735_v6  ;;  %5547 = vmatmul.bf16.gmra.mxu0 %v13279_v5  ;;  %v13303_v6 = vor.u32 %v15519_v43, %v13302_v61  ;;  %v13320_v61 = vld [vmem:[#allocation4 + $0x1b8] sm:$0xf0] }
 0x5a1   :  { %5636 = vmatmul.bf16.gmra.mxu1 %v13283_v59 }
 0x5a2   :  { %v17090_v49 = vadd.f32 %v4824_v46, %v16994_v29  ;;  %5725 = vmatmul.bf16.gmra.mxu2 %v13287_v21  ;;  %v15516_v29 = vld [vmem:[#allocation4 + $0x184] sm:$0xf] }
 0x5a3   :  { %5814 = vmatmul.bf16.gmra.mxu3 %v13291_v51  ;;  %v13299_v31 = vor.u32 %v15516_v29, %v13296_v42  ;;  %v15670_v51 = vld [vmem:[#allocation7 + $0x6b0] sm:$0xff]  ;;  %v15523_v29 = vld [vmem:[#allocation4 + $0x1b4] sm:$0xf0]  ;;  %v15521_v42 = vld [vmem:[#allocation4 + $0x1ac] sm:$0xf] }
 0x5a4   :  { %6717 = vmatpush.bf16.msra.mxu2 %v15670_v51 }
 0x5a5   :  { %v4737_v47 = vpop.f32.mrf.mxu2  ;;  %v4561_v1 = vpop.f32.mrf.mxu0 }
 0x5a6   :  { %v4826_v12 = vpop.f32.mrf.mxu3  ;;  %v4738_v2 = vadd.f32 %v4737_v47, %v4649_v32  ;;  %v4650_v36 = vpop.f32.mrf.mxu1  ;;  %v15678_v32 = vld [vmem:[#allocation7 + $0x6f0] sm:$0xff] }
 0x5a7   :  { %v4651_v54 = vadd.f32 %v4650_v36, %v4561_v1  ;;  %6806 = vmatpush.bf16.msra.mxu3 %v15678_v32  ;;  %v13310_v36 = vld [vmem:[#allocation4 + $0x1a0] sm:$0xf] }
 0x5a8   :  { %v4827_v39 = vadd.f32 %v4826_v12, %v4738_v2 }
 0x5aa   :  { %v17093_v13 = vadd.f32 %v4827_v39, %v16997_v28 }
 0x5ad   :  { %v4739_v38 = vpop.f32.mrf.mxu2  ;;  %v4564_v5 = vpop.f32.mrf.mxu0 }
 0x5ae   :  { %v4828_v26 = vpop.f32.mrf.mxu3  ;;  %v4740_v41 = vadd.f32 %v4739_v38, %v4651_v54  ;;  %v4653_v59 = vpop.f32.mrf.mxu1  ;;  %v15522_v54 = vld [vmem:[#allocation4 + $0x1ac] sm:$0xf0] }
 0x5af   :  { %v4654_v62 = vadd.f32 %v4653_v59, %v4564_v5  ;;  %v13311_v4 = vor.u32 %v15522_v54, %v13310_v36  ;;  %v13323_v5 = vor.u32 %v15521_v42, %v13320_v61  ;;  %v13328_v36 = vld [vmem:[#allocation4 + $0x1d0] sm:$0xf0]  ;;  %v13334_v54 = vld [vmem:[#allocation4 + $0x1c8] sm:$0xf] }
 0x5b0   :  { %v4829_v21 = vadd.f32 %v4828_v26, %v4740_v41  ;;  %5552 = vmatmul.bf16.gmra.mxu0 %v13295_v10  ;;  %v13319_v41 = vor.u32 %v15523_v29, %v13318_v3  ;;  %v13336_v3 = vld [vmem:[#allocation4 + $0x1d8] sm:$0xf0] }
 0x5b1   :  { %5641 = vmatmul.bf16.gmra.mxu1 %v13299_v31 }
 0x5b2   :  { %v17096_v28 = vadd.f32 %v4829_v21, %v17000_v40  ;;  %5730 = vmatmul.bf16.gmra.mxu2 %v13303_v6  ;;  %v15520_v40 = vld [vmem:[#allocation4 + $0x1a4] sm:$0xf] }
 0x5b3   :  { %5819 = vmatmul.bf16.gmra.mxu3 %v13307_v45  ;;  %v13315_v38 = vor.u32 %v15520_v40, %v13312_v53  ;;  %v15650_v45 = vld [vmem:[#allocation7 + $0x610] sm:$0xff]  ;;  %v15527_v40 = vld [vmem:[#allocation4 + $0x1d4] sm:$0xf0]  ;;  %v15525_v53 = vld [vmem:[#allocation4 + $0x1cc] sm:$0xf] }
 0x5b4   :  { %6543 = vmatpush.bf16.msra.mxu0 %v15650_v45 }
 0x5b5   :  { %v4742_v46 = vpop.f32.mrf.mxu2  ;;  %v4566_v47 = vpop.f32.mrf.mxu0 }
 0x5b6   :  { %v4831_v0 = vpop.f32.mrf.mxu3  ;;  %v4743_v19 = vadd.f32 %v4742_v46, %v4654_v62  ;;  %v4655_v12 = vpop.f32.mrf.mxu1  ;;  %v15658_v62 = vld [vmem:[#allocation7 + $0x650] sm:$0xff] }
 0x5b7   :  { %v4656_v2 = vadd.f32 %v4655_v12, %v4566_v47  ;;  %6632 = vmatpush.bf16.msra.mxu1 %v15658_v62  ;;  %v13326_v12 = vld [vmem:[#allocation4 + $0x1c0] sm:$0xf] }
 0x5b8   :  { %v4832_v1 = vadd.f32 %v4831_v0, %v4743_v19 }
 0x5ba   :  { %v17099_v39 = vadd.f32 %v4832_v1, %v17003_v44 }
 0x5bd   :  { %v4744_v43 = vpop.f32.mrf.mxu2  ;;  %v5518_v10 = vpop.f32.mrf.mxu0 }
 0x5be   :  { %v4833_v55 = vpop.f32.mrf.mxu3  ;;  %v4745_v26 = vadd.f32 %v4744_v43, %v4656_v2  ;;  %v5607_v31 = vpop.f32.mrf.mxu1  ;;  %v15526_v2 = vld [vmem:[#allocation4 + $0x1cc] sm:$0xf0] }
 0x5bf   :  { %v5608_v59 = vadd.f32 %v5607_v31, %v5518_v10  ;;  %v13327_v61 = vor.u32 %v15526_v2, %v13326_v12  ;;  %v13339_v10 = vor.u32 %v15525_v53, %v13336_v3  ;;  %v13344_v12 = vld [vmem:[#allocation4 + $0x1f0] sm:$0xf0]  ;;  %v13350_v2 = vld [vmem:[#allocation4 + $0x1e8] sm:$0xf] }
 0x5c0   :  { %v4834_v6 = vadd.f32 %v4833_v55, %v4745_v26  ;;  %5557 = vmatmul.bf16.gmra.mxu0 %v13311_v4  ;;  %v13335_v26 = vor.u32 %v15527_v40, %v13334_v54  ;;  %v13352_v54 = vld [vmem:[#allocation4 + $0x1f8] sm:$0xf0] }
 0x5c1   :  { %5646 = vmatmul.bf16.gmra.mxu1 %v13315_v38 }
 0x5c2   :  { %v17102_v44 = vadd.f32 %v4834_v6, %v17006_v8  ;;  %5735 = vmatmul.bf16.gmra.mxu2 %v13319_v41  ;;  %v15524_v8 = vld [vmem:[#allocation4 + $0x1c4] sm:$0xf] }
 0x5c3   :  { %5824 = vmatmul.bf16.gmra.mxu3 %v13323_v5  ;;  %v13331_v43 = vor.u32 %v15524_v8, %v13328_v36  ;;  %v15669_v5 = vld [vmem:[#allocation7 + $0x6a8] sm:$0xff]  ;;  %v15531_v8 = vld [vmem:[#allocation4 + $0x1f4] sm:$0xf0] }
 0x5c4   :  { %6718 = vmatpush.bf16.msra.mxu2 %v15669_v5  ;;  %v15529_v36 = vld [vmem:[#allocation4 + $0x1ec] sm:$0xf] }
 0x5c5   :  { %v5696_v21 = vpop.f32.mrf.mxu2  ;;  %v5520_v46 = vpop.f32.mrf.mxu0 }
 0x5c6   :  { %v5785_v51 = vpop.f32.mrf.mxu3  ;;  %v5697_v32 = vadd.f32 %v5696_v21, %v5608_v59  ;;  %v5609_v0 = vpop.f32.mrf.mxu1  ;;  %v15677_v59 = vld [vmem:[#allocation7 + $0x6e8] sm:$0xff] }
 0x5c7   :  { %v5610_v19 = vadd.f32 %v5609_v0, %v5520_v46  ;;  %6807 = vmatpush.bf16.msra.mxu3 %v15677_v59  ;;  %v13342_v0 = vld [vmem:[#allocation4 + $0x1e0] sm:$0xf] }
 0x5c8   :  { %v5786_v47 = vadd.f32 %v5785_v51, %v5697_v32 }
 0x5ca   :  { %v17105_v1 = vadd.f32 %v5786_v47, %v17009_v57 }
 0x5cd   :  { %v5698_v29 = vpop.f32.mrf.mxu2  ;;  %v5523_v4 = vpop.f32.mrf.mxu0 }
 0x5ce   :  { %v5787_v42 = vpop.f32.mrf.mxu3  ;;  %v5699_v55 = vadd.f32 %v5698_v29, %v5610_v19  ;;  %v5612_v38 = vpop.f32.mrf.mxu1  ;;  %v15530_v19 = vld [vmem:[#allocation4 + $0x1ec] sm:$0xf0] }
 0x5cf   :  { %v5613_v31 = vadd.f32 %v5612_v38, %v5523_v4  ;;  %v13343_v3 = vor.u32 %v15530_v19, %v13342_v0  ;;  %v13355_v4 = vor.u32 %v15529_v36, %v13352_v54  ;;  %v13360_v0 = vld [vmem:[#allocation4 + $0x210] sm:$0xf0]  ;;  %v13366_v19 = vld [vmem:[#allocation4 + $0x208] sm:$0xf] }
 0x5d0   :  { %v5788_v41 = vadd.f32 %v5787_v42, %v5699_v55  ;;  %5562 = vmatmul.bf16.gmra.mxu0 %v13327_v61  ;;  %v13351_v55 = vor.u32 %v15531_v8, %v13350_v2  ;;  %v13368_v2 = vld [vmem:[#allocation4 + $0x218] sm:$0xf0] }
 0x5d1   :  { %5651 = vmatmul.bf16.gmra.mxu1 %v13331_v43 }
 0x5d2   :  { %v17108_v57 = vadd.f32 %v5788_v41, %v17012_v20  ;;  %5740 = vmatmul.bf16.gmra.mxu2 %v13335_v26  ;;  %v15528_v20 = vld [vmem:[#allocation4 + $0x1e4] sm:$0xf] }
 0x5d3   :  { %5829 = vmatmul.bf16.gmra.mxu3 %v13339_v10  ;;  %v13347_v29 = vor.u32 %v15528_v20, %v13344_v12  ;;  %v15649_v10 = vld [vmem:[#allocation7 + $0x608] sm:$0xff]  ;;  %v15535_v20 = vld [vmem:[#allocation4 + $0x214] sm:$0xf0] }
 0x5d4   :  { %6544 = vmatpush.bf16.msra.mxu0 %v15649_v10  ;;  %v15533_v12 = vld [vmem:[#allocation4 + $0x20c] sm:$0xf] }
 0x5d5   :  { %v5701_v6 = vpop.f32.mrf.mxu2  ;;  %v5525_v21 = vpop.f32.mrf.mxu0 }
 0x5d6   :  { %v5790_v45 = vpop.f32.mrf.mxu3  ;;  %v5702_v62 = vadd.f32 %v5701_v6, %v5613_v31  ;;  %v5614_v51 = vpop.f32.mrf.mxu1  ;;  %v15657_v31 = vld [vmem:[#allocation7 + $0x648] sm:$0xff] }
 0x5d7   :  { %v5615_v32 = vadd.f32 %v5614_v51, %v5525_v21  ;;  %6633 = vmatpush.bf16.msra.mxu1 %v15657_v31  ;;  %v13358_v51 = vld [vmem:[#allocation4 + $0x200] sm:$0xf] }
 0x5d8   :  { %v5791_v46 = vadd.f32 %v5790_v45, %v5702_v62 }
 0x5da   :  { %v17111_v47 = vadd.f32 %v5791_v46, %v17015_v60 }
 0x5dd   :  { %v5703_v40 = vpop.f32.mrf.mxu2  ;;  %v5528_v61 = vpop.f32.mrf.mxu0 }
 0x5de   :  { %v5792_v53 = vpop.f32.mrf.mxu3  ;;  %v5704_v42 = vadd.f32 %v5703_v40, %v5615_v32  ;;  %v5617_v43 = vpop.f32.mrf.mxu1  ;;  %v15534_v32 = vld [vmem:[#allocation4 + $0x20c] sm:$0xf0] }
 0x5df   :  { %v5618_v38 = vadd.f32 %v5617_v43, %v5528_v61  ;;  %v13359_v54 = vor.u32 %v15534_v32, %v13358_v51  ;;  %v13371_v61 = vor.u32 %v15533_v12, %v13368_v2  ;;  %v13376_v51 = vld [vmem:[#allocation4 + $0x230] sm:$0xf0]  ;;  %v13382_v32 = vld [vmem:[#allocation4 + $0x228] sm:$0xf] }
 0x5e0   :  { %v5793_v26 = vadd.f32 %v5792_v53, %v5704_v42  ;;  %5567 = vmatmul.bf16.gmra.mxu0 %v13343_v3  ;;  %v13367_v42 = vor.u32 %v15535_v20, %v13366_v19  ;;  %v13384_v19 = vld [vmem:[#allocation4 + $0x238] sm:$0xf0] }
 0x5e1   :  { %5656 = vmatmul.bf16.gmra.mxu1 %v13347_v29 }
 0x5e2   :  { %v17114_v60 = vadd.f32 %v5793_v26, %v17018_v22  ;;  %5745 = vmatmul.bf16.gmra.mxu2 %v13351_v55  ;;  %v15532_v22 = vld [vmem:[#allocation4 + $0x204] sm:$0xf] }
 0x5e3   :  { %5834 = vmatmul.bf16.gmra.mxu3 %v13355_v4  ;;  %v13363_v40 = vor.u32 %v15532_v22, %v13360_v0  ;;  %v15668_v4 = vld [vmem:[#allocation7 + $0x6a0] sm:$0xff]  ;;  %v15539_v22 = vld [vmem:[#allocation4 + $0x234] sm:$0xf0]  ;;  %v15537_v0 = vld [vmem:[#allocation4 + $0x22c] sm:$0xf] }
 0x5e4   :  { %6719 = vmatpush.bf16.msra.mxu2 %v15668_v4 }
 0x5e5   :  { %v5706_v41 = vpop.f32.mrf.mxu2  ;;  %v5530_v6 = vpop.f32.mrf.mxu0 }
 0x5e6   :  { %v5795_v5 = vpop.f32.mrf.mxu3  ;;  %v5707_v59 = vadd.f32 %v5706_v41, %v5618_v38  ;;  %v5619_v45 = vpop.f32.mrf.mxu1  ;;  %v15676_v38 = vld [vmem:[#allocation7 + $0x6e0] sm:$0xff] }
 0x5e7   :  { %v5620_v62 = vadd.f32 %v5619_v45, %v5530_v6  ;;  %6808 = vmatpush.bf16.msra.mxu3 %v15676_v38  ;;  %v13374_v45 = vld [vmem:[#allocation4 + $0x220] sm:$0xf] }
 0x5e8   :  { %v5796_v21 = vadd.f32 %v5795_v5, %v5707_v59 }
 0x5ea   :  { %v17117_v46 = vadd.f32 %v5796_v21, %v17021_v25 }
 0x5ed   :  { %v5708_v8 = vpop.f32.mrf.mxu2  ;;  %v5533_v3 = vpop.f32.mrf.mxu0 }
 0x5ee   :  { %v5797_v36 = vpop.f32.mrf.mxu3  ;;  %v5709_v53 = vadd.f32 %v5708_v8, %v5620_v62  ;;  %v5622_v29 = vpop.f32.mrf.mxu1  ;;  %v15538_v62 = vld [vmem:[#allocation4 + $0x22c] sm:$0xf0] }
 0x5ef   :  { %v5623_v43 = vadd.f32 %v5622_v29, %v5533_v3  ;;  %v13375_v2 = vor.u32 %v15538_v62, %v13374_v45  ;;  %v13387_v3 = vor.u32 %v15537_v0, %v13384_v19  ;;  %v13392_v45 = vld [vmem:[#allocation4 + $0x250] sm:$0xf0]  ;;  %v13398_v62 = vld [vmem:[#allocation4 + $0x248] sm:$0xf] }
 0x5f0   :  { %v5798_v55 = vadd.f32 %v5797_v36, %v5709_v53  ;;  %5572 = vmatmul.bf16.gmra.mxu0 %v13359_v54  ;;  %v13383_v53 = vor.u32 %v15539_v22, %v13382_v32  ;;  %v13400_v32 = vld [vmem:[#allocation4 + $0x258] sm:$0xf0] }
 0x5f1   :  { %5661 = vmatmul.bf16.gmra.mxu1 %v13363_v40 }
 0x5f2   :  { %v17120_v25 = vadd.f32 %v5798_v55, %v17024_v16  ;;  %5750 = vmatmul.bf16.gmra.mxu2 %v13367_v42  ;;  %v15536_v16 = vld [vmem:[#allocation4 + $0x224] sm:$0xf] }
 0x5f3   :  { %5839 = vmatmul.bf16.gmra.mxu3 %v13371_v61  ;;  %v13379_v8 = vor.u32 %v15536_v16, %v13376_v51  ;;  %v15648_v61 = vld [vmem:[#allocation7 + $0x600] sm:$0xff]  ;;  %v15543_v16 = vld [vmem:[#allocation4 + $0x254] sm:$0xf0]  ;;  %v15541_v51 = vld [vmem:[#allocation4 + $0x24c] sm:$0xf] }
 0x5f4   :  { %6545 = vmatpush.bf16.msra.mxu0 %v15648_v61 }
 0x5f5   :  { %v5711_v26 = vpop.f32.mrf.mxu2  ;;  %v5535_v41 = vpop.f32.mrf.mxu0 }
 0x5f6   :  { %v5800_v10 = vpop.f32.mrf.mxu3  ;;  %v5712_v31 = vadd.f32 %v5711_v26, %v5623_v43  ;;  %v5624_v5 = vpop.f32.mrf.mxu1  ;;  %v15656_v43 = vld [vmem:[#allocation7 + $0x640] sm:$0xff] }
 0x5f7   :  { %v5625_v59 = vadd.f32 %v5624_v5, %v5535_v41  ;;  %6634 = vmatpush.bf16.msra.mxu1 %v15656_v43  ;;  %v13390_v5 = vld [vmem:[#allocation4 + $0x240] sm:$0xf]  ;;  %v15666_v43 = vld [vmem:[#allocation7 + $0x690] sm:$0xff] }
 0x5f8   :  { %v5801_v6 = vadd.f32 %v5800_v10, %v5712_v31 }
 0x5fa   :  { %v17123_v21 = vadd.f32 %v5801_v6, %v17027_v9 }
 0x5fd   :  { %v5713_v20 = vpop.f32.mrf.mxu2  ;;  %v5538_v54 = vpop.f32.mrf.mxu0 }
 0x5fe   :  { %v5802_v12 = vpop.f32.mrf.mxu3  ;;  %v5714_v36 = vadd.f32 %v5713_v20, %v5625_v59  ;;  %v5627_v40 = vpop.f32.mrf.mxu1  ;;  %v15542_v59 = vld [vmem:[#allocation4 + $0x24c] sm:$0xf0] }
 0x5ff   :  { %v5628_v29 = vadd.f32 %v5627_v40, %v5538_v54  ;;  %v13391_v19 = vor.u32 %v15542_v59, %v13390_v5  ;;  %v13403_v54 = vor.u32 %v15541_v51, %v13400_v32  ;;  %v15546_v5 = vld [vmem:[#allocation4 + $0x26c] sm:$0xf0]  ;;  %v15665_v59 = vld [vmem:[#allocation7 + $0x688] sm:$0xff]  ;;  %v15547_v51 = vld [vmem:[#allocation4 + $0x274] sm:$0xf0] }
 0x600   :  { %v5803_v42 = vadd.f32 %v5802_v12, %v5714_v36  ;;  %5577 = vmatmul.bf16.gmra.mxu0 %v13375_v2  ;;  %v13399_v36 = vor.u32 %v15543_v16, %v13398_v62  ;;  %v13408_v62 = vld [vmem:[#allocation4 + $0x270] sm:$0xf0]  ;;  %v13414_v16 = vld [vmem:[#allocation4 + $0x268] sm:$0xf]  ;;  %v15545_v32 = vld [vmem:[#allocation4 + $0x26c] sm:$0xf] }
 0x601   :  { %5666 = vmatmul.bf16.gmra.mxu1 %v13379_v8 }
 0x602   :  { %v17126_v9 = vadd.f32 %v5803_v42, %v17030_v30  ;;  %5755 = vmatmul.bf16.gmra.mxu2 %v13383_v53  ;;  %v15540_v30 = vld [vmem:[#allocation4 + $0x244] sm:$0xf] }
 0x603   :  { %5844 = vmatmul.bf16.gmra.mxu3 %v13387_v3  ;;  %v13395_v20 = vor.u32 %v15540_v30, %v13392_v45  ;;  %v15675_v3 = vld [vmem:[#allocation7 + $0x6d8] sm:$0xff]  ;;  %v15544_v45 = vld [vmem:[#allocation4 + $0x264] sm:$0xf] }
 0x604   :  { %6809 = vmatpush.bf16.msra.mxu3 %v15675_v3 }
 0x605   :  { %v5716_v55 = vpop.f32.mrf.mxu2  ;;  %v5540_v26 = vpop.f32.mrf.mxu0 }
 0x606   :  { %v5805_v4 = vpop.f32.mrf.mxu3  ;;  %v5717_v38 = vadd.f32 %v5716_v55, %v5628_v29  ;;  %v5629_v10 = vpop.f32.mrf.mxu1  ;;  %v15674_v55 = vld [vmem:[#allocation7 + $0x6d0] sm:$0xff] }
 0x607   :  { %v5630_v31 = vadd.f32 %v5629_v10, %v5540_v26 }
 0x608   :  { %v5806_v41 = vadd.f32 %v5805_v4, %v5717_v38  ;;  %6810 = vmatpush.bf16.msra.mxu3 %v15674_v55 }
 0x60a   :  { %v17129_v6 = vadd.f32 %v5806_v41, %v17033_v17  ;;  %v15667_v17 = vld [vmem:[#allocation7 + $0x698] sm:$0xff]  ;;  %v13406_v41 = vld [vmem:[#allocation4 + $0x260] sm:$0xf] }
 0x60b   :  { %6720 = vmatpush.bf16.msra.mxu2 %v15667_v17 }
 0x60d   :  { %v5718_v22 = vpop.f32.mrf.mxu2  ;;  %v5543_v2 = vpop.f32.mrf.mxu0 }
 0x60e   :  { %v5807_v0 = vpop.f32.mrf.mxu3  ;;  %v5719_v12 = vadd.f32 %v5718_v22, %v5630_v31  ;;  %v5632_v8 = vpop.f32.mrf.mxu1  ;;  %v13416_v22 = vld [vmem:[#allocation4 + $0x278] sm:$0xf0] }
 0x60f   :  { %v5633_v40 = vadd.f32 %v5632_v8, %v5543_v2  ;;  %6721 = vmatpush.bf16.msra.mxu2 %v15666_v43  ;;  %v15664_v2 = vld [vmem:[#allocation7 + $0x680] sm:$0xff]  ;;  %v15759_v43 = vld [vmem:[#allocation7 + $0x778] sm:$0xff] }
 0x610   :  { %v5808_v53 = vadd.f32 %v5807_v0, %v5719_v12  ;;  %5582 = vmatmul.bf16.gmra.mxu0 %v13391_v19  ;;  %v13411_v12 = vor.u32 %v15544_v45, %v13408_v62  ;;  %v15672_v8 = vld [vmem:[#allocation7 + $0x6c0] sm:$0xff]  ;;  %7656 = vmatpush.bf16.msrb.mxu1 %v15759_v43  ;;  %v13424_v45 = vld [vmem:[#allocation4 + $0x290] sm:$0xf0]  ;;  %v13430_v62 = vld [vmem:[#allocation4 + $0x288] sm:$0xf] }
 0x611   :  { %5671 = vmatmul.bf16.gmra.mxu1 %v13395_v20  ;;  %v13407_v20 = vor.u32 %v15546_v5, %v13406_v41  ;;  %v13422_v5 = vld [vmem:[#allocation4 + $0x280] sm:$0xf] }
 0x612   :  { %v17132_v29 = vadd.f32 %v5808_v53, %v17036_v37  ;;  %5760 = vmatmul.bf16.gmra.mxu2 %v13399_v36  ;;  %v15673_v37 = vld [vmem:[#allocation7 + $0x6c8] sm:$0xff]  ;;  %v13415_v53 = vor.u32 %v15547_v51, %v13414_v16  ;;  %v15551_v16 = vld [vmem:[#allocation4 + $0x294] sm:$0xf0] }
 0x613   :  { %5849 = vmatmul.bf16.gmra.mxu3 %v13403_v54  ;;  %6722 = vmatpush.bf16.msra.mxu2 %v15665_v59  ;;  %v15550_v59 = vld [vmem:[#allocation4 + $0x28c] sm:$0xf0]  ;;  %v15549_v51 = vld [vmem:[#allocation4 + $0x28c] sm:$0xf] }
 0x614   :  { %6811 = vmatpush.bf16.msra.mxu3 %v15673_v37 }
 0x615   :  { %v5721_v42 = vpop.f32.mrf.mxu2  ;;  %v5545_v38 = vpop.f32.mrf.mxu0 }
 0x616   :  { %v5810_v61 = vpop.f32.mrf.mxu3  ;;  %v5722_v4 = vadd.f32 %v5721_v42, %v5633_v40  ;;  %v5634_v26 = vpop.f32.mrf.mxu1 }
 0x617   :  { %v5635_v10 = vadd.f32 %v5634_v26, %v5545_v38  ;;  %6723 = vmatpush.bf16.msra.mxu2 %v15664_v2 }
 0x618   :  { %v5811_v31 = vadd.f32 %v5810_v61, %v5722_v4  ;;  %6812 = vmatpush.bf16.msra.mxu3 %v15672_v8  ;;  %v15751_v61 = vld [vmem:[#allocation7 + $0x738] sm:$0xff] }
 0x619   :  { %7567 = vmatpush.bf16.msrb.mxu0 %v15751_v61 }
 0x61a   :  { %v17135_v30 = vadd.f32 %v5811_v31, %v17039_v18  ;;  %v13419_v18 = vor.u32 %v15545_v32, %v13416_v22  ;;  %v13432_v32 = vld [vmem:[#allocation4 + $0x298] sm:$0xf0] }
 0x61d   :  { %v5723_v0 = vpop.f32.mrf.mxu2  ;;  %v5548_v54 = vpop.f32.mrf.mxu0 }
 0x61e   :  { %v5812_v19 = vpop.f32.mrf.mxu3  ;;  %v5724_v36 = vadd.f32 %v5723_v0, %v5635_v10  ;;  %v5637_v40 = vpop.f32.mrf.mxu1 }
 0x61f   :  { %v5638_v17 = vadd.f32 %v5637_v40, %v5548_v54  ;;  %v13435_v54 = vor.u32 %v15549_v51, %v13432_v32 }
 0x620   :  { %v5813_v3 = vadd.f32 %v5812_v19, %v5724_v36  ;;  %5587 = vmatmul.bf16.gmra.mxu0 %v13407_v20  ;;  %v13423_v19 = vor.u32 %v15550_v59, %v13422_v5  ;;  %v13431_v36 = vor.u32 %v15551_v16, %v13430_v62  ;;  %v13574_v5 = vld [vmem:[#allocation4 + $0xc8] sm:$0xf]  ;;  %v15587_v59 = vld [vmem:[#allocation4 + $0xd4] sm:$0xf0] }
 0x621   :  { %5676 = vmatmul.bf16.gmra.mxu1 %v13411_v12 }
 0x622   :  { %v17138_v42 = vadd.f32 %v5813_v3, %v17042_v63  ;;  %5765 = vmatmul.bf16.gmra.mxu2 %v13415_v53  ;;  %v15548_v63 = vld [vmem:[#allocation4 + $0x284] sm:$0xf] }
 0x623   :  { %5854 = vmatmul.bf16.gmra.mxu3 %v13419_v18  ;;  %v13427_v20 = vor.u32 %v15548_v63, %v13424_v45  ;;  %v13576_v63 = vld [vmem:[#allocation4 + $0xd8] sm:$0xf0] }
 0x625   :  { %v5726_v55 = vpop.f32.mrf.mxu2  ;;  %v5550_v26 = vpop.f32.mrf.mxu0 }
 0x626   :  { %v5815_v4 = vpop.f32.mrf.mxu3  ;;  %v5727_v38 = vadd.f32 %v5726_v55, %v5638_v17  ;;  %v5639_v10 = vpop.f32.mrf.mxu1 }
 0x627   :  { %v5640_v31 = vadd.f32 %v5639_v10, %v5550_v26  ;;  %v15586_v26 = vld [vmem:[#allocation4 + $0xcc] sm:$0xf0] }
 0x628   :  { %v5816_v41 = vadd.f32 %v5815_v4, %v5727_v38  ;;  %v13566_v38 = vld [vmem:[#allocation4 + $0xc0] sm:$0xf] }
 0x629   :  { %v13567_v16 = vor.u32 %v15586_v26, %v13566_v38  ;;  %v13584_v38 = vld [vmem:[#allocation4 + $0xf0] sm:$0xf0]  ;;  %v13590_v26 = vld [vmem:[#allocation4 + $0xe8] sm:$0xf] }
 0x62a   :  { %v17141_v37 = vadd.f32 %v5816_v41, %v17045_v24  ;;  %v13568_v41 = vld [vmem:[#allocation4 + $0xd0] sm:$0xf0] }
 0x62d   :  { %v5728_v22 = vpop.f32.mrf.mxu2  ;;  %v5553_v2 = vpop.f32.mrf.mxu0 }
 0x62e   :  { %v5817_v0 = vpop.f32.mrf.mxu3  ;;  %v5729_v12 = vadd.f32 %v5728_v22, %v5640_v31  ;;  %v5642_v8 = vpop.f32.mrf.mxu1  ;;  %v15584_v31 = vld [vmem:[#allocation4 + $0xc4] sm:$0xf] }
 0x62f   :  { %v5643_v40 = vadd.f32 %v5642_v8, %v5553_v2  ;;  %v13571_v51 = vor.u32 %v15584_v31, %v13568_v41  ;;  %v15750_v8 = vld [vmem:[#allocation7 + $0x730] sm:$0xff]  ;;  %v15591_v31 = vld [vmem:[#allocation4 + $0xf4] sm:$0xf0]  ;;  %v15589_v41 = vld [vmem:[#allocation4 + $0xec] sm:$0xf] }
 0x630   :  { %v5818_v53 = vadd.f32 %v5817_v0, %v5729_v12  ;;  %5592 = vmatmul.bf16.gmra.mxu0 %v13423_v19  ;;  %v13575_v19 = vor.u32 %v15587_v59, %v13574_v5  ;;  %v13592_v5 = vld [vmem:[#allocation4 + $0xf8] sm:$0xf0] }
 0x631   :  { %5681 = vmatmul.bf16.gmra.mxu1 %v13427_v20  ;;  %7568 = vmatpush.bf16.msrb.mxu0 %v15750_v8 }
 0x632   :  { %v17144_v24 = vadd.f32 %v5818_v53, %v17048_v35  ;;  %5770 = vmatmul.bf16.gmra.mxu2 %v13431_v36  ;;  %v15585_v35 = vld [vmem:[#allocation4 + $0xcc] sm:$0xf]  ;;  %v15758_v36 = vld [vmem:[#allocation7 + $0x770] sm:$0xff] }
 0x633   :  { %5859 = vmatmul.bf16.gmra.mxu3 %v13435_v54  ;;  %v13579_v20 = vor.u32 %v15585_v35, %v13576_v63  ;;  %7657 = vmatpush.bf16.msrb.mxu1 %v15758_v36 }
 0x635   :  { %v5731_v18 = vpop.f32.mrf.mxu2  ;;  %v5555_v61 = vpop.f32.mrf.mxu0 }
 0x636   :  { %v5820_v17 = vpop.f32.mrf.mxu3  ;;  %v5732_v3 = vadd.f32 %v5731_v18, %v5643_v40  ;;  %v5644_v43 = vpop.f32.mrf.mxu1 }
 0x637   :  { %v5645_v55 = vadd.f32 %v5644_v43, %v5555_v61  ;;  %v13582_v43 = vld [vmem:[#allocation4 + $0xe0] sm:$0xf] }
 0x638   :  { %v5821_v4 = vadd.f32 %v5820_v17, %v5732_v3 }
 0x63a   :  { %v17147_v10 = vadd.f32 %v5821_v4, %v17051_v33 }
 0x63d   :  { %v5733_v45 = vpop.f32.mrf.mxu2  ;;  %v5558_v22 = vpop.f32.mrf.mxu0 }
 0x63e   :  { %v5822_v62 = vpop.f32.mrf.mxu3  ;;  %v5734_v32 = vadd.f32 %v5733_v45, %v5645_v55  ;;  %v5647_v0 = vpop.f32.mrf.mxu1  ;;  %v15590_v55 = vld [vmem:[#allocation4 + $0xec] sm:$0xf0] }
 0x63f   :  { %v5648_v12 = vadd.f32 %v5647_v0, %v5558_v22  ;;  %v13583_v63 = vor.u32 %v15590_v55, %v13582_v43  ;;  %v13595_v22 = vor.u32 %v15589_v41, %v13592_v5  ;;  %v13606_v43 = vld [vmem:[#allocation4 + $0x108] sm:$0xf]  ;;  %v15595_v55 = vld [vmem:[#allocation4 + $0x114] sm:$0xf0] }
 0x640   :  { %v5823_v2 = vadd.f32 %v5822_v62, %v5734_v32  ;;  %6546 = vmatmul.bf16.vlgmr.msra.gmra.mxu0 %v13567_v16  ;;  %v13591_v32 = vor.u32 %v15591_v31, %v13590_v26 }
 0x641   :  { %6635 = vmatmul.bf16.vlgmr.msra.gmra.mxu1 %v13571_v51 }
 0x642   :  { %v17150_v33 = vadd.f32 %v5823_v2, %v17054_v7  ;;  %6724 = vmatmul.bf16.vlgmr.msra.gmra.mxu2 %v13575_v19  ;;  %v15588_v7 = vld [vmem:[#allocation4 + $0xe4] sm:$0xf] }
 0x643   :  { %6813 = vmatmul.bf16.vlgmr.msra.gmra.mxu3 %v13579_v20  ;;  %v13587_v45 = vor.u32 %v15588_v7, %v13584_v38  ;;  %v13608_v7 = vld [vmem:[#allocation4 + $0x118] sm:$0xf0] }
 0x645   :  { %v5736_v54 = vpop.f32.mrf.mxu2  ;;  %v5560_v18 = vpop.f32.mrf.mxu0 }
 0x646   :  { %v5825_v40 = vpop.f32.mrf.mxu3  ;;  %v5737_v53 = vadd.f32 %v5736_v54, %v5648_v12  ;;  %v5649_v17 = vpop.f32.mrf.mxu1 }
 0x647   :  { %v5650_v3 = vadd.f32 %v5649_v17, %v5560_v18  ;;  %v15594_v18 = vld [vmem:[#allocation4 + $0x10c] sm:$0xf0] }
 0x648   :  { %v5826_v61 = vadd.f32 %v5825_v40, %v5737_v53  ;;  %v13598_v53 = vld [vmem:[#allocation4 + $0x100] sm:$0xf] }
 0x649   :  { %v13599_v31 = vor.u32 %v15594_v18, %v13598_v53  ;;  %v13616_v53 = vld [vmem:[#allocation4 + $0x130] sm:$0xf0]  ;;  %v13622_v18 = vld [vmem:[#allocation4 + $0x128] sm:$0xf] }
 0x64a   :  { %v17153_v4 = vadd.f32 %v5826_v61, %v17057_v56  ;;  %v13600_v61 = vld [vmem:[#allocation4 + $0x110] sm:$0xf0] }
 0x64d   :  { %v5738_v59 = vpop.f32.mrf.mxu2  ;;  %v5563_v16 = vpop.f32.mrf.mxu0 }
 0x64e   :  { %v5827_v35 = vpop.f32.mrf.mxu3  ;;  %v5739_v62 = vadd.f32 %v5738_v59, %v5650_v3  ;;  %v5652_v51 = vpop.f32.mrf.mxu1  ;;  %v15592_v3 = vld [vmem:[#allocation4 + $0x104] sm:$0xf] }
 0x64f   :  { %v5653_v0 = vadd.f32 %v5652_v51, %v5563_v16  ;;  %v13603_v41 = vor.u32 %v15592_v3, %v13600_v61  ;;  %v15749_v51 = vld [vmem:[#allocation7 + $0x728] sm:$0xff]  ;;  %v15599_v3 = vld [vmem:[#allocation4 + $0x134] sm:$0xf0] }
 0x650   :  { %v5828_v19 = vadd.f32 %v5827_v35, %v5739_v62  ;;  %6551 = vmatmul.bf16.gmra.mxu0 %v13583_v63  ;;  %v13607_v63 = vor.u32 %v15595_v55, %v13606_v43  ;;  %v15597_v61 = vld [vmem:[#allocation4 + $0x12c] sm:$0xf]  ;;  %v13624_v43 = vld [vmem:[#allocation4 + $0x138] sm:$0xf0] }
 0x651   :  { %6640 = vmatmul.bf16.gmra.mxu1 %v13587_v45  ;;  %7569 = vmatpush.bf16.msrb.mxu0 %v15749_v51 }
 0x652   :  { %v17156_v56 = vadd.f32 %v5828_v19, %v17060_v58  ;;  %6729 = vmatmul.bf16.gmra.mxu2 %v13591_v32  ;;  %v15593_v58 = vld [vmem:[#allocation4 + $0x10c] sm:$0xf] }
 0x653   :  { %6818 = vmatmul.bf16.gmra.mxu3 %v13595_v22  ;;  %v13611_v45 = vor.u32 %v15593_v58, %v13608_v7  ;;  %v15757_v32 = vld [vmem:[#allocation7 + $0x768] sm:$0xff] }
 0x654   :  { %7658 = vmatpush.bf16.msrb.mxu1 %v15757_v32 }
 0x655   :  { %v5741_v20 = vpop.f32.mrf.mxu2  ;;  %v5565_v8 = vpop.f32.mrf.mxu0 }
 0x656   :  { %v5830_v12 = vpop.f32.mrf.mxu3  ;;  %v5742_v2 = vadd.f32 %v5741_v20, %v5653_v0  ;;  %v5654_v36 = vpop.f32.mrf.mxu1 }
 0x657   :  { %v5655_v54 = vadd.f32 %v5654_v36, %v5565_v8  ;;  %v13614_v36 = vld [vmem:[#allocation4 + $0x120] sm:$0xf] }
 0x658   :  { %v5831_v40 = vadd.f32 %v5830_v12, %v5742_v2 }
 0x65a   :  { %v17159_v17 = vadd.f32 %v5831_v40, %v17063_v14 }
 0x65d   :  { %v5743_v38 = vpop.f32.mrf.mxu2  ;;  %v5568_v59 = vpop.f32.mrf.mxu0 }
 0x65e   :  { %v5832_v26 = vpop.f32.mrf.mxu3  ;;  %v5744_v5 = vadd.f32 %v5743_v38, %v5655_v54  ;;  %v5657_v35 = vpop.f32.mrf.mxu1  ;;  %v15598_v54 = vld [vmem:[#allocation4 + $0x12c] sm:$0xf0] }
 0x65f   :  { %v5658_v62 = vadd.f32 %v5657_v35, %v5568_v59  ;;  %v13615_v7 = vor.u32 %v15598_v54, %v13614_v36  ;;  %v13627_v59 = vor.u32 %v15597_v61, %v13624_v43  ;;  %v13638_v36 = vld [vmem:[#allocation4 + $0x148] sm:$0xf]  ;;  %v15603_v54 = vld [vmem:[#allocation4 + $0x154] sm:$0xf0] }
 0x660   :  { %v5833_v16 = vadd.f32 %v5832_v26, %v5744_v5  ;;  %6556 = vmatmul.bf16.gmra.mxu0 %v13599_v31  ;;  %v13623_v5 = vor.u32 %v15599_v3, %v13622_v18 }
 0x661   :  { %6645 = vmatmul.bf16.gmra.mxu1 %v13603_v41 }
 0x662   :  { %v17162_v14 = vadd.f32 %v5833_v16, %v17066_v48  ;;  %6734 = vmatmul.bf16.gmra.mxu2 %v13607_v63  ;;  %v15596_v48 = vld [vmem:[#allocation4 + $0x124] sm:$0xf] }
 0x663   :  { %6823 = vmatmul.bf16.gmra.mxu3 %v13611_v45  ;;  %v13619_v38 = vor.u32 %v15596_v48, %v13616_v53  ;;  %v13640_v48 = vld [vmem:[#allocation4 + $0x158] sm:$0xf0] }
 0x665   :  { %v5746_v22 = vpop.f32.mrf.mxu2  ;;  %v5570_v20 = vpop.f32.mrf.mxu0 }
 0x666   :  { %v5835_v0 = vpop.f32.mrf.mxu3  ;;  %v5747_v19 = vadd.f32 %v5746_v22, %v5658_v62  ;;  %v5659_v12 = vpop.f32.mrf.mxu1 }
 0x667   :  { %v5660_v2 = vadd.f32 %v5659_v12, %v5570_v20  ;;  %v15602_v20 = vld [vmem:[#allocation4 + $0x14c] sm:$0xf0] }
 0x668   :  { %v5836_v8 = vadd.f32 %v5835_v0, %v5747_v19  ;;  %v13630_v19 = vld [vmem:[#allocation4 + $0x140] sm:$0xf] }
 0x669   :  { %v13631_v3 = vor.u32 %v15602_v20, %v13630_v19  ;;  %v13648_v19 = vld [vmem:[#allocation4 + $0x170] sm:$0xf0]  ;;  %v13654_v20 = vld [vmem:[#allocation4 + $0x168] sm:$0xf] }
 0x66a   :  { %v17165_v40 = vadd.f32 %v5836_v8, %v17069_v23  ;;  %v13632_v8 = vld [vmem:[#allocation4 + $0x150] sm:$0xf0] }
 0x66d   :  { %v5748_v55 = vpop.f32.mrf.mxu2  ;;  %v5573_v31 = vpop.f32.mrf.mxu0 }
 0x66e   :  { %v5837_v58 = vpop.f32.mrf.mxu3  ;;  %v5749_v26 = vadd.f32 %v5748_v55, %v5660_v2  ;;  %v5662_v41 = vpop.f32.mrf.mxu1  ;;  %v15600_v2 = vld [vmem:[#allocation4 + $0x144] sm:$0xf] }
 0x66f   :  { %v5663_v35 = vadd.f32 %v5662_v41, %v5573_v31  ;;  %v13635_v61 = vor.u32 %v15600_v2, %v13632_v8  ;;  %v15748_v41 = vld [vmem:[#allocation7 + $0x720] sm:$0xff]  ;;  %v15607_v2 = vld [vmem:[#allocation4 + $0x174] sm:$0xf0]  ;;  %v15605_v8 = vld [vmem:[#allocation4 + $0x16c] sm:$0xf] }
 0x670   :  { %v5838_v63 = vadd.f32 %v5837_v58, %v5749_v26  ;;  %6561 = vmatmul.bf16.gmra.mxu0 %v13615_v7  ;;  %v13639_v7 = vor.u32 %v15603_v54, %v13638_v36  ;;  %v13656_v36 = vld [vmem:[#allocation4 + $0x178] sm:$0xf0] }
 0x671   :  { %6650 = vmatmul.bf16.gmra.mxu1 %v13619_v38  ;;  %7570 = vmatpush.bf16.msrb.mxu0 %v15748_v41 }
 0x672   :  { %v17168_v23 = vadd.f32 %v5838_v63, %v17072_v11  ;;  %6739 = vmatmul.bf16.gmra.mxu2 %v13623_v5  ;;  %v15601_v11 = vld [vmem:[#allocation4 + $0x14c] sm:$0xf]  ;;  %v15756_v5 = vld [vmem:[#allocation7 + $0x760] sm:$0xff] }
 0x673   :  { %6828 = vmatmul.bf16.gmra.mxu3 %v13627_v59  ;;  %v13643_v38 = vor.u32 %v15601_v11, %v13640_v48  ;;  %7659 = vmatpush.bf16.msrb.mxu1 %v15756_v5 }
 0x675   :  { %v5751_v45 = vpop.f32.mrf.mxu2  ;;  %v5575_v51 = vpop.f32.mrf.mxu0 }
 0x676   :  { %v5840_v62 = vpop.f32.mrf.mxu3  ;;  %v5752_v16 = vadd.f32 %v5751_v45, %v5663_v35  ;;  %v5664_v32 = vpop.f32.mrf.mxu1 }
 0x677   :  { %v5665_v22 = vadd.f32 %v5664_v32, %v5575_v51  ;;  %v13646_v32 = vld [vmem:[#allocation4 + $0x160] sm:$0xf] }
 0x678   :  { %v5841_v0 = vadd.f32 %v5840_v62, %v5752_v16 }
 0x67a   :  { %v17171_v12 = vadd.f32 %v5841_v0, %v17075_v27 }
 0x67d   :  { %v5753_v53 = vpop.f32.mrf.mxu2  ;;  %v5578_v55 = vpop.f32.mrf.mxu0 }
 0x67e   :  { %v5842_v18 = vpop.f32.mrf.mxu3  ;;  %v5754_v43 = vadd.f32 %v5753_v53, %v5665_v22  ;;  %v5667_v58 = vpop.f32.mrf.mxu1  ;;  %v15606_v22 = vld [vmem:[#allocation4 + $0x16c] sm:$0xf0] }
 0x67f   :  { %v5668_v26 = vadd.f32 %v5667_v58, %v5578_v55  ;;  %v13647_v48 = vor.u32 %v15606_v22, %v13646_v32  ;;  %v13659_v55 = vor.u32 %v15605_v8, %v13656_v36  ;;  %v13664_v32 = vld [vmem:[#allocation4 + $0x190] sm:$0xf0]  ;;  %v13670_v22 = vld [vmem:[#allocation4 + $0x188] sm:$0xf] }
 0x680   :  { %v5843_v31 = vadd.f32 %v5842_v18, %v5754_v43  ;;  %6566 = vmatmul.bf16.gmra.mxu0 %v13631_v3  ;;  %v13655_v43 = vor.u32 %v15607_v2, %v13654_v20  ;;  %v13672_v20 = vld [vmem:[#allocation4 + $0x198] sm:$0xf0] }
 0x681   :  { %6655 = vmatmul.bf16.gmra.mxu1 %v13635_v61 }
 0x682   :  { %v17174_v27 = vadd.f32 %v5843_v31, %v17078_v15  ;;  %6744 = vmatmul.bf16.gmra.mxu2 %v13639_v7  ;;  %v15604_v15 = vld [vmem:[#allocation4 + $0x164] sm:$0xf] }
 0x683   :  { %6833 = vmatmul.bf16.gmra.mxu3 %v13643_v38  ;;  %v13651_v53 = vor.u32 %v15604_v15, %v13648_v19  ;;  %v15767_v38 = vld [vmem:[#allocation7 + $0x7b8] sm:$0xff]  ;;  %v15609_v19 = vld [vmem:[#allocation4 + $0x18c] sm:$0xf] }
 0x684   :  { %7745 = vmatpush.bf16.msrb.mxu2 %v15767_v38  ;;  %v15611_v15 = vld [vmem:[#allocation4 + $0x194] sm:$0xf0] }
 0x685   :  { %v5756_v59 = vpop.f32.mrf.mxu2  ;;  %v5580_v45 = vpop.f32.mrf.mxu0 }
 0x686   :  { %v5845_v35 = vpop.f32.mrf.mxu3  ;;  %v5757_v63 = vadd.f32 %v5756_v59, %v5668_v26  ;;  %v5669_v62 = vpop.f32.mrf.mxu1  ;;  %v15775_v26 = vld [vmem:[#allocation7 + $0x7f8] sm:$0xff] }
 0x687   :  { %v5670_v16 = vadd.f32 %v5669_v62, %v5580_v45  ;;  %7834 = vmatpush.bf16.msrb.mxu3 %v15775_v26  ;;  %v13662_v62 = vld [vmem:[#allocation4 + $0x180] sm:$0xf] }
 0x688   :  { %v5846_v51 = vadd.f32 %v5845_v35, %v5757_v63 }
 0x68a   :  { %v17177_v0 = vadd.f32 %v5846_v51, %v17081_v34 }
 0x68d   :  { %v5758_v54 = vpop.f32.mrf.mxu2  ;;  %v5583_v3 = vpop.f32.mrf.mxu0 }
 0x68e   :  { %v5847_v11 = vpop.f32.mrf.mxu3  ;;  %v5759_v18 = vadd.f32 %v5758_v54, %v5670_v16  ;;  %v5672_v61 = vpop.f32.mrf.mxu1  ;;  %v15610_v16 = vld [vmem:[#allocation4 + $0x18c] sm:$0xf0] }
 0x68f   :  { %v5673_v58 = vadd.f32 %v5672_v61, %v5583_v3  ;;  %v13663_v36 = vor.u32 %v15610_v16, %v13662_v62  ;;  %v13675_v3 = vor.u32 %v15609_v19, %v13672_v20  ;;  %v13680_v62 = vld [vmem:[#allocation4 + $0x1b0] sm:$0xf0]  ;;  %v13686_v16 = vld [vmem:[#allocation4 + $0x1a8] sm:$0xf] }
 0x690   :  { %v5848_v7 = vadd.f32 %v5847_v11, %v5759_v18  ;;  %6571 = vmatmul.bf16.gmra.mxu0 %v13647_v48  ;;  %v13671_v18 = vor.u32 %v15611_v15, %v13670_v22  ;;  %v13688_v22 = vld [vmem:[#allocation4 + $0x1b8] sm:$0xf0] }
 0x691   :  { %6660 = vmatmul.bf16.gmra.mxu1 %v13651_v53 }
 0x692   :  { %v17180_v34 = vadd.f32 %v5848_v7, %v17084_v52  ;;  %6749 = vmatmul.bf16.gmra.mxu2 %v13655_v43  ;;  %v15608_v52 = vld [vmem:[#allocation4 + $0x184] sm:$0xf] }
 0x693   :  { %6838 = vmatmul.bf16.gmra.mxu3 %v13659_v55  ;;  %v13667_v54 = vor.u32 %v15608_v52, %v13664_v32  ;;  %v15747_v55 = vld [vmem:[#allocation7 + $0x718] sm:$0xff]  ;;  %v15613_v32 = vld [vmem:[#allocation4 + $0x1ac] sm:$0xf] }
 0x694   :  { %7571 = vmatpush.bf16.msrb.mxu0 %v15747_v55  ;;  %v15615_v52 = vld [vmem:[#allocation4 + $0x1b4] sm:$0xf0] }
 0x695   :  { %v5761_v31 = vpop.f32.mrf.mxu2  ;;  %v5585_v59 = vpop.f32.mrf.mxu0 }
 0x696   :  { %v5850_v41 = vpop.f32.mrf.mxu3  ;;  %v5762_v5 = vadd.f32 %v5761_v31, %v5673_v58  ;;  %v5674_v35 = vpop.f32.mrf.mxu1  ;;  %v15755_v58 = vld [vmem:[#allocation7 + $0x758] sm:$0xff] }
 0x697   :  { %v5675_v63 = vadd.f32 %v5674_v35, %v5585_v59  ;;  %7660 = vmatpush.bf16.msrb.mxu1 %v15755_v58  ;;  %v13678_v35 = vld [vmem:[#allocation4 + $0x1a0] sm:$0xf] }
 0x698   :  { %v5851_v45 = vadd.f32 %v5850_v41, %v5762_v5 }
 0x69a   :  { %v17183_v51 = vadd.f32 %v5851_v45, %v17087_v50 }
 0x69d   :  { %v5763_v2 = vpop.f32.mrf.mxu2  ;;  %v5588_v48 = vpop.f32.mrf.mxu0 }
 0x69e   :  { %v5852_v8 = vpop.f32.mrf.mxu3  ;;  %v5764_v11 = vadd.f32 %v5763_v2, %v5675_v63  ;;  %v5677_v53 = vpop.f32.mrf.mxu1  ;;  %v15614_v63 = vld [vmem:[#allocation4 + $0x1ac] sm:$0xf0] }
 0x69f   :  { %v5678_v61 = vadd.f32 %v5677_v53, %v5588_v48  ;;  %v13679_v20 = vor.u32 %v15614_v63, %v13678_v35  ;;  %v13691_v48 = vor.u32 %v15613_v32, %v13688_v22  ;;  %v13696_v35 = vld [vmem:[#allocation4 + $0x1d0] sm:$0xf0]  ;;  %v13702_v63 = vld [vmem:[#allocation4 + $0x1c8] sm:$0xf] }
 0x6a0   :  { %v5853_v43 = vadd.f32 %v5852_v8, %v5764_v11  ;;  %6576 = vmatmul.bf16.gmra.mxu0 %v13663_v36  ;;  %v13687_v11 = vor.u32 %v15615_v52, %v13686_v16  ;;  %v13704_v16 = vld [vmem:[#allocation4 + $0x1d8] sm:$0xf0] }
 0x6a1   :  { %6665 = vmatmul.bf16.gmra.mxu1 %v13667_v54 }
 0x6a2   :  { %v17186_v50 = vadd.f32 %v5853_v43, %v17090_v49  ;;  %6754 = vmatmul.bf16.gmra.mxu2 %v13671_v18  ;;  %v15612_v49 = vld [vmem:[#allocation4 + $0x1a4] sm:$0xf] }
 0x6a3   :  { %6843 = vmatmul.bf16.gmra.mxu3 %v13675_v3  ;;  %v13683_v2 = vor.u32 %v15612_v49, %v13680_v62  ;;  %v15766_v3 = vld [vmem:[#allocation7 + $0x7b0] sm:$0xff]  ;;  %v15619_v49 = vld [vmem:[#allocation4 + $0x1d4] sm:$0xf0]  ;;  %v15617_v62 = vld [vmem:[#allocation4 + $0x1cc] sm:$0xf] }
 0x6a4   :  { %7746 = vmatpush.bf16.msrb.mxu2 %v15766_v3 }
 0x6a5   :  { %v5766_v7 = vpop.f32.mrf.mxu2  ;;  %v5590_v31 = vpop.f32.mrf.mxu0 }
 0x6a6   :  { %v5855_v38 = vpop.f32.mrf.mxu3  ;;  %v5767_v26 = vadd.f32 %v5766_v7, %v5678_v61  ;;  %v5679_v41 = vpop.f32.mrf.mxu1  ;;  %v15774_v61 = vld [vmem:[#allocation7 + $0x7f0] sm:$0xff] }
 0x6a7   :  { %v5680_v5 = vadd.f32 %v5679_v41, %v5590_v31  ;;  %7835 = vmatpush.bf16.msrb.mxu3 %v15774_v61  ;;  %v13694_v41 = vld [vmem:[#allocation4 + $0x1c0] sm:$0xf] }
 0x6a8   :  { %v5856_v59 = vadd.f32 %v5855_v38, %v5767_v26 }
 0x6aa   :  { %v17189_v45 = vadd.f32 %v5856_v59, %v17093_v13 }
 0x6ad   :  { %v5768_v15 = vpop.f32.mrf.mxu2  ;;  %v5593_v36 = vpop.f32.mrf.mxu0 }
 0x6ae   :  { %v5857_v19 = vpop.f32.mrf.mxu3  ;;  %v5769_v8 = vadd.f32 %v5768_v15, %v5680_v5  ;;  %v5682_v54 = vpop.f32.mrf.mxu1  ;;  %v15618_v5 = vld [vmem:[#allocation4 + $0x1cc] sm:$0xf0] }
 0x6af   :  { %v5683_v53 = vadd.f32 %v5682_v54, %v5593_v36  ;;  %v13695_v22 = vor.u32 %v15618_v5, %v13694_v41  ;;  %v13707_v36 = vor.u32 %v15617_v62, %v13704_v16  ;;  %v13712_v41 = vld [vmem:[#allocation4 + $0x1f0] sm:$0xf0]  ;;  %v13718_v5 = vld [vmem:[#allocation4 + $0x1e8] sm:$0xf] }
 0x6b0   :  { %v5858_v18 = vadd.f32 %v5857_v19, %v5769_v8  ;;  %6581 = vmatmul.bf16.gmra.mxu0 %v13679_v20  ;;  %v13703_v8 = vor.u32 %v15619_v49, %v13702_v63  ;;  %v13720_v63 = vld [vmem:[#allocation4 + $0x1f8] sm:$0xf0] }
 0x6b1   :  { %6670 = vmatmul.bf16.gmra.mxu1 %v13683_v2 }
 0x6b2   :  { %v17192_v13 = vadd.f32 %v5858_v18, %v17096_v28  ;;  %6759 = vmatmul.bf16.gmra.mxu2 %v13687_v11  ;;  %v15616_v28 = vld [vmem:[#allocation4 + $0x1c4] sm:$0xf] }
 0x6b3   :  { %6848 = vmatmul.bf16.gmra.mxu3 %v13691_v48  ;;  %v13699_v15 = vor.u32 %v15616_v28, %v13696_v35  ;;  %v15746_v48 = vld [vmem:[#allocation7 + $0x710] sm:$0xff]  ;;  %v15623_v28 = vld [vmem:[#allocation4 + $0x1f4] sm:$0xf0]  ;;  %v15621_v35 = vld [vmem:[#allocation4 + $0x1ec] sm:$0xf] }
 0x6b4   :  { %7572 = vmatpush.bf16.msrb.mxu0 %v15746_v48 }
 0x6b5   :  { %v5771_v43 = vpop.f32.mrf.mxu2  ;;  %v5595_v7 = vpop.f32.mrf.mxu0 }
 0x6b6   :  { %v5860_v55 = vpop.f32.mrf.mxu3  ;;  %v5772_v58 = vadd.f32 %v5771_v43, %v5683_v53  ;;  %v5684_v38 = vpop.f32.mrf.mxu1  ;;  %v15754_v53 = vld [vmem:[#allocation7 + $0x750] sm:$0xff] }
 0x6b7   :  { %v5685_v26 = vadd.f32 %v5684_v38, %v5595_v7  ;;  %7661 = vmatpush.bf16.msrb.mxu1 %v15754_v53  ;;  %v13710_v38 = vld [vmem:[#allocation4 + $0x1e0] sm:$0xf] }
 0x6b8   :  { %v5861_v31 = vadd.f32 %v5860_v55, %v5772_v58 }
 0x6ba   :  { %v17195_v59 = vadd.f32 %v5861_v31, %v17099_v39 }
 0x6bd   :  { %v5773_v52 = vpop.f32.mrf.mxu2  ;;  %v6547_v20 = vpop.f32.mrf.mxu0 }
 0x6be   :  { %v5862_v32 = vpop.f32.mrf.mxu3  ;;  %v5774_v19 = vadd.f32 %v5773_v52, %v5685_v26  ;;  %v6636_v2 = vpop.f32.mrf.mxu1  ;;  %v15622_v26 = vld [vmem:[#allocation4 + $0x1ec] sm:$0xf0] }
 0x6bf   :  { %v6637_v54 = vadd.f32 %v6636_v2, %v6547_v20  ;;  %v13711_v16 = vor.u32 %v15622_v26, %v13710_v38  ;;  %v13723_v20 = vor.u32 %v15621_v35, %v13720_v63  ;;  %v13728_v38 = vld [vmem:[#allocation4 + $0x210] sm:$0xf0]  ;;  %v13734_v26 = vld [vmem:[#allocation4 + $0x208] sm:$0xf] }
 0x6c0   :  { %v5863_v11 = vadd.f32 %v5862_v32, %v5774_v19  ;;  %6586 = vmatmul.bf16.gmra.mxu0 %v13695_v22  ;;  %v13719_v19 = vor.u32 %v15623_v28, %v13718_v5  ;;  %v13736_v5 = vld [vmem:[#allocation4 + $0x218] sm:$0xf0] }
 0x6c1   :  { %6675 = vmatmul.bf16.gmra.mxu1 %v13699_v15 }
 0x6c2   :  { %v17198_v39 = vadd.f32 %v5863_v11, %v17102_v44  ;;  %6764 = vmatmul.bf16.gmra.mxu2 %v13703_v8  ;;  %v15620_v44 = vld [vmem:[#allocation4 + $0x1e4] sm:$0xf] }
 0x6c3   :  { %6853 = vmatmul.bf16.gmra.mxu3 %v13707_v36  ;;  %v13715_v52 = vor.u32 %v15620_v44, %v13712_v41  ;;  %v15765_v36 = vld [vmem:[#allocation7 + $0x7a8] sm:$0xff]  ;;  %v15627_v44 = vld [vmem:[#allocation4 + $0x214] sm:$0xf0] }
 0x6c4   :  { %7747 = vmatpush.bf16.msrb.mxu2 %v15765_v36  ;;  %v15625_v41 = vld [vmem:[#allocation4 + $0x20c] sm:$0xf] }
 0x6c5   :  { %v6725_v18 = vpop.f32.mrf.mxu2  ;;  %v6549_v43 = vpop.f32.mrf.mxu0 }
 0x6c6   :  { %v6814_v3 = vpop.f32.mrf.mxu3  ;;  %v6726_v61 = vadd.f32 %v6725_v18, %v6637_v54  ;;  %v6638_v55 = vpop.f32.mrf.mxu1  ;;  %v15773_v54 = vld [vmem:[#allocation7 + $0x7e8] sm:$0xff] }
 0x6c7   :  { %v6639_v58 = vadd.f32 %v6638_v55, %v6549_v43  ;;  %7836 = vmatpush.bf16.msrb.mxu3 %v15773_v54  ;;  %v13726_v55 = vld [vmem:[#allocation4 + $0x200] sm:$0xf] }
 0x6c8   :  { %v6815_v7 = vadd.f32 %v6814_v3, %v6726_v61 }
 0x6ca   :  { %v17201_v31 = vadd.f32 %v6815_v7, %v17105_v1 }
 0x6cd   :  { %v6727_v49 = vpop.f32.mrf.mxu2  ;;  %v6552_v22 = vpop.f32.mrf.mxu0 }
 0x6ce   :  { %v6816_v62 = vpop.f32.mrf.mxu3  ;;  %v6728_v32 = vadd.f32 %v6727_v49, %v6639_v58  ;;  %v6641_v15 = vpop.f32.mrf.mxu1  ;;  %v15626_v58 = vld [vmem:[#allocation4 + $0x20c] sm:$0xf0] }
 0x6cf   :  { %v6642_v2 = vadd.f32 %v6641_v15, %v6552_v22  ;;  %v13727_v63 = vor.u32 %v15626_v58, %v13726_v55  ;;  %v13739_v22 = vor.u32 %v15625_v41, %v13736_v5  ;;  %v13744_v55 = vld [vmem:[#allocation4 + $0x230] sm:$0xf0]  ;;  %v13750_v58 = vld [vmem:[#allocation4 + $0x228] sm:$0xf] }
 0x6d0   :  { %v6817_v8 = vadd.f32 %v6816_v62, %v6728_v32  ;;  %6591 = vmatmul.bf16.gmra.mxu0 %v13711_v16  ;;  %v13735_v32 = vor.u32 %v15627_v44, %v13734_v26  ;;  %v13752_v26 = vld [vmem:[#allocation4 + $0x238] sm:$0xf0] }
 0x6d1   :  { %6680 = vmatmul.bf16.gmra.mxu1 %v13715_v52 }
 0x6d2   :  { %v17204_v1 = vadd.f32 %v6817_v8, %v17108_v57  ;;  %6769 = vmatmul.bf16.gmra.mxu2 %v13719_v19  ;;  %v15624_v57 = vld [vmem:[#allocation4 + $0x204] sm:$0xf] }
 0x6d3   :  { %6858 = vmatmul.bf16.gmra.mxu3 %v13723_v20  ;;  %v13731_v49 = vor.u32 %v15624_v57, %v13728_v38  ;;  %v15745_v20 = vld [vmem:[#allocation7 + $0x708] sm:$0xff]  ;;  %v15631_v57 = vld [vmem:[#allocation4 + $0x234] sm:$0xf0] }
 0x6d4   :  { %7573 = vmatpush.bf16.msrb.mxu0 %v15745_v20  ;;  %v15629_v38 = vld [vmem:[#allocation4 + $0x22c] sm:$0xf] }
 0x6d5   :  { %v6730_v11 = vpop.f32.mrf.mxu2  ;;  %v6554_v18 = vpop.f32.mrf.mxu0 }
 0x6d6   :  { %v6819_v48 = vpop.f32.mrf.mxu3  ;;  %v6731_v53 = vadd.f32 %v6730_v11, %v6642_v2  ;;  %v6643_v3 = vpop.f32.mrf.mxu1  ;;  %v15753_v2 = vld [vmem:[#allocation7 + $0x748] sm:$0xff] }
 0x6d7   :  { %v6644_v61 = vadd.f32 %v6643_v3, %v6554_v18  ;;  %7662 = vmatpush.bf16.msrb.mxu1 %v15753_v2  ;;  %v13742_v3 = vld [vmem:[#allocation4 + $0x220] sm:$0xf] }
 0x6d8   :  { %v6820_v43 = vadd.f32 %v6819_v48, %v6731_v53 }
 0x6da   :  { %v17207_v7 = vadd.f32 %v6820_v43, %v17111_v47 }
 0x6dd   :  { %v6732_v28 = vpop.f32.mrf.mxu2  ;;  %v6557_v16 = vpop.f32.mrf.mxu0 }
 0x6de   :  { %v6821_v35 = vpop.f32.mrf.mxu3  ;;  %v6733_v62 = vadd.f32 %v6732_v28, %v6644_v61  ;;  %v6646_v52 = vpop.f32.mrf.mxu1  ;;  %v15630_v61 = vld [vmem:[#allocation4 + $0x22c] sm:$0xf0] }
 0x6df   :  { %v6647_v15 = vadd.f32 %v6646_v52, %v6557_v16  ;;  %v13743_v5 = vor.u32 %v15630_v61, %v13742_v3  ;;  %v13755_v16 = vor.u32 %v15629_v38, %v13752_v26  ;;  %v13760_v3 = vld [vmem:[#allocation4 + $0x250] sm:$0xf0]  ;;  %v13766_v61 = vld [vmem:[#allocation4 + $0x248] sm:$0xf] }
 0x6e0   :  { %v6822_v19 = vadd.f32 %v6821_v35, %v6733_v62  ;;  %6596 = vmatmul.bf16.gmra.mxu0 %v13727_v63  ;;  %v13751_v62 = vor.u32 %v15631_v57, %v13750_v58  ;;  %v13768_v58 = vld [vmem:[#allocation4 + $0x258] sm:$0xf0] }
 0x6e1   :  { %6685 = vmatmul.bf16.gmra.mxu1 %v13731_v49 }
 0x6e2   :  { %v17210_v47 = vadd.f32 %v6822_v19, %v17114_v60  ;;  %6774 = vmatmul.bf16.gmra.mxu2 %v13735_v32  ;;  %v15628_v60 = vld [vmem:[#allocation4 + $0x224] sm:$0xf] }
 0x6e3   :  { %6863 = vmatmul.bf16.gmra.mxu3 %v13739_v22  ;;  %v13747_v28 = vor.u32 %v15628_v60, %v13744_v55  ;;  %v15764_v22 = vld [vmem:[#allocation7 + $0x7a0] sm:$0xff]  ;;  %v15635_v60 = vld [vmem:[#allocation4 + $0x254] sm:$0xf0]  ;;  %v15633_v55 = vld [vmem:[#allocation4 + $0x24c] sm:$0xf] }
 0x6e4   :  { %7748 = vmatpush.bf16.msrb.mxu2 %v15764_v22 }
 0x6e5   :  { %v6735_v8 = vpop.f32.mrf.mxu2  ;;  %v6559_v11 = vpop.f32.mrf.mxu0 }
 0x6e6   :  { %v6824_v36 = vpop.f32.mrf.mxu3  ;;  %v6736_v54 = vadd.f32 %v6735_v8, %v6647_v15  ;;  %v6648_v48 = vpop.f32.mrf.mxu1  ;;  %v15772_v15 = vld [vmem:[#allocation7 + $0x7e0] sm:$0xff] }
 0x6e7   :  { %v6649_v53 = vadd.f32 %v6648_v48, %v6559_v11  ;;  %7837 = vmatpush.bf16.msrb.mxu3 %v15772_v15  ;;  %v13758_v48 = vld [vmem:[#allocation4 + $0x240] sm:$0xf] }
 0x6e8   :  { %v6825_v18 = vadd.f32 %v6824_v36, %v6736_v54 }
 0x6ea   :  { %v17213_v43 = vadd.f32 %v6825_v18, %v17117_v46 }
 0x6ed   :  { %v6737_v44 = vpop.f32.mrf.mxu2  ;;  %v6562_v63 = vpop.f32.mrf.mxu0 }
 0x6ee   :  { %v6826_v41 = vpop.f32.mrf.mxu3  ;;  %v6738_v35 = vadd.f32 %v6737_v44, %v6649_v53  ;;  %v6651_v49 = vpop.f32.mrf.mxu1  ;;  %v15634_v53 = vld [vmem:[#allocation4 + $0x24c] sm:$0xf0] }
 0x6ef   :  { %v6652_v52 = vadd.f32 %v6651_v49, %v6562_v63  ;;  %v13759_v26 = vor.u32 %v15634_v53, %v13758_v48  ;;  %v13771_v63 = vor.u32 %v15633_v55, %v13768_v58  ;;  %v13776_v48 = vld [vmem:[#allocation4 + $0x270] sm:$0xf0]  ;;  %v13782_v53 = vld [vmem:[#allocation4 + $0x268] sm:$0xf] }
 0x6f0   :  { %v6827_v32 = vadd.f32 %v6826_v41, %v6738_v35  ;;  %6601 = vmatmul.bf16.gmra.mxu0 %v13743_v5  ;;  %v13767_v35 = vor.u32 %v15635_v60, %v13766_v61  ;;  %v13784_v61 = vld [vmem:[#allocation4 + $0x278] sm:$0xf0] }
 0x6f1   :  { %6690 = vmatmul.bf16.gmra.mxu1 %v13747_v28 }
 0x6f2   :  { %v17216_v46 = vadd.f32 %v6827_v32, %v17120_v25  ;;  %6779 = vmatmul.bf16.gmra.mxu2 %v13751_v62  ;;  %v15632_v25 = vld [vmem:[#allocation4 + $0x244] sm:$0xf] }
 0x6f3   :  { %6868 = vmatmul.bf16.gmra.mxu3 %v13755_v16  ;;  %v13763_v44 = vor.u32 %v15632_v25, %v13760_v3  ;;  %v15744_v16 = vld [vmem:[#allocation7 + $0x700] sm:$0xff]  ;;  %v15639_v25 = vld [vmem:[#allocation4 + $0x274] sm:$0xf0]  ;;  %v15637_v3 = vld [vmem:[#allocation4 + $0x26c] sm:$0xf] }
 0x6f4   :  { %7574 = vmatpush.bf16.msrb.mxu0 %v15744_v16 }
 0x6f5   :  { %v6740_v19 = vpop.f32.mrf.mxu2  ;;  %v6564_v8 = vpop.f32.mrf.mxu0 }
 0x6f6   :  { %v6829_v20 = vpop.f32.mrf.mxu3  ;;  %v6741_v2 = vadd.f32 %v6740_v19, %v6652_v52  ;;  %v6653_v36 = vpop.f32.mrf.mxu1  ;;  %v15752_v52 = vld [vmem:[#allocation7 + $0x740] sm:$0xff] }
 0x6f7   :  { %v6654_v54 = vadd.f32 %v6653_v36, %v6564_v8  ;;  %7663 = vmatpush.bf16.msrb.mxu1 %v15752_v52  ;;  %v13774_v36 = vld [vmem:[#allocation4 + $0x260] sm:$0xf]  ;;  %v15762_v52 = vld [vmem:[#allocation7 + $0x790] sm:$0xff] }
 0x6f8   :  { %v6830_v11 = vadd.f32 %v6829_v20, %v6741_v2 }
 0x6fa   :  { %v17219_v18 = vadd.f32 %v6830_v11, %v17123_v21 }
 0x6fd   :  { %v6742_v57 = vpop.f32.mrf.mxu2  ;;  %v6567_v5 = vpop.f32.mrf.mxu0 }
 0x6fe   :  { %v6831_v38 = vpop.f32.mrf.mxu3  ;;  %v6743_v41 = vadd.f32 %v6742_v57, %v6654_v54  ;;  %v6656_v28 = vpop.f32.mrf.mxu1  ;;  %v15638_v54 = vld [vmem:[#allocation4 + $0x26c] sm:$0xf0] }
 0x6ff   :  { %v6657_v49 = vadd.f32 %v6656_v28, %v6567_v5  ;;  %v13775_v58 = vor.u32 %v15638_v54, %v13774_v36  ;;  %v13787_v5 = vor.u32 %v15637_v3, %v13784_v61  ;;  %v15642_v36 = vld [vmem:[#allocation4 + $0x28c] sm:$0xf0]  ;;  %v15761_v54 = vld [vmem:[#allocation7 + $0x788] sm:$0xff]  ;;  %v15643_v3 = vld [vmem:[#allocation4 + $0x294] sm:$0xf0] }
 0x700   :  { %v6832_v62 = vadd.f32 %v6831_v38, %v6743_v41  ;;  %6606 = vmatmul.bf16.gmra.mxu0 %v13759_v26  ;;  %v13783_v41 = vor.u32 %v15639_v25, %v13782_v53  ;;  %v13792_v53 = vld [vmem:[#allocation4 + $0x290] sm:$0xf0]  ;;  %v13798_v25 = vld [vmem:[#allocation4 + $0x288] sm:$0xf]  ;;  %v15641_v61 = vld [vmem:[#allocation4 + $0x28c] sm:$0xf] }
 0x701   :  { %6695 = vmatmul.bf16.gmra.mxu1 %v13763_v44 }
 0x702   :  { %v17222_v21 = vadd.f32 %v6832_v62, %v17126_v9  ;;  %6784 = vmatmul.bf16.gmra.mxu2 %v13767_v35  ;;  %v15636_v9 = vld [vmem:[#allocation4 + $0x264] sm:$0xf] }
 0x703   :  { %6873 = vmatmul.bf16.gmra.mxu3 %v13771_v63  ;;  %v13779_v57 = vor.u32 %v15636_v9, %v13776_v48  ;;  %v15771_v63 = vld [vmem:[#allocation7 + $0x7d8] sm:$0xff]  ;;  %v15640_v48 = vld [vmem:[#allocation4 + $0x284] sm:$0xf] }
 0x704   :  { %7838 = vmatpush.bf16.msrb.mxu3 %v15771_v63 }
 0x705   :  { %v6745_v32 = vpop.f32.mrf.mxu2  ;;  %v6569_v19 = vpop.f32.mrf.mxu0 }
 0x706   :  { %v6834_v22 = vpop.f32.mrf.mxu3  ;;  %v6746_v15 = vadd.f32 %v6745_v32, %v6657_v49  ;;  %v6658_v20 = vpop.f32.mrf.mxu1  ;;  %v15770_v32 = vld [vmem:[#allocation7 + $0x7d0] sm:$0xff] }
 0x707   :  { %v6659_v2 = vadd.f32 %v6658_v20, %v6569_v19 }
 0x708   :  { %v6835_v8 = vadd.f32 %v6834_v22, %v6746_v15  ;;  %7839 = vmatpush.bf16.msrb.mxu3 %v15770_v32  ;;  %v15826_v32 = vld [vmem:[#allocation9 + $0xf4] sm:$0xf] }
 0x70a   :  { %v17225_v11 = vadd.f32 %v6835_v8, %v17129_v6  ;;  %v15763_v6 = vld [vmem:[#allocation7 + $0x798] sm:$0xff]  ;;  %v13790_v8 = vld [vmem:[#allocation4 + $0x280] sm:$0xf] }
 0x70b   :  { %7749 = vmatpush.bf16.msrb.mxu2 %v15763_v6 }
 0x70d   :  { %v6747_v60 = vpop.f32.mrf.mxu2  ;;  %v6572_v26 = vpop.f32.mrf.mxu0 }
 0x70e   :  { %v6836_v55 = vpop.f32.mrf.mxu3  ;;  %v6748_v38 = vadd.f32 %v6747_v60, %v6659_v2  ;;  %v6661_v44 = vpop.f32.mrf.mxu1  ;;  %v13800_v60 = vld [vmem:[#allocation4 + $0x298] sm:$0xf0] }
 0x70f   :  { %v6662_v28 = vadd.f32 %v6661_v44, %v6572_v26  ;;  %7750 = vmatpush.bf16.msrb.mxu2 %v15762_v52  ;;  %v15760_v26 = vld [vmem:[#allocation7 + $0x780] sm:$0xff]  ;;  %v15827_v52 = vld [vmem:[#allocation9 + $0xf4] sm:$0xf0] }
 0x710   :  { %v6837_v35 = vadd.f32 %v6836_v55, %v6748_v38  ;;  %6611 = vmatmul.bf16.gmra.mxu0 %v13775_v58  ;;  %v13795_v38 = vor.u32 %v15640_v48, %v13792_v53  ;;  %v15768_v44 = vld [vmem:[#allocation7 + $0x7c0] sm:$0xff] }
 0x711   :  { %6700 = vmatmul.bf16.gmra.mxu1 %v13779_v57  ;;  %v13791_v57 = vor.u32 %v15642_v36, %v13790_v8  ;;  %v13806_v53 = vld [vmem:[#allocation4 + $0x2a0] sm:$0xf] }
 0x712   :  { %v17228_v49 = vadd.f32 %v6837_v35, %v17132_v29  ;;  %6789 = vmatmul.bf16.gmra.mxu2 %v13783_v41  ;;  %v15769_v29 = vld [vmem:[#allocation7 + $0x7c8] sm:$0xff]  ;;  %v13799_v35 = vor.u32 %v15643_v3, %v13798_v25  ;;  %v15644_v3 = vld [vmem:[#allocation4 + $0x2a4] sm:$0xf] }
 0x713   :  { %6878 = vmatmul.bf16.gmra.mxu3 %v13787_v5  ;;  %7751 = vmatpush.bf16.msrb.mxu2 %v15761_v54 }
 0x714   :  { %7840 = vmatpush.bf16.msrb.mxu3 %v15769_v29 }
 0x715   :  { %v6750_v62 = vpop.f32.mrf.mxu2  ;;  %v6574_v15 = vpop.f32.mrf.mxu0 }
 0x716   :  { %v6839_v16 = vpop.f32.mrf.mxu3  ;;  %v6751_v22 = vadd.f32 %v6750_v62, %v6662_v28  ;;  %v6663_v19 = vpop.f32.mrf.mxu1 }
 0x717   :  { %v6664_v20 = vadd.f32 %v6663_v19, %v6574_v15  ;;  %7752 = vmatpush.bf16.msrb.mxu2 %v15760_v26  ;;  %v14456_v15 = vld [vmem:[#allocation9 + $0xf8] sm:$0xf0] }
 0x718   :  { %v6840_v2 = vadd.f32 %v6839_v16, %v6751_v22  ;;  %7841 = vmatpush.bf16.msrb.mxu3 %v15768_v44  ;;  %v14454_v16 = vld [vmem:[#allocation9 + $0xf0] sm:$0xf]  ;;  %v14459_v19 = vor.u32 %v15826_v32, %v14456_v15 }
 0x719   :  { %v14455_v22 = vor.u32 %v15827_v52, %v14454_v16 }
 0x71a   :  { %v17231_v9 = vadd.f32 %v6840_v2, %v17135_v30  ;;  %v13803_v30 = vor.u32 %v15641_v61, %v13800_v60  ;;  %8469 = vmatpush.bf16.msra.mxu1 %v14459_v19  ;;  %v13808_v61 = vld [vmem:[#allocation4 + $0x2b0] sm:$0xf0]  ;;  %v13814_v60 = vld [vmem:[#allocation4 + $0x2a8] sm:$0xf] }
 0x71b   :  { %8380 = vmatpush.bf16.msra.mxu0 %v14455_v22 }
 0x71d   :  { %v6752_v55 = vpop.f32.mrf.mxu2  ;;  %v6577_v5 = vpop.f32.mrf.mxu0 }
 0x71e   :  { %v6841_v58 = vpop.f32.mrf.mxu3  ;;  %v6753_v41 = vadd.f32 %v6752_v55, %v6664_v20  ;;  %v6666_v28 = vpop.f32.mrf.mxu1  ;;  %v15647_v55 = vld [vmem:[#allocation4 + $0x2b4] sm:$0xf0] }
 0x71f   :  { %v6667_v6 = vadd.f32 %v6666_v28, %v6577_v5 }
 0x720   :  { %v6842_v63 = vadd.f32 %v6841_v58, %v6753_v41  ;;  %6616 = vmatmul.bf16.gmra.mxu0 %v13791_v57  ;;  %v15645_v58 = vld [vmem:[#allocation4 + $0x2ac] sm:$0xf]  ;;  %v13816_v57 = vld [vmem:[#allocation4 + $0x2b8] sm:$0xf0]  ;;  %v13811_v41 = vor.u32 %v15644_v3, %v13808_v61 }
 0x721   :  { %6705 = vmatmul.bf16.gmra.mxu1 %v13795_v38  ;;  %v13960_v3 = vld [vmem:[#allocation4 + $0xf8] sm:$0xf0] }
 0x722   :  { %v17234_v62 = vadd.f32 %v6842_v63, %v17138_v42  ;;  %6794 = vmatmul.bf16.gmra.mxu2 %v13799_v35  ;;  %v15646_v42 = vld [vmem:[#allocation4 + $0x2ac] sm:$0xf0] }
 0x723   :  { %6883 = vmatmul.bf16.gmra.mxu3 %v13803_v30  ;;  %v13807_v44 = vor.u32 %v15646_v42, %v13806_v53  ;;  %v13815_v30 = vor.u32 %v15647_v55, %v13814_v60  ;;  %v13958_v53 = vld [vmem:[#allocation4 + $0xe8] sm:$0xf]  ;;  %v15683_v42 = vld [vmem:[#allocation4 + $0xf4] sm:$0xf0] }
 0x725   :  { %v6755_v20 = vpop.f32.mrf.mxu2  ;;  %v6579_v36 = vpop.f32.mrf.mxu0 }
 0x726   :  { %v6844_v2 = vpop.f32.mrf.mxu3  ;;  %v6756_v8 = vadd.f32 %v6755_v20, %v6667_v6  ;;  %v6668_v54 = vpop.f32.mrf.mxu1  ;;  %v13819_v6 = vor.u32 %v15645_v58, %v13816_v57 }
 0x727   :  { %v6669_v29 = vadd.f32 %v6668_v54, %v6579_v36  ;;  %v15682_v36 = vld [vmem:[#allocation4 + $0xec] sm:$0xf0] }
 0x728   :  { %v6845_v48 = vadd.f32 %v6844_v2, %v6756_v8  ;;  %v13950_v8 = vld [vmem:[#allocation4 + $0xe0] sm:$0xf] }
 0x729   :  { %v13951_v55 = vor.u32 %v15682_v36, %v13950_v8  ;;  %v13966_v36 = vld [vmem:[#allocation4 + $0x100] sm:$0xf] }
 0x72a   :  { %v17237_v25 = vadd.f32 %v6845_v48, %v17141_v37  ;;  %v13952_v48 = vld [vmem:[#allocation4 + $0xf0] sm:$0xf0] }
 0x72d   :  { %v6757_v38 = vpop.f32.mrf.mxu2  ;;  %v6582_v28 = vpop.f32.mrf.mxu0 }
 0x72e   :  { %v6846_v26 = vpop.f32.mrf.mxu3  ;;  %v6758_v5 = vadd.f32 %v6757_v38, %v6669_v29  ;;  %v6671_v35 = vpop.f32.mrf.mxu1  ;;  %v15680_v29 = vld [vmem:[#allocation4 + $0xe4] sm:$0xf] }
 0x72f   :  { %v6672_v63 = vadd.f32 %v6671_v35, %v6582_v28  ;;  %v13955_v58 = vor.u32 %v15680_v29, %v13952_v48  ;;  %v14446_v35 = vld [vmem:[#allocation9 + $0xe0] sm:$0xf]  ;;  %v15684_v48 = vld [vmem:[#allocation4 + $0x104] sm:$0xf] }
 0x730   :  { %v6847_v16 = vadd.f32 %v6846_v26, %v6758_v5  ;;  %6621 = vmatmul.bf16.gmra.mxu0 %v13807_v44  ;;  %v13959_v44 = vor.u32 %v15683_v42, %v13958_v53  ;;  %v13968_v53 = vld [vmem:[#allocation4 + $0x110] sm:$0xf0]  ;;  %v13974_v42 = vld [vmem:[#allocation4 + $0x108] sm:$0xf] }
 0x731   :  { %6710 = vmatmul.bf16.gmra.mxu1 %v13811_v41 }
 0x732   :  { %v17240_v37 = vadd.f32 %v6847_v16, %v17144_v24  ;;  %6799 = vmatmul.bf16.gmra.mxu2 %v13815_v30  ;;  %v15681_v24 = vld [vmem:[#allocation4 + $0xec] sm:$0xf]  ;;  %v15825_v30 = vld [vmem:[#allocation9 + $0xe4] sm:$0xf0] }
 0x733   :  { %6888 = vmatmul.bf16.gmra.mxu3 %v13819_v6  ;;  %v13963_v41 = vor.u32 %v15681_v24, %v13960_v3  ;;  %v15824_v6 = vld [vmem:[#allocation9 + $0xe4] sm:$0xf]  ;;  %v14448_v16 = vld [vmem:[#allocation9 + $0xe8] sm:$0xf0]  ;;  %v15687_v24 = vld [vmem:[#allocation4 + $0x114] sm:$0xf0] }
 0x734   :  { %v15685_v3 = vld [vmem:[#allocation4 + $0x10c] sm:$0xf] }
 0x735   :  { %v6760_v52 = vpop.f32.mrf.mxu2  ;;  %v6584_v15 = vpop.f32.mrf.mxu0 }
 0x736   :  { %v6849_v32 = vpop.f32.mrf.mxu3  ;;  %v6761_v22 = vadd.f32 %v6760_v52, %v6672_v63  ;;  %v6673_v19 = vpop.f32.mrf.mxu1  ;;  %v14447_v63 = vor.u32 %v15825_v30, %v14446_v35  ;;  %v14451_v52 = vor.u32 %v15824_v6, %v14448_v16 }
 0x737   :  { %v6674_v20 = vadd.f32 %v6673_v19, %v6584_v15 }
 0x738   :  { %v6850_v2 = vadd.f32 %v6849_v32, %v6761_v22  ;;  %8381 = vmatpush.bf16.msra.mxu0 %v14447_v63  ;;  %8470 = vmatpush.bf16.msra.mxu1 %v14451_v52 }
 0x73a   :  { %v17243_v54 = vadd.f32 %v6850_v2, %v17147_v10 }
 0x73d   :  { %v6762_v61 = vpop.f32.mrf.mxu2  ;;  %v6587_v38 = vpop.f32.mrf.mxu0 }
 0x73e   :  { %v6851_v60 = vpop.f32.mrf.mxu3  ;;  %v6763_v57 = vadd.f32 %v6762_v61, %v6674_v20  ;;  %v6676_v26 = vpop.f32.mrf.mxu1  ;;  %v13976_v61 = vld [vmem:[#allocation4 + $0x118] sm:$0xf0] }
 0x73f   :  { %v6677_v5 = vadd.f32 %v6676_v26, %v6587_v38 }
 0x740   :  { %v6852_v28 = vadd.f32 %v6851_v60, %v6763_v57  ;;  %7575 = vmatmul.bf16.vlgmr.msrb.gmra.mxu0 %v13951_v55  ;;  %v13971_v57 = vor.u32 %v15684_v48, %v13968_v53  ;;  %v13992_v48 = vld [vmem:[#allocation4 + $0x138] sm:$0xf0] }
 0x741   :  { %7664 = vmatmul.bf16.vlgmr.msrb.gmra.mxu1 %v13955_v58 }
 0x742   :  { %v17246_v10 = vadd.f32 %v6852_v28, %v17150_v33  ;;  %7753 = vmatmul.bf16.vlgmr.msrb.gmra.mxu2 %v13959_v44  ;;  %v15686_v33 = vld [vmem:[#allocation4 + $0x10c] sm:$0xf0] }
 0x743   :  { %7842 = vmatmul.bf16.vlgmr.msrb.gmra.mxu3 %v13963_v41  ;;  %v13967_v58 = vor.u32 %v15686_v33, %v13966_v36  ;;  %v13975_v41 = vor.u32 %v15687_v24, %v13974_v42  ;;  %v13990_v36 = vld [vmem:[#allocation4 + $0x128] sm:$0xf]  ;;  %v15691_v33 = vld [vmem:[#allocation4 + $0x134] sm:$0xf0] }
 0x745   :  { %v6765_v32 = vpop.f32.mrf.mxu2  ;;  %v6589_v19 = vpop.f32.mrf.mxu0 }
 0x746   :  { %v6854_v22 = vpop.f32.mrf.mxu3  ;;  %v6766_v15 = vadd.f32 %v6765_v32, %v6677_v5  ;;  %v6678_v20 = vpop.f32.mrf.mxu1  ;;  %v13979_v5 = vor.u32 %v15685_v3, %v13976_v61 }
 0x747   :  { %v6679_v2 = vadd.f32 %v6678_v20, %v6589_v19  ;;  %v15690_v19 = vld [vmem:[#allocation4 + $0x12c] sm:$0xf0] }
 0x748   :  { %v6855_v8 = vadd.f32 %v6854_v22, %v6766_v15  ;;  %v13982_v15 = vld [vmem:[#allocation4 + $0x120] sm:$0xf] }
 0x749   :  { %v13983_v24 = vor.u32 %v15690_v19, %v13982_v15  ;;  %v13998_v19 = vld [vmem:[#allocation4 + $0x140] sm:$0xf] }
 0x74a   :  { %v17249_v29 = vadd.f32 %v6855_v8, %v17153_v4  ;;  %v13984_v8 = vld [vmem:[#allocation4 + $0x130] sm:$0xf0] }
 0x74d   :  { %v6767_v60 = vpop.f32.mrf.mxu2  ;;  %v6592_v26 = vpop.f32.mrf.mxu0 }
 0x74e   :  { %v6856_v55 = vpop.f32.mrf.mxu3  ;;  %v6768_v38 = vadd.f32 %v6767_v60, %v6679_v2  ;;  %v6681_v44 = vpop.f32.mrf.mxu1  ;;  %v15688_v2 = vld [vmem:[#allocation4 + $0x124] sm:$0xf] }
 0x74f   :  { %v6682_v28 = vadd.f32 %v6681_v44, %v6592_v26  ;;  %v13987_v3 = vor.u32 %v15688_v2, %v13984_v8  ;;  %v14438_v44 = vld [vmem:[#allocation9 + $0xd0] sm:$0xf]  ;;  %v15692_v8 = vld [vmem:[#allocation4 + $0x144] sm:$0xf] }
 0x750   :  { %v6857_v35 = vadd.f32 %v6856_v55, %v6768_v38  ;;  %7580 = vmatmul.bf16.gmra.mxu0 %v13967_v58  ;;  %v13991_v58 = vor.u32 %v15691_v33, %v13990_v36  ;;  %v14000_v36 = vld [vmem:[#allocation4 + $0x150] sm:$0xf0]  ;;  %v14006_v33 = vld [vmem:[#allocation4 + $0x148] sm:$0xf] }
 0x751   :  { %7669 = vmatmul.bf16.gmra.mxu1 %v13971_v57 }
 0x752   :  { %v17252_v4 = vadd.f32 %v6857_v35, %v17156_v56  ;;  %7758 = vmatmul.bf16.gmra.mxu2 %v13975_v41  ;;  %v15689_v56 = vld [vmem:[#allocation4 + $0x12c] sm:$0xf]  ;;  %v15823_v41 = vld [vmem:[#allocation9 + $0xd4] sm:$0xf0]  ;;  %v14440_v35 = vld [vmem:[#allocation9 + $0xd8] sm:$0xf0] }
 0x753   :  { %7847 = vmatmul.bf16.gmra.mxu3 %v13979_v5  ;;  %v13995_v57 = vor.u32 %v15689_v56, %v13992_v48  ;;  %v15822_v5 = vld [vmem:[#allocation9 + $0xd4] sm:$0xf]  ;;  %v15695_v56 = vld [vmem:[#allocation4 + $0x154] sm:$0xf0]  ;;  %v15693_v48 = vld [vmem:[#allocation4 + $0x14c] sm:$0xf] }
 0x755   :  { %v6770_v30 = vpop.f32.mrf.mxu2  ;;  %v6594_v16 = vpop.f32.mrf.mxu0 }
 0x756   :  { %v6859_v6 = vpop.f32.mrf.mxu3  ;;  %v6771_v63 = vadd.f32 %v6770_v30, %v6682_v28  ;;  %v6683_v52 = vpop.f32.mrf.mxu1  ;;  %v14439_v28 = vor.u32 %v15823_v41, %v14438_v44  ;;  %v14443_v30 = vor.u32 %v15822_v5, %v14440_v35 }
 0x757   :  { %v6684_v32 = vadd.f32 %v6683_v52, %v6594_v16 }
 0x758   :  { %v6860_v22 = vadd.f32 %v6859_v6, %v6771_v63  ;;  %8382 = vmatpush.bf16.msra.mxu0 %v14439_v28  ;;  %8471 = vmatpush.bf16.msra.mxu1 %v14443_v30 }
 0x75a   :  { %v17255_v20 = vadd.f32 %v6860_v22, %v17159_v17 }
 0x75d   :  { %v6772_v53 = vpop.f32.mrf.mxu2  ;;  %v6597_v60 = vpop.f32.mrf.mxu0 }
 0x75e   :  { %v6861_v42 = vpop.f32.mrf.mxu3  ;;  %v6773_v61 = vadd.f32 %v6772_v53, %v6684_v32  ;;  %v6686_v55 = vpop.f32.mrf.mxu1  ;;  %v14008_v53 = vld [vmem:[#allocation4 + $0x158] sm:$0xf0] }
 0x75f   :  { %v6687_v38 = vadd.f32 %v6686_v55, %v6597_v60 }
 0x760   :  { %v6862_v26 = vadd.f32 %v6861_v42, %v6773_v61  ;;  %7585 = vmatmul.bf16.gmra.mxu0 %v13983_v24  ;;  %v14003_v61 = vor.u32 %v15692_v8, %v14000_v36  ;;  %v14024_v8 = vld [vmem:[#allocation4 + $0x178] sm:$0xf0] }
 0x761   :  { %7674 = vmatmul.bf16.gmra.mxu1 %v13987_v3 }
 0x762   :  { %v17258_v17 = vadd.f32 %v6862_v26, %v17162_v14  ;;  %7763 = vmatmul.bf16.gmra.mxu2 %v13991_v58  ;;  %v15694_v14 = vld [vmem:[#allocation4 + $0x14c] sm:$0xf0] }
 0x763   :  { %7852 = vmatmul.bf16.gmra.mxu3 %v13995_v57  ;;  %v13999_v3 = vor.u32 %v15694_v14, %v13998_v19  ;;  %v14007_v57 = vor.u32 %v15695_v56, %v14006_v33  ;;  %v14022_v19 = vld [vmem:[#allocation4 + $0x168] sm:$0xf]  ;;  %v15699_v14 = vld [vmem:[#allocation4 + $0x174] sm:$0xf0] }
 0x765   :  { %v6775_v6 = vpop.f32.mrf.mxu2  ;;  %v6599_v52 = vpop.f32.mrf.mxu0 }
 0x766   :  { %v6864_v63 = vpop.f32.mrf.mxu3  ;;  %v6776_v16 = vadd.f32 %v6775_v6, %v6687_v38  ;;  %v6688_v32 = vpop.f32.mrf.mxu1  ;;  %v14011_v38 = vor.u32 %v15693_v48, %v14008_v53 }
 0x767   :  { %v6689_v22 = vadd.f32 %v6688_v32, %v6599_v52  ;;  %v15698_v52 = vld [vmem:[#allocation4 + $0x16c] sm:$0xf0] }
 0x768   :  { %v6865_v15 = vadd.f32 %v6864_v63, %v6776_v16  ;;  %v14014_v16 = vld [vmem:[#allocation4 + $0x160] sm:$0xf] }
 0x769   :  { %v14015_v56 = vor.u32 %v15698_v52, %v14014_v16  ;;  %v14030_v52 = vld [vmem:[#allocation4 + $0x180] sm:$0xf] }
 0x76a   :  { %v17261_v2 = vadd.f32 %v6865_v15, %v17165_v40  ;;  %v14016_v15 = vld [vmem:[#allocation4 + $0x170] sm:$0xf0] }
 0x76d   :  { %v6777_v42 = vpop.f32.mrf.mxu2  ;;  %v6602_v55 = vpop.f32.mrf.mxu0 }
 0x76e   :  { %v6866_v24 = vpop.f32.mrf.mxu3  ;;  %v6778_v60 = vadd.f32 %v6777_v42, %v6689_v22  ;;  %v6691_v58 = vpop.f32.mrf.mxu1  ;;  %v15696_v22 = vld [vmem:[#allocation4 + $0x164] sm:$0xf] }
 0x76f   :  { %v6692_v26 = vadd.f32 %v6691_v58, %v6602_v55  ;;  %v14019_v48 = vor.u32 %v15696_v22, %v14016_v15  ;;  %v14430_v58 = vld [vmem:[#allocation9 + $0xc0] sm:$0xf]  ;;  %v15700_v15 = vld [vmem:[#allocation4 + $0x184] sm:$0xf] }
 0x770   :  { %v6867_v44 = vadd.f32 %v6866_v24, %v6778_v60  ;;  %7590 = vmatmul.bf16.gmra.mxu0 %v13999_v3  ;;  %v14023_v3 = vor.u32 %v15699_v14, %v14022_v19  ;;  %v14032_v19 = vld [vmem:[#allocation4 + $0x190] sm:$0xf0]  ;;  %v14038_v14 = vld [vmem:[#allocation4 + $0x188] sm:$0xf] }
 0x771   :  { %7679 = vmatmul.bf16.gmra.mxu1 %v14003_v61 }
 0x772   :  { %v17264_v40 = vadd.f32 %v6867_v44, %v17168_v23  ;;  %7768 = vmatmul.bf16.gmra.mxu2 %v14007_v57  ;;  %v15697_v23 = vld [vmem:[#allocation4 + $0x16c] sm:$0xf]  ;;  %v15821_v57 = vld [vmem:[#allocation9 + $0xc4] sm:$0xf0] }
 0x773   :  { %7857 = vmatmul.bf16.gmra.mxu3 %v14011_v38  ;;  %v14027_v61 = vor.u32 %v15697_v23, %v14024_v8  ;;  %v15820_v38 = vld [vmem:[#allocation9 + $0xc4] sm:$0xf]  ;;  %v14432_v44 = vld [vmem:[#allocation9 + $0xc8] sm:$0xf0]  ;;  %v15703_v23 = vld [vmem:[#allocation4 + $0x194] sm:$0xf0] }
 0x774   :  { %v15701_v8 = vld [vmem:[#allocation4 + $0x18c] sm:$0xf] }
 0x775   :  { %v6780_v41 = vpop.f32.mrf.mxu2  ;;  %v6604_v35 = vpop.f32.mrf.mxu0 }
 0x776   :  { %v6869_v5 = vpop.f32.mrf.mxu3  ;;  %v6781_v28 = vadd.f32 %v6780_v41, %v6692_v26  ;;  %v6693_v30 = vpop.f32.mrf.mxu1  ;;  %v14431_v26 = vor.u32 %v15821_v57, %v14430_v58  ;;  %v14435_v41 = vor.u32 %v15820_v38, %v14432_v44 }
 0x777   :  { %v6694_v6 = vadd.f32 %v6693_v30, %v6604_v35 }
 0x778   :  { %v6870_v63 = vadd.f32 %v6869_v5, %v6781_v28  ;;  %8383 = vmatpush.bf16.msra.mxu0 %v14431_v26  ;;  %8472 = vmatpush.bf16.msra.mxu1 %v14435_v41 }
 0x77a   :  { %v17267_v32 = vadd.f32 %v6870_v63, %v17171_v12 }
 0x77d   :  { %v6782_v36 = vpop.f32.mrf.mxu2  ;;  %v6607_v42 = vpop.f32.mrf.mxu0 }
 0x77e   :  { %v6871_v33 = vpop.f32.mrf.mxu3  ;;  %v6783_v53 = vadd.f32 %v6782_v36, %v6694_v6  ;;  %v6696_v24 = vpop.f32.mrf.mxu1  ;;  %v14040_v36 = vld [vmem:[#allocation4 + $0x198] sm:$0xf0] }
 0x77f   :  { %v6697_v60 = vadd.f32 %v6696_v24, %v6607_v42 }
 0x780   :  { %v6872_v55 = vadd.f32 %v6871_v33, %v6783_v53  ;;  %7595 = vmatmul.bf16.gmra.mxu0 %v14015_v56  ;;  %v14035_v53 = vor.u32 %v15700_v15, %v14032_v19  ;;  %v14056_v15 = vld [vmem:[#allocation4 + $0x1b8] sm:$0xf0] }
 0x781   :  { %7684 = vmatmul.bf16.gmra.mxu1 %v14019_v48 }
 0x782   :  { %v17270_v12 = vadd.f32 %v6872_v55, %v17174_v27  ;;  %7773 = vmatmul.bf16.gmra.mxu2 %v14023_v3  ;;  %v15702_v27 = vld [vmem:[#allocation4 + $0x18c] sm:$0xf0] }
 0x783   :  { %7862 = vmatmul.bf16.gmra.mxu3 %v14027_v61  ;;  %v14031_v48 = vor.u32 %v15702_v27, %v14030_v52  ;;  %v14039_v61 = vor.u32 %v15703_v23, %v14038_v14  ;;  %v14054_v52 = vld [vmem:[#allocation4 + $0x1a8] sm:$0xf]  ;;  %v15707_v27 = vld [vmem:[#allocation4 + $0x1b4] sm:$0xf0] }
 0x785   :  { %v6785_v5 = vpop.f32.mrf.mxu2  ;;  %v6609_v30 = vpop.f32.mrf.mxu0 }
 0x786   :  { %v6874_v28 = vpop.f32.mrf.mxu3  ;;  %v6786_v35 = vadd.f32 %v6785_v5, %v6697_v60  ;;  %v6698_v6 = vpop.f32.mrf.mxu1  ;;  %v14043_v60 = vor.u32 %v15701_v8, %v14040_v36 }
 0x787   :  { %v6699_v63 = vadd.f32 %v6698_v6, %v6609_v30  ;;  %v15706_v30 = vld [vmem:[#allocation4 + $0x1ac] sm:$0xf0] }
 0x788   :  { %v6875_v16 = vadd.f32 %v6874_v28, %v6786_v35  ;;  %v14046_v35 = vld [vmem:[#allocation4 + $0x1a0] sm:$0xf] }
 0x789   :  { %v14047_v23 = vor.u32 %v15706_v30, %v14046_v35  ;;  %v14062_v30 = vld [vmem:[#allocation4 + $0x1c0] sm:$0xf] }
 0x78a   :  { %v17273_v22 = vadd.f32 %v6875_v16, %v17177_v0  ;;  %v14048_v16 = vld [vmem:[#allocation4 + $0x1b0] sm:$0xf0] }
 0x78d   :  { %v6787_v33 = vpop.f32.mrf.mxu2  ;;  %v6612_v24 = vpop.f32.mrf.mxu0 }
 0x78e   :  { %v6876_v56 = vpop.f32.mrf.mxu3  ;;  %v6788_v42 = vadd.f32 %v6787_v33, %v6699_v63  ;;  %v6701_v3 = vpop.f32.mrf.mxu1  ;;  %v15704_v63 = vld [vmem:[#allocation4 + $0x1a4] sm:$0xf] }
 0x78f   :  { %v6702_v55 = vadd.f32 %v6701_v3, %v6612_v24  ;;  %v14051_v8 = vor.u32 %v15704_v63, %v14048_v16  ;;  %v14422_v3 = vld [vmem:[#allocation9 + $0xb0] sm:$0xf]  ;;  %v15708_v16 = vld [vmem:[#allocation4 + $0x1c4] sm:$0xf] }
 0x790   :  { %v6877_v58 = vadd.f32 %v6876_v56, %v6788_v42  ;;  %7600 = vmatmul.bf16.gmra.mxu0 %v14031_v48  ;;  %v14055_v48 = vor.u32 %v15707_v27, %v14054_v52  ;;  %v14064_v52 = vld [vmem:[#allocation4 + $0x1d0] sm:$0xf0]  ;;  %v14070_v27 = vld [vmem:[#allocation4 + $0x1c8] sm:$0xf] }
 0x791   :  { %7689 = vmatmul.bf16.gmra.mxu1 %v14035_v53 }
 0x792   :  { %v17276_v0 = vadd.f32 %v6877_v58, %v17180_v34  ;;  %7778 = vmatmul.bf16.gmra.mxu2 %v14039_v61  ;;  %v15705_v34 = vld [vmem:[#allocation4 + $0x1ac] sm:$0xf]  ;;  %v15819_v61 = vld [vmem:[#allocation9 + $0xb4] sm:$0xf0]  ;;  %v14424_v58 = vld [vmem:[#allocation9 + $0xb8] sm:$0xf0] }
 0x793   :  { %7867 = vmatmul.bf16.gmra.mxu3 %v14043_v60  ;;  %v14059_v53 = vor.u32 %v15705_v34, %v14056_v15  ;;  %v15818_v60 = vld [vmem:[#allocation9 + $0xb4] sm:$0xf]  ;;  %v15711_v34 = vld [vmem:[#allocation4 + $0x1d4] sm:$0xf0]  ;;  %v15709_v15 = vld [vmem:[#allocation4 + $0x1cc] sm:$0xf] }
 0x795   :  { %v6790_v57 = vpop.f32.mrf.mxu2  ;;  %v6614_v44 = vpop.f32.mrf.mxu0 }
 0x796   :  { %v6879_v38 = vpop.f32.mrf.mxu3  ;;  %v6791_v26 = vadd.f32 %v6790_v57, %v6702_v55  ;;  %v6703_v41 = vpop.f32.mrf.mxu1  ;;  %v14423_v55 = vor.u32 %v15819_v61, %v14422_v3  ;;  %v14427_v57 = vor.u32 %v15818_v60, %v14424_v58 }
 0x797   :  { %v6704_v5 = vadd.f32 %v6703_v41, %v6614_v44 }
 0x798   :  { %v6880_v28 = vadd.f32 %v6879_v38, %v6791_v26  ;;  %8384 = vmatpush.bf16.msra.mxu0 %v14423_v55  ;;  %8473 = vmatpush.bf16.msra.mxu1 %v14427_v57 }
 0x79a   :  { %v17279_v6 = vadd.f32 %v6880_v28, %v17183_v51 }
 0x79d   :  { %v6792_v19 = vpop.f32.mrf.mxu2  ;;  %v6617_v33 = vpop.f32.mrf.mxu0 }
 0x79e   :  { %v6881_v14 = vpop.f32.mrf.mxu3  ;;  %v6793_v36 = vadd.f32 %v6792_v19, %v6704_v5  ;;  %v6706_v56 = vpop.f32.mrf.mxu1  ;;  %v14072_v19 = vld [vmem:[#allocation4 + $0x1d8] sm:$0xf0] }
 0x79f   :  { %v6707_v42 = vadd.f32 %v6706_v56, %v6617_v33 }
 0x7a0   :  { %v6882_v24 = vadd.f32 %v6881_v14, %v6793_v36  ;;  %7605 = vmatmul.bf16.gmra.mxu0 %v14047_v23  ;;  %v14067_v36 = vor.u32 %v15708_v16, %v14064_v52  ;;  %v14088_v16 = vld [vmem:[#allocation4 + $0x1f8] sm:$0xf0] }
 0x7a1   :  { %7694 = vmatmul.bf16.gmra.mxu1 %v14051_v8 }
 0x7a2   :  { %v17282_v51 = vadd.f32 %v6882_v24, %v17186_v50  ;;  %7783 = vmatmul.bf16.gmra.mxu2 %v14055_v48  ;;  %v15710_v50 = vld [vmem:[#allocation4 + $0x1cc] sm:$0xf0] }
 0x7a3   :  { %7872 = vmatmul.bf16.gmra.mxu3 %v14059_v53  ;;  %v14063_v8 = vor.u32 %v15710_v50, %v14062_v30  ;;  %v14071_v53 = vor.u32 %v15711_v34, %v14070_v27  ;;  %v14086_v30 = vld [vmem:[#allocation4 + $0x1e8] sm:$0xf]  ;;  %v15715_v50 = vld [vmem:[#allocation4 + $0x1f4] sm:$0xf0] }
 0x7a5   :  { %v6795_v38 = vpop.f32.mrf.mxu2  ;;  %v6619_v41 = vpop.f32.mrf.mxu0 }
 0x7a6   :  { %v6884_v26 = vpop.f32.mrf.mxu3  ;;  %v6796_v44 = vadd.f32 %v6795_v38, %v6707_v42  ;;  %v6708_v5 = vpop.f32.mrf.mxu1  ;;  %v14075_v42 = vor.u32 %v15709_v15, %v14072_v19 }
 0x7a7   :  { %v6709_v28 = vadd.f32 %v6708_v5, %v6619_v41  ;;  %v15714_v41 = vld [vmem:[#allocation4 + $0x1ec] sm:$0xf0] }
 0x7a8   :  { %v6885_v35 = vadd.f32 %v6884_v26, %v6796_v44  ;;  %v14078_v44 = vld [vmem:[#allocation4 + $0x1e0] sm:$0xf] }
 0x7a9   :  { %v14079_v34 = vor.u32 %v15714_v41, %v14078_v44  ;;  %v14094_v44 = vld [vmem:[#allocation4 + $0x200] sm:$0xf]  ;;  %v15718_v41 = vld [vmem:[#allocation4 + $0x20c] sm:$0xf0] }
 0x7aa   :  { %v17285_v63 = vadd.f32 %v6885_v35, %v17189_v45  ;;  %v14080_v35 = vld [vmem:[#allocation4 + $0x1f0] sm:$0xf0] }
 0x7ad   :  { %v6797_v14 = vpop.f32.mrf.mxu2  ;;  %v6622_v56 = vpop.f32.mrf.mxu0 }
 0x7ae   :  { %v6886_v23 = vpop.f32.mrf.mxu3  ;;  %v6798_v33 = vadd.f32 %v6797_v14, %v6709_v28  ;;  %v6711_v48 = vpop.f32.mrf.mxu1  ;;  %v15712_v28 = vld [vmem:[#allocation4 + $0x1e4] sm:$0xf] }
 0x7af   :  { %v6712_v24 = vadd.f32 %v6711_v48, %v6622_v56  ;;  %v14083_v15 = vor.u32 %v15712_v28, %v14080_v35  ;;  %v14522_v56 = vld [vmem:[#allocation9 + $0x70] sm:$0xf]  ;;  %v15811_v48 = vld [vmem:[#allocation9 + $0x74] sm:$0xf0]  ;;  %v17296_v28 = vld [vmem:[#allocation12] ss:$0 sm:$0xff] }
 0x7b0   :  { %v6887_v3 = vadd.f32 %v6886_v23, %v6798_v33  ;;  %7610 = vmatmul.bf16.gmra.mxu0 %v14063_v8  ;;  %v14087_v8 = vor.u32 %v15715_v50, %v14086_v30  ;;  %v15716_v35 = vld [vmem:[#allocation4 + $0x204] sm:$0xf]  ;;  %v14096_v30 = vld [vmem:[#allocation4 + $0x210] sm:$0xf0]  ;;  %v15719_v50 = vld [vmem:[#allocation4 + $0x214] sm:$0xf0] }
 0x7b1   :  { %7699 = vmatmul.bf16.gmra.mxu1 %v14067_v36 }
 0x7b2   :  { %v17288_v45 = vadd.f32 %v6887_v3, %v17192_v13  ;;  %7788 = vmatmul.bf16.gmra.mxu2 %v14071_v53  ;;  %v15713_v13 = vld [vmem:[#allocation4 + $0x1ec] sm:$0xf]  ;;  %v14523_v53 = vor.u32 %v15811_v48, %v14522_v56 }
 0x7b3   :  { %7877 = vmatmul.bf16.gmra.mxu3 %v14075_v42  ;;  %v14091_v36 = vor.u32 %v15713_v13, %v14088_v16  ;;  %v14524_v42 = vld [vmem:[#allocation9 + $0x78] sm:$0xf0]  ;;  %v15717_v13 = vld [vmem:[#allocation4 + $0x20c] sm:$0xf] }
 0x7b4   :  { %8644 = vmatpush.bf16.msra.mxu2 %v14523_v53  ;;  %v14104_v16 = vld [vmem:[#allocation4 + $0x218] sm:$0xf0]  ;;  %v14416_v56 = vld [vmem:[#allocation9 + $0xa8] sm:$0xf0] }
 0x7b5   :  { %v6800_v61 = vpop.f32.mrf.mxu2  ;;  %v6624_v58 = vpop.f32.mrf.mxu0 }
 0x7b6   :  { %v6889_v60 = vpop.f32.mrf.mxu3  ;;  %v6801_v55 = vadd.f32 %v6800_v61, %v6712_v24  ;;  %v6713_v57 = vpop.f32.mrf.mxu1 }
 0x7b7   :  { %v6714_v38 = vadd.f32 %v6713_v57, %v6624_v58 }
 0x7b8   :  { %v6890_v26 = vadd.f32 %v6889_v60, %v6801_v55 }
 0x7ba   :  { %v17291_v5 = vadd.f32 %v6890_v26, %v17195_v59  ;;  %v15810_v59 = vld [vmem:[#allocation9 + $0x74] sm:$0xf] }
 0x7bb   :  { %v14527_v3 = vor.u32 %v15810_v59, %v14524_v42 }
 0x7bd   :  { %v6802_v52 = vpop.f32.mrf.mxu2  ;;  %v7576_v14 = vpop.f32.mrf.mxu0  ;;  %8733 = vmatpush.bf16.msra.mxu3 %v14527_v3  ;;  %v14107_v3 = vor.u32 %v15717_v13, %v14104_v16 }
 0x7be   :  { %v6891_v27 = vpop.f32.mrf.mxu3  ;;  %v6803_v19 = vadd.f32 %v6802_v52, %v6714_v38  ;;  %v7665_v23 = vpop.f32.mrf.mxu1 }
 0x7bf   :  { %v7666_v61 = vadd.f32 %v7665_v23, %v7576_v14 }
 0x7c0   :  { %v6892_v33 = vadd.f32 %v6891_v27, %v6803_v19  ;;  %7615 = vmatmul.bf16.gmra.mxu0 %v14079_v34  ;;  %v14414_v34 = vld [vmem:[#allocation9 + $0xa0] sm:$0xf]  ;;  %v15816_v19 = vld [vmem:[#allocation9 + $0xa4] sm:$0xf] }
 0x7c1   :  { %7704 = vmatmul.bf16.gmra.mxu1 %v14083_v15  ;;  %v15817_v15 = vld [vmem:[#allocation9 + $0xa4] sm:$0xf0] }
 0x7c2   :  { %v17294_v24 = vadd.f32 %v6892_v33, %v17198_v39  ;;  %7793 = vmatmul.bf16.gmra.mxu2 %v14087_v8  ;;  %v14102_v39 = vld [vmem:[#allocation4 + $0x208] sm:$0xf]  ;;  %v14095_v8 = vor.u32 %v15718_v41, %v14094_v44  ;;  %v14415_v33 = vor.u32 %v15817_v15, %v14414_v34  ;;  %v15722_v34 = vld [vmem:[#allocation4 + $0x22c] sm:$0xf0]  ;;  %v15720_v15 = vld [vmem:[#allocation4 + $0x224] sm:$0xf] }
 0x7c3   :  { %7882 = vmatmul.bf16.gmra.mxu3 %v14091_v36  ;;  %v14099_v36 = vor.u32 %v15716_v35, %v14096_v30  ;;  %v14103_v42 = vor.u32 %v15719_v50, %v14102_v39 }
 0x7c4   :  { %8385 = vmatpush.bf16.msra.mxu0 %v14415_v33 }
 0x7c5   :  { %v7754_v60 = vpop.f32.mrf.mxu2  ;;  %v7578_v57 = vpop.f32.mrf.mxu0 }
 0x7c6   :  { %v7843_v55 = vpop.f32.mrf.mxu3  ;;  %v7755_v58 = vadd.f32 %v7754_v60, %v7666_v61  ;;  %v7667_v38 = vpop.f32.mrf.mxu1  ;;  %v14419_v61 = vor.u32 %v15816_v19, %v14416_v56  ;;  %v14112_v19 = vld [vmem:[#allocation4 + $0x230] sm:$0xf0] }
 0x7c7   :  { %v7668_v27 = vadd.f32 %v7667_v38, %v7578_v57 }
 0x7c8   :  { %v7844_v26 = vadd.f32 %v7843_v55, %v7755_v58  ;;  %8474 = vmatpush.bf16.msra.mxu1 %v14419_v61 }
 0x7ca   :  { %v7923_v52 = vadd.f32 %v7844_v26, %v17201_v31  ;;  %v17300_v31 = vld [vmem:[#allocation13] ss:$0 sm:$0xff] }
 0x7cc   :  { %v7959_v60 = vmul.f32 %v17296_v28, %v7923_v52 }
 0x7cd   :  { %v7756_v14 = vpop.f32.mrf.mxu2  ;;  %v7581_v59 = vpop.f32.mrf.mxu0 }
 0x7ce   :  { %v7845_v23 = vpop.f32.mrf.mxu3  ;;  %v7757_v48 = vadd.f32 %v7756_v14, %v7668_v27  ;;  %v7670_v53 = vpop.f32.mrf.mxu1  ;;  %v7995_v57 = vadd.f32 %v17300_v31, %v7959_v60  ;;  %v14110_v27 = vld [vmem:[#allocation4 + $0x220] sm:$0xf]  ;;  %v14118_v14 = vld [vmem:[#allocation4 + $0x228] sm:$0xf] }
 0x7cf   :  { %v7671_v26 = vadd.f32 %v7670_v53, %v7581_v59  ;;  %v14111_v53 = vor.u32 %v15722_v34, %v14110_v27 }
 0x7d0   :  { %v7846_v55 = vadd.f32 %v7845_v23, %v7757_v48  ;;  %7620 = vmatmul.bf16.gmra.mxu0 %v14095_v8  ;;  %v8027_v13 = vmax.f32 %v7995_v57, 0.0  ;;  %v15723_v23 = vld [vmem:[#allocation4 + $0x234] sm:$0xf0]  ;;  %v15721_v8 = vld [vmem:[#allocation4 + $0x22c] sm:$0xf] }
 0x7d1   :  { %7709 = vmatmul.bf16.gmra.mxu1 %v14099_v36  ;;  %v14120_v36 = vld [vmem:[#allocation4 + $0x238] sm:$0xf0] }
 0x7d2   :  { %v7924_v58 = vadd.f32 %v7846_v55, %v17204_v1  ;;  %7798 = vmatmul.bf16.gmra.mxu2 %v14103_v42  ;;  %v14115_v42 = vor.u32 %v15720_v15, %v14112_v19  ;;  %v14119_v55 = vor.u32 %v15723_v23, %v14118_v14 }
 0x7d3   :  { %7887 = vmatmul.bf16.gmra.mxu3 %v14107_v3 }
 0x7d4   :  { %v7960_v38 = vmul.f32 %v17296_v28, %v7924_v58  ;;  %v14123_v58 = vor.u32 %v15721_v8, %v14120_v36  ;;  %v14126_v8 = vld [vmem:[#allocation4 + $0x240] sm:$0xf]  ;;  %v15726_v36 = vld [vmem:[#allocation4 + $0x24c] sm:$0xf0] }
 0x7d5   :  { %v7759_v44 = vpop.f32.mrf.mxu2  ;;  %v7583_v39 = vpop.f32.mrf.mxu0 }
 0x7d6   :  { %v7848_v41 = vpop.f32.mrf.mxu3  ;;  %v7996_v35 = vadd.f32 %v17300_v31, %v7960_v38  ;;  %v7760_v30 = vadd.f32 %v7759_v44, %v7671_v26  ;;  %v7672_v50 = vpop.f32.mrf.mxu1  ;;  %v15809_v44 = vld [vmem:[#allocation9 + $0x64] sm:$0xf0] }
 0x7d7   :  { %v7673_v56 = vadd.f32 %v7672_v50, %v7583_v39 }
 0x7d8   :  { %v8028_v16 = vmax.f32 %v7996_v35, 0.0  ;;  %v7849_v52 = vadd.f32 %v7848_v41, %v7760_v30  ;;  %v15808_v41 = vld [vmem:[#allocation9 + $0x64] sm:$0xf] }
 0x7da   :  { %v15963_v1 = vpack.c.bf16 %v8028_v16, %v8027_v13  ;;  %v7925_v33 = vadd.f32 %v7849_v52, %v17207_v7  ;;  %v14514_v7 = vld [vmem:[#allocation9 + $0x60] sm:$0xf]  ;;  %v14516_v13 = vld [vmem:[#allocation9 + $0x68] sm:$0xf0] }
 0x7db   :  { %v14515_v50 = vor.u32 %v15809_v44, %v14514_v7  ;;  %v14519_v27 = vor.u32 %v15808_v41, %v14516_v13  ;;  %v15815_v13 = vld [vmem:[#allocation9 + $0x94] sm:$0xf0] }
 0x7dc   :  { %16040 = vst [vmem:[#allocation2 + $0x10] sm:$0xff] %v15963_v1   ;;  %v7961_v57 = vmul.f32 %v17296_v28, %v7925_v33 }
 0x7dd   :  { %v7761_v48 = vpop.f32.mrf.mxu2  ;;  %v7586_v61 = vpop.f32.mrf.mxu0  ;;  %8645 = vmatpush.bf16.msra.mxu2 %v14515_v50  ;;  %8734 = vmatpush.bf16.msra.mxu3 %v14519_v27 }
 0x7de   :  { %v7850_v59 = vpop.f32.mrf.mxu3  ;;  %v7762_v3 = vadd.f32 %v7761_v48, %v7673_v56  ;;  %v7675_v60 = vpop.f32.mrf.mxu1  ;;  %v7997_v35 = vadd.f32 %v17300_v31, %v7961_v57  ;;  %v15724_v56 = vld [vmem:[#allocation4 + $0x244] sm:$0xf]  ;;  %v14128_v48 = vld [vmem:[#allocation4 + $0x250] sm:$0xf0]  ;;  %v14127_v57 = vor.u32 %v15726_v36, %v14126_v8 }
 0x7df   :  { %v7676_v39 = vadd.f32 %v7675_v60, %v7586_v61 }
 0x7e0   :  { %v7851_v38 = vadd.f32 %v7850_v59, %v7762_v3  ;;  %7625 = vmatmul.bf16.gmra.mxu0 %v14111_v53  ;;  %v8029_v19 = vmax.f32 %v7997_v35, 0.0  ;;  %v14134_v59 = vld [vmem:[#allocation4 + $0x248] sm:$0xf]  ;;  %v15727_v53 = vld [vmem:[#allocation4 + $0x254] sm:$0xf0] }
 0x7e1   :  { %7714 = vmatmul.bf16.gmra.mxu1 %v14115_v42  ;;  %v15725_v42 = vld [vmem:[#allocation4 + $0x24c] sm:$0xf]  ;;  %v14136_v3 = vld [vmem:[#allocation4 + $0x258] sm:$0xf0]  ;;  %v14135_v41 = vor.u32 %v15727_v53, %v14134_v59  ;;  %v14142_v59 = vld [vmem:[#allocation4 + $0x260] sm:$0xf] }
 0x7e2   :  { %v7926_v26 = vadd.f32 %v7851_v38, %v17210_v47  ;;  %7803 = vmatmul.bf16.gmra.mxu2 %v14119_v55  ;;  %v14131_v38 = vor.u32 %v15724_v56, %v14128_v48  ;;  %v14139_v35 = vor.u32 %v15725_v42, %v14136_v3  ;;  %v15730_v53 = vld [vmem:[#allocation4 + $0x26c] sm:$0xf0]  ;;  %v15728_v3 = vld [vmem:[#allocation4 + $0x264] sm:$0xf] }
 0x7e3   :  { %7892 = vmatmul.bf16.gmra.mxu3 %v14123_v58 }
 0x7e4   :  { %v7962_v30 = vmul.f32 %v17296_v28, %v7926_v26 }
 0x7e5   :  { %v7764_v16 = vpop.f32.mrf.mxu2  ;;  %v7588_v15 = vpop.f32.mrf.mxu0 }
 0x7e6   :  { %v7853_v52 = vpop.f32.mrf.mxu3  ;;  %v7998_v34 = vadd.f32 %v17300_v31, %v7962_v30  ;;  %v7765_v1 = vadd.f32 %v7764_v16, %v7676_v39  ;;  %v7677_v47 = vpop.f32.mrf.mxu1  ;;  %v15814_v16 = vld [vmem:[#allocation9 + $0x94] sm:$0xf] }
 0x7e7   :  { %v7678_v60 = vadd.f32 %v7677_v47, %v7588_v15  ;;  %v14408_v15 = vld [vmem:[#allocation9 + $0x98] sm:$0xf0] }
 0x7e8   :  { %v8030_v14 = vmax.f32 %v7998_v34, 0.0  ;;  %v7854_v23 = vadd.f32 %v7853_v52, %v7765_v1 }
 0x7ea   :  { %v15968_v33 = vpack.c.bf16 %v8030_v14, %v8029_v19  ;;  %v7927_v61 = vadd.f32 %v7854_v23, %v17213_v43  ;;  %v14406_v43 = vld [vmem:[#allocation9 + $0x90] sm:$0xf]  ;;  %v14411_v14 = vor.u32 %v15814_v16, %v14408_v15 }
 0x7eb   :  { %v14407_v1 = vor.u32 %v15815_v13, %v14406_v43 }
 0x7ec   :  { %16041 = vst [vmem:[#allocation2 + $0x18] sm:$0xff] %v15968_v33   ;;  %v7963_v30 = vmul.f32 %v17296_v28, %v7927_v61  ;;  %8475 = vmatpush.bf16.msra.mxu1 %v14411_v14  ;;  %v14144_v61 = vld [vmem:[#allocation4 + $0x270] sm:$0xf0] }
 0x7ed   :  { %v7766_v55 = vpop.f32.mrf.mxu2  ;;  %v7591_v7 = vpop.f32.mrf.mxu0  ;;  %8386 = vmatpush.bf16.msra.mxu0 %v14407_v1  ;;  %v15806_v14 = vld [vmem:[#allocation9 + $0x54] sm:$0xf] }
 0x7ee   :  { %v7855_v58 = vpop.f32.mrf.mxu3  ;;  %v7767_v26 = vadd.f32 %v7766_v55, %v7678_v60  ;;  %v7680_v44 = vpop.f32.mrf.mxu1  ;;  %v7999_v52 = vadd.f32 %v17300_v31, %v7963_v30  ;;  %v14150_v60 = vld [vmem:[#allocation4 + $0x268] sm:$0xf]  ;;  %v15731_v55 = vld [vmem:[#allocation4 + $0x274] sm:$0xf0] }
 0x7ef   :  { %v7681_v34 = vadd.f32 %v7680_v44, %v7591_v7  ;;  %v14151_v43 = vor.u32 %v15731_v55, %v14150_v60  ;;  %v15732_v55 = vld [vmem:[#allocation4 + $0x284] sm:$0xf] }
 0x7f0   :  { %v7856_v39 = vadd.f32 %v7855_v58, %v7767_v26  ;;  %7630 = vmatmul.bf16.gmra.mxu0 %v14127_v57  ;;  %v8031_v33 = vmax.f32 %v7999_v52, 0.0  ;;  %v15729_v58 = vld [vmem:[#allocation4 + $0x26c] sm:$0xf]  ;;  %v14152_v57 = vld [vmem:[#allocation4 + $0x278] sm:$0xf0] }
 0x7f1   :  { %7719 = vmatmul.bf16.gmra.mxu1 %v14131_v38  ;;  %v14155_v13 = vor.u32 %v15729_v58, %v14152_v57  ;;  %v14160_v58 = vld [vmem:[#allocation4 + $0x290] sm:$0xf0]  ;;  %v14166_v57 = vld [vmem:[#allocation4 + $0x288] sm:$0xf] }
 0x7f2   :  { %v7928_v50 = vadd.f32 %v7856_v39, %v17216_v46  ;;  %7808 = vmatmul.bf16.gmra.mxu2 %v14135_v41  ;;  %v14143_v41 = vor.u32 %v15730_v53, %v14142_v59 }
 0x7f3   :  { %7897 = vmatmul.bf16.gmra.mxu3 %v14139_v35  ;;  %v14147_v35 = vor.u32 %v15728_v3, %v14144_v61  ;;  %v14158_v3 = vld [vmem:[#allocation4 + $0x280] sm:$0xf]  ;;  %v15734_v61 = vld [vmem:[#allocation4 + $0x28c] sm:$0xf0] }
 0x7f4   :  { %v7964_v27 = vmul.f32 %v17296_v28, %v7928_v50 }
 0x7f5   :  { %v7769_v47 = vpop.f32.mrf.mxu2  ;;  %v7593_v36 = vpop.f32.mrf.mxu0 }
 0x7f6   :  { %v7858_v19 = vpop.f32.mrf.mxu3  ;;  %v8000_v23 = vadd.f32 %v17300_v31, %v7964_v27  ;;  %v7770_v8 = vadd.f32 %v7769_v47, %v7681_v34  ;;  %v7682_v46 = vpop.f32.mrf.mxu1  ;;  %v15807_v34 = vld [vmem:[#allocation9 + $0x54] sm:$0xf0] }
 0x7f7   :  { %v7683_v26 = vadd.f32 %v7682_v46, %v7593_v36 }
 0x7f8   :  { %v8032_v56 = vmax.f32 %v8000_v23, 0.0  ;;  %v7859_v48 = vadd.f32 %v7858_v19, %v7770_v8  ;;  %v14508_v23 = vld [vmem:[#allocation9 + $0x58] sm:$0xf0] }
 0x7f9   :  { %v14511_v46 = vor.u32 %v15806_v14, %v14508_v23 }
 0x7fa   :  { %v15973_v42 = vpack.c.bf16 %v8032_v56, %v8031_v33  ;;  %v7929_v38 = vadd.f32 %v7859_v48, %v17219_v18  ;;  %v14506_v18 = vld [vmem:[#allocation9 + $0x50] sm:$0xf] }
 0x7fb   :  { %v14507_v19 = vor.u32 %v15807_v34, %v14506_v18  ;;  %8735 = vmatpush.bf16.msra.mxu3 %v14511_v46  ;;  %v15802_v46 = vld [vmem:[#allocation9 + $0x34] sm:$0xf] }
 0x7fc   :  { %16042 = vst [vmem:[#allocation2 + $0x20] sm:$0xff] %v15973_v42   ;;  %v7965_v16 = vmul.f32 %v17296_v28, %v7929_v38 }
 0x7fd   :  { %v7771_v7 = vpop.f32.mrf.mxu2  ;;  %v7596_v39 = vpop.f32.mrf.mxu0  ;;  %8646 = vmatpush.bf16.msra.mxu2 %v14507_v19 }
 0x7fe   :  { %v7860_v44 = vpop.f32.mrf.mxu3  ;;  %v7772_v30 = vadd.f32 %v7771_v7, %v7683_v26  ;;  %v7685_v50 = vpop.f32.mrf.mxu1  ;;  %v8001_v1 = vadd.f32 %v17300_v31, %v7965_v16  ;;  %v15735_v26 = vld [vmem:[#allocation4 + $0x294] sm:$0xf0]  ;;  %v15733_v7 = vld [vmem:[#allocation4 + $0x28c] sm:$0xf] }
 0x7ff   :  { %v7686_v47 = vadd.f32 %v7685_v50, %v7596_v39 }
 0x800   :  { %v7861_v52 = vadd.f32 %v7860_v44, %v7772_v30  ;;  %7635 = vmatmul.bf16.gmra.mxu0 %v14143_v41  ;;  %v8033_v59 = vmax.f32 %v8001_v1, 0.0  ;;  %v14168_v44 = vld [vmem:[#allocation4 + $0x298] sm:$0xf0]  ;;  %v15805_v30 = vld [vmem:[#allocation9 + $0x44] sm:$0xf0] }
 0x801   :  { %7724 = vmatmul.bf16.gmra.mxu1 %v14147_v35  ;;  %v14498_v35 = vld [vmem:[#allocation9 + $0x40] sm:$0xf] }
 0x802   :  { %v7930_v27 = vadd.f32 %v7861_v52, %v17222_v21  ;;  %7813 = vmatmul.bf16.gmra.mxu2 %v14151_v43  ;;  %v14159_v43 = vor.u32 %v15734_v61, %v14158_v3  ;;  %v14499_v16 = vor.u32 %v15805_v30, %v14498_v35  ;;  %v15804_v52 = vld [vmem:[#allocation9 + $0x44] sm:$0xf]  ;;  %v14400_v61 = vld [vmem:[#allocation9 + $0x88] sm:$0xf0] }
 0x803   :  { %7902 = vmatmul.bf16.gmra.mxu3 %v14155_v13  ;;  %v14163_v13 = vor.u32 %v15732_v55, %v14160_v58  ;;  %v15812_v3 = vld [vmem:[#allocation9 + $0x84] sm:$0xf] }
 0x804   :  { %v7966_v15 = vmul.f32 %v17296_v28, %v7930_v27  ;;  %v14500_v27 = vld [vmem:[#allocation9 + $0x48] sm:$0xf0]  ;;  %8647 = vmatpush.bf16.msra.mxu2 %v14499_v16 }
 0x805   :  { %v7774_v8 = vpop.f32.mrf.mxu2  ;;  %v7598_v48 = vpop.f32.mrf.mxu0 }
 0x806   :  { %v7863_v36 = vpop.f32.mrf.mxu3  ;;  %v8002_v33 = vadd.f32 %v17300_v31, %v7966_v15  ;;  %v7775_v56 = vadd.f32 %v7774_v8, %v7686_v47  ;;  %v7687_v21 = vpop.f32.mrf.mxu1  ;;  %v14167_v15 = vor.u32 %v15735_v26, %v14166_v57  ;;  %v14171_v47 = vor.u32 %v15733_v7, %v14168_v44  ;;  %v14490_v8 = vld [vmem:[#allocation9 + $0x30] sm:$0xf]  ;;  %v15801_v26 = vld [vmem:[#allocation9 + $0x24] sm:$0xf0]  ;;  %v15800_v7 = vld [vmem:[#allocation9 + $0x24] sm:$0xf] }
 0x807   :  { %v7688_v41 = vadd.f32 %v7687_v21, %v7598_v48  ;;  %v15813_v48 = vld [vmem:[#allocation9 + $0x84] sm:$0xf0] }
 0x808   :  { %v8034_v53 = vmax.f32 %v8002_v33, 0.0  ;;  %v7864_v42 = vadd.f32 %v7863_v36, %v7775_v56  ;;  %v15803_v36 = vld [vmem:[#allocation9 + $0x34] sm:$0xf0]  ;;  %v14398_v56 = vld [vmem:[#allocation9 + $0x80] sm:$0xf] }
 0x809   :  { %v14491_v21 = vor.u32 %v15803_v36, %v14490_v8  ;;  %v14182_v36 = vld [vmem:[#allocation4 + $0x2a8] sm:$0xf] }
 0x80a   :  { %v15978_v60 = vpack.c.bf16 %v8034_v53, %v8033_v59  ;;  %v7931_v38 = vadd.f32 %v7864_v42, %v17225_v11  ;;  %v14503_v11 = vor.u32 %v15804_v52, %v14500_v27  ;;  %v14399_v42 = vor.u32 %v15813_v48, %v14398_v56  ;;  %v14174_v27 = vld [vmem:[#allocation4 + $0x2a0] sm:$0xf]  ;;  %v14184_v56 = vld [vmem:[#allocation4 + $0x2b8] sm:$0xf0] }
 0x80b   :  { %8648 = vmatpush.bf16.msra.mxu2 %v14491_v21 }
 0x80c   :  { %16043 = vst [vmem:[#allocation2 + $0x28] sm:$0xff] %v15978_v60   ;;  %v7967_v19 = vmul.f32 %v17296_v28, %v7931_v38  ;;  %8736 = vmatpush.bf16.msra.mxu3 %v14503_v11  ;;  %v14492_v60 = vld [vmem:[#allocation9 + $0x38] sm:$0xf0]  ;;  %v14482_v38 = vld [vmem:[#allocation9 + $0x20] sm:$0xf]  ;;  %8387 = vmatpush.bf16.msra.mxu0 %v14399_v42 }
 0x80d   :  { %v7776_v39 = vpop.f32.mrf.mxu2  ;;  %v7601_v34 = vpop.f32.mrf.mxu0  ;;  %v14495_v57 = vor.u32 %v15802_v46, %v14492_v60  ;;  %v15739_v46 = vld [vmem:[#allocation4 + $0x2b4] sm:$0xf0]  ;;  %v15797_v42 = vld [vmem:[#allocation9 + $0x4] sm:$0xf0] }
 0x80e   :  { %v7865_v50 = vpop.f32.mrf.mxu3  ;;  %v7777_v18 = vadd.f32 %v7776_v39, %v7688_v41  ;;  %v7690_v1 = vpop.f32.mrf.mxu1  ;;  %v8003_v33 = vadd.f32 %v17300_v31, %v7967_v19  ;;  %v14483_v39 = vor.u32 %v15801_v26, %v14482_v38  ;;  %v15798_v19 = vld [vmem:[#allocation9 + $0x14] sm:$0xf] }
 0x80f   :  { %v7691_v53 = vadd.f32 %v7690_v1, %v7601_v34  ;;  %v15736_v34 = vld [vmem:[#allocation4 + $0x2a4] sm:$0xf]  ;;  %v14176_v1 = vld [vmem:[#allocation4 + $0x2b0] sm:$0xf0] }
 0x810   :  { %v7866_v14 = vadd.f32 %v7865_v50, %v7777_v18  ;;  %7640 = vmatmul.bf16.gmra.mxu0 %v14159_v43  ;;  %v14484_v50 = vld [vmem:[#allocation9 + $0x28] sm:$0xf0]  ;;  %v8035_v43 = vmax.f32 %v8003_v33, 0.0  ;;  %8737 = vmatpush.bf16.msra.mxu3 %v14495_v57  ;;  %v15738_v18 = vld [vmem:[#allocation4 + $0x2ac] sm:$0xf0] }
 0x811   :  { %7729 = vmatmul.bf16.gmra.mxu1 %v14163_v13  ;;  %v14487_v13 = vor.u32 %v15800_v7, %v14484_v50  ;;  %8649 = vmatpush.bf16.msra.mxu2 %v14483_v39  ;;  %v15737_v33 = vld [vmem:[#allocation4 + $0x2ac] sm:$0xf]  ;;  %v14175_v60 = vor.u32 %v15738_v18, %v14174_v27  ;;  %v14183_v7 = vor.u32 %v15739_v46, %v14182_v36  ;;  %v14192_v36 = vld [vmem:[#allocation4 + $0x2d0] sm:$0xf0]  ;;  %v14198_v46 = vld [vmem:[#allocation4 + $0x2c8] sm:$0xf] }
 0x812   :  { %v7932_v23 = vadd.f32 %v7866_v14, %v17228_v49  ;;  %7818 = vmatmul.bf16.gmra.mxu2 %v14167_v15  ;;  %v14403_v49 = vor.u32 %v15812_v3, %v14400_v61  ;;  %v14474_v15 = vld [vmem:[#allocation9 + $0x10] sm:$0xf]  ;;  %v14476_v14 = vld [vmem:[#allocation9 + $0x18] sm:$0xf0] }
 0x813   :  { %7907 = vmatmul.bf16.gmra.mxu3 %v14171_v47  ;;  %v15799_v47 = vld [vmem:[#allocation9 + $0x14] sm:$0xf0]  ;;  %v14479_v48 = vor.u32 %v15798_v19, %v14476_v14  ;;  %v15742_v19 = vld [vmem:[#allocation4 + $0x2cc] sm:$0xf0] }
 0x814   :  { %v7968_v59 = vmul.f32 %v17296_v28, %v7932_v23  ;;  %8476 = vmatpush.bf16.msra.mxu1 %v14403_v49  ;;  %v14475_v11 = vor.u32 %v15799_v47, %v14474_v15  ;;  %v16322_v23 = vmov 0   ;;  %8738 = vmatpush.bf16.msra.mxu3 %v14487_v13  ;;  %v14468_v49 = vld [vmem:[#allocation9 + $0x8] sm:$0xf0] }
 0x815   :  { %v7779_v55 = vpop.f32.mrf.mxu2  ;;  %v7603_v35 = vpop.f32.mrf.mxu0  ;;  %8061 = vst [vmem:[#allocation2 + $0x8] sm:$0xf] %v16322_v23 }
 0x816   :  { %v7868_v58 = vpop.f32.mrf.mxu3  ;;  %v8004_v44 = vadd.f32 %v17300_v31, %v7968_v59  ;;  %v7780_v41 = vadd.f32 %v7779_v55, %v7691_v53  ;;  %v7692_v30 = vpop.f32.mrf.mxu1  ;;  %8062 = vst [vmem:[#allocation2 + $0xc] sm:$0xf] %v16322_v23  ;;  %v14466_v53 = vld [vmem:[#allocation9] sm:$0xf]  ;;  %v14179_v55 = vor.u32 %v15736_v34, %v14176_v1  ;;  %8650 = vmatpush.bf16.msra.mxu2 %v14475_v11 }
 0x817   :  { %8059 = vst [vmem:[#allocation2] sm:$0xf] %v16322_v23  ;;  %v7693_v59 = vadd.f32 %v7692_v30, %v7603_v35  ;;  %v14190_v11 = vld [vmem:[#allocation4 + $0x2c0] sm:$0xf] }
 0x818   :  { %v8036_v16 = vmax.f32 %v8004_v44, 0.0  ;;  %v7869_v52 = vadd.f32 %v7868_v58, %v7780_v41  ;;  %v15796_v58 = vld [vmem:[#allocation9 + $0x4] sm:$0xf]  ;;  %8060 = vst [vmem:[#allocation2 + $0x4] sm:$0xf] %v16322_v23  ;;  %v14187_v44 = vor.u32 %v15737_v33, %v14184_v56  ;;  %8739 = vmatpush.bf16.msra.mxu3 %v14479_v48  ;;  %v14467_v41 = vor.u32 %v15797_v42, %v14466_v53 }
 0x819   :  { %8063 = vst [vmem:[#allocation2 + $0x90] sm:$0xf] %v16322_v23  ;;  %v15743_v33 = vld [vmem:[#allocation4 + $0x2d4] sm:$0xf0]  ;;  %v15741_v56 = vld [vmem:[#allocation4 + $0x2cc] sm:$0xf]  ;;  %v14191_v42 = vor.u32 %v15742_v19, %v14190_v11 }
 0x81a   :  { %v15983_v8 = vpack.c.bf16 %v8036_v16, %v8035_v43  ;;  %v7933_v21 = vadd.f32 %v7869_v52, %v17231_v9  ;;  %v14471_v9 = vor.u32 %v15796_v58, %v14468_v49  ;;  %8064 = vst [vmem:[#allocation2 + $0x94] sm:$0xf] %v16322_v23  ;;  %8651 = vmatpush.bf16.msra.mxu2 %v14467_v41  ;;  %v14200_v48 = vld [vmem:[#allocation4 + $0x2d8] sm:$0xf0] }
 0x81b   :  { %8065 = vst [vmem:[#allocation2 + $0x98] sm:$0xf] %v16322_v23  ;;  %v14199_v58 = vor.u32 %v15743_v33, %v14198_v46  ;;  %v14203_v49 = vor.u32 %v15741_v56, %v14200_v48 }
 0x81c   :  { %16044 = vst [vmem:[#allocation2 + $0x30] sm:$0xff] %v15983_v8   ;;  %v7969_v35 = vmul.f32 %v17296_v28, %v7933_v21  ;;  %8740 = vmatpush.bf16.msra.mxu3 %v14471_v9  ;;  %v15740_v8 = vld [vmem:[#allocation4 + $0x2c4] sm:$0xf] }
 0x81d   :  { %v7781_v3 = vpop.f32.mrf.mxu2  ;;  %v7606_v38 = vpop.f32.mrf.mxu0  ;;  %8066 = vst [vmem:[#allocation2 + $0x9c] sm:$0xf] %v16322_v23 }
 0x81e   :  { %v7870_v61 = vpop.f32.mrf.mxu3  ;;  %v7782_v57 = vadd.f32 %v7781_v3, %v7693_v59  ;;  %v7695_v26 = vpop.f32.mrf.mxu1  ;;  %10061 = vst [vmem:[#allocation3] sm:$0xff] %v16322_v23  ;;  %v8005_v50 = vadd.f32 %v17300_v31, %v7969_v35  ;;  %v14195_v3 = vor.u32 %v15740_v8, %v14192_v36 }
 0x81f   :  { %10062 = vst [vmem:[#allocation3 + $0x8] sm:$0xff] %v16322_v23  ;;  %v7696_v13 = vadd.f32 %v7695_v26, %v7606_v38  ;;  %v15776_v33 = vld [vmem:[#allocation2] sm:$0xff] }
 0x820   :  { %v7871_v30 = vadd.f32 %v7870_v61, %v7782_v57  ;;  %7645 = vmatmul.bf16.gmra.mxu0 %v14175_v60  ;;  %10063 = vst [vmem:[#allocation3 + $0x110] sm:$0xff] %v16322_v23  ;;  %v8037_v1 = vmax.f32 %v8005_v50, 0.0 }
 0x821   :  { %7734 = vmatmul.bf16.gmra.mxu1 %v14179_v55  ;;  %10064 = vst [vmem:[#allocation3 + $0x118] sm:$0xff] %v16322_v23 }
 0x822   :  { %v7934_v39 = vadd.f32 %v7871_v30, %v17234_v62  ;;  %7823 = vmatmul.bf16.gmra.mxu2 %v14183_v7  ;;  %v15843_v7 = vld [vmem:[#allocation9 + $0x174] sm:$0xf0]  ;;  %v15842_v30 = vld [vmem:[#allocation9 + $0x174] sm:$0xf] }
 0x823   :  { %7912 = vmatmul.bf16.gmra.mxu3 %v14187_v44 }
 0x824   :  { %v7970_v43 = vmul.f32 %v17296_v28, %v7934_v39  ;;  %v14592_v39 = vld [vmem:[#allocation9 + $0x178] sm:$0xf0] }
 0x825   :  { %v7784_v16 = vpop.f32.mrf.mxu2  ;;  %v7608_v34 = vpop.f32.mrf.mxu0 }
 0x826   :  { %v7873_v52 = vpop.f32.mrf.mxu3  ;;  %v8006_v27 = vadd.f32 %v17300_v31, %v7970_v43  ;;  %v7785_v18 = vadd.f32 %v7784_v16, %v7696_v13  ;;  %v7697_v62 = vpop.f32.mrf.mxu1  ;;  %v14595_v13 = vor.u32 %v15842_v30, %v14592_v39 }
 0x827   :  { %v7698_v21 = vadd.f32 %v7697_v62, %v7608_v34 }
 0x828   :  { %v8038_v15 = vmax.f32 %v8006_v27, 0.0  ;;  %v7874_v47 = vadd.f32 %v7873_v52, %v7785_v18  ;;  %9014 = vmatpush.bf16.msrb.mxu1 %v14595_v13 }
 0x82a   :  { %v15988_v14 = vpack.c.bf16 %v8038_v15, %v8037_v1  ;;  %v7935_v23 = vadd.f32 %v7874_v47, %v17237_v25  ;;  %v14590_v25 = vld [vmem:[#allocation9 + $0x170] sm:$0xf] }
 0x82b   :  { %v14591_v35 = vor.u32 %v15843_v7, %v14590_v25 }
 0x82c   :  { %16045 = vst [vmem:[#allocation2 + $0x38] sm:$0xff] %v15988_v14   ;;  %v7971_v57 = vmul.f32 %v17296_v28, %v7935_v23  ;;  %v15777_v14 = vld [vmem:[#allocation2 + $0x8] sm:$0xff] }
 0x82d   :  { %v7786_v59 = vpop.f32.mrf.mxu2  ;;  %v7611_v60 = vpop.f32.mrf.mxu0  ;;  %8925 = vmatpush.bf16.msrb.mxu0 %v14591_v35  ;;  %v17349_v35 = vld [vmem:[#allocation2 + $0x10] sm:$0xff] }
 0x82e   :  { %v7875_v53 = vpop.f32.mrf.mxu3  ;;  %v7787_v61 = vadd.f32 %v7786_v59, %v7698_v21  ;;  %v7700_v55 = vpop.f32.mrf.mxu1  ;;  %v8007_v44 = vadd.f32 %v17300_v31, %v7971_v57 }
 0x82f   :  { %v7701_v9 = vadd.f32 %v7700_v55, %v7611_v60 }
 0x830   :  { %v7876_v38 = vadd.f32 %v7875_v53, %v7787_v61  ;;  %7650 = vmatmul.bf16.gmra.mxu0 %v14191_v42  ;;  %v8039_v18 = vmax.f32 %v8007_v44, 0.0 }
 0x831   :  { %7739 = vmatmul.bf16.gmra.mxu1 %v14195_v3 }
 0x832   :  { %v7936_v26 = vadd.f32 %v7876_v38, %v17240_v37  ;;  %7828 = vmatmul.bf16.gmra.mxu2 %v14199_v58 }
 0x833   :  { %7917 = vmatmul.bf16.gmra.mxu3 %v14203_v49 }
 0x834   :  { %v7972_v41 = vmul.f32 %v17296_v28, %v7936_v26 }
 0x835   :  { %v7789_v50 = vpop.f32.mrf.mxu2  ;;  %v7613_v27 = vpop.f32.mrf.mxu0 }
 0x836   :  { %v7878_v43 = vpop.f32.mrf.mxu3  ;;  %v8008_v16 = vadd.f32 %v17300_v31, %v7972_v41  ;;  %v7790_v52 = vadd.f32 %v7789_v50, %v7701_v9  ;;  %v7702_v37 = vpop.f32.mrf.mxu1 }
 0x837   :  { %v7703_v47 = vadd.f32 %v7702_v37, %v7613_v27  ;;  %v15840_v37 = vld [vmem:[#allocation9 + $0x164] sm:$0xf] }
 0x838   :  { %v8040_v34 = vmax.f32 %v8008_v16, 0.0  ;;  %v7879_v62 = vadd.f32 %v7878_v43, %v7790_v52  ;;  %v15841_v43 = vld [vmem:[#allocation9 + $0x164] sm:$0xf0] }
 0x83a   :  { %v15993_v1 = vpack.c.bf16 %v8040_v34, %v8039_v18  ;;  %v7937_v15 = vadd.f32 %v7879_v62, %v17243_v54  ;;  %v14584_v18 = vld [vmem:[#allocation9 + $0x168] sm:$0xf0] }
 0x83c   :  { %16046 = vst [vmem:[#allocation2 + $0x40] sm:$0xff] %v15993_v1   ;;  %v7973_v56 = vmul.f32 %v17296_v28, %v7937_v15  ;;  %v14587_v1 = vor.u32 %v15840_v37, %v14584_v18 }
 0x83d   :  { %v7791_v11 = vpop.f32.mrf.mxu2  ;;  %v7616_v36 = vpop.f32.mrf.mxu0 }
 0x83e   :  { %v7880_v19 = vpop.f32.mrf.mxu3  ;;  %v7792_v8 = vadd.f32 %v7791_v11, %v7703_v47  ;;  %v7705_v46 = vpop.f32.mrf.mxu1  ;;  %v8009_v21 = vadd.f32 %v17300_v31, %v7973_v56  ;;  %9015 = vmatpush.bf16.msrb.mxu1 %v14587_v1  ;;  %v15838_v1 = vld [vmem:[#allocation9 + $0x154] sm:$0xf] }
 0x83f   :  { %v7706_v59 = vadd.f32 %v7705_v46, %v7616_v36 }
 0x840   :  { %v7881_v48 = vadd.f32 %v7880_v19, %v7792_v8  ;;  %8388 = vmatmul.bf16.vlgmr.msra.gmra.mxu0 %v15777_v14  ;;  %v8041_v58 = vmax.f32 %v8009_v21, 0.0 }
 0x841   :  { %8477 = vmatmul.bf16.vlgmr.msra.gmra.mxu1 %v15777_v14 }
 0x842   :  { %v7938_v23 = vadd.f32 %v7881_v48, %v17246_v10  ;;  %8652 = vmatmul.bf16.vlgmr.msra.gmra.mxu2 %v15776_v33 }
 0x843   :  { %8741 = vmatmul.bf16.vlgmr.msra.gmra.mxu3 %v15776_v33 }
 0x844   :  { %v7974_v54 = vmul.f32 %v17296_v28, %v7938_v23 }
 0x845   :  { %v7794_v53 = vpop.f32.mrf.mxu2  ;;  %v7618_v60 = vpop.f32.mrf.mxu0 }
 0x846   :  { %v7883_v42 = vpop.f32.mrf.mxu3  ;;  %v8010_v3 = vadd.f32 %v17300_v31, %v7974_v54  ;;  %v7795_v61 = vadd.f32 %v7794_v53, %v7706_v59  ;;  %v7707_v55 = vpop.f32.mrf.mxu1  ;;  %v17359_v59 = vld [vmem:[#allocation2 + $0x18] sm:$0xff] }
 0x847   :  { %v7708_v26 = vadd.f32 %v7707_v55, %v7618_v60 }
 0x848   :  { %v8042_v49 = vmax.f32 %v8010_v3, 0.0  ;;  %v7884_v57 = vadd.f32 %v7883_v42, %v7795_v61 }
 0x84a   :  { %v15998_v38 = vpack.c.bf16 %v8042_v49, %v8041_v58  ;;  %v7939_v10 = vadd.f32 %v7884_v57, %v17249_v29  ;;  %v14582_v29 = vld [vmem:[#allocation9 + $0x160] sm:$0xf] }
 0x84b   :  { %v14583_v27 = vor.u32 %v15841_v43, %v14582_v29  ;;  %v17371_v43 = vld [vmem:[#allocation2 + $0x20] sm:$0xff] }
 0x84c   :  { %16047 = vst [vmem:[#allocation2 + $0x48] sm:$0xff] %v15998_v38   ;;  %v7975_v30 = vmul.f32 %v17296_v28, %v7939_v10 }
 0x84d   :  { %v7796_v25 = vpop.f32.mrf.mxu2  ;;  %v7621_v41 = vpop.f32.mrf.mxu0  ;;  %8926 = vmatpush.bf16.msrb.mxu0 %v14583_v27  ;;  %v15839_v27 = vld [vmem:[#allocation9 + $0x154] sm:$0xf0] }
 0x84e   :  { %v7885_v7 = vpop.f32.mrf.mxu3  ;;  %v7797_v44 = vadd.f32 %v7796_v25, %v7708_v26  ;;  %v7710_v9 = vpop.f32.mrf.mxu1  ;;  %v8011_v13 = vadd.f32 %v17300_v31, %v7975_v30 }
 0x84f   :  { %v7711_v52 = vadd.f32 %v7710_v9, %v7621_v41 }
 0x850   :  { %v7886_v39 = vadd.f32 %v7885_v7, %v7797_v44  ;;  %8393 = vmatmul.bf16.gmra.mxu0 %v17349_v35  ;;  %v8043_v19 = vmax.f32 %v8011_v13, 0.0 }
 0x851   :  { %8482 = vmatmul.bf16.gmra.mxu1 %v17349_v35 }
 0x852   :  { %v7940_v50 = vadd.f32 %v7886_v39, %v17252_v4  ;;  %8657 = vmatmul.bf16.gmra.mxu2 %v15777_v14 }
 0x853   :  { %8746 = vmatmul.bf16.gmra.mxu3 %v15777_v14 }
 0x854   :  { %v7976_v16 = vmul.f32 %v17296_v28, %v7940_v50 }
 0x855   :  { %v7799_v34 = vpop.f32.mrf.mxu2  ;;  %v7623_v11 = vpop.f32.mrf.mxu0 }
 0x856   :  { %v7888_v62 = vpop.f32.mrf.mxu3  ;;  %v8012_v15 = vadd.f32 %v17300_v31, %v7976_v16  ;;  %v7800_v47 = vadd.f32 %v7799_v34, %v7711_v52  ;;  %v7712_v4 = vpop.f32.mrf.mxu1 }
 0x857   :  { %v7713_v33 = vadd.f32 %v7712_v4, %v7623_v11 }
 0x858   :  { %v8044_v14 = vmax.f32 %v8012_v15, 0.0  ;;  %v7889_v8 = vadd.f32 %v7888_v62, %v7800_v47  ;;  %v14576_v15 = vld [vmem:[#allocation9 + $0x158] sm:$0xf0] }
 0x859   :  { %v14579_v4 = vor.u32 %v15838_v1, %v14576_v15 }
 0x85a   :  { %v16003_v36 = vpack.c.bf16 %v8044_v14, %v8043_v19  ;;  %v7941_v46 = vadd.f32 %v7889_v8, %v17255_v20 }
 0x85b   :  { %9016 = vmatpush.bf16.msrb.mxu1 %v14579_v4 }
 0x85c   :  { %16048 = vst [vmem:[#allocation2 + $0x50] sm:$0xff] %v16003_v36   ;;  %v7977_v53 = vmul.f32 %v17296_v28, %v7941_v46 }
 0x85d   :  { %v7801_v56 = vpop.f32.mrf.mxu2  ;;  %v7626_v21 = vpop.f32.mrf.mxu0 }
 0x85e   :  { %v7890_v48 = vpop.f32.mrf.mxu3  ;;  %v7802_v23 = vadd.f32 %v7801_v56, %v7713_v33  ;;  %v7715_v54 = vpop.f32.mrf.mxu1  ;;  %v8013_v20 = vadd.f32 %v17300_v31, %v7977_v53 }
 0x85f   :  { %v7716_v60 = vadd.f32 %v7715_v54, %v7626_v21 }
 0x860   :  { %v7891_v42 = vadd.f32 %v7890_v48, %v7802_v23  ;;  %8398 = vmatmul.bf16.gmra.mxu0 %v17359_v59  ;;  %v8045_v26 = vmax.f32 %v8013_v20, 0.0  ;;  %v17385_v20 = vld [vmem:[#allocation12] ss:$0 sm:$0xff] }
 0x861   :  { %8487 = vmatmul.bf16.gmra.mxu1 %v17359_v59 }
 0x862   :  { %v7942_v3 = vadd.f32 %v7891_v42, %v17258_v17  ;;  %8662 = vmatmul.bf16.gmra.mxu2 %v17349_v35 }
 0x863   :  { %8751 = vmatmul.bf16.gmra.mxu3 %v17349_v35 }
 0x864   :  { %v7978_v61 = vmul.f32 %v17296_v28, %v7942_v3  ;;  %v17383_v3 = vld [vmem:[#allocation2 + $0x28] sm:$0xff] }
 0x865   :  { %v7804_v55 = vpop.f32.mrf.mxu2  ;;  %v7628_v38 = vpop.f32.mrf.mxu0 }
 0x866   :  { %v7893_v58 = vpop.f32.mrf.mxu3  ;;  %v8014_v49 = vadd.f32 %v17300_v31, %v7978_v61  ;;  %v7805_v57 = vadd.f32 %v7804_v55, %v7716_v60  ;;  %v7717_v10 = vpop.f32.mrf.mxu1 }
 0x867   :  { %v7718_v41 = vadd.f32 %v7717_v10, %v7628_v38 }
 0x868   :  { %v8046_v25 = vmax.f32 %v8014_v49, 0.0  ;;  %v7894_v7 = vadd.f32 %v7893_v58, %v7805_v57 }
 0x86a   :  { %v16008_v17 = vpack.c.bf16 %v8046_v25, %v8045_v26  ;;  %v7943_v44 = vadd.f32 %v7894_v7, %v17261_v2  ;;  %v14574_v2 = vld [vmem:[#allocation9 + $0x150] sm:$0xf] }
 0x86b   :  { %v14575_v62 = vor.u32 %v15839_v27, %v14574_v2 }
 0x86c   :  { %16049 = vst [vmem:[#allocation2 + $0x58] sm:$0xff] %v16008_v17   ;;  %v7979_v13 = vmul.f32 %v17296_v28, %v7943_v44 }
 0x86d   :  { %v7806_v9 = vpop.f32.mrf.mxu2  ;;  %v7631_v50 = vpop.f32.mrf.mxu0  ;;  %8927 = vmatpush.bf16.msrb.mxu0 %v14575_v62 }
 0x86e   :  { %v7895_v30 = vpop.f32.mrf.mxu3  ;;  %v7807_v39 = vadd.f32 %v7806_v9, %v7718_v41  ;;  %v7720_v29 = vpop.f32.mrf.mxu1  ;;  %v8015_v37 = vadd.f32 %v17300_v31, %v7979_v13 }
 0x86f   :  { %v7721_v34 = vadd.f32 %v7720_v29, %v7631_v50 }
 0x870   :  { %v7896_v16 = vadd.f32 %v7895_v30, %v7807_v39  ;;  %8403 = vmatmul.bf16.gmra.mxu0 %v17371_v43  ;;  %v8047_v36 = vmax.f32 %v8015_v37, 0.0  ;;  %v15837_v37 = vld [vmem:[#allocation9 + $0x144] sm:$0xf0] }
 0x871   :  { %8492 = vmatmul.bf16.gmra.mxu1 %v17371_v43 }
 0x872   :  { %v7944_v52 = vadd.f32 %v7896_v16, %v17264_v40  ;;  %8667 = vmatmul.bf16.gmra.mxu2 %v17359_v59 }
 0x873   :  { %8756 = vmatmul.bf16.gmra.mxu3 %v17359_v59 }
 0x874   :  { %v7980_v18 = vmul.f32 %v17296_v28, %v7944_v52  ;;  %v17397_v52 = vld [vmem:[#allocation2 + $0x30] sm:$0xff] }
 0x875   :  { %v7809_v47 = vpop.f32.mrf.mxu2  ;;  %v7633_v14 = vpop.f32.mrf.mxu0 }
 0x876   :  { %v7898_v11 = vpop.f32.mrf.mxu3  ;;  %v8016_v19 = vadd.f32 %v17300_v31, %v7980_v18  ;;  %v7810_v40 = vadd.f32 %v7809_v47, %v7721_v34  ;;  %v7722_v8 = vpop.f32.mrf.mxu1  ;;  %v17405_v18 = vld [vmem:[#allocation13] ss:$0 sm:$0xff]  ;;  %v15836_v47 = vld [vmem:[#allocation9 + $0x144] sm:$0xf] }
 0x877   :  { %v7723_v48 = vadd.f32 %v7722_v8, %v7633_v14 }
 0x878   :  { %v8048_v46 = vmax.f32 %v8016_v19, 0.0  ;;  %v7899_v33 = vadd.f32 %v7898_v11, %v7810_v40  ;;  %v14568_v11 = vld [vmem:[#allocation9 + $0x148] sm:$0xf0] }
 0x879   :  { %v14571_v40 = vor.u32 %v15836_v47, %v14568_v11 }
 0x87a   :  { %v16013_v56 = vpack.c.bf16 %v8048_v46, %v8047_v36  ;;  %v7945_v28 = vadd.f32 %v7899_v33, %v17267_v32 }
 0x87b   :  { %9017 = vmatpush.bf16.msrb.mxu1 %v14571_v40 }
 0x87c   :  { %16050 = vst [vmem:[#allocation2 + $0x60] sm:$0xff] %v16013_v56   ;;  %v7981_v61 = vmul.f32 %v17385_v20, %v7945_v28 }
 0x87d   :  { %v7811_v23 = vpop.f32.mrf.mxu2  ;;  %v7636_v53 = vpop.f32.mrf.mxu0 }
 0x87e   :  { %v7900_v21 = vpop.f32.mrf.mxu3  ;;  %v7812_v54 = vadd.f32 %v7811_v23, %v7723_v48  ;;  %v7725_v42 = vpop.f32.mrf.mxu1  ;;  %v8017_v32 = vadd.f32 %v17300_v31, %v7981_v61 }
 0x87f   :  { %v7726_v49 = vadd.f32 %v7725_v42, %v7636_v53 }
 0x880   :  { %v7901_v60 = vadd.f32 %v7900_v21, %v7812_v54  ;;  %8408 = vmatmul.bf16.gmra.mxu0 %v17383_v3  ;;  %v8049_v17 = vmax.f32 %v8017_v32, 0.0 }
 0x881   :  { %8497 = vmatmul.bf16.gmra.mxu1 %v17383_v3 }
 0x882   :  { %v7946_v55 = vadd.f32 %v7901_v60, %v17270_v12  ;;  %8672 = vmatmul.bf16.gmra.mxu2 %v17371_v43  ;;  %v17411_v60 = vld [vmem:[#allocation2 + $0x38] sm:$0xff] }
 0x883   :  { %8761 = vmatmul.bf16.gmra.mxu3 %v17371_v43 }
 0x884   :  { %v7982_v58 = vmul.f32 %v17385_v20, %v7946_v55 }
 0x885   :  { %v7814_v57 = vpop.f32.mrf.mxu2  ;;  %v7638_v25 = vpop.f32.mrf.mxu0 }
 0x886   :  { %v7903_v38 = vpop.f32.mrf.mxu3  ;;  %v8018_v10 = vadd.f32 %v17300_v31, %v7982_v58  ;;  %v7815_v26 = vadd.f32 %v7814_v57, %v7726_v49  ;;  %v7727_v7 = vpop.f32.mrf.mxu1 }
 0x887   :  { %v7728_v30 = vadd.f32 %v7727_v7, %v7638_v25 }
 0x888   :  { %v8050_v44 = vmax.f32 %v8018_v10, 0.0  ;;  %v7904_v41 = vadd.f32 %v7903_v38, %v7815_v26 }
 0x88a   :  { %v16018_v12 = vpack.c.bf16 %v8050_v44, %v8049_v17  ;;  %v7947_v9 = vadd.f32 %v7904_v41, %v17273_v22  ;;  %v14566_v22 = vld [vmem:[#allocation9 + $0x140] sm:$0xf] }
 0x88b   :  { %v14567_v15 = vor.u32 %v15837_v37, %v14566_v22 }
 0x88c   :  { %16051 = vst [vmem:[#allocation2 + $0x68] sm:$0xff] %v16018_v12   ;;  %v7983_v31 = vmul.f32 %v17385_v20, %v7947_v9 }
 0x88d   :  { %v7816_v39 = vpop.f32.mrf.mxu2  ;;  %v7641_v13 = vpop.f32.mrf.mxu0  ;;  %8928 = vmatpush.bf16.msrb.mxu0 %v14567_v15 }
 0x88e   :  { %v7905_v50 = vpop.f32.mrf.mxu3  ;;  %v7817_v29 = vadd.f32 %v7816_v39, %v7728_v30  ;;  %v7730_v16 = vpop.f32.mrf.mxu1  ;;  %v8019_v34 = vadd.f32 %v17405_v18, %v7983_v31  ;;  %v14558_v39 = vld [vmem:[#allocation9 + $0x130] sm:$0xf]  ;;  %v15834_v31 = vld [vmem:[#allocation9 + $0x134] sm:$0xf] }
 0x88f   :  { %v7731_v1 = vadd.f32 %v7730_v16, %v7641_v13 }
 0x890   :  { %v7906_v2 = vadd.f32 %v7905_v50, %v7817_v29  ;;  %8413 = vmatmul.bf16.gmra.mxu0 %v17397_v52  ;;  %v8051_v46 = vmax.f32 %v8019_v34, 0.0  ;;  %v15835_v50 = vld [vmem:[#allocation9 + $0x134] sm:$0xf0] }
 0x891   :  { %8502 = vmatmul.bf16.gmra.mxu1 %v17397_v52  ;;  %v14559_v16 = vor.u32 %v15835_v50, %v14558_v39 }
 0x892   :  { %v7948_v27 = vadd.f32 %v7906_v2, %v17276_v0  ;;  %8677 = vmatmul.bf16.gmra.mxu2 %v17383_v3  ;;  %v14560_v2 = vld [vmem:[#allocation9 + $0x138] sm:$0xf0] }
 0x893   :  { %8766 = vmatmul.bf16.gmra.mxu3 %v17383_v3  ;;  %v14563_v34 = vor.u32 %v15834_v31, %v14560_v2  ;;  %8929 = vmatpush.bf16.msrb.mxu0 %v14559_v16 }
 0x894   :  { %v7984_v62 = vmul.f32 %v17385_v20, %v7948_v27 }
 0x895   :  { %v7819_v4 = vpop.f32.mrf.mxu2  ;;  %v7643_v8 = vpop.f32.mrf.mxu0  ;;  %9018 = vmatpush.bf16.msrb.mxu1 %v14563_v34 }
 0x896   :  { %v7908_v19 = vpop.f32.mrf.mxu3  ;;  %v8020_v0 = vadd.f32 %v17405_v18, %v7984_v62  ;;  %v7820_v14 = vadd.f32 %v7819_v4, %v7731_v1  ;;  %v7732_v36 = vpop.f32.mrf.mxu1  ;;  %v17423_v62 = vld [vmem:[#allocation2 + $0x40] sm:$0xff] }
 0x897   :  { %v7733_v23 = vadd.f32 %v7732_v36, %v7643_v8 }
 0x898   :  { %v8052_v33 = vmax.f32 %v8020_v0, 0.0  ;;  %v7909_v56 = vadd.f32 %v7908_v19, %v7820_v14 }
 0x89a   :  { %v16023_v28 = vpack.c.bf16 %v8052_v33, %v8051_v46  ;;  %v7949_v48 = vadd.f32 %v7909_v56, %v17279_v6  ;;  %v14658_v46 = vld [vmem:[#allocation9 + $0x1f0] sm:$0xf]  ;;  %v15859_v33 = vld [vmem:[#allocation9 + $0x1f4] sm:$0xf0]  ;;  %v15858_v56 = vld [vmem:[#allocation9 + $0x1f4] sm:$0xf] }
 0x89c   :  { %16052 = vst [vmem:[#allocation2 + $0x70] sm:$0xff] %v16023_v28   ;;  %v7985_v55 = vmul.f32 %v17385_v20, %v7949_v48  ;;  %v14660_v28 = vld [vmem:[#allocation9 + $0x1f8] sm:$0xf0] }
 0x89d   :  { %v7821_v21 = vpop.f32.mrf.mxu2  ;;  %v7646_v42 = vpop.f32.mrf.mxu0 }
 0x89e   :  { %v7910_v54 = vpop.f32.mrf.mxu3  ;;  %v7822_v53 = vadd.f32 %v7821_v21, %v7733_v23  ;;  %v7735_v61 = vpop.f32.mrf.mxu1  ;;  %v8021_v6 = vadd.f32 %v17405_v18, %v7985_v55 }
 0x89f   :  { %v7736_v57 = vadd.f32 %v7735_v61, %v7646_v42 }
 0x8a0   :  { %v7911_v32 = vadd.f32 %v7910_v54, %v7822_v53  ;;  %8418 = vmatmul.bf16.gmra.mxu0 %v17411_v60  ;;  %v8053_v44 = vmax.f32 %v8021_v6, 0.0  ;;  %v14663_v54 = vor.u32 %v15858_v56, %v14660_v28 }
 0x8a1   :  { %8507 = vmatmul.bf16.gmra.mxu1 %v17411_v60 }
 0x8a2   :  { %v7950_v58 = vadd.f32 %v7911_v32, %v17282_v51  ;;  %8682 = vmatmul.bf16.gmra.mxu2 %v17397_v52  ;;  %9359 = vmatpush.bf16.msrb.mxu3 %v14663_v54  ;;  %v14542_v54 = vld [vmem:[#allocation9 + $0x110] sm:$0xf] }
 0x8a3   :  { %8771 = vmatmul.bf16.gmra.mxu3 %v17397_v52 }
 0x8a4   :  { %v7986_v49 = vmul.f32 %v17385_v20, %v7950_v58 }
 0x8a5   :  { %v7824_v38 = vpop.f32.mrf.mxu2  ;;  %v7648_v7 = vpop.f32.mrf.mxu0 }
 0x8a6   :  { %v7913_v10 = vpop.f32.mrf.mxu3  ;;  %v8022_v26 = vadd.f32 %v17405_v18, %v7986_v49  ;;  %v7825_v25 = vadd.f32 %v7824_v38, %v7736_v57  ;;  %v7737_v17 = vpop.f32.mrf.mxu1  ;;  %v17435_v57 = vld [vmem:[#allocation2 + $0x48] sm:$0xff] }
 0x8a7   :  { %v7738_v30 = vadd.f32 %v7737_v17, %v7648_v7  ;;  %v15832_v7 = vld [vmem:[#allocation9 + $0x124] sm:$0xf] }
 0x8a8   :  { %v8054_v41 = vmax.f32 %v8022_v26, 0.0  ;;  %v7914_v12 = vadd.f32 %v7913_v10, %v7825_v25  ;;  %v15833_v25 = vld [vmem:[#allocation9 + $0x124] sm:$0xf0] }
 0x8aa   :  { %v16028_v51 = vpack.c.bf16 %v8054_v41, %v8053_v44  ;;  %v7951_v9 = vadd.f32 %v7914_v12, %v17285_v63  ;;  %v14552_v44 = vld [vmem:[#allocation9 + $0x128] sm:$0xf0] }
 0x8ac   :  { %16053 = vst [vmem:[#allocation2 + $0x78] sm:$0xff] %v16028_v51   ;;  %v7987_v1 = vmul.f32 %v17385_v20, %v7951_v9  ;;  %v14555_v51 = vor.u32 %v15832_v7, %v14552_v44 }
 0x8ad   :  { %v7826_v29 = vpop.f32.mrf.mxu2  ;;  %v7651_v22 = vpop.f32.mrf.mxu0 }
 0x8ae   :  { %v7915_v13 = vpop.f32.mrf.mxu3  ;;  %v7827_v27 = vadd.f32 %v7826_v29, %v7738_v30  ;;  %v7740_v37 = vpop.f32.mrf.mxu1  ;;  %v8023_v47 = vadd.f32 %v17405_v18, %v7987_v1  ;;  %9019 = vmatpush.bf16.msrb.mxu1 %v14555_v51 }
 0x8af   :  { %v7741_v4 = vadd.f32 %v7740_v37, %v7651_v22 }
 0x8b0   :  { %v7916_v15 = vadd.f32 %v7915_v13, %v7827_v27  ;;  %8423 = vmatmul.bf16.gmra.mxu0 %v17423_v62  ;;  %v8055_v48 = vmax.f32 %v8023_v47, 0.0 }
 0x8b1   :  { %8512 = vmatmul.bf16.gmra.mxu1 %v17423_v62 }
 0x8b2   :  { %v7952_v63 = vadd.f32 %v7916_v15, %v17288_v45  ;;  %8687 = vmatmul.bf16.gmra.mxu2 %v17411_v60  ;;  %v14659_v45 = vor.u32 %v15859_v33, %v14658_v46 }
 0x8b3   :  { %8776 = vmatmul.bf16.gmra.mxu3 %v17411_v60 }
 0x8b4   :  { %v7988_v11 = vmul.f32 %v17385_v20, %v7952_v63  ;;  %9270 = vmatpush.bf16.msrb.mxu2 %v14659_v45 }
 0x8b5   :  { %v7829_v19 = vpop.f32.mrf.mxu2  ;;  %v7653_v8 = vpop.f32.mrf.mxu0 }
 0x8b6   :  { %v7918_v40 = vpop.f32.mrf.mxu3  ;;  %v8024_v0 = vadd.f32 %v17405_v18, %v7988_v11  ;;  %v7830_v14 = vadd.f32 %v7829_v19, %v7741_v4  ;;  %v7742_v36 = vpop.f32.mrf.mxu1 }
 0x8b7   :  { %v7743_v61 = vadd.f32 %v7742_v36, %v7653_v8  ;;  %v14652_v36 = vld [vmem:[#allocation9 + $0x1e8] sm:$0xf0] }
 0x8b8   :  { %v8056_v23 = vmax.f32 %v8024_v0, 0.0  ;;  %v7919_v21 = vadd.f32 %v7918_v40, %v7830_v14  ;;  %v14650_v40 = vld [vmem:[#allocation9 + $0x1e0] sm:$0xf]  ;;  %v15857_v0 = vld [vmem:[#allocation9 + $0x1e4] sm:$0xf0] }
 0x8b9   :  { %v15856_v14 = vld [vmem:[#allocation9 + $0x1e4] sm:$0xf]  ;;  %v14651_v8 = vor.u32 %v15857_v0, %v14650_v40  ;;  %v17496_v0 = vld [vmem:[#allocation2 + $0x68] sm:$0xff] }
 0x8ba   :  { %v16033_v53 = vpack.c.bf16 %v8056_v23, %v8055_v48  ;;  %v7953_v42 = vadd.f32 %v7919_v21, %v17291_v5  ;;  %v14550_v5 = vld [vmem:[#allocation9 + $0x120] sm:$0xf]  ;;  %v14655_v46 = vor.u32 %v15856_v14, %v14652_v36  ;;  %v17468_v21 = vld [vmem:[#allocation2 + $0x58] sm:$0xff]  ;;  %v15828_v36 = vld [vmem:[#allocation9 + $0x104] sm:$0xf] }
 0x8bb   :  { %v14551_v17 = vor.u32 %v15833_v25, %v14550_v5  ;;  %9271 = vmatpush.bf16.msrb.mxu2 %v14651_v8  ;;  %v14534_v14 = vld [vmem:[#allocation9 + $0x100] sm:$0xf]  ;;  %v15829_v8 = vld [vmem:[#allocation9 + $0x104] sm:$0xf0] }
 0x8bc   :  { %16054 = vst [vmem:[#allocation2 + $0x80] sm:$0xff] %v16033_v53   ;;  %v7989_v38 = vmul.f32 %v17385_v20, %v7953_v42  ;;  %9360 = vmatpush.bf16.msrb.mxu3 %v14655_v46  ;;  %v15831_v53 = vld [vmem:[#allocation9 + $0x114] sm:$0xf0]  ;;  %v15830_v42 = vld [vmem:[#allocation9 + $0x114] sm:$0xf]  ;;  %v14535_v46 = vor.u32 %v15829_v8, %v14534_v14 }
 0x8bd   :  { %v7831_v55 = vpop.f32.mrf.mxu2  ;;  %v8389_v6 = vpop.f32.mrf.mxu0  ;;  %8930 = vmatpush.bf16.msrb.mxu0 %v14551_v17 }
 0x8be   :  { %v7920_v32 = vpop.f32.mrf.mxu3  ;;  %v7832_v58 = vadd.f32 %v7831_v55, %v7743_v61  ;;  %v8478_v49 = vpop.f32.mrf.mxu1  ;;  %v8025_v41 = vadd.f32 %v17405_v18, %v7989_v38  ;;  %v14543_v61 = vor.u32 %v15831_v53, %v14542_v54  ;;  %v14544_v55 = vld [vmem:[#allocation9 + $0x118] sm:$0xf0] }
 0x8c0   :  { %v7921_v10 = vadd.f32 %v7920_v32, %v7832_v58  ;;  %8428 = vmatmul.bf16.gmra.mxu0 %v17435_v57  ;;  %v8057_v16 = vmax.f32 %v8025_v41, 0.0  ;;  %v14547_v32 = vor.u32 %v15830_v42, %v14544_v55 }
 0x8c1   :  { %8517 = vmatmul.bf16.gmra.mxu1 %v17435_v57  ;;  %8931 = vmatpush.bf16.msrb.mxu0 %v14543_v61 }
 0x8c2   :  { %v7954_v26 = vadd.f32 %v7921_v10, %v17294_v24  ;;  %8692 = vmatmul.bf16.gmra.mxu2 %v17423_v62  ;;  %9020 = vmatpush.bf16.msrb.mxu1 %v14547_v32 }
 0x8c3   :  { %8781 = vmatmul.bf16.gmra.mxu3 %v17423_v62 }
 0x8c4   :  { %v7990_v12 = vmul.f32 %v17385_v20, %v7954_v26 }
 0x8c5   :  { %v8653_v9 = vpop.f32.mrf.mxu2  ;;  %v8391_v29 = vpop.f32.mrf.mxu0  ;;  %8932 = vmatpush.bf16.msrb.mxu0 %v14535_v46 }
 0x8c6   :  { %v8742_v30 = vpop.f32.mrf.mxu3  ;;  %v8026_v39 = vadd.f32 %v17405_v18, %v7990_v12  ;;  %v17446_v24 = vadd.f32 %v8653_v9, %v8389_v6  ;;  %v8480_v13 = vpop.f32.mrf.mxu1  ;;  %v17454_v18 = vld [vmem:[#allocation2 + $0x50] sm:$0xff]  ;;  %v17482_v12 = vld [vmem:[#allocation2 + $0x60] sm:$0xff] }
 0x8c7   :  { %v17448_v50 = vadd.f32 %v8742_v30, %v8478_v49 }
 0x8c8   :  { %v8058_v31 = vmax.f32 %v8026_v39, 0.0 }
 0x8ca   :  { %v16038_v2 = vpack.c.bf16 %v8058_v31, %v8057_v16  ;;  %v14642_v16 = vld [vmem:[#allocation9 + $0x1d0] sm:$0xf]  ;;  %v15855_v31 = vld [vmem:[#allocation9 + $0x1d4] sm:$0xf0] }
 0x8cc   :  { %16055 = vst [vmem:[#allocation2 + $0x88] sm:$0xff] %v16038_v2   ;;  %v15854_v2 = vld [vmem:[#allocation9 + $0x1d4] sm:$0xf] }
 0x8cd   :  { %v8655_v27 = vpop.f32.mrf.mxu2  ;;  %v8394_v34 = vpop.f32.mrf.mxu0 }
 0x8ce   :  { %v8744_v22 = vpop.f32.mrf.mxu3  ;;  %v17450_v20 = vadd.f32 %v8655_v27, %v8391_v29  ;;  %v8483_v1 = vpop.f32.mrf.mxu1  ;;  %v14643_v27 = vor.u32 %v15855_v31, %v14642_v16  ;;  %v15851_v16 = vld [vmem:[#allocation9 + $0x1b4] sm:$0xf0]  ;;  %v15850_v31 = vld [vmem:[#allocation9 + $0x1b4] sm:$0xf] }
 0x8cf   :  { %v17452_v37 = vadd.f32 %v8744_v22, %v8480_v13  ;;  %v14644_v22 = vld [vmem:[#allocation9 + $0x1d8] sm:$0xf0] }
 0x8d0   :  { %8433 = vmatmul.bf16.gmra.mxu0 %v17454_v18  ;;  %9272 = vmatpush.bf16.msrb.mxu2 %v14643_v27  ;;  %v14628_v27 = vld [vmem:[#allocation9 + $0x1b8] sm:$0xf0] }
 0x8d1   :  { %8522 = vmatmul.bf16.gmra.mxu1 %v17454_v18 }
 0x8d2   :  { %8697 = vmatmul.bf16.gmra.mxu2 %v17435_v57 }
 0x8d3   :  { %8786 = vmatmul.bf16.gmra.mxu3 %v17435_v57 }
 0x8d5   :  { %v8658_v15 = vpop.f32.mrf.mxu2  ;;  %v8396_v4 = vpop.f32.mrf.mxu0 }
 0x8d6   :  { %v8747_v63 = vpop.f32.mrf.mxu3  ;;  %v17460_v47 = vadd.f32 %v8658_v15, %v8394_v34  ;;  %v8485_v19 = vpop.f32.mrf.mxu1  ;;  %v14647_v34 = vor.u32 %v15854_v2, %v14644_v22  ;;  %v14631_v22 = vor.u32 %v15850_v31, %v14628_v27  ;;  %v17524_v27 = vld [vmem:[#allocation2 + $0x78] sm:$0xff] }
 0x8d7   :  { %v17462_v11 = vadd.f32 %v8747_v63, %v8483_v1 }
 0x8d8   :  { %9361 = vmatpush.bf16.msrb.mxu3 %v14647_v34 }
 0x8dd   :  { %v8660_v33 = vpop.f32.mrf.mxu2  ;;  %v8399_v48 = vpop.f32.mrf.mxu0 }
 0x8de   :  { %v8749_v56 = vpop.f32.mrf.mxu3  ;;  %v17464_v45 = vadd.f32 %v8660_v33, %v8396_v4  ;;  %v8488_v23 = vpop.f32.mrf.mxu1  ;;  %v14536_v33 = vld [vmem:[#allocation9 + $0x108] sm:$0xf0] }
 0x8df   :  { %v17466_v28 = vadd.f32 %v8749_v56, %v8485_v19  ;;  %v14539_v56 = vor.u32 %v15828_v36, %v14536_v33 }
 0x8e0   :  { %8438 = vmatmul.bf16.gmra.mxu0 %v17468_v21 }
 0x8e1   :  { %8527 = vmatmul.bf16.gmra.mxu1 %v17468_v21 }
 0x8e2   :  { %8702 = vmatmul.bf16.gmra.mxu2 %v17454_v18  ;;  %9021 = vmatpush.bf16.msrb.mxu1 %v14539_v56  ;;  %v14620_v56 = vld [vmem:[#allocation9 + $0x1a8] sm:$0xf0] }
 0x8e3   :  { %8791 = vmatmul.bf16.gmra.mxu3 %v17454_v18 }
 0x8e5   :  { %v8663_v58 = vpop.f32.mrf.mxu2  ;;  %v8401_v10 = vpop.f32.mrf.mxu0 }
 0x8e6   :  { %v8752_v6 = vpop.f32.mrf.mxu3  ;;  %v17474_v49 = vadd.f32 %v8663_v58, %v8399_v48  ;;  %v8490_v26 = vpop.f32.mrf.mxu1  ;;  %v14634_v58 = vld [vmem:[#allocation9 + $0x1c0] sm:$0xf] }
 0x8e7   :  { %v17476_v38 = vadd.f32 %v8752_v6, %v8488_v23  ;;  %v15853_v6 = vld [vmem:[#allocation9 + $0x1c4] sm:$0xf0] }
 0x8ed   :  { %v8665_v5 = vpop.f32.mrf.mxu2  ;;  %v8404_v44 = vpop.f32.mrf.mxu0 }
 0x8ee   :  { %v8754_v25 = vpop.f32.mrf.mxu3  ;;  %v17478_v7 = vadd.f32 %v8665_v5, %v8401_v10  ;;  %v8493_v41 = vpop.f32.mrf.mxu1  ;;  %v15852_v10 = vld [vmem:[#allocation9 + $0x1c4] sm:$0xf] }
 0x8ef   :  { %v17480_v17 = vadd.f32 %v8754_v25, %v8490_v26 }
 0x8f0   :  { %8443 = vmatmul.bf16.gmra.mxu0 %v17482_v12 }
 0x8f1   :  { %8532 = vmatmul.bf16.gmra.mxu1 %v17482_v12 }
 0x8f2   :  { %8707 = vmatmul.bf16.gmra.mxu2 %v17468_v21 }
 0x8f3   :  { %8796 = vmatmul.bf16.gmra.mxu3 %v17468_v21 }
 0x8f5   :  { %v8668_v51 = vpop.f32.mrf.mxu2  ;;  %v8406_v29 = vpop.f32.mrf.mxu0 }
 0x8f6   :  { %v8757_v9 = vpop.f32.mrf.mxu3  ;;  %v17488_v30 = vadd.f32 %v8668_v51, %v8404_v44  ;;  %v8495_v13 = vpop.f32.mrf.mxu1  ;;  %v14636_v51 = vld [vmem:[#allocation9 + $0x1c8] sm:$0xf0] }
 0x8f7   :  { %v17490_v39 = vadd.f32 %v8757_v9, %v8493_v41  ;;  %v14635_v41 = vor.u32 %v15853_v6, %v14634_v58  ;;  %v17510_v9 = vld [vmem:[#allocation2 + $0x70] sm:$0xff] }
 0x8f9   :  { %9273 = vmatpush.bf16.msrb.mxu2 %v14635_v41  ;;  %v15844_v41 = vld [vmem:[#allocation9 + $0x184] sm:$0xf] }
 0x8fd   :  { %v8670_v1 = vpop.f32.mrf.mxu2  ;;  %v8409_v19 = vpop.f32.mrf.mxu0 }
 0x8fe   :  { %v8759_v15 = vpop.f32.mrf.mxu3  ;;  %v17492_v63 = vadd.f32 %v8670_v1, %v8406_v29  ;;  %v8498_v40 = vpop.f32.mrf.mxu1  ;;  %v14639_v29 = vor.u32 %v15852_v10, %v14636_v51 }
 0x8ff   :  { %v17494_v4 = vadd.f32 %v8759_v15, %v8495_v13  ;;  %v14626_v13 = vld [vmem:[#allocation9 + $0x1b0] sm:$0xf]  ;;  %v14618_v15 = vld [vmem:[#allocation9 + $0x1a0] sm:$0xf] }
 0x900   :  { %8448 = vmatmul.bf16.gmra.mxu0 %v17496_v0  ;;  %v14627_v2 = vor.u32 %v15851_v16, %v14626_v13  ;;  %9362 = vmatpush.bf16.msrb.mxu3 %v14639_v29 }
 0x901   :  { %8537 = vmatmul.bf16.gmra.mxu1 %v17496_v0 }
 0x902   :  { %8712 = vmatmul.bf16.gmra.mxu2 %v17482_v12 }
 0x903   :  { %8801 = vmatmul.bf16.gmra.mxu3 %v17482_v12  ;;  %9274 = vmatpush.bf16.msrb.mxu2 %v14627_v2  ;;  %v14604_v2 = vld [vmem:[#allocation9 + $0x188] sm:$0xf0] }
 0x904   :  { %9363 = vmatpush.bf16.msrb.mxu3 %v14631_v22  ;;  %v14607_v22 = vor.u32 %v15844_v41, %v14604_v2 }
 0x905   :  { %v8673_v48 = vpop.f32.mrf.mxu2  ;;  %v8411_v42 = vpop.f32.mrf.mxu0 }
 0x906   :  { %v8762_v23 = vpop.f32.mrf.mxu3  ;;  %v17502_v54 = vadd.f32 %v8673_v48, %v8409_v19  ;;  %v8500_v61 = vpop.f32.mrf.mxu1  ;;  %v15849_v19 = vld [vmem:[#allocation9 + $0x1a4] sm:$0xf0]  ;;  %v14610_v48 = vld [vmem:[#allocation9 + $0x190] sm:$0xf] }
 0x907   :  { %v17504_v53 = vadd.f32 %v8762_v23, %v8498_v40  ;;  %v15848_v40 = vld [vmem:[#allocation9 + $0x1a4] sm:$0xf]  ;;  %v14619_v33 = vor.u32 %v15849_v19, %v14618_v15  ;;  %v15847_v23 = vld [vmem:[#allocation9 + $0x194] sm:$0xf0]  ;;  %v15874_v15 = vld [vmem:[#allocation9 + $0x274] sm:$0xf] }
 0x909   :  { %9275 = vmatpush.bf16.msrb.mxu2 %v14619_v33 }
 0x90d   :  { %v8675_v55 = vpop.f32.mrf.mxu2  ;;  %v8414_v25 = vpop.f32.mrf.mxu0 }
 0x90e   :  { %v8764_v32 = vpop.f32.mrf.mxu3  ;;  %v17506_v26 = vadd.f32 %v8675_v55, %v8411_v42  ;;  %v8503_v44 = vpop.f32.mrf.mxu1  ;;  %v14623_v42 = vor.u32 %v15848_v40, %v14620_v56  ;;  %v15846_v55 = vld [vmem:[#allocation9 + $0x194] sm:$0xf]  ;;  %v14728_v40 = vld [vmem:[#allocation9 + $0x278] sm:$0xf0] }
 0x90f   :  { %v17508_v5 = vadd.f32 %v8764_v32, %v8500_v61  ;;  %v14611_v61 = vor.u32 %v15847_v23, %v14610_v48  ;;  %v14612_v32 = vld [vmem:[#allocation9 + $0x198] sm:$0xf0] }
 0x910   :  { %8453 = vmatmul.bf16.gmra.mxu0 %v17510_v9  ;;  %9364 = vmatpush.bf16.msrb.mxu3 %v14623_v42  ;;  %v14615_v58 = vor.u32 %v15846_v55, %v14612_v32 }
 0x911   :  { %8542 = vmatmul.bf16.gmra.mxu1 %v17510_v9  ;;  %9276 = vmatpush.bf16.msrb.mxu2 %v14611_v61 }
 0x912   :  { %8717 = vmatmul.bf16.gmra.mxu2 %v17496_v0 }
 0x913   :  { %8806 = vmatmul.bf16.gmra.mxu3 %v17496_v0 }
 0x914   :  { %9365 = vmatpush.bf16.msrb.mxu3 %v14615_v58 }
 0x915   :  { %v8678_v34 = vpop.f32.mrf.mxu2  ;;  %v8416_v36 = vpop.f32.mrf.mxu0 }
 0x916   :  { %v8767_v1 = vpop.f32.mrf.mxu3  ;;  %v17516_v14 = vadd.f32 %v8678_v34, %v8414_v25  ;;  %v8505_v46 = vpop.f32.mrf.mxu1  ;;  %v14602_v25 = vld [vmem:[#allocation9 + $0x180] sm:$0xf]  ;;  %v14726_v34 = vld [vmem:[#allocation9 + $0x270] sm:$0xf] }
 0x917   :  { %v17518_v8 = vadd.f32 %v8767_v1, %v8503_v44  ;;  %v15845_v44 = vld [vmem:[#allocation9 + $0x184] sm:$0xf0]  ;;  %v15875_v1 = vld [vmem:[#allocation9 + $0x274] sm:$0xf0] }
 0x918   :  { %v14603_v31 = vor.u32 %v15845_v44, %v14602_v25  ;;  %9366 = vmatpush.bf16.msrb.mxu3 %v14607_v22  ;;  %v14727_v19 = vor.u32 %v15875_v1, %v14726_v34  ;;  %v17538_v25 = vld [vmem:[#allocation2 + $0x80] sm:$0xff] }
 0x91a   :  { %9277 = vmatpush.bf16.msrb.mxu2 %v14603_v31  ;;  %9615 = vmatpush.bf16.msra.mxu0 %v14727_v19 }
 0x91d   :  { %v8680_v6 = vpop.f32.mrf.mxu2  ;;  %v8419_v13 = vpop.f32.mrf.mxu0 }
 0x91e   :  { %v8769_v10 = vpop.f32.mrf.mxu3  ;;  %v17520_v51 = vadd.f32 %v8680_v6, %v8416_v36  ;;  %v8508_v16 = vpop.f32.mrf.mxu1  ;;  %v14731_v36 = vor.u32 %v15874_v15, %v14728_v40 }
 0x91f   :  { %v17522_v29 = vadd.f32 %v8769_v10, %v8505_v46 }
 0x920   :  { %8458 = vmatmul.bf16.gmra.mxu0 %v17524_v27  ;;  %9704 = vmatpush.bf16.msra.mxu1 %v14731_v36  ;;  %v14718_v36 = vld [vmem:[#allocation9 + $0x260] sm:$0xf] }
 0x921   :  { %8547 = vmatmul.bf16.gmra.mxu1 %v17524_v27 }
 0x922   :  { %8722 = vmatmul.bf16.gmra.mxu2 %v17510_v9 }
 0x923   :  { %8811 = vmatmul.bf16.gmra.mxu3 %v17510_v9 }
 0x925   :  { %v8683_v46 = vpop.f32.mrf.mxu2  ;;  %v8421_v23 = vpop.f32.mrf.mxu0 }
 0x926   :  { %v8772_v33 = vpop.f32.mrf.mxu3  ;;  %v17530_v56 = vadd.f32 %v8683_v46, %v8419_v13  ;;  %v8510_v42 = vpop.f32.mrf.mxu1  ;;  %v15873_v46 = vld [vmem:[#allocation9 + $0x264] sm:$0xf0] }
 0x927   :  { %v17532_v48 = vadd.f32 %v8772_v33, %v8508_v16  ;;  %v15872_v33 = vld [vmem:[#allocation9 + $0x264] sm:$0xf] }
 0x92d   :  { %v8685_v61 = vpop.f32.mrf.mxu2  ;;  %v8424_v6 = vpop.f32.mrf.mxu0 }
 0x92e   :  { %v8774_v55 = vpop.f32.mrf.mxu3  ;;  %v17534_v32 = vadd.f32 %v8685_v61, %v8421_v23  ;;  %v8513_v10 = vpop.f32.mrf.mxu1  ;;  %v14719_v23 = vor.u32 %v15873_v46, %v14718_v36 }
 0x92f   :  { %v17536_v58 = vadd.f32 %v8774_v55, %v8510_v42  ;;  %v14720_v42 = vld [vmem:[#allocation9 + $0x268] sm:$0xf0] }
 0x930   :  { %8463 = vmatmul.bf16.gmra.mxu0 %v17538_v25  ;;  %v14723_v61 = vor.u32 %v15872_v33, %v14720_v42 }
 0x931   :  { %8552 = vmatmul.bf16.gmra.mxu1 %v17538_v25  ;;  %9616 = vmatpush.bf16.msra.mxu0 %v14719_v23 }
 0x932   :  { %8727 = vmatmul.bf16.gmra.mxu2 %v17524_v27  ;;  %9705 = vmatpush.bf16.msra.mxu1 %v14723_v61 }
 0x933   :  { %8816 = vmatmul.bf16.gmra.mxu3 %v17524_v27 }
 0x935   :  { %v8688_v44 = vpop.f32.mrf.mxu2  ;;  %v8426_v31 = vpop.f32.mrf.mxu0 }
 0x936   :  { %v8777_v41 = vpop.f32.mrf.mxu3  ;;  %v17544_v13 = vadd.f32 %v8688_v44, %v8424_v6  ;;  %v8515_v2 = vpop.f32.mrf.mxu1 }
 0x937   :  { %v17546_v16 = vadd.f32 %v8777_v41, %v8513_v10 }
 0x93d   :  { %v8690_v22 = vpop.f32.mrf.mxu2  ;;  %v8429_v19 = vpop.f32.mrf.mxu0 }
 0x93e   :  { %v8779_v34 = vpop.f32.mrf.mxu3  ;;  %v17548_v1 = vadd.f32 %v8690_v22, %v8426_v31  ;;  %v8518_v40 = vpop.f32.mrf.mxu1 }
 0x93f   :  { %v17550_v15 = vadd.f32 %v8779_v34, %v8515_v2 }
 0x940   :  { %8933 = vmatmul.bf16.vlgmr.msrb.gmra.mxu0 %v17349_v35 }
 0x941   :  { %18670 = vst [vmem:[#allocation22_spill] sm:$0xff] %v17550_v15  ;;  %9022 = vmatmul.bf16.vlgmr.msrb.gmra.mxu1 %v17349_v35 }
 0x942   :  { %9278 = vmatmul.bf16.vlgmr.msrb.gmra.mxu2 %v17359_v59 }
 0x943   :  { %9367 = vmatmul.bf16.vlgmr.msrb.gmra.mxu3 %v17359_v59 }
 0x945   :  { %v8693_v55 = vpop.f32.mrf.mxu2  ;;  %v8431_v41 = vpop.f32.mrf.mxu0 }
 0x946   :  { %v8782_v6 = vpop.f32.mrf.mxu3  ;;  %v17556_v10 = vadd.f32 %v8693_v55, %v8429_v19  ;;  %v8520_v31 = vpop.f32.mrf.mxu1 }
 0x947   :  { %v17558_v44 = vadd.f32 %v8782_v6, %v8518_v40 }
 0x94d   :  { %v8695_v35 = vpop.f32.mrf.mxu2  ;;  %v8434_v15 = vpop.f32.mrf.mxu0 }
 0x94e   :  { %v8784_v2 = vpop.f32.mrf.mxu3  ;;  %v17560_v22 = vadd.f32 %v8695_v35, %v8431_v41  ;;  %v8523_v36 = vpop.f32.mrf.mxu1  ;;  %v15871_v35 = vld [vmem:[#allocation9 + $0x254] sm:$0xf0] }
 0x94f   :  { %v17562_v34 = vadd.f32 %v8784_v2, %v8520_v31  ;;  %v15870_v2 = vld [vmem:[#allocation9 + $0x254] sm:$0xf] }
 0x950   :  { %18671 = vst [vmem:[#allocation31_spill] sm:$0xff] %v17560_v22  ;;  %8938 = vmatmul.bf16.gmra.mxu0 %v17359_v59 }
 0x951   :  { %18672 = vst [vmem:[#allocation32_spill] sm:$0xff] %v17562_v34  ;;  %9027 = vmatmul.bf16.gmra.mxu1 %v17359_v59 }
 0x952   :  { %9283 = vmatmul.bf16.gmra.mxu2 %v17371_v43 }
 0x953   :  { %9372 = vmatmul.bf16.gmra.mxu3 %v17371_v43 }
 0x955   :  { %v8698_v19 = vpop.f32.mrf.mxu2  ;;  %v8436_v23 = vpop.f32.mrf.mxu0 }
 0x956   :  { %v8787_v40 = vpop.f32.mrf.mxu3  ;;  %v17568_v46 = vadd.f32 %v8698_v19, %v8434_v15  ;;  %v8525_v42 = vpop.f32.mrf.mxu1  ;;  %v14710_v15 = vld [vmem:[#allocation9 + $0x250] sm:$0xf]  ;;  %v14712_v19 = vld [vmem:[#allocation9 + $0x258] sm:$0xf0] }
 0x957   :  { %v17570_v33 = vadd.f32 %v8787_v40, %v8523_v36  ;;  %v14711_v36 = vor.u32 %v15871_v35, %v14710_v15  ;;  %v14715_v40 = vor.u32 %v15870_v2, %v14712_v19 }
 0x958   :  { %18673 = vst [vmem:[#allocation23_spill] sm:$0xff] %v17568_v46 }
 0x959   :  { %18674 = vst [vmem:[#allocation24_spill] sm:$0xff] %v17570_v33  ;;  %9617 = vmatpush.bf16.msra.mxu0 %v14711_v36  ;;  %9706 = vmatpush.bf16.msra.mxu1 %v14715_v40 }
 0x95d   :  { %v8700_v61 = vpop.f32.mrf.mxu2  ;;  %v8439_v31 = vpop.f32.mrf.mxu0 }
 0x95e   :  { %v8789_v55 = vpop.f32.mrf.mxu3  ;;  %v17572_v6 = vadd.f32 %v8700_v61, %v8436_v23  ;;  %v8528_v59 = vpop.f32.mrf.mxu1 }
 0x95f   :  { %v17574_v41 = vadd.f32 %v8789_v55, %v8525_v42 }
 0x960   :  { %18675 = vst [vmem:[#allocation25_spill] sm:$0xff] %v17572_v6  ;;  %8943 = vmatmul.bf16.gmra.mxu0 %v17371_v43 }
 0x961   :  { %18676 = vst [vmem:[#allocation26_spill] sm:$0xff] %v17574_v41  ;;  %9032 = vmatmul.bf16.gmra.mxu1 %v17371_v43 }
 0x962   :  { %9288 = vmatmul.bf16.gmra.mxu2 %v17383_v3 }
 0x963   :  { %9377 = vmatmul.bf16.gmra.mxu3 %v17383_v3 }
 0x965   :  { %v8703_v23 = vpop.f32.mrf.mxu2  ;;  %v8441_v41 = vpop.f32.mrf.mxu0 }
 0x966   :  { %v8792_v61 = vpop.f32.mrf.mxu3  ;;  %v17580_v42 = vadd.f32 %v8703_v23, %v8439_v31  ;;  %v8530_v6 = vpop.f32.mrf.mxu1 }
 0x967   :  { %v17582_v55 = vadd.f32 %v8792_v61, %v8528_v59  ;;  %v15869_v61 = vld [vmem:[#allocation9 + $0x244] sm:$0xf0] }
 0x96d   :  { %v8705_v43 = vpop.f32.mrf.mxu2  ;;  %v8444_v22 = vpop.f32.mrf.mxu0 }
 0x96e   :  { %v8794_v33 = vpop.f32.mrf.mxu3  ;;  %v17584_v46 = vadd.f32 %v8705_v43, %v8441_v41  ;;  %v8533_v15 = vpop.f32.mrf.mxu1  ;;  %v15868_v43 = vld [vmem:[#allocation9 + $0x244] sm:$0xf] }
 0x96f   :  { %v17586_v34 = vadd.f32 %v8794_v33, %v8530_v6 }
 0x970   :  { %18677 = vst [vmem:[#allocation37_spill] sm:$0xff] %v17584_v46  ;;  %8948 = vmatmul.bf16.gmra.mxu0 %v17383_v3 }
 0x971   :  { %18678 = vst [vmem:[#allocation38_spill] sm:$0xff] %v17586_v34  ;;  %9037 = vmatmul.bf16.gmra.mxu1 %v17383_v3 }
 0x972   :  { %9293 = vmatmul.bf16.gmra.mxu2 %v17397_v52 }
 0x973   :  { %9382 = vmatmul.bf16.gmra.mxu3 %v17397_v52 }
 0x975   :  { %v8708_v31 = vpop.f32.mrf.mxu2  ;;  %v8446_v41 = vpop.f32.mrf.mxu0 }
 0x976   :  { %v8797_v59 = vpop.f32.mrf.mxu3  ;;  %v17592_v35 = vadd.f32 %v8708_v31, %v8444_v22  ;;  %v8535_v36 = vpop.f32.mrf.mxu1  ;;  %v14702_v22 = vld [vmem:[#allocation9 + $0x240] sm:$0xf]  ;;  %v14704_v31 = vld [vmem:[#allocation9 + $0x248] sm:$0xf0] }
 0x977   :  { %v17594_v2 = vadd.f32 %v8797_v59, %v8533_v15  ;;  %v14703_v15 = vor.u32 %v15869_v61, %v14702_v22  ;;  %v14707_v59 = vor.u32 %v15868_v43, %v14704_v31 }
 0x978   :  { %18679 = vst [vmem:[#allocation27_spill] sm:$0xff] %v17592_v35 }
 0x979   :  { %18680 = vst [vmem:[#allocation28_spill] sm:$0xff] %v17594_v2  ;;  %9618 = vmatpush.bf16.msra.mxu0 %v14703_v15  ;;  %9707 = vmatpush.bf16.msra.mxu1 %v14707_v59 }
 0x97d   :  { %v8710_v33 = vpop.f32.mrf.mxu2  ;;  %v8449_v23 = vpop.f32.mrf.mxu0 }
 0x97e   :  { %v8799_v6 = vpop.f32.mrf.mxu3  ;;  %v17596_v19 = vadd.f32 %v8710_v33, %v8446_v41  ;;  %v8538_v3 = vpop.f32.mrf.mxu1 }
 0x97f   :  { %v17598_v40 = vadd.f32 %v8799_v6, %v8535_v36 }
 0x980   :  { %18681 = vst [vmem:[#allocation29_spill] sm:$0xff] %v17596_v19  ;;  %8953 = vmatmul.bf16.gmra.mxu0 %v17397_v52 }
 0x981   :  { %18682 = vst [vmem:[#allocation30_spill] sm:$0xff] %v17598_v40  ;;  %9042 = vmatmul.bf16.gmra.mxu1 %v17397_v52 }
 0x982   :  { %9298 = vmatmul.bf16.gmra.mxu2 %v17411_v60 }
 0x983   :  { %9387 = vmatmul.bf16.gmra.mxu3 %v17411_v60 }
 0x985   :  { %v8713_v41 = vpop.f32.mrf.mxu2  ;;  %v8451_v40 = vpop.f32.mrf.mxu0 }
 0x986   :  { %v8802_v33 = vpop.f32.mrf.mxu3  ;;  %v17604_v36 = vadd.f32 %v8713_v41, %v8449_v23  ;;  %v8540_v19 = vpop.f32.mrf.mxu1 }
 0x987   :  { %v17606_v6 = vadd.f32 %v8802_v33, %v8538_v3  ;;  %v15867_v33 = vld [vmem:[#allocation9 + $0x234] sm:$0xf0] }
 0x98d   :  { %v8715_v52 = vpop.f32.mrf.mxu2  ;;  %v8454_v46 = vpop.f32.mrf.mxu0 }
 0x98e   :  { %v8804_v2 = vpop.f32.mrf.mxu3  ;;  %v17608_v35 = vadd.f32 %v8715_v52, %v8451_v40  ;;  %v8543_v22 = vpop.f32.mrf.mxu1  ;;  %v15866_v52 = vld [vmem:[#allocation9 + $0x234] sm:$0xf] }
 0x98f   :  { %v17610_v34 = vadd.f32 %v8804_v2, %v8540_v19 }
 0x990   :  { %18683 = vst [vmem:[#allocation43_spill] sm:$0xff] %v17608_v35  ;;  %8958 = vmatmul.bf16.gmra.mxu0 %v17411_v60 }
 0x991   :  { %18684 = vst [vmem:[#allocation44_spill] sm:$0xff] %v17610_v34  ;;  %9047 = vmatmul.bf16.gmra.mxu1 %v17411_v60 }
 0x992   :  { %9303 = vmatmul.bf16.gmra.mxu2 %v17423_v62 }
 0x993   :  { %9392 = vmatmul.bf16.gmra.mxu3 %v17423_v62 }
 0x995   :  { %v8718_v23 = vpop.f32.mrf.mxu2  ;;  %v8456_v40 = vpop.f32.mrf.mxu0 }
 0x996   :  { %v8807_v3 = vpop.f32.mrf.mxu3  ;;  %v17616_v61 = vadd.f32 %v8718_v23, %v8454_v46  ;;  %v8545_v15 = vpop.f32.mrf.mxu1  ;;  %v14694_v46 = vld [vmem:[#allocation9 + $0x230] sm:$0xf]  ;;  %v14696_v23 = vld [vmem:[#allocation9 + $0x238] sm:$0xf0] }
 0x997   :  { %v17618_v43 = vadd.f32 %v8807_v3, %v8543_v22  ;;  %v14695_v22 = vor.u32 %v15867_v33, %v14694_v46  ;;  %v14699_v3 = vor.u32 %v15866_v52, %v14696_v23 }
 0x998   :  { %18685 = vst [vmem:[#allocation33_spill] sm:$0xff] %v17616_v61 }
 0x999   :  { %18686 = vst [vmem:[#allocation34_spill] sm:$0xff] %v17618_v43  ;;  %9619 = vmatpush.bf16.msra.mxu0 %v14695_v22  ;;  %9708 = vmatpush.bf16.msra.mxu1 %v14699_v3 }
 0x99d   :  { %v8720_v2 = vpop.f32.mrf.mxu2  ;;  %v8459_v41 = vpop.f32.mrf.mxu0 }
 0x99e   :  { %v8809_v19 = vpop.f32.mrf.mxu3  ;;  %v17620_v31 = vadd.f32 %v8720_v2, %v8456_v40  ;;  %v8548_v60 = vpop.f32.mrf.mxu1 }
 0x99f   :  { %v17622_v59 = vadd.f32 %v8809_v19, %v8545_v15 }
 0x9a0   :  { %18687 = vst [vmem:[#allocation35_spill] sm:$0xff] %v17620_v31  ;;  %8963 = vmatmul.bf16.gmra.mxu0 %v17423_v62 }
 0x9a1   :  { %18688 = vst [vmem:[#allocation36_spill] sm:$0xff] %v17622_v59  ;;  %9052 = vmatmul.bf16.gmra.mxu1 %v17423_v62 }
 0x9a2   :  { %9308 = vmatmul.bf16.gmra.mxu2 %v17435_v57 }
 0x9a3   :  { %9397 = vmatmul.bf16.gmra.mxu3 %v17435_v57 }
 0x9a5   :  { %v8723_v40 = vpop.f32.mrf.mxu2  ;;  %v8461_v59 = vpop.f32.mrf.mxu0 }
 0x9a6   :  { %v8812_v2 = vpop.f32.mrf.mxu3  ;;  %v17628_v15 = vadd.f32 %v8723_v40, %v8459_v41  ;;  %v8550_v31 = vpop.f32.mrf.mxu1 }
 0x9a7   :  { %v17630_v19 = vadd.f32 %v8812_v2, %v8548_v60 }
 0x9ad   :  { %v8725_v62 = vpop.f32.mrf.mxu2  ;;  %v8464_v35 = vpop.f32.mrf.mxu0 }
 0x9ae   :  { %v8814_v43 = vpop.f32.mrf.mxu3  ;;  %v17632_v61 = vadd.f32 %v8725_v62, %v8461_v59  ;;  %v8553_v46 = vpop.f32.mrf.mxu1 }
 0x9af   :  { %v17634_v34 = vadd.f32 %v8814_v43, %v8550_v31  ;;  %v15935_v43 = vld [vmem:[#allocation10 + $0xb8] sm:$0xff] }
 0x9b0   :  { %8968 = vmatmul.bf16.gmra.mxu0 %v17435_v57  ;;  %v15943_v31 = vld [vmem:[#allocation10 + $0xf8] sm:$0xff]  ;;  %10486 = vmatpush.bf16.msra.mxu2 %v15935_v43 }
 0x9b1   :  { %18689 = vst [vmem:[#allocation49_spill] sm:$0xff] %v17634_v34  ;;  %9057 = vmatmul.bf16.gmra.mxu1 %v17435_v57  ;;  %10575 = vmatpush.bf16.msra.mxu3 %v15943_v31 }
 0x9b2   :  { %9313 = vmatmul.bf16.gmra.mxu2 %v17454_v18 }
 0x9b3   :  { %9402 = vmatmul.bf16.gmra.mxu3 %v17454_v18 }
 0x9b5   :  { %v8728_v41 = vpop.f32.mrf.mxu2  ;;  %v8466_v59 = vpop.f32.mrf.mxu0 }
 0x9b6   :  { %v8817_v60 = vpop.f32.mrf.mxu3  ;;  %v17640_v33 = vadd.f32 %v8728_v41, %v8464_v35  ;;  %v8555_v22 = vpop.f32.mrf.mxu1  ;;  %v15865_v41 = vld [vmem:[#allocation9 + $0x224] sm:$0xf0] }
 0x9b7   :  { %v17642_v52 = vadd.f32 %v8817_v60, %v8553_v46  ;;  %v14686_v46 = vld [vmem:[#allocation9 + $0x220] sm:$0xf]  ;;  %v15864_v60 = vld [vmem:[#allocation9 + $0x224] sm:$0xf] }
 0x9b9   :  { %18690 = vst [vmem:[#allocation50_spill] sm:$0xff] %v17642_v52 }
 0x9bd   :  { %v8730_v23 = vpop.f32.mrf.mxu2  ;;  %v8934_v2 = vpop.f32.mrf.mxu0 }
 0x9be   :  { %v8819_v3 = vpop.f32.mrf.mxu3  ;;  %v17644_v40 = vadd.f32 %v8730_v23, %v8466_v59  ;;  %v9023_v62 = vpop.f32.mrf.mxu1  ;;  %v9103_v34 = vadd.f32 %v8934_v2, %v17446_v24  ;;  %v14687_v59 = vor.u32 %v15865_v41, %v14686_v46 }
 0x9bf   :  { %v17646_v57 = vadd.f32 %v8819_v3, %v8555_v22  ;;  %v9104_v35 = vadd.f32 %v9023_v62, %v17448_v50  ;;  %v14688_v22 = vld [vmem:[#allocation9 + $0x228] sm:$0xf0] }
 0x9c0   :  { %18691 = vst [vmem:[#allocation39_spill] sm:$0xff] %v17644_v40  ;;  %8973 = vmatmul.bf16.gmra.mxu0 %v17454_v18  ;;  %v14691_v43 = vor.u32 %v15864_v60, %v14688_v22 }
 0x9c1   :  { %18692 = vst [vmem:[#allocation40_spill] sm:$0xff] %v17646_v57  ;;  %9062 = vmatmul.bf16.gmra.mxu1 %v17454_v18  ;;  %9620 = vmatpush.bf16.msra.mxu0 %v14687_v59 }
 0x9c2   :  { %9318 = vmatmul.bf16.gmra.mxu2 %v17468_v21  ;;  %9709 = vmatpush.bf16.msra.mxu1 %v14691_v43  ;;  %v15934_v43 = vld [vmem:[#allocation10 + $0xb0] sm:$0xff] }
 0x9c3   :  { %9407 = vmatmul.bf16.gmra.mxu3 %v17468_v21  ;;  %10487 = vmatpush.bf16.msra.mxu2 %v15934_v43 }
 0x9c5   :  { %v9279_v31 = vpop.f32.mrf.mxu2  ;;  %v8936_v3 = vpop.f32.mrf.mxu0 }
 0x9c6   :  { %v9368_v23 = vpop.f32.mrf.mxu3  ;;  %v17654_v24 = vadd.f32 %v9279_v31, %v9103_v34  ;;  %v9025_v2 = vpop.f32.mrf.mxu1  ;;  %v9105_v18 = vadd.f32 %v8936_v3, %v17450_v20  ;;  %v15942_v31 = vld [vmem:[#allocation10 + $0xf0] sm:$0xff] }
 0x9c7   :  { %v17656_v50 = vadd.f32 %v9368_v23, %v9104_v35  ;;  %v9106_v62 = vadd.f32 %v9025_v2, %v17452_v37  ;;  %10576 = vmatpush.bf16.msra.mxu3 %v15942_v31 }
 0x9cd   :  { %v9281_v57 = vpop.f32.mrf.mxu2  ;;  %v8939_v41 = vpop.f32.mrf.mxu0 }
 0x9ce   :  { %v9370_v40 = vpop.f32.mrf.mxu3  ;;  %v17660_v52 = vadd.f32 %v9281_v57, %v9105_v18  ;;  %v9028_v60 = vpop.f32.mrf.mxu1  ;;  %v9107_v34 = vadd.f32 %v8939_v41, %v17460_v47 }
 0x9cf   :  { %v17662_v46 = vadd.f32 %v9370_v40, %v9106_v62  ;;  %v9108_v35 = vadd.f32 %v9028_v60, %v17462_v11 }
 0x9d0   :  { %8978 = vmatmul.bf16.gmra.mxu0 %v17468_v21 }
 0x9d1   :  { %9067 = vmatmul.bf16.gmra.mxu1 %v17468_v21 }
 0x9d2   :  { %9323 = vmatmul.bf16.gmra.mxu2 %v17482_v12 }
 0x9d3   :  { %9412 = vmatmul.bf16.gmra.mxu3 %v17482_v12 }
 0x9d5   :  { %v9284_v20 = vpop.f32.mrf.mxu2  ;;  %v8941_v59 = vpop.f32.mrf.mxu0 }
 0x9d6   :  { %v9373_v37 = vpop.f32.mrf.mxu3  ;;  %v17670_v57 = vadd.f32 %v9284_v20, %v9107_v34  ;;  %v9030_v22 = vpop.f32.mrf.mxu1  ;;  %v9109_v47 = vadd.f32 %v8941_v59, %v17464_v45  ;;  %v14678_v45 = vld [vmem:[#allocation9 + $0x210] sm:$0xf]  ;;  %v15862_v34 = vld [vmem:[#allocation9 + $0x214] sm:$0xf]  ;;  %v14680_v20 = vld [vmem:[#allocation9 + $0x218] sm:$0xf0] }
 0x9d7   :  { %v17672_v40 = vadd.f32 %v9373_v37, %v9108_v35  ;;  %v9110_v11 = vadd.f32 %v9030_v22, %v17466_v28  ;;  %v15863_v28 = vld [vmem:[#allocation9 + $0x214] sm:$0xf0]  ;;  %v14683_v37 = vor.u32 %v15862_v34, %v14680_v20 }
 0x9d8   :  { %v14679_v35 = vor.u32 %v15863_v28, %v14678_v45 }
 0x9d9   :  { %9710 = vmatpush.bf16.msra.mxu1 %v14683_v37  ;;  %v15933_v37 = vld [vmem:[#allocation10 + $0xa8] sm:$0xff] }
 0x9da   :  { %9621 = vmatpush.bf16.msra.mxu0 %v14679_v35  ;;  %10488 = vmatpush.bf16.msra.mxu2 %v15933_v37 }
 0x9dd   :  { %v9286_v21 = vpop.f32.mrf.mxu2  ;;  %v8944_v18 = vpop.f32.mrf.mxu0 }
 0x9de   :  { %v9375_v23 = vpop.f32.mrf.mxu3  ;;  %v17676_v3 = vadd.f32 %v9286_v21, %v9109_v47  ;;  %v9033_v62 = vpop.f32.mrf.mxu1  ;;  %v9111_v41 = vadd.f32 %v8944_v18, %v17474_v49 }
 0x9df   :  { %v17678_v2 = vadd.f32 %v9375_v23, %v9110_v11  ;;  %v9112_v60 = vadd.f32 %v9033_v62, %v17476_v38 }
 0x9e0   :  { %8983 = vmatmul.bf16.gmra.mxu0 %v17482_v12 }
 0x9e1   :  { %9072 = vmatmul.bf16.gmra.mxu1 %v17482_v12 }
 0x9e2   :  { %9328 = vmatmul.bf16.gmra.mxu2 %v17496_v0 }
 0x9e3   :  { %9417 = vmatmul.bf16.gmra.mxu3 %v17496_v0 }
 0x9e5   :  { %v9289_v59 = vpop.f32.mrf.mxu2  ;;  %v8946_v47 = vpop.f32.mrf.mxu0 }
 0x9e6   :  { %v9378_v22 = vpop.f32.mrf.mxu3  ;;  %v17686_v49 = vadd.f32 %v9289_v59, %v9111_v41  ;;  %v9035_v11 = vpop.f32.mrf.mxu1  ;;  %v9113_v12 = vadd.f32 %v8946_v47, %v17478_v7  ;;  %v15941_v59 = vld [vmem:[#allocation10 + $0xe8] sm:$0xff] }
 0x9e7   :  { %v17688_v38 = vadd.f32 %v9378_v22, %v9112_v60  ;;  %v9114_v43 = vadd.f32 %v9035_v11, %v17480_v17  ;;  %10577 = vmatpush.bf16.msra.mxu3 %v15941_v59 }
 0x9ed   :  { %v9291_v31 = vpop.f32.mrf.mxu2  ;;  %v8949_v62 = vpop.f32.mrf.mxu0 }
 0x9ee   :  { %v9380_v21 = vpop.f32.mrf.mxu3  ;;  %v17692_v23 = vadd.f32 %v9291_v31, %v9113_v12  ;;  %v9038_v45 = vpop.f32.mrf.mxu1  ;;  %v9115_v41 = vadd.f32 %v8949_v62, %v17488_v30  ;;  %v15860_v62 = vld [vmem:[#allocation9 + $0x204] sm:$0xf] }
 0x9ef   :  { %v17694_v18 = vadd.f32 %v9380_v21, %v9114_v43  ;;  %v9116_v60 = vadd.f32 %v9038_v45, %v17490_v39 }
 0x9f0   :  { %8988 = vmatmul.bf16.gmra.mxu0 %v17496_v0 }
 0x9f1   :  { %9077 = vmatmul.bf16.gmra.mxu1 %v17496_v0 }
 0x9f2   :  { %9333 = vmatmul.bf16.gmra.mxu2 %v17510_v9 }
 0x9f3   :  { %9422 = vmatmul.bf16.gmra.mxu3 %v17510_v9 }
 0x9f5   :  { %v9294_v7 = vpop.f32.mrf.mxu2  ;;  %v8951_v35 = vpop.f32.mrf.mxu0 }
 0x9f6   :  { %v9383_v17 = vpop.f32.mrf.mxu3  ;;  %v17702_v28 = vadd.f32 %v9294_v7, %v9115_v41  ;;  %v9040_v20 = vpop.f32.mrf.mxu1  ;;  %v9117_v30 = vadd.f32 %v8951_v35, %v17492_v63  ;;  %v14670_v63 = vld [vmem:[#allocation9 + $0x200] sm:$0xf]  ;;  %v14672_v41 = vld [vmem:[#allocation9 + $0x208] sm:$0xf0] }
 0x9f7   :  { %v17704_v34 = vadd.f32 %v9383_v17, %v9116_v60  ;;  %v9118_v39 = vadd.f32 %v9040_v20, %v17494_v4  ;;  %v15861_v4 = vld [vmem:[#allocation9 + $0x204] sm:$0xf0]  ;;  %v14675_v60 = vor.u32 %v15860_v62, %v14672_v41 }
 0x9f8   :  { %v14671_v45 = vor.u32 %v15861_v4, %v14670_v63  ;;  %v15932_v4 = vld [vmem:[#allocation10 + $0xa0] sm:$0xff] }
 0x9f9   :  { %9711 = vmatpush.bf16.msra.mxu1 %v14675_v60  ;;  %10489 = vmatpush.bf16.msra.mxu2 %v15932_v4 }
 0x9fa   :  { %9622 = vmatpush.bf16.msra.mxu0 %v14671_v45 }
 0x9fd   :  { %v9296_v0 = vpop.f32.mrf.mxu2  ;;  %v8954_v12 = vpop.f32.mrf.mxu0 }
 0x9fe   :  { %v9385_v22 = vpop.f32.mrf.mxu3  ;;  %v17708_v47 = vadd.f32 %v9296_v0, %v9117_v30  ;;  %v9043_v43 = vpop.f32.mrf.mxu1  ;;  %v9119_v31 = vadd.f32 %v8954_v12, %v17502_v54 }
 0x9ff   :  { %v17710_v11 = vadd.f32 %v9385_v22, %v9118_v39  ;;  %v9120_v21 = vadd.f32 %v9043_v43, %v17504_v53 }
 0xa00   :  { %8993 = vmatmul.bf16.gmra.mxu0 %v17510_v9 }
 0xa01   :  { %9082 = vmatmul.bf16.gmra.mxu1 %v17510_v9 }
 0xa02   :  { %9338 = vmatmul.bf16.gmra.mxu2 %v17524_v27 }
 0xa03   :  { %9427 = vmatmul.bf16.gmra.mxu3 %v17524_v27 }
 0xa05   :  { %v9299_v7 = vpop.f32.mrf.mxu2  ;;  %v8956_v35 = vpop.f32.mrf.mxu0 }
 0xa06   :  { %v9388_v17 = vpop.f32.mrf.mxu3  ;;  %v17718_v54 = vadd.f32 %v9299_v7, %v9119_v31  ;;  %v9045_v20 = vpop.f32.mrf.mxu1  ;;  %v17723_v9 = vadd.f32 %v8956_v35, %v17506_v26  ;;  %v17754_v35 = vld [vmem:[#allocation2 + $0x88] sm:$0xff] }
 0xa07   :  { %v17720_v53 = vadd.f32 %v9388_v17, %v9120_v21  ;;  %v17726_v30 = vadd.f32 %v9045_v20, %v17508_v5 }
 0xa0d   :  { %v17728_v39 = vpop.f32.mrf.mxu2  ;;  %v8959_v59 = vpop.f32.mrf.mxu0 }
 0xa0e   :  { %v17730_v37 = vpop.f32.mrf.mxu3  ;;  %v9048_v0 = vpop.f32.mrf.mxu1  ;;  %v9123_v22 = vadd.f32 %v8959_v59, %v17516_v14 }
 0xa0f   :  { %v9124_v12 = vadd.f32 %v9048_v0, %v17518_v8 }
 0xa10   :  { %8998 = vmatmul.bf16.gmra.mxu0 %v17524_v27 }
 0xa11   :  { %9087 = vmatmul.bf16.gmra.mxu1 %v17524_v27  ;;  %v15940_v27 = vld [vmem:[#allocation10 + $0xe0] sm:$0xff] }
 0xa12   :  { %9343 = vmatmul.bf16.gmra.mxu2 %v17538_v25  ;;  %10578 = vmatpush.bf16.msra.mxu3 %v15940_v27 }
 0xa13   :  { %9432 = vmatmul.bf16.gmra.mxu3 %v17538_v25 }
 0xa15   :  { %v9304_v26 = vpop.f32.mrf.mxu2  ;;  %v8961_v21 = vpop.f32.mrf.mxu0 }
 0xa16   :  { %v9393_v5 = vpop.f32.mrf.mxu3  ;;  %v17738_v43 = vadd.f32 %v9304_v26, %v9123_v22  ;;  %v9050_v63 = vpop.f32.mrf.mxu1  ;;  %v17743_v14 = vadd.f32 %v8961_v21, %v17520_v51  ;;  %v17774_v21 = vld [vmem:[#allocation2 + $0x90] sm:$0xff] }
 0xa17   :  { %v17740_v31 = vadd.f32 %v9393_v5, %v9124_v12  ;;  %v17746_v8 = vadd.f32 %v9050_v63, %v17522_v29 }
 0xa1d   :  { %v17748_v62 = vpop.f32.mrf.mxu2  ;;  %v8964_v41 = vpop.f32.mrf.mxu0 }
 0xa1e   :  { %v17750_v45 = vpop.f32.mrf.mxu3  ;;  %v9053_v60 = vpop.f32.mrf.mxu1  ;;  %v9127_v7 = vadd.f32 %v8964_v41, %v17530_v56 }
 0xa1f   :  { %v9128_v17 = vadd.f32 %v9053_v60, %v17532_v48 }
 0xa20   :  { %9003 = vmatmul.bf16.gmra.mxu0 %v17538_v25 }
 0xa21   :  { %9092 = vmatmul.bf16.gmra.mxu1 %v17538_v25 }
 0xa22   :  { %9348 = vmatmul.bf16.gmra.mxu2 %v17754_v35 }
 0xa23   :  { %9437 = vmatmul.bf16.gmra.mxu3 %v17754_v35 }
 0xa25   :  { %v9309_v51 = vpop.f32.mrf.mxu2  ;;  %v8966_v0 = vpop.f32.mrf.mxu0 }
 0xa26   :  { %v9398_v29 = vpop.f32.mrf.mxu3  ;;  %v17760_v20 = vadd.f32 %v9309_v51, %v9127_v7  ;;  %v9055_v56 = vpop.f32.mrf.mxu1  ;;  %v17765_v48 = vadd.f32 %v8966_v0, %v17534_v32  ;;  %v15931_v51 = vld [vmem:[#allocation10 + $0x98] sm:$0xff] }
 0xa27   :  { %v17762_v59 = vadd.f32 %v9398_v29, %v9128_v17  ;;  %v17768_v22 = vadd.f32 %v9055_v56, %v17536_v58  ;;  %v15939_v29 = vld [vmem:[#allocation10 + $0xd8] sm:$0xff]  ;;  %10490 = vmatpush.bf16.msra.mxu2 %v15931_v51 }
 0xa28   :  { %10579 = vmatpush.bf16.msra.mxu3 %v15939_v29  ;;  %v18699_v29 = vld [vmem:[#allocation31_spill] sm:$0xff] }
 0xa2d   :  { %v17770_v12 = vpop.f32.mrf.mxu2  ;;  %v8969_v26 = vpop.f32.mrf.mxu0 }
 0xa2e   :  { %v17772_v25 = vpop.f32.mrf.mxu3  ;;  %v9058_v5 = vpop.f32.mrf.mxu1  ;;  %v9131_v63 = vadd.f32 %v8969_v26, %v17544_v13 }
 0xa2f   :  { %v9132_v4 = vadd.f32 %v9058_v5, %v17546_v16  ;;  %v18694_v16 = vld [vmem:[#allocation22_spill] sm:$0xff] }
 0xa30   :  { %9008 = vmatmul.bf16.gmra.mxu0 %v17754_v35 }
 0xa31   :  { %9097 = vmatmul.bf16.gmra.mxu1 %v17754_v35 }
 0xa32   :  { %9353 = vmatmul.bf16.gmra.mxu2 %v17774_v21 }
 0xa33   :  { %9442 = vmatmul.bf16.gmra.mxu3 %v17774_v21 }
 0xa35   :  { %v9314_v32 = vpop.f32.mrf.mxu2  ;;  %v8971_v60 = vpop.f32.mrf.mxu0 }
 0xa36   :  { %v9403_v58 = vpop.f32.mrf.mxu3  ;;  %v17782_v27 = vadd.f32 %v9314_v32, %v9131_v63  ;;  %v9060_v7 = vpop.f32.mrf.mxu1  ;;  %v17787_v13 = vadd.f32 %v8971_v60, %v17548_v1  ;;  %v16094_v32 = vld [vmem:[#allocation2 + $0x20] sm:$0xff] }
 0xa37   :  { %v17784_v41 = vadd.f32 %v9403_v58, %v9132_v4  ;;  %v17790_v17 = vadd.f32 %v9060_v7, %v18694_v16 }
 0xa38   :  { %18693 = vst [vmem:[#allocation41_spill] sm:$0xff] %v17787_v13 }
 0xa39   :  { %18695 = vst [vmem:[#allocation42_spill] sm:$0xff] %v17790_v17 }
 0xa3d   :  { %v17792_v0 = vpop.f32.mrf.mxu2  ;;  %v8974_v26 = vpop.f32.mrf.mxu0 }
 0xa3e   :  { %18696 = vst [vmem:[#allocation55_spill] sm:$0xff] %v17792_v0  ;;  %v17794_v56 = vpop.f32.mrf.mxu3  ;;  %v9063_v5 = vpop.f32.mrf.mxu1  ;;  %v9135_v63 = vadd.f32 %v8974_v26, %v17556_v10 }
 0xa3f   :  { %18697 = vst [vmem:[#allocation56_spill] sm:$0xff] %v17794_v56  ;;  %v9136_v4 = vadd.f32 %v9063_v5, %v17558_v44  ;;  %v18701_v56 = vld [vmem:[#allocation32_spill] sm:$0xff] }
 0xa40   :  { %9623 = vmatmul.bf16.vlgmr.msra.gmra.mxu0 %v16094_v32 }
 0xa41   :  { %9712 = vmatmul.bf16.vlgmr.msra.gmra.mxu1 %v16094_v32  ;;  %v18705_v32 = vld [vmem:[#allocation23_spill] sm:$0xff] }
 0xa45   :  { %v9319_v1 = vpop.f32.mrf.mxu2  ;;  %v8976_v16 = vpop.f32.mrf.mxu0 }
 0xa46   :  { %v9408_v58 = vpop.f32.mrf.mxu3  ;;  %v17798_v60 = vadd.f32 %v9319_v1, %v9135_v63  ;;  %v9065_v51 = vpop.f32.mrf.mxu1  ;;  %v17803_v17 = vadd.f32 %v8976_v16, %v18699_v29  ;;  %v18706_v63 = vld [vmem:[#allocation24_spill] sm:$0xff] }
 0xa47   :  { %v17800_v7 = vadd.f32 %v9408_v58, %v9136_v4  ;;  %v17806_v0 = vadd.f32 %v9065_v51, %v18701_v56  ;;  %v16095_v4 = vld [vmem:[#allocation2 + $0x28] sm:$0xff] }
 0xa48   :  { %18700 = vst [vmem:[#allocation46_spill] sm:$0xff] %v17803_v17 }
 0xa49   :  { %18698 = vst [vmem:[#allocation45_spill] sm:$0xff] %v17800_v7 }
 0xa4a   :  { %18702 = vst [vmem:[#allocation47_spill] sm:$0xff] %v17806_v0  ;;  %v18708_v0 = vld [vmem:[#allocation25_spill] sm:$0xff] }
 0xa4d   :  { %v17808_v10 = vpop.f32.mrf.mxu2  ;;  %v8979_v26 = vpop.f32.mrf.mxu0 }
 0xa4e   :  { %18703 = vst [vmem:[#allocation48_spill] sm:$0xff] %v17808_v10  ;;  %v17810_v44 = vpop.f32.mrf.mxu3  ;;  %v9068_v5 = vpop.f32.mrf.mxu1  ;;  %v9139_v13 = vadd.f32 %v8979_v26, %v18705_v32  ;;  %v15930_v26 = vld [vmem:[#allocation10 + $0x90] sm:$0xff] }
 0xa4f   :  { %18704 = vst [vmem:[#allocation51_spill] sm:$0xff] %v17810_v44  ;;  %v9140_v1 = vadd.f32 %v9068_v5, %v18706_v63  ;;  %v18710_v44 = vld [vmem:[#allocation26_spill] sm:$0xff]  ;;  %10491 = vmatpush.bf16.msra.mxu2 %v15930_v26 }
 0xa50   :  { %9628 = vmatmul.bf16.gmra.mxu0 %v16095_v4  ;;  %v15938_v32 = vld [vmem:[#allocation10 + $0xd0] sm:$0xff] }
 0xa51   :  { %9717 = vmatmul.bf16.gmra.mxu1 %v16095_v4  ;;  %10580 = vmatpush.bf16.msra.mxu3 %v15938_v32 }
 0xa55   :  { %v9324_v58 = vpop.f32.mrf.mxu2  ;;  %v8981_v56 = vpop.f32.mrf.mxu0 }
 0xa56   :  { %v9413_v7 = vpop.f32.mrf.mxu3  ;;  %v17814_v16 = vadd.f32 %v9324_v58, %v9139_v13  ;;  %v9070_v51 = vpop.f32.mrf.mxu1  ;;  %v17819_v10 = vadd.f32 %v8981_v56, %v18708_v0  ;;  %v16096_v58 = vld [vmem:[#allocation2 + $0x30] sm:$0xff] }
 0xa57   :  { %v17816_v29 = vadd.f32 %v9413_v7, %v9140_v1  ;;  %v17822_v17 = vadd.f32 %v9070_v51, %v18710_v44 }
 0xa58   :  { %18709 = vst [vmem:[#allocation53_spill] sm:$0xff] %v17819_v10 }
 0xa59   :  { %18707 = vst [vmem:[#allocation52_spill] sm:$0xff] %v17816_v29 }
 0xa5a   :  { %18711 = vst [vmem:[#allocation54_spill] sm:$0xff] %v17822_v17  ;;  %v18715_v17 = vld [vmem:[#allocation37_spill] sm:$0xff] }
 0xa5d   :  { %v17824_v5 = vpop.f32.mrf.mxu2  ;;  %v8984_v13 = vpop.f32.mrf.mxu0 }
 0xa5e   :  { %18712 = vst [vmem:[#allocation22_spill] sm:$0xff] %v17824_v5  ;;  %v17826_v63 = vpop.f32.mrf.mxu3  ;;  %v9073_v4 = vpop.f32.mrf.mxu1  ;;  %v9143_v7 = vadd.f32 %v8984_v13, %v17580_v42 }
 0xa5f   :  { %18713 = vst [vmem:[#allocation31_spill] sm:$0xff] %v17826_v63  ;;  %v9144_v1 = vadd.f32 %v9073_v4, %v17582_v55  ;;  %v18717_v63 = vld [vmem:[#allocation38_spill] sm:$0xff] }
 0xa60   :  { %9633 = vmatmul.bf16.gmra.mxu0 %v16096_v58 }
 0xa61   :  { %9722 = vmatmul.bf16.gmra.mxu1 %v16096_v58  ;;  %v18721_v58 = vld [vmem:[#allocation27_spill] sm:$0xff] }
 0xa65   :  { %v9329_v0 = vpop.f32.mrf.mxu2  ;;  %v8986_v26 = vpop.f32.mrf.mxu0 }
 0xa66   :  { %v9418_v44 = vpop.f32.mrf.mxu3  ;;  %v17830_v56 = vadd.f32 %v9329_v0, %v9143_v7  ;;  %v9075_v32 = vpop.f32.mrf.mxu1  ;;  %v17835_v5 = vadd.f32 %v8986_v26, %v18715_v17  ;;  %v18722_v7 = vld [vmem:[#allocation28_spill] sm:$0xff] }
 0xa67   :  { %v17832_v51 = vadd.f32 %v9418_v44, %v9144_v1  ;;  %v17838_v10 = vadd.f32 %v9075_v32, %v18717_v63  ;;  %v16097_v1 = vld [vmem:[#allocation2 + $0x38] sm:$0xff] }
 0xa68   :  { %18716 = vst [vmem:[#allocation23_spill] sm:$0xff] %v17835_v5 }
 0xa69   :  { %18714 = vst [vmem:[#allocation32_spill] sm:$0xff] %v17832_v51 }
 0xa6a   :  { %18718 = vst [vmem:[#allocation24_spill] sm:$0xff] %v17838_v10  ;;  %v18724_v10 = vld [vmem:[#allocation29_spill] sm:$0xff] }
 0xa6d   :  { %v17840_v42 = vpop.f32.mrf.mxu2  ;;  %v8989_v13 = vpop.f32.mrf.mxu0 }
 0xa6e   :  { %18719 = vst [vmem:[#allocation25_spill] sm:$0xff] %v17840_v42  ;;  %v17842_v55 = vpop.f32.mrf.mxu3  ;;  %v9078_v4 = vpop.f32.mrf.mxu1  ;;  %v9147_v29 = vadd.f32 %v8989_v13, %v18721_v58  ;;  %v15929_v13 = vld [vmem:[#allocation10 + $0x88] sm:$0xff] }
 0xa6f   :  { %18720 = vst [vmem:[#allocation26_spill] sm:$0xff] %v17842_v55  ;;  %v9148_v0 = vadd.f32 %v9078_v4, %v18722_v7  ;;  %v18726_v55 = vld [vmem:[#allocation30_spill] sm:$0xff]  ;;  %v15937_v58 = vld [vmem:[#allocation10 + $0xc8] sm:$0xff]  ;;  %10492 = vmatpush.bf16.msra.mxu2 %v15929_v13 }
 0xa70   :  { %9638 = vmatmul.bf16.gmra.mxu0 %v16097_v1  ;;  %10581 = vmatpush.bf16.msra.mxu3 %v15937_v58 }
 0xa71   :  { %9727 = vmatmul.bf16.gmra.mxu1 %v16097_v1 }
 0xa75   :  { %v9334_v44 = vpop.f32.mrf.mxu2  ;;  %v8991_v63 = vpop.f32.mrf.mxu0 }
 0xa76   :  { %v9423_v51 = vpop.f32.mrf.mxu3  ;;  %v17846_v17 = vadd.f32 %v9334_v44, %v9147_v29  ;;  %v9080_v32 = vpop.f32.mrf.mxu1  ;;  %v17851_v42 = vadd.f32 %v8991_v63, %v18724_v10  ;;  %v16098_v44 = vld [vmem:[#allocation2 + $0x40] sm:$0xff] }
 0xa77   :  { %v17848_v26 = vadd.f32 %v9423_v51, %v9148_v0  ;;  %v17854_v5 = vadd.f32 %v9080_v32, %v18726_v55 }
 0xa78   :  { %18725 = vst [vmem:[#allocation38_spill] sm:$0xff] %v17851_v42 }
 0xa79   :  { %18723 = vst [vmem:[#allocation37_spill] sm:$0xff] %v17848_v26 }
 0xa7a   :  { %18727 = vst [vmem:[#allocation27_spill] sm:$0xff] %v17854_v5  ;;  %v18731_v5 = vld [vmem:[#allocation43_spill] sm:$0xff] }
 0xa7d   :  { %v17856_v4 = vpop.f32.mrf.mxu2  ;;  %v8994_v29 = vpop.f32.mrf.mxu0 }
 0xa7e   :  { %18728 = vst [vmem:[#allocation28_spill] sm:$0xff] %v17856_v4  ;;  %v17858_v7 = vpop.f32.mrf.mxu3  ;;  %v9083_v1 = vpop.f32.mrf.mxu1  ;;  %v9151_v51 = vadd.f32 %v8994_v29, %v17604_v36 }
 0xa7f   :  { %18729 = vst [vmem:[#allocation29_spill] sm:$0xff] %v17858_v7  ;;  %v9152_v0 = vadd.f32 %v9083_v1, %v17606_v6  ;;  %v18733_v7 = vld [vmem:[#allocation44_spill] sm:$0xff] }
 0xa80   :  { %9643 = vmatmul.bf16.gmra.mxu0 %v16098_v44 }
 0xa81   :  { %9732 = vmatmul.bf16.gmra.mxu1 %v16098_v44  ;;  %v18737_v44 = vld [vmem:[#allocation33_spill] sm:$0xff] }
 0xa85   :  { %v9339_v10 = vpop.f32.mrf.mxu2  ;;  %v8996_v13 = vpop.f32.mrf.mxu0 }
 0xa86   :  { %v9428_v55 = vpop.f32.mrf.mxu3  ;;  %v17862_v63 = vadd.f32 %v9339_v10, %v9151_v51  ;;  %v9085_v58 = vpop.f32.mrf.mxu1  ;;  %v17867_v4 = vadd.f32 %v8996_v13, %v18731_v5  ;;  %v18738_v51 = vld [vmem:[#allocation34_spill] sm:$0xff] }
 0xa87   :  { %v17864_v32 = vadd.f32 %v9428_v55, %v9152_v0  ;;  %v17870_v42 = vadd.f32 %v9085_v58, %v18733_v7  ;;  %v16099_v0 = vld [vmem:[#allocation2 + $0x48] sm:$0xff] }
 0xa88   :  { %18732 = vst [vmem:[#allocation43_spill] sm:$0xff] %v17867_v4 }
 0xa89   :  { %18730 = vst [vmem:[#allocation30_spill] sm:$0xff] %v17864_v32 }
 0xa8a   :  { %18734 = vst [vmem:[#allocation44_spill] sm:$0xff] %v17870_v42  ;;  %v18739_v42 = vld [vmem:[#allocation35_spill] sm:$0xff] }
 0xa8d   :  { %v17872_v36 = vpop.f32.mrf.mxu2  ;;  %v8999_v29 = vpop.f32.mrf.mxu0 }
 0xa8e   :  { %18735 = vst [vmem:[#allocation57_spill] sm:$0xff] %v17872_v36  ;;  %v17874_v6 = vpop.f32.mrf.mxu3  ;;  %v9088_v1 = vpop.f32.mrf.mxu1  ;;  %v9155_v26 = vadd.f32 %v8999_v29, %v18737_v44  ;;  %v15928_v29 = vld [vmem:[#allocation10 + $0x80] sm:$0xff] }
 0xa8f   :  { %18736 = vst [vmem:[#allocation58_spill] sm:$0xff] %v17874_v6  ;;  %v9156_v10 = vadd.f32 %v9088_v1, %v18738_v51  ;;  %v18740_v6 = vld [vmem:[#allocation36_spill] sm:$0xff]  ;;  %10493 = vmatpush.bf16.msra.mxu2 %v15928_v29 }
 0xa90   :  { %9648 = vmatmul.bf16.gmra.mxu0 %v16099_v0  ;;  %v15936_v44 = vld [vmem:[#allocation10 + $0xc0] sm:$0xff] }
 0xa91   :  { %9737 = vmatmul.bf16.gmra.mxu1 %v16099_v0  ;;  %10582 = vmatpush.bf16.msra.mxu3 %v15936_v44 }
 0xa95   :  { %v9344_v55 = vpop.f32.mrf.mxu2  ;;  %v9001_v7 = vpop.f32.mrf.mxu0 }
 0xa96   :  { %v9433_v32 = vpop.f32.mrf.mxu3  ;;  %v17878_v5 = vadd.f32 %v9344_v55, %v9155_v26  ;;  %v9090_v58 = vpop.f32.mrf.mxu1  ;;  %v17883_v36 = vadd.f32 %v9001_v7, %v18739_v42  ;;  %v16100_v55 = vld [vmem:[#allocation2 + $0x50] sm:$0xff] }
 0xa97   :  { %v17880_v13 = vadd.f32 %v9433_v32, %v9156_v10  ;;  %v17886_v4 = vadd.f32 %v9090_v58, %v18740_v6 }
 0xa99   :  { %18741 = vst [vmem:[#allocation33_spill] sm:$0xff] %v17886_v4 }
 0xa9d   :  { %v17888_v1 = vpop.f32.mrf.mxu2  ;;  %v9004_v26 = vpop.f32.mrf.mxu0 }
 0xa9e   :  { %18742 = vst [vmem:[#allocation34_spill] sm:$0xff] %v17888_v1  ;;  %v17890_v51 = vpop.f32.mrf.mxu3  ;;  %v9093_v0 = vpop.f32.mrf.mxu1  ;;  %v9159_v32 = vadd.f32 %v9004_v26, %v17628_v15 }
 0xa9f   :  { %18743 = vst [vmem:[#allocation35_spill] sm:$0xff] %v17890_v51  ;;  %v9160_v10 = vadd.f32 %v9093_v0, %v17630_v19  ;;  %v18747_v51 = vld [vmem:[#allocation49_spill] sm:$0xff] }
 0xaa0   :  { %9653 = vmatmul.bf16.gmra.mxu0 %v16100_v55 }
 0xaa1   :  { %9742 = vmatmul.bf16.gmra.mxu1 %v16100_v55 }
 0xaa5   :  { %v9349_v42 = vpop.f32.mrf.mxu2  ;;  %v9006_v29 = vpop.f32.mrf.mxu0 }
 0xaa6   :  { %v9438_v6 = vpop.f32.mrf.mxu3  ;;  %v17894_v7 = vadd.f32 %v9349_v42, %v9159_v32  ;;  %v9095_v44 = vpop.f32.mrf.mxu1  ;;  %v17899_v4 = vadd.f32 %v9006_v29, %v17632_v61  ;;  %v18751_v32 = vld [vmem:[#allocation50_spill] sm:$0xff] }
 0xaa7   :  { %v17896_v58 = vadd.f32 %v9438_v6, %v9160_v10  ;;  %v17902_v1 = vadd.f32 %v9095_v44, %v18747_v51  ;;  %v16101_v10 = vld [vmem:[#allocation2 + $0x58] sm:$0xff] }
 0xaa8   :  { %18744 = vst [vmem:[#allocation36_spill] sm:$0xff] %v17894_v7  ;;  %v15919_v7 = vld [vmem:[#allocation10 + $0x38] sm:$0xff] }
 0xaa9   :  { %18745 = vst [vmem:[#allocation59_spill] sm:$0xff] %v17896_v58  ;;  %10770 = vmatpush.bf16.msrb.mxu0 %v15919_v7 }
 0xaaa   :  { %18746 = vst [vmem:[#allocation60_spill] sm:$0xff] %v17899_v4 }
 0xaab   :  { %18748 = vst [vmem:[#allocation49_spill] sm:$0xff] %v17902_v1  ;;  %v18754_v1 = vld [vmem:[#allocation39_spill] sm:$0xff] }
 0xaad   :  { %v17904_v15 = vpop.f32.mrf.mxu2  ;;  %v9009_v26 = vpop.f32.mrf.mxu0 }
 0xaae   :  { %18749 = vst [vmem:[#allocation61_spill] sm:$0xff] %v17904_v15  ;;  %v17906_v19 = vpop.f32.mrf.mxu3  ;;  %v9098_v0 = vpop.f32.mrf.mxu1  ;;  %v9163_v55 = vadd.f32 %v9009_v26, %v17640_v33  ;;  %v9857_v33 = vld [vmem:[%s18568_s6] sm:$0x3] }
 0xaaf   :  { %18750 = vst [vmem:[#allocation62_spill] sm:$0xff] %v17906_v19  ;;  %v9164_v42 = vadd.f32 %v9098_v0, %v18751_v32  ;;  %v18756_v19 = vld [vmem:[#allocation40_spill] sm:$0xff]  ;;  %v9927_v26 = vld [vmem:[%s18569_s7] sm:$0x3]  ;;  %v17926_v0 = vperm.slane %v9857_v33, 0 }
 0xab0   :  { %9658 = vmatmul.bf16.gmra.mxu0 %v16101_v10 }
 0xab1   :  { %9747 = vmatmul.bf16.gmra.mxu1 %v16101_v10  ;;  %v17934_v10 = vperm.slane %v9927_v26, 1 }
 0xab5   :  { %v9354_v6 = vpop.f32.mrf.mxu2  ;;  %v9011_v51 = vpop.f32.mrf.mxu0 }
 0xab6   :  { %v9443_v58 = vpop.f32.mrf.mxu3  ;;  %v17910_v61 = vadd.f32 %v9354_v6, %v9163_v55  ;;  %v9100_v44 = vpop.f32.mrf.mxu1  ;;  %v17915_v15 = vadd.f32 %v9011_v51, %v18754_v1 }
 0xab7   :  { %v17912_v29 = vadd.f32 %v9443_v58, %v9164_v42  ;;  %v17918_v4 = vadd.f32 %v9100_v44, %v18756_v19  ;;  %v17928_v58 = vperm.slane %v9857_v33, 1  ;;  %v17931_v42 = vperm.slane %v9927_v26, 0  ;;  %v16102_v44 = vld [vmem:[#allocation2 + $0x60] sm:$0xff]  ;;  %v15959_v33 = vld [vmem:[#allocation10 + $0x178] sm:$0xff] }
 0xab8   :  { %18752 = vst [vmem:[#allocation50_spill] sm:$0xff] %v17910_v61  ;;  %11176 = vmatpush.bf16.msrb.mxu3 %v15959_v33 }
 0xab9   :  { %18753 = vst [vmem:[#allocation63_spill] sm:$0xff] %v17912_v29 }
 0xaba   :  { %18755 = vst [vmem:[#allocation39_spill] sm:$0xff] %v17915_v15 }
 0xabb   :  { %18757 = vst [vmem:[#allocation40_spill] sm:$0xff] %v17918_v4  ;;  %v15951_v4 = vld [vmem:[#allocation10 + $0x138] sm:$0xff] }
 0xabc   :  { %11087 = vmatpush.bf16.msrb.mxu2 %v15951_v4 }
 0xabd   :  { %v9624_v55 = vpop.f32.mrf.mxu0 }
 0xabe   :  { %v9713_v32 = vpop.f32.mrf.mxu1  ;;  %v9793_v1 = vadd.f32 %v9624_v55, %v17654_v24 }
 0xabf   :  { %v9794_v19 = vadd.f32 %v9713_v32, %v17656_v50 }
 0xac0   :  { %v9863_v6 = vmul.f32 %v17926_v0, %v9793_v1  ;;  %9663 = vmatmul.bf16.gmra.mxu0 %v16102_v44 }
 0xac1   :  { %v9864_v51 = vmul.f32 %v17928_v58, %v9794_v19  ;;  %9752 = vmatmul.bf16.gmra.mxu1 %v16102_v44 }
 0xac2   :  { %v9933_v15 = vadd.f32 %v17931_v42, %v9863_v6  ;;  %v15927_v6 = vld [vmem:[#allocation10 + $0x78] sm:$0xff] }
 0xac3   :  { %v9934_v29 = vadd.f32 %v17934_v10, %v9864_v51  ;;  %10859 = vmatpush.bf16.msrb.mxu1 %v15927_v6 }
 0xac4   :  { %v9997_v24 = vmax.f32 %v9933_v15, 0.0 }
 0xac5   :  { %v9998_v55 = vmax.f32 %v9934_v29, 0.0  ;;  %v9626_v50 = vpop.f32.mrf.mxu0 }
 0xac6   :  { %v9715_v26 = vpop.f32.mrf.mxu1  ;;  %v9795_v1 = vadd.f32 %v9626_v50, %v17660_v52 }
 0xac7   :  { %v10065_v32 = vpack.c.bf16 %v9998_v55, %v9997_v24  ;;  %v9796_v19 = vadd.f32 %v9715_v26, %v17662_v46 }
 0xac8   :  { %v9865_v44 = vmul.f32 %v17926_v0, %v9795_v1 }
 0xac9   :  { %10097 = vst [vmem:[#allocation3 + $0x10] sm:$0xff] %v10065_v32  ;;  %v9866_v61 = vmul.f32 %v17928_v58, %v9796_v19  ;;  %v16103_v32 = vld [vmem:[#allocation2 + $0x68] sm:$0xff] }
 0xaca   :  { %v9935_v51 = vadd.f32 %v17931_v42, %v9865_v44 }
 0xacb   :  { %v9936_v4 = vadd.f32 %v17934_v10, %v9866_v61 }
 0xacc   :  { %v9999_v15 = vmax.f32 %v9935_v51, 0.0 }
 0xacd   :  { %v10000_v29 = vmax.f32 %v9936_v4, 0.0  ;;  %v9629_v33 = vpop.f32.mrf.mxu0 }
 0xace   :  { %v9718_v24 = vpop.f32.mrf.mxu1  ;;  %v9797_v46 = vadd.f32 %v9629_v33, %v17670_v57 }
 0xacf   :  { %v10066_v52 = vpack.c.bf16 %v10000_v29, %v9999_v15  ;;  %v9798_v55 = vadd.f32 %v9718_v24, %v17672_v40 }
 0xad0   :  { %v9867_v50 = vmul.f32 %v17926_v0, %v9797_v46  ;;  %9668 = vmatmul.bf16.gmra.mxu0 %v16103_v32  ;;  %v14734_v4 = vld [vmem:[#allocation3 + $0x10] sm:$0xf]  ;;  %v15878_v29 = vld [vmem:[#allocation3 + $0x14] sm:$0xf] }
 0xad1   :  { %10098 = vst [vmem:[#allocation3 + $0x18] sm:$0xff] %v10066_v52  ;;  %v9868_v26 = vmul.f32 %v17928_v58, %v9798_v55  ;;  %9757 = vmatmul.bf16.gmra.mxu1 %v16103_v32 }
 0xad2   :  { %v9937_v7 = vadd.f32 %v17931_v42, %v9867_v50 }
 0xad3   :  { %v9938_v61 = vadd.f32 %v17934_v10, %v9868_v26 }
 0xad4   :  { %v10001_v1 = vmax.f32 %v9937_v7, 0.0 }
 0xad5   :  { %v10002_v19 = vmax.f32 %v9938_v61, 0.0  ;;  %v9631_v44 = vpop.f32.mrf.mxu0 }
 0xad6   :  { %v9720_v6 = vpop.f32.mrf.mxu1  ;;  %v9799_v57 = vadd.f32 %v9631_v44, %v17676_v3 }
 0xad7   :  { %v10067_v51 = vpack.c.bf16 %v10002_v19, %v10001_v1  ;;  %v9800_v40 = vadd.f32 %v9720_v6, %v17678_v2 }
 0xad8   :  { %v15879_v15 = vld [vmem:[#allocation3 + $0x14] sm:$0xf0]  ;;  %v14736_v33 = vld [vmem:[#allocation3 + $0x18] sm:$0xf0]  ;;  %v9869_v24 = vmul.f32 %v17926_v0, %v9799_v57  ;;  %v15950_v57 = vld [vmem:[#allocation10 + $0x130] sm:$0xff] }
 0xad9   :  { %10099 = vst [vmem:[#allocation3 + $0x20] sm:$0xff] %v10067_v51  ;;  %v9870_v52 = vmul.f32 %v17928_v58, %v9800_v40  ;;  %v17956_v46 = vor.u32 %v15879_v15, %v14734_v4  ;;  %v17958_v55 = vor.u32 %v15878_v29, %v14736_v33  ;;  %v16104_v51 = vld [vmem:[#allocation2 + $0x70] sm:$0xff]  ;;  %11088 = vmatpush.bf16.msrb.mxu2 %v15950_v57 }
 0xada   :  { %v9939_v50 = vadd.f32 %v17931_v42, %v9869_v24  ;;  %v15958_v40 = vld [vmem:[#allocation10 + $0x170] sm:$0xff] }
 0xadb   :  { %v9940_v26 = vadd.f32 %v17934_v10, %v9870_v52  ;;  %10494 = vmatmul.bf16.vlgmr.msra.gmra.mxu2 %v17956_v46  ;;  %10583 = vmatmul.bf16.vlgmr.msra.gmra.mxu3 %v17958_v55 }
 0xadc   :  { %v10003_v3 = vmax.f32 %v9939_v50, 0.0  ;;  %11177 = vmatpush.bf16.msrb.mxu3 %v15958_v40 }
 0xadd   :  { %v10004_v2 = vmax.f32 %v9940_v26, 0.0  ;;  %v9634_v32 = vpop.f32.mrf.mxu0 }
 0xade   :  { %v9723_v7 = vpop.f32.mrf.mxu1  ;;  %v9801_v1 = vadd.f32 %v9634_v32, %v17686_v49 }
 0xadf   :  { %v10068_v61 = vpack.c.bf16 %v10004_v2, %v10003_v3  ;;  %v9802_v19 = vadd.f32 %v9723_v7, %v17688_v38 }
 0xae0   :  { %v9871_v44 = vmul.f32 %v17926_v0, %v9801_v1  ;;  %9673 = vmatmul.bf16.gmra.mxu0 %v16104_v51  ;;  %v14742_v26 = vld [vmem:[#allocation3 + $0x20] sm:$0xf]  ;;  %v15880_v2 = vld [vmem:[#allocation3 + $0x24] sm:$0xf] }
 0xae1   :  { %10100 = vst [vmem:[#allocation3 + $0x28] sm:$0xff] %v10068_v61  ;;  %v9872_v6 = vmul.f32 %v17928_v58, %v9802_v19  ;;  %9762 = vmatmul.bf16.gmra.mxu1 %v16104_v51 }
 0xae2   :  { %v9941_v4 = vadd.f32 %v17931_v42, %v9871_v44  ;;  %v15918_v44 = vld [vmem:[#allocation10 + $0x30] sm:$0xff] }
 0xae3   :  { %v9942_v15 = vadd.f32 %v17934_v10, %v9872_v6  ;;  %v15926_v6 = vld [vmem:[#allocation10 + $0x70] sm:$0xff]  ;;  %10771 = vmatpush.bf16.msrb.mxu0 %v15918_v44 }
 0xae4   :  { %v10005_v29 = vmax.f32 %v9941_v4, 0.0  ;;  %10860 = vmatpush.bf16.msrb.mxu1 %v15926_v6 }
 0xae5   :  { %v10006_v49 = vmax.f32 %v9942_v15, 0.0  ;;  %v9636_v33 = vpop.f32.mrf.mxu0 }
 0xae6   :  { %v9725_v38 = vpop.f32.mrf.mxu1  ;;  %v9803_v52 = vadd.f32 %v9636_v33, %v17692_v23 }
 0xae7   :  { %v10069_v24 = vpack.c.bf16 %v10006_v49, %v10005_v29  ;;  %v9804_v50 = vadd.f32 %v9725_v38, %v17694_v18 }
 0xae8   :  { %v15881_v3 = vld [vmem:[#allocation3 + $0x24] sm:$0xf0]  ;;  %v14744_v32 = vld [vmem:[#allocation3 + $0x28] sm:$0xf0]  ;;  %v9873_v7 = vmul.f32 %v17926_v0, %v9803_v52 }
 0xae9   :  { %10101 = vst [vmem:[#allocation3 + $0x30] sm:$0xff] %v10069_v24  ;;  %v9874_v61 = vmul.f32 %v17928_v58, %v9804_v50  ;;  %v17974_v1 = vor.u32 %v15881_v3, %v14742_v26  ;;  %v17976_v19 = vor.u32 %v15880_v2, %v14744_v32  ;;  %v16105_v24 = vld [vmem:[#allocation2 + $0x78] sm:$0xff] }
 0xaea   :  { %v9943_v51 = vadd.f32 %v17931_v42, %v9873_v7 }
 0xaeb   :  { %v9944_v23 = vadd.f32 %v17934_v10, %v9874_v61  ;;  %10499 = vmatmul.bf16.gmra.mxu2 %v17974_v1  ;;  %10588 = vmatmul.bf16.gmra.mxu3 %v17976_v19 }
 0xaec   :  { %v10007_v18 = vmax.f32 %v9943_v51, 0.0 }
 0xaed   :  { %v10008_v57 = vmax.f32 %v9944_v23, 0.0  ;;  %v9639_v40 = vpop.f32.mrf.mxu0 }
 0xaee   :  { %v9728_v4 = vpop.f32.mrf.mxu1  ;;  %v9805_v29 = vadd.f32 %v9639_v40, %v17702_v28 }
 0xaef   :  { %v10070_v15 = vpack.c.bf16 %v10008_v57, %v10007_v18  ;;  %v9806_v49 = vadd.f32 %v9728_v4, %v17704_v34 }
 0xaf0   :  { %v9875_v33 = vmul.f32 %v17926_v0, %v9805_v29  ;;  %9678 = vmatmul.bf16.gmra.mxu0 %v16105_v24  ;;  %v14750_v61 = vld [vmem:[#allocation3 + $0x30] sm:$0xf]  ;;  %v15882_v6 = vld [vmem:[#allocation3 + $0x34] sm:$0xf] }
 0xaf1   :  { %10102 = vst [vmem:[#allocation3 + $0x38] sm:$0xff] %v10070_v15  ;;  %v9876_v38 = vmul.f32 %v17928_v58, %v9806_v49  ;;  %9767 = vmatmul.bf16.gmra.mxu1 %v16105_v24 }
 0xaf2   :  { %v9945_v52 = vadd.f32 %v17931_v42, %v9875_v33 }
 0xaf3   :  { %v9946_v50 = vadd.f32 %v17934_v10, %v9876_v38 }
 0xaf4   :  { %v10009_v26 = vmax.f32 %v9945_v52, 0.0 }
 0xaf5   :  { %v10010_v3 = vmax.f32 %v9946_v50, 0.0  ;;  %v9641_v2 = vpop.f32.mrf.mxu0 }
 0xaf6   :  { %v9730_v32 = vpop.f32.mrf.mxu1  ;;  %v9807_v28 = vadd.f32 %v9641_v2, %v17708_v47  ;;  %v15957_v2 = vld [vmem:[#allocation10 + $0x168] sm:$0xff] }
 0xaf7   :  { %v10071_v7 = vpack.c.bf16 %v10010_v3, %v10009_v26  ;;  %v9808_v34 = vadd.f32 %v9730_v32, %v17710_v11  ;;  %v16106_v26 = vld [vmem:[#allocation2 + $0x80] sm:$0xff]  ;;  %v15949_v3 = vld [vmem:[#allocation10 + $0x128] sm:$0xff]  ;;  %11178 = vmatpush.bf16.msrb.mxu3 %v15957_v2 }
 0xaf8   :  { %v15883_v44 = vld [vmem:[#allocation3 + $0x34] sm:$0xf0]  ;;  %v14752_v51 = vld [vmem:[#allocation3 + $0x38] sm:$0xf0]  ;;  %v9877_v23 = vmul.f32 %v17926_v0, %v9807_v28  ;;  %11089 = vmatpush.bf16.msrb.mxu2 %v15949_v3  ;;  %v15924_v3 = vld [vmem:[#allocation10 + $0x60] sm:$0xff] }
 0xaf9   :  { %10103 = vst [vmem:[#allocation3 + $0x40] sm:$0xff] %v10071_v7  ;;  %v9878_v18 = vmul.f32 %v17928_v58, %v9808_v34  ;;  %v17992_v57 = vor.u32 %v15883_v44, %v14750_v61  ;;  %v17994_v40 = vor.u32 %v15882_v6, %v14752_v51 }
 0xafa   :  { %v9947_v4 = vadd.f32 %v17931_v42, %v9877_v23 }
 0xafb   :  { %v9948_v15 = vadd.f32 %v17934_v10, %v9878_v18  ;;  %10504 = vmatmul.bf16.gmra.mxu2 %v17992_v57  ;;  %10593 = vmatmul.bf16.gmra.mxu3 %v17994_v40 }
 0xafc   :  { %v10011_v47 = vmax.f32 %v9947_v4, 0.0 }
 0xafd   :  { %v10012_v11 = vmax.f32 %v9948_v15, 0.0  ;;  %v9644_v29 = vpop.f32.mrf.mxu0 }
 0xafe   :  { %v9733_v49 = vpop.f32.mrf.mxu1  ;;  %v9809_v38 = vadd.f32 %v9644_v29, %v17718_v54  ;;  %v9466_v54 = vadd.f32 %v17728_v39, %v17723_v9 }
 0xaff   :  { %v10072_v33 = vpack.c.bf16 %v10012_v11, %v10011_v47  ;;  %v9810_v24 = vadd.f32 %v9733_v49, %v17720_v53  ;;  %v9467_v53 = vadd.f32 %v17730_v37, %v17726_v30  ;;  %v15917_v30 = vld [vmem:[#allocation10 + $0x28] sm:$0xff] }
 0xb00   :  { %v9879_v52 = vmul.f32 %v17926_v0, %v9809_v38  ;;  %9683 = vmatmul.bf16.gmra.mxu0 %v16106_v26  ;;  %v14758_v18 = vld [vmem:[#allocation3 + $0x40] sm:$0xf]  ;;  %v15884_v15 = vld [vmem:[#allocation3 + $0x44] sm:$0xf]  ;;  %v15925_v37 = vld [vmem:[#allocation10 + $0x68] sm:$0xff] }
 0xb01   :  { %10104 = vst [vmem:[#allocation3 + $0x48] sm:$0xff] %v10072_v33  ;;  %v9880_v50 = vmul.f32 %v17928_v58, %v9810_v24  ;;  %9772 = vmatmul.bf16.gmra.mxu1 %v16106_v26  ;;  %10772 = vmatpush.bf16.msrb.mxu0 %v15917_v30  ;;  %v15916_v26 = vld [vmem:[#allocation10 + $0x20] sm:$0xff] }
 0xb02   :  { %v9949_v32 = vadd.f32 %v17931_v42, %v9879_v52  ;;  %10861 = vmatpush.bf16.msrb.mxu1 %v15925_v37 }
 0xb03   :  { %v9950_v7 = vadd.f32 %v17934_v10, %v9880_v50 }
 0xb04   :  { %v10013_v28 = vmax.f32 %v9949_v32, 0.0 }
 0xb05   :  { %v10014_v34 = vmax.f32 %v9950_v7, 0.0  ;;  %v9646_v61 = vpop.f32.mrf.mxu0  ;;  %10773 = vmatpush.bf16.msrb.mxu0 %v15916_v26 }
 0xb06   :  { %v9735_v44 = vpop.f32.mrf.mxu1  ;;  %v9811_v51 = vadd.f32 %v9646_v61, %v9466_v54  ;;  %10862 = vmatpush.bf16.msrb.mxu1 %v15924_v3 }
 0xb07   :  { %v10073_v6 = vpack.c.bf16 %v10014_v34, %v10013_v28  ;;  %v9812_v23 = vadd.f32 %v9735_v44, %v9467_v53  ;;  %v15915_v28 = vld [vmem:[#allocation10 + $0x18] sm:$0xff] }
 0xb08   :  { %v15885_v4 = vld [vmem:[#allocation3 + $0x44] sm:$0xf0]  ;;  %v14760_v47 = vld [vmem:[#allocation3 + $0x48] sm:$0xf0]  ;;  %v9881_v11 = vmul.f32 %v17926_v0, %v9811_v51  ;;  %v15923_v34 = vld [vmem:[#allocation10 + $0x58] sm:$0xff] }
 0xb09   :  { %10105 = vst [vmem:[#allocation3 + $0x50] sm:$0xff] %v10073_v6  ;;  %v9882_v29 = vmul.f32 %v17928_v58, %v9812_v23  ;;  %v18012_v9 = vor.u32 %v15885_v4, %v14758_v18  ;;  %v18014_v39 = vor.u32 %v15884_v15, %v14760_v47  ;;  %10774 = vmatpush.bf16.msrb.mxu0 %v15915_v28  ;;  %v15914_v4 = vld [vmem:[#allocation10 + $0x10] sm:$0xff] }
 0xb0a   :  { %v9951_v49 = vadd.f32 %v17931_v42, %v9881_v11  ;;  %10863 = vmatpush.bf16.msrb.mxu1 %v15923_v34 }
 0xb0b   :  { %v9952_v33 = vadd.f32 %v17934_v10, %v9882_v29  ;;  %10509 = vmatmul.bf16.gmra.mxu2 %v18012_v9  ;;  %10598 = vmatmul.bf16.gmra.mxu3 %v18014_v39 }
 0xb0c   :  { %v10015_v38 = vmax.f32 %v9951_v49, 0.0 }
 0xb0d   :  { %v10016_v24 = vmax.f32 %v9952_v33, 0.0  ;;  %v9649_v52 = vpop.f32.mrf.mxu0  ;;  %10775 = vmatpush.bf16.msrb.mxu0 %v15914_v4  ;;  %v15913_v33 = vld [vmem:[#allocation10 + $0x8] sm:$0xff] }
 0xb0e   :  { %v9738_v50 = vpop.f32.mrf.mxu1  ;;  %v9813_v32 = vadd.f32 %v9649_v52, %v17738_v43  ;;  %v9470_v43 = vadd.f32 %v17748_v62, %v17743_v14 }
 0xb0f   :  { %v10074_v2 = vpack.c.bf16 %v10016_v24, %v10015_v38  ;;  %v9814_v7 = vadd.f32 %v9738_v50, %v17740_v31  ;;  %v9471_v31 = vadd.f32 %v17750_v45, %v17746_v8  ;;  %v15921_v38 = vld [vmem:[#allocation10 + $0x48] sm:$0xff] }
 0xb10   :  { %v9883_v54 = vmul.f32 %v17926_v0, %v9813_v32  ;;  %9688 = vmatmul.bf16.gmra.mxu0 %v17754_v35  ;;  %v14766_v29 = vld [vmem:[#allocation3 + $0x50] sm:$0xf]  ;;  %v15886_v37 = vld [vmem:[#allocation3 + $0x54] sm:$0xf]  ;;  %v15912_v32 = vld [vmem:[#allocation10] sm:$0xff] }
 0xb11   :  { %10106 = vst [vmem:[#allocation3 + $0x58] sm:$0xff] %v10074_v2  ;;  %v9884_v53 = vmul.f32 %v17928_v58, %v9814_v7  ;;  %9777 = vmatmul.bf16.gmra.mxu1 %v17754_v35  ;;  %v15922_v35 = vld [vmem:[#allocation10 + $0x50] sm:$0xff]  ;;  %10776 = vmatpush.bf16.msrb.mxu0 %v15913_v33  ;;  %v15920_v7 = vld [vmem:[#allocation10 + $0x40] sm:$0xff]  ;;  %v15795_v33 = vld [vmem:[#allocation2 + $0x98] sm:$0xff] }
 0xb12   :  { %v9953_v61 = vadd.f32 %v17931_v42, %v9883_v54  ;;  %10864 = vmatpush.bf16.msrb.mxu1 %v15922_v35 }
 0xb13   :  { %v9954_v44 = vadd.f32 %v17934_v10, %v9884_v53 }
 0xb14   :  { %v10017_v6 = vmax.f32 %v9953_v61, 0.0 }
 0xb15   :  { %v10018_v51 = vmax.f32 %v9954_v44, 0.0  ;;  %v9651_v23 = vpop.f32.mrf.mxu0  ;;  %10777 = vmatpush.bf16.msrb.mxu0 %v15912_v32  ;;  %v15948_v44 = vld [vmem:[#allocation10 + $0x120] sm:$0xff] }
 0xb16   :  { %v9740_v18 = vpop.f32.mrf.mxu1  ;;  %v9815_v47 = vadd.f32 %v9651_v23, %v9470_v43  ;;  %10865 = vmatpush.bf16.msrb.mxu1 %v15921_v38  ;;  %v15956_v43 = vld [vmem:[#allocation10 + $0x160] sm:$0xff]  ;;  %11090 = vmatpush.bf16.msrb.mxu2 %v15948_v44 }
 0xb17   :  { %v10075_v15 = vpack.c.bf16 %v10018_v51, %v10017_v6  ;;  %v9816_v11 = vadd.f32 %v9740_v18, %v9471_v31  ;;  %11179 = vmatpush.bf16.msrb.mxu3 %v15956_v43 }
 0xb18   :  { %v15887_v30 = vld [vmem:[#allocation3 + $0x54] sm:$0xf0]  ;;  %v14768_v49 = vld [vmem:[#allocation3 + $0x58] sm:$0xf0]  ;;  %v9885_v14 = vmul.f32 %v17926_v0, %v9815_v47 }
 0xb19   :  { %10107 = vst [vmem:[#allocation3 + $0x60] sm:$0xff] %v10075_v15  ;;  %v9886_v8 = vmul.f32 %v17928_v58, %v9816_v11  ;;  %v18034_v62 = vor.u32 %v15887_v30, %v14766_v29  ;;  %v18036_v45 = vor.u32 %v15886_v37, %v14768_v49 }
 0xb1a   :  { %v9955_v24 = vadd.f32 %v17931_v42, %v9885_v14  ;;  %10866 = vmatpush.bf16.msrb.mxu1 %v15920_v7 }
 0xb1b   :  { %v9956_v52 = vadd.f32 %v17934_v10, %v9886_v8  ;;  %10514 = vmatmul.bf16.gmra.mxu2 %v18034_v62  ;;  %10603 = vmatmul.bf16.gmra.mxu3 %v18036_v45 }
 0xb1c   :  { %v10019_v50 = vmax.f32 %v9955_v24, 0.0 }
 0xb1d   :  { %v10020_v26 = vmax.f32 %v9956_v52, 0.0  ;;  %v9654_v3 = vpop.f32.mrf.mxu0 }
 0xb1e   :  { %v9743_v2 = vpop.f32.mrf.mxu1  ;;  %v9817_v53 = vadd.f32 %v9654_v3, %v17760_v20  ;;  %v9474_v20 = vadd.f32 %v17770_v12, %v17765_v48 }
 0xb1f   :  { %v10076_v54 = vpack.c.bf16 %v10020_v26, %v10019_v50  ;;  %v9818_v28 = vadd.f32 %v9743_v2, %v17762_v59  ;;  %v9475_v59 = vadd.f32 %v17772_v25, %v17768_v22 }
 0xb20   :  { %v9887_v34 = vmul.f32 %v17926_v0, %v9817_v53  ;;  %9693 = vmatmul.bf16.gmra.mxu0 %v17774_v21  ;;  %v14774_v47 = vld [vmem:[#allocation3 + $0x60] sm:$0xf]  ;;  %v15888_v29 = vld [vmem:[#allocation3 + $0x64] sm:$0xf] }
 0xb21   :  { %10108 = vst [vmem:[#allocation3 + $0x68] sm:$0xff] %v10076_v54  ;;  %v9888_v61 = vmul.f32 %v17928_v58, %v9818_v28  ;;  %9782 = vmatmul.bf16.gmra.mxu1 %v17774_v21  ;;  %v18758_v54 = vld [vmem:[#allocation41_spill] sm:$0xff]  ;;  %v18759_v53 = vld [vmem:[#allocation55_spill] sm:$0xff] }
 0xb22   :  { %v9957_v31 = vadd.f32 %v17931_v42, %v9887_v34  ;;  %v9478_v28 = vadd.f32 %v18759_v53, %v18758_v54  ;;  %v18760_v34 = vld [vmem:[#allocation42_spill] sm:$0xff] }
 0xb23   :  { %v9958_v6 = vadd.f32 %v17934_v10, %v9888_v61  ;;  %v18761_v61 = vld [vmem:[#allocation56_spill] sm:$0xff]  ;;  %v15955_v54 = vld [vmem:[#allocation10 + $0x158] sm:$0xff] }
 0xb24   :  { %v10021_v51 = vmax.f32 %v9957_v31, 0.0  ;;  %v9479_v44 = vadd.f32 %v18761_v61, %v18760_v34  ;;  %11180 = vmatpush.bf16.msrb.mxu3 %v15955_v54  ;;  %v18763_v34 = vld [vmem:[#allocation46_spill] sm:$0xff]  ;;  %v18764_v61 = vld [vmem:[#allocation48_spill] sm:$0xff] }
 0xb25   :  { %v10022_v23 = vmax.f32 %v9958_v6, 0.0  ;;  %v9656_v18 = vpop.f32.mrf.mxu0  ;;  %v18769_v54 = vld [vmem:[#allocation22_spill] sm:$0xff] }
 0xb26   :  { %v9745_v4 = vpop.f32.mrf.mxu1  ;;  %v9819_v21 = vadd.f32 %v9656_v18, %v9474_v20 }
 0xb27   :  { %v10077_v35 = vpack.c.bf16 %v10022_v23, %v10021_v51  ;;  %v9820_v15 = vadd.f32 %v9745_v4, %v9475_v59 }
 0xb28   :  { %v15889_v11 = vld [vmem:[#allocation3 + $0x64] sm:$0xf0]  ;;  %v14776_v30 = vld [vmem:[#allocation3 + $0x68] sm:$0xf0]  ;;  %v9889_v37 = vmul.f32 %v17926_v0, %v9819_v21 }
 0xb29   :  { %10109 = vst [vmem:[#allocation3 + $0x70] sm:$0xff] %v10077_v35  ;;  %v9890_v49 = vmul.f32 %v17928_v58, %v9820_v15  ;;  %v18056_v48 = vor.u32 %v15889_v11, %v14774_v47  ;;  %v18058_v12 = vor.u32 %v15888_v29, %v14776_v30  ;;  %v14926_v11 = vld [vmem:[#allocation3] sm:$0xf]  ;;  %v15877_v29 = vld [vmem:[#allocation3 + $0x4] sm:$0xf0] }
 0xb2a   :  { %v9959_v22 = vadd.f32 %v17931_v42, %v9889_v37  ;;  %v15876_v30 = vld [vmem:[#allocation3 + $0x4] sm:$0xf]  ;;  %v14928_v37 = vld [vmem:[#allocation3 + $0x8] sm:$0xf0] }
 0xb2b   :  { %v9960_v25 = vadd.f32 %v17934_v10, %v9890_v49  ;;  %10519 = vmatmul.bf16.gmra.mxu2 %v18056_v48  ;;  %10608 = vmatmul.bf16.gmra.mxu3 %v18058_v12 }
 0xb2c   :  { %v10023_v14 = vmax.f32 %v9959_v22, 0.0 }
 0xb2d   :  { %v10024_v8 = vmax.f32 %v9960_v25, 0.0  ;;  %v9659_v38 = vpop.f32.mrf.mxu0 }
 0xb2e   :  { %v9748_v24 = vpop.f32.mrf.mxu1  ;;  %v9821_v50 = vadd.f32 %v9659_v38, %v17782_v27 }
 0xb2f   :  { %v10078_v52 = vpack.c.bf16 %v10024_v8, %v10023_v14  ;;  %v9822_v26 = vadd.f32 %v9748_v24, %v17784_v41  ;;  %v14927_v8 = vor.u32 %v15877_v29, %v14926_v11 }
 0xb30   :  { %v9891_v3 = vmul.f32 %v17926_v0, %v9821_v50  ;;  %9698 = vmatmul.bf16.gmra.mxu0 %v15795_v33  ;;  %v14782_v51 = vld [vmem:[#allocation3 + $0x70] sm:$0xf]  ;;  %v15890_v18 = vld [vmem:[#allocation3 + $0x74] sm:$0xf] }
 0xb31   :  { %10110 = vst [vmem:[#allocation3 + $0x78] sm:$0xff] %v10078_v52  ;;  %v9892_v2 = vmul.f32 %v17928_v58, %v9822_v26  ;;  %9787 = vmatmul.bf16.gmra.mxu1 %v15795_v33  ;;  %v14931_v33 = vor.u32 %v15876_v30, %v14928_v37  ;;  %v18762_v26 = vld [vmem:[#allocation45_spill] sm:$0xff] }
 0xb32   :  { %v9961_v32 = vadd.f32 %v17931_v42, %v9891_v3 }
 0xb33   :  { %v9962_v7 = vadd.f32 %v17934_v10, %v9892_v2 }
 0xb34   :  { %v10025_v27 = vmax.f32 %v9961_v32, 0.0 }
 0xb35   :  { %v10026_v43 = vmax.f32 %v9962_v7, 0.0  ;;  %v9661_v41 = vpop.f32.mrf.mxu0  ;;  %v15947_v7 = vld [vmem:[#allocation10 + $0x118] sm:$0xff] }
 0xb36   :  { %v9750_v31 = vpop.f32.mrf.mxu1  ;;  %v9823_v20 = vadd.f32 %v9661_v41, %v9478_v28  ;;  %11091 = vmatpush.bf16.msrb.mxu2 %v15947_v7  ;;  %v18768_v7 = vld [vmem:[#allocation53_spill] sm:$0xff] }
 0xb37   :  { %v10079_v6 = vpack.c.bf16 %v10026_v43, %v10025_v27  ;;  %v9824_v59 = vadd.f32 %v9750_v31, %v9479_v44  ;;  %v18765_v44 = vld [vmem:[#allocation47_spill] sm:$0xff] }
 0xb38   :  { %v15891_v23 = vld [vmem:[#allocation3 + $0x74] sm:$0xf0]  ;;  %v14784_v4 = vld [vmem:[#allocation3 + $0x78] sm:$0xf0]  ;;  %v9893_v35 = vmul.f32 %v17926_v0, %v9823_v20 }
 0xb39   :  { %10111 = vst [vmem:[#allocation3 + $0x80] sm:$0xff] %v10079_v6  ;;  %v9894_v21 = vmul.f32 %v17928_v58, %v9824_v59  ;;  %v18076_v15 = vor.u32 %v15891_v23, %v14782_v51  ;;  %v18078_v47 = vor.u32 %v15890_v18, %v14784_v4  ;;  %v18766_v27 = vld [vmem:[#allocation51_spill] sm:$0xff] }
 0xb3a   :  { %v9963_v49 = vadd.f32 %v17931_v42, %v9893_v35  ;;  %v9483_v43 = vadd.f32 %v18766_v27, %v18765_v44 }
 0xb3b   :  { %v9964_v22 = vadd.f32 %v17934_v10, %v9894_v21  ;;  %10524 = vmatmul.bf16.gmra.mxu2 %v18076_v15  ;;  %10613 = vmatmul.bf16.gmra.mxu3 %v18078_v47 }
 0xb3c   :  { %v10027_v25 = vmax.f32 %v9963_v49, 0.0 }
 0xb3d   :  { %v10028_v14 = vmax.f32 %v9964_v22, 0.0  ;;  %v9664_v38 = vpop.f32.mrf.mxu0 }
 0xb3e   :  { %v9753_v24 = vpop.f32.mrf.mxu1  ;;  %v9825_v50 = vadd.f32 %v9664_v38, %v17798_v60  ;;  %v9482_v60 = vadd.f32 %v18764_v61, %v18763_v34 }
 0xb3f   :  { %v10080_v52 = vpack.c.bf16 %v10028_v14, %v10027_v25  ;;  %v9826_v3 = vadd.f32 %v9753_v24, %v18762_v26 }
 0xb40   :  { %v9895_v2 = vmul.f32 %v17926_v0, %v9825_v50  ;;  %10778 = vmatmul.bf16.vlgmr.msrb.gmra.mxu0 %v14927_v8  ;;  %v14790_v18 = vld [vmem:[#allocation3 + $0x80] sm:$0xf]  ;;  %v15892_v35 = vld [vmem:[#allocation3 + $0x84] sm:$0xf] }
 0xb41   :  { %10112 = vst [vmem:[#allocation3 + $0x88] sm:$0xff] %v10080_v52  ;;  %v9896_v32 = vmul.f32 %v17928_v58, %v9826_v3  ;;  %10867 = vmatmul.bf16.vlgmr.msrb.gmra.mxu1 %v14931_v33  ;;  %v18767_v52 = vld [vmem:[#allocation52_spill] sm:$0xff] }
 0xb42   :  { %v9965_v53 = vadd.f32 %v17931_v42, %v9895_v2 }
 0xb43   :  { %v9966_v28 = vadd.f32 %v17934_v10, %v9896_v32 }
 0xb44   :  { %v10029_v41 = vmax.f32 %v9965_v53, 0.0  ;;  %v9486_v53 = vadd.f32 %v18769_v54, %v18768_v7  ;;  %v18773_v54 = vld [vmem:[#allocation23_spill] sm:$0xff] }
 0xb45   :  { %v10030_v31 = vmax.f32 %v9966_v28, 0.0  ;;  %v9666_v6 = vpop.f32.mrf.mxu0  ;;  %v18770_v28 = vld [vmem:[#allocation54_spill] sm:$0xff] }
 0xb46   :  { %v9755_v20 = vpop.f32.mrf.mxu1  ;;  %v9827_v51 = vadd.f32 %v9666_v6, %v9482_v60 }
 0xb47   :  { %v10081_v59 = vpack.c.bf16 %v10030_v31, %v10029_v41  ;;  %v9828_v23 = vadd.f32 %v9755_v20, %v9483_v43  ;;  %v18116_v43 = vpop.f32.mrf.mxu2  ;;  %v18118_v41 = vpop.f32.mrf.mxu3 }
 0xb48   :  { %v15893_v4 = vld [vmem:[#allocation3 + $0x84] sm:$0xf0]  ;;  %v14792_v21 = vld [vmem:[#allocation3 + $0x88] sm:$0xf0]  ;;  %v9897_v11 = vmul.f32 %v17926_v0, %v9827_v51 }
 0xb49   :  { %10113 = vst [vmem:[#allocation3 + $0x90] sm:$0xff] %v10081_v59  ;;  %v9898_v29 = vmul.f32 %v17928_v58, %v9828_v23  ;;  %v18096_v30 = vor.u32 %v15893_v4, %v14790_v18  ;;  %v18098_v37 = vor.u32 %v15892_v35, %v14792_v21 }
 0xb4a   :  { %v9967_v49 = vadd.f32 %v17931_v42, %v9897_v11 }
 0xb4b   :  { %v9968_v22 = vadd.f32 %v17934_v10, %v9898_v29  ;;  %10529 = vmatmul.bf16.gmra.mxu2 %v18096_v30  ;;  %10618 = vmatmul.bf16.gmra.mxu3 %v18098_v37 }
 0xb4c   :  { %v10031_v25 = vmax.f32 %v9967_v49, 0.0 }
 0xb4d   :  { %v10032_v14 = vmax.f32 %v9968_v22, 0.0  ;;  %v9669_v8 = vpop.f32.mrf.mxu0 }
 0xb4e   :  { %v9758_v33 = vpop.f32.mrf.mxu1  ;;  %v9829_v24 = vadd.f32 %v9669_v8, %v17814_v16  ;;  %v18771_v16 = vld [vmem:[#allocation31_spill] sm:$0xff] }
 0xb4f   :  { %v10082_v38 = vpack.c.bf16 %v10032_v14, %v10031_v25  ;;  %v9830_v50 = vadd.f32 %v9758_v33, %v18767_v52  ;;  %v9487_v34 = vadd.f32 %v18771_v16, %v18770_v28  ;;  %v18772_v33 = vld [vmem:[#allocation32_spill] sm:$0xff] }
 0xb50   :  { %v9899_v26 = vmul.f32 %v17926_v0, %v9829_v24  ;;  %10783 = vmatmul.bf16.gmra.mxu0 %v17956_v46  ;;  %v14798_v6 = vld [vmem:[#allocation3 + $0x90] sm:$0xf]  ;;  %v15894_v59 = vld [vmem:[#allocation3 + $0x94] sm:$0xf]  ;;  %v18775_v16 = vld [vmem:[#allocation24_spill] sm:$0xff] }
 0xb51   :  { %10114 = vst [vmem:[#allocation3 + $0x98] sm:$0xff] %v10082_v38  ;;  %v9900_v3 = vmul.f32 %v17928_v58, %v9830_v50  ;;  %10872 = vmatmul.bf16.gmra.mxu1 %v17958_v55 }
 0xb52   :  { %v9969_v2 = vadd.f32 %v17931_v42, %v9899_v26 }
 0xb53   :  { %v9970_v32 = vadd.f32 %v17934_v10, %v9900_v3 }
 0xb54   :  { %v10033_v61 = vmax.f32 %v9969_v2, 0.0  ;;  %v15946_v2 = vld [vmem:[#allocation10 + $0x110] sm:$0xff] }
 0xb55   :  { %v10034_v60 = vmax.f32 %v9970_v32, 0.0  ;;  %v9671_v44 = vpop.f32.mrf.mxu0  ;;  %v15954_v32 = vld [vmem:[#allocation10 + $0x150] sm:$0xff]  ;;  %11092 = vmatpush.bf16.msrb.mxu2 %v15946_v2 }
 0xb56   :  { %v9760_v27 = vpop.f32.mrf.mxu1  ;;  %v9831_v55 = vadd.f32 %v9671_v44, %v9486_v53  ;;  %11181 = vmatpush.bf16.msrb.mxu3 %v15954_v32  ;;  %v18774_v53 = vld [vmem:[#allocation25_spill] sm:$0xff] }
 0xb57   :  { %v10083_v46 = vpack.c.bf16 %v10034_v60, %v10033_v61  ;;  %v9832_v31 = vadd.f32 %v9760_v27, %v9487_v34  ;;  %v9490_v28 = vadd.f32 %v18774_v53, %v18773_v54  ;;  %v18776_v34 = vld [vmem:[#allocation26_spill] sm:$0xff]  ;;  %v18777_v2 = vld [vmem:[#allocation37_spill] sm:$0xff] }
 0xb58   :  { %v15895_v20 = vld [vmem:[#allocation3 + $0x94] sm:$0xf0]  ;;  %v14800_v51 = vld [vmem:[#allocation3 + $0x98] sm:$0xf0]  ;;  %v9901_v23 = vmul.f32 %v17926_v0, %v9831_v55  ;;  %v9491_v61 = vadd.f32 %v18776_v34, %v18775_v16 }
 0xb59   :  { %10115 = vst [vmem:[#allocation3 + $0xa0] sm:$0xff] %v10083_v46  ;;  %v9902_v18 = vmul.f32 %v17928_v58, %v9832_v31  ;;  %v18122_v4 = vor.u32 %v15895_v20, %v14798_v6  ;;  %v18124_v35 = vor.u32 %v15894_v59, %v14800_v51 }
 0xb5a   :  { %v9971_v21 = vadd.f32 %v17931_v42, %v9901_v23 }
 0xb5b   :  { %v9972_v11 = vadd.f32 %v17934_v10, %v9902_v18  ;;  %10534 = vmatmul.bf16.gmra.mxu2 %v18122_v4  ;;  %10623 = vmatmul.bf16.gmra.mxu3 %v18124_v35 }
 0xb5c   :  { %v10035_v29 = vmax.f32 %v9971_v21, 0.0 }
 0xb5d   :  { %v10036_v49 = vmax.f32 %v9972_v11, 0.0  ;;  %v9674_v22 = vpop.f32.mrf.mxu0 }
 0xb5e   :  { %v9763_v25 = vpop.f32.mrf.mxu1  ;;  %v9833_v8 = vadd.f32 %v9674_v22, %v17830_v56  ;;  %v10495_v24 = vpop.f32.mrf.mxu2 }
 0xb5f   :  { %v10084_v14 = vpack.c.bf16 %v10036_v49, %v10035_v29  ;;  %v9834_v38 = vadd.f32 %v9763_v25, %v18772_v33  ;;  %v10584_v52 = vpop.f32.mrf.mxu3 }
 0xb60   :  { %v18132_v50 = vadd.f32 %v10584_v52, %v10495_v24  ;;  %v9903_v26 = vmul.f32 %v17926_v0, %v9833_v8  ;;  %10788 = vmatmul.bf16.gmra.mxu0 %v17974_v1  ;;  %v14806_v51 = vld [vmem:[#allocation3 + $0xa0] sm:$0xf]  ;;  %v15896_v21 = vld [vmem:[#allocation3 + $0xa4] sm:$0xf] }
 0xb61   :  { %10116 = vst [vmem:[#allocation3 + $0xa8] sm:$0xff] %v10084_v14  ;;  %v9904_v3 = vmul.f32 %v17928_v58, %v9834_v38  ;;  %10877 = vmatmul.bf16.gmra.mxu1 %v17976_v19 }
 0xb62   :  { %v9973_v7 = vadd.f32 %v17931_v42, %v9903_v26 }
 0xb63   :  { %v9974_v56 = vadd.f32 %v17934_v10, %v9904_v3 }
 0xb64   :  { %v10037_v60 = vmax.f32 %v9973_v7, 0.0 }
 0xb65   :  { %v10038_v44 = vmax.f32 %v9974_v56, 0.0  ;;  %v9676_v27 = vpop.f32.mrf.mxu0 }
 0xb66   :  { %v9765_v46 = vpop.f32.mrf.mxu1  ;;  %v9835_v31 = vadd.f32 %v9676_v27, %v9490_v28  ;;  %v10497_v20 = vpop.f32.mrf.mxu2  ;;  %v18781_v27 = vld [vmem:[#allocation29_spill] sm:$0xff] }
 0xb67   :  { %v10085_v55 = vpack.c.bf16 %v10038_v44, %v10037_v60  ;;  %v9836_v6 = vadd.f32 %v9765_v46, %v9491_v61  ;;  %v10586_v59 = vpop.f32.mrf.mxu3  ;;  %v18779_v61 = vld [vmem:[#allocation28_spill] sm:$0xff]  ;;  %v18780_v44 = vld [vmem:[#allocation27_spill] sm:$0xff] }
 0xb68   :  { %v18144_v23 = vadd.f32 %v10586_v59, %v10497_v20  ;;  %v15897_v18 = vld [vmem:[#allocation3 + $0xa4] sm:$0xf0]  ;;  %v14808_v11 = vld [vmem:[#allocation3 + $0xa8] sm:$0xf0]  ;;  %v9905_v29 = vmul.f32 %v17926_v0, %v9835_v31  ;;  %v9495_v46 = vadd.f32 %v18781_v27, %v18780_v44 }
 0xb69   :  { %10117 = vst [vmem:[#allocation3 + $0xb0] sm:$0xff] %v10085_v55  ;;  %v9906_v49 = vmul.f32 %v17928_v58, %v9836_v6  ;;  %v18148_v22 = vor.u32 %v15897_v18, %v14806_v51  ;;  %v18150_v25 = vor.u32 %v15896_v21, %v14808_v11 }
 0xb6a   :  { %v9975_v14 = vadd.f32 %v17931_v42, %v9905_v29 }
 0xb6b   :  { %v9976_v8 = vadd.f32 %v17934_v10, %v9906_v49  ;;  %10539 = vmatmul.bf16.gmra.mxu2 %v18148_v22  ;;  %10628 = vmatmul.bf16.gmra.mxu3 %v18150_v25 }
 0xb6c   :  { %v10039_v33 = vmax.f32 %v9975_v14, 0.0 }
 0xb6d   :  { %v10040_v38 = vmax.f32 %v9976_v8, 0.0  ;;  %v9679_v24 = vpop.f32.mrf.mxu0 }
 0xb6e   :  { %v9768_v52 = vpop.f32.mrf.mxu1  ;;  %v9837_v3 = vadd.f32 %v9679_v24, %v17846_v17  ;;  %v10500_v7 = vpop.f32.mrf.mxu2  ;;  %v18778_v17 = vld [vmem:[#allocation38_spill] sm:$0xff] }
 0xb6f   :  { %v10086_v26 = vpack.c.bf16 %v10040_v38, %v10039_v33  ;;  %v9838_v32 = vadd.f32 %v9768_v52, %v18777_v2  ;;  %v10589_v56 = vpop.f32.mrf.mxu3  ;;  %v9494_v60 = vadd.f32 %v18779_v61, %v18778_v17 }
 0xb70   :  { %v18158_v54 = vadd.f32 %v10589_v56, %v10500_v7  ;;  %v9907_v53 = vmul.f32 %v17926_v0, %v9837_v3  ;;  %10793 = vmatmul.bf16.gmra.mxu0 %v17992_v57  ;;  %v14814_v29 = vld [vmem:[#allocation3 + $0xb0] sm:$0xf]  ;;  %v15898_v8 = vld [vmem:[#allocation3 + $0xb4] sm:$0xf] }
 0xb71   :  { %10118 = vst [vmem:[#allocation3 + $0xb8] sm:$0xff] %v10086_v26  ;;  %v9908_v28 = vmul.f32 %v17928_v58, %v9838_v32  ;;  %10882 = vmatmul.bf16.gmra.mxu1 %v17994_v40 }
 0xb72   :  { %v9977_v16 = vadd.f32 %v17931_v42, %v9907_v53 }
 0xb73   :  { %v9978_v34 = vadd.f32 %v17934_v10, %v9908_v28 }
 0xb74   :  { %v10041_v55 = vmax.f32 %v9977_v16, 0.0 }
 0xb75   :  { %v10042_v31 = vmax.f32 %v9978_v34, 0.0  ;;  %v9681_v6 = vpop.f32.mrf.mxu0  ;;  %v18782_v34 = vld [vmem:[#allocation30_spill] sm:$0xff] }
 0xb76   :  { %v9770_v20 = vpop.f32.mrf.mxu1  ;;  %v9839_v51 = vadd.f32 %v9681_v6, %v9494_v60  ;;  %v10502_v21 = vpop.f32.mrf.mxu2 }
 0xb77   :  { %v10087_v59 = vpack.c.bf16 %v10042_v31, %v10041_v55  ;;  %v9840_v18 = vadd.f32 %v9770_v20, %v9495_v46  ;;  %v10591_v11 = vpop.f32.mrf.mxu3  ;;  %v15945_v55 = vld [vmem:[#allocation10 + $0x108] sm:$0xff]  ;;  %v18783_v20 = vld [vmem:[#allocation43_spill] sm:$0xff] }
 0xb78   :  { %v18170_v49 = vadd.f32 %v10591_v11, %v10502_v21  ;;  %v15899_v14 = vld [vmem:[#allocation3 + $0xb4] sm:$0xf0]  ;;  %v14816_v33 = vld [vmem:[#allocation3 + $0xb8] sm:$0xf0]  ;;  %v9909_v38 = vmul.f32 %v17926_v0, %v9839_v51  ;;  %v15953_v31 = vld [vmem:[#allocation10 + $0x148] sm:$0xff]  ;;  %11093 = vmatpush.bf16.msrb.mxu2 %v15945_v55 }
 0xb79   :  { %10119 = vst [vmem:[#allocation3 + $0xc0] sm:$0xff] %v10087_v59  ;;  %v9910_v24 = vmul.f32 %v17928_v58, %v9840_v18  ;;  %v18174_v52 = vor.u32 %v15899_v14, %v14814_v29  ;;  %v18176_v26 = vor.u32 %v15898_v8, %v14816_v33  ;;  %11182 = vmatpush.bf16.msrb.mxu3 %v15953_v31  ;;  %v18784_v59 = vld [vmem:[#allocation57_spill] sm:$0xff]  ;;  %v18785_v18 = vld [vmem:[#allocation44_spill] sm:$0xff]  ;;  %v18786_v21 = vld [vmem:[#allocation58_spill] sm:$0xff] }
 0xb7a   :  { %v9979_v3 = vadd.f32 %v17931_v42, %v9909_v38  ;;  %v9498_v51 = vadd.f32 %v18784_v59, %v18783_v20  ;;  %v9499_v11 = vadd.f32 %v18786_v21, %v18785_v18 }
 0xb7b   :  { %v9980_v2 = vadd.f32 %v17934_v10, %v9910_v24  ;;  %10544 = vmatmul.bf16.gmra.mxu2 %v18174_v52  ;;  %10633 = vmatmul.bf16.gmra.mxu3 %v18176_v26 }
 0xb7c   :  { %v10043_v32 = vmax.f32 %v9979_v3, 0.0 }
 0xb7d   :  { %v10044_v7 = vmax.f32 %v9980_v2, 0.0  ;;  %v9684_v56 = vpop.f32.mrf.mxu0 }
 0xb7e   :  { %v9773_v53 = vpop.f32.mrf.mxu1  ;;  %v9841_v16 = vadd.f32 %v9684_v56, %v17862_v63  ;;  %v10505_v61 = vpop.f32.mrf.mxu2 }
 0xb7f   :  { %v10088_v28 = vpack.c.bf16 %v10044_v7, %v10043_v32  ;;  %v9842_v17 = vadd.f32 %v9773_v53, %v18782_v34  ;;  %v10594_v60 = vpop.f32.mrf.mxu3 }
 0xb80   :  { %v18184_v44 = vadd.f32 %v10594_v60, %v10505_v61  ;;  %v9911_v27 = vmul.f32 %v17926_v0, %v9841_v16  ;;  %10798 = vmatmul.bf16.gmra.mxu0 %v18012_v9  ;;  %v14822_v7 = vld [vmem:[#allocation3 + $0xc0] sm:$0xf] }
 0xb81   :  { %10120 = vst [vmem:[#allocation3 + $0xc8] sm:$0xff] %v10088_v28  ;;  %v9912_v46 = vmul.f32 %v17928_v58, %v9842_v17  ;;  %10887 = vmatmul.bf16.gmra.mxu1 %v18014_v39  ;;  %v15900_v28 = vld [vmem:[#allocation3 + $0xc4] sm:$0xf] }
 0xb82   :  { %v9981_v6 = vadd.f32 %v17931_v42, %v9911_v27 }
 0xb83   :  { %v9982_v63 = vadd.f32 %v17934_v10, %v9912_v46 }
 0xb84   :  { %v10045_v29 = vmax.f32 %v9981_v6, 0.0 }
 0xb85   :  { %v10046_v14 = vmax.f32 %v9982_v63, 0.0  ;;  %v9686_v8 = vpop.f32.mrf.mxu0 }
 0xb86   :  { %v9775_v33 = vpop.f32.mrf.mxu1  ;;  %v9843_v24 = vadd.f32 %v9686_v8, %v9498_v51  ;;  %v10507_v2 = vpop.f32.mrf.mxu2 }
 0xb87   :  { %v10089_v38 = vpack.c.bf16 %v10046_v14, %v10045_v29  ;;  %v9844_v3 = vadd.f32 %v9775_v33, %v9499_v11  ;;  %v10596_v32 = vpop.f32.mrf.mxu3 }
 0xb88   :  { %v18196_v56 = vadd.f32 %v10596_v32, %v10507_v2  ;;  %v15901_v53 = vld [vmem:[#allocation3 + $0xc4] sm:$0xf0]  ;;  %v14824_v16 = vld [vmem:[#allocation3 + $0xc8] sm:$0xf0]  ;;  %v9913_v34 = vmul.f32 %v17926_v0, %v9843_v24  ;;  %v18789_v24 = vld [vmem:[#allocation35_spill] sm:$0xff] }
 0xb89   :  { %10121 = vst [vmem:[#allocation3 + $0xd0] sm:$0xff] %v10089_v38  ;;  %v9914_v17 = vmul.f32 %v17928_v58, %v9844_v3  ;;  %v18200_v61 = vor.u32 %v15901_v53, %v14822_v7  ;;  %v18202_v60 = vor.u32 %v15900_v28, %v14824_v16  ;;  %v18788_v38 = vld [vmem:[#allocation33_spill] sm:$0xff] }
 0xb8a   :  { %v9983_v27 = vadd.f32 %v17931_v42, %v9913_v34  ;;  %v9503_v3 = vadd.f32 %v18789_v24, %v18788_v38  ;;  %v18791_v24 = vld [vmem:[#allocation59_spill] sm:$0xff] }
 0xb8b   :  { %v9984_v46 = vadd.f32 %v17934_v10, %v9914_v17  ;;  %10549 = vmatmul.bf16.gmra.mxu2 %v18200_v61  ;;  %10638 = vmatmul.bf16.gmra.mxu3 %v18202_v60 }
 0xb8c   :  { %v10047_v55 = vmax.f32 %v9983_v27, 0.0 }
 0xb8d   :  { %v10048_v31 = vmax.f32 %v9984_v46, 0.0  ;;  %v9689_v6 = vpop.f32.mrf.mxu0 }
 0xb8e   :  { %v9778_v63 = vpop.f32.mrf.mxu1  ;;  %v9845_v59 = vadd.f32 %v9689_v6, %v17878_v5  ;;  %v10510_v18 = vpop.f32.mrf.mxu2  ;;  %v18787_v5 = vld [vmem:[#allocation34_spill] sm:$0xff] }
 0xb8f   :  { %v10090_v20 = vpack.c.bf16 %v10048_v31, %v10047_v55  ;;  %v9846_v51 = vadd.f32 %v9778_v63, %v17880_v13  ;;  %v10599_v21 = vpop.f32.mrf.mxu3  ;;  %v9502_v13 = vadd.f32 %v18787_v5, %v17883_v36 }
 0xb90   :  { %v18210_v11 = vadd.f32 %v10599_v21, %v10510_v18  ;;  %v9915_v29 = vmul.f32 %v17926_v0, %v9845_v59  ;;  %10803 = vmatmul.bf16.gmra.mxu0 %v18034_v62  ;;  %v14830_v46 = vld [vmem:[#allocation3 + $0xd0] sm:$0xf]  ;;  %v15902_v6 = vld [vmem:[#allocation3 + $0xd4] sm:$0xf] }
 0xb91   :  { %10122 = vst [vmem:[#allocation3 + $0xd8] sm:$0xff] %v10090_v20  ;;  %v9916_v14 = vmul.f32 %v17928_v58, %v9846_v51  ;;  %10892 = vmatmul.bf16.gmra.mxu1 %v18036_v45 }
 0xb92   :  { %v9985_v8 = vadd.f32 %v17931_v42, %v9915_v29 }
 0xb93   :  { %v9986_v33 = vadd.f32 %v17934_v10, %v9916_v14 }
 0xb94   :  { %v10049_v2 = vmax.f32 %v9985_v8, 0.0 }
 0xb95   :  { %v10050_v32 = vmax.f32 %v9986_v33, 0.0  ;;  %v9691_v7 = vpop.f32.mrf.mxu0 }
 0xb96   :  { %v9780_v53 = vpop.f32.mrf.mxu1  ;;  %v9847_v16 = vadd.f32 %v9691_v7, %v9502_v13  ;;  %v10512_v17 = vpop.f32.mrf.mxu2  ;;  %v18790_v13 = vld [vmem:[#allocation36_spill] sm:$0xff] }
 0xb97   :  { %v10091_v28 = vpack.c.bf16 %v10050_v32, %v10049_v2  ;;  %v9848_v34 = vadd.f32 %v9780_v53, %v9503_v3  ;;  %v10601_v27 = vpop.f32.mrf.mxu3 }
 0xb98   :  { %v18222_v55 = vadd.f32 %v10601_v27, %v10512_v17  ;;  %v15903_v31 = vld [vmem:[#allocation3 + $0xd4] sm:$0xf0]  ;;  %v14832_v63 = vld [vmem:[#allocation3 + $0xd8] sm:$0xf0]  ;;  %v9917_v36 = vmul.f32 %v17926_v0, %v9847_v16  ;;  %v15944_v16 = vld [vmem:[#allocation10 + $0x100] sm:$0xff] }
 0xb99   :  { %10123 = vst [vmem:[#allocation3 + $0xe0] sm:$0xff] %v10091_v28  ;;  %v9918_v20 = vmul.f32 %v17928_v58, %v9848_v34  ;;  %v18226_v59 = vor.u32 %v15903_v31, %v14830_v46  ;;  %v18228_v51 = vor.u32 %v15902_v6, %v14832_v63  ;;  %v15952_v34 = vld [vmem:[#allocation10 + $0x140] sm:$0xff]  ;;  %11094 = vmatpush.bf16.msrb.mxu2 %v15944_v16  ;;  %v18793_v31 = vld [vmem:[#allocation61_spill] sm:$0xff] }
 0xb9a   :  { %v9987_v18 = vadd.f32 %v17931_v42, %v9917_v36  ;;  %11183 = vmatpush.bf16.msrb.mxu3 %v15952_v34  ;;  %v18792_v46 = vld [vmem:[#allocation60_spill] sm:$0xff]  ;;  %v18794_v63 = vld [vmem:[#allocation49_spill] sm:$0xff]  ;;  %v18795_v36 = vld [vmem:[#allocation62_spill] sm:$0xff] }
 0xb9b   :  { %v9988_v21 = vadd.f32 %v17934_v10, %v9918_v20  ;;  %10554 = vmatmul.bf16.gmra.mxu2 %v18226_v59  ;;  %10643 = vmatmul.bf16.gmra.mxu3 %v18228_v51  ;;  %v9506_v6 = vadd.f32 %v18793_v31, %v18792_v46  ;;  %v9507_v20 = vadd.f32 %v18795_v36, %v18794_v63 }
 0xb9c   :  { %v10051_v29 = vmax.f32 %v9987_v18, 0.0 }
 0xb9d   :  { %v10052_v14 = vmax.f32 %v9988_v21, 0.0  ;;  %v9694_v8 = vpop.f32.mrf.mxu0 }
 0xb9e   :  { %v9783_v33 = vpop.f32.mrf.mxu1  ;;  %v9849_v38 = vadd.f32 %v9694_v8, %v18790_v13  ;;  %v10515_v2 = vpop.f32.mrf.mxu2 }
 0xb9f   :  { %v10092_v5 = vpack.c.bf16 %v10052_v14, %v10051_v29  ;;  %v9850_v3 = vadd.f32 %v9783_v33, %v18791_v24  ;;  %v10604_v32 = vpop.f32.mrf.mxu3 }
 0xba0   :  { %v18236_v7 = vadd.f32 %v10604_v32, %v10515_v2  ;;  %v9919_v53 = vmul.f32 %v17926_v0, %v9849_v38  ;;  %10808 = vmatmul.bf16.gmra.mxu0 %v18056_v48  ;;  %v14838_v24 = vld [vmem:[#allocation3 + $0xe0] sm:$0xf]  ;;  %v15904_v32 = vld [vmem:[#allocation3 + $0xe4] sm:$0xf] }
 0xba1   :  { %10124 = vst [vmem:[#allocation3 + $0xe8] sm:$0xff] %v10092_v5  ;;  %v9920_v28 = vmul.f32 %v17928_v58, %v9850_v3  ;;  %10897 = vmatmul.bf16.gmra.mxu1 %v18058_v12 }
 0xba2   :  { %v9989_v17 = vadd.f32 %v17931_v42, %v9919_v53 }
 0xba3   :  { %v9990_v27 = vadd.f32 %v17934_v10, %v9920_v28 }
 0xba4   :  { %v10053_v18 = vmax.f32 %v9989_v17, 0.0 }
 0xba5   :  { %v10054_v21 = vmax.f32 %v9990_v27, 0.0  ;;  %v9696_v29 = vpop.f32.mrf.mxu0 }
 0xba6   :  { %v9785_v14 = vpop.f32.mrf.mxu1  ;;  %v9851_v33 = vadd.f32 %v9696_v29, %v9506_v6  ;;  %v10517_v13 = vpop.f32.mrf.mxu2  ;;  %v18797_v29 = vld [vmem:[#allocation63_spill] sm:$0xff] }
 0xba7   :  { %v10093_v8 = vpack.c.bf16 %v10054_v21, %v10053_v18  ;;  %v9852_v5 = vadd.f32 %v9785_v14, %v9507_v20  ;;  %v10606_v38 = vpop.f32.mrf.mxu3  ;;  %v18796_v18 = vld [vmem:[#allocation50_spill] sm:$0xff] }
 0xba8   :  { %v18248_v3 = vadd.f32 %v10606_v38, %v10517_v13  ;;  %v15905_v2 = vld [vmem:[#allocation3 + $0xe4] sm:$0xf0]  ;;  %v14840_v53 = vld [vmem:[#allocation3 + $0xe8] sm:$0xf0]  ;;  %v9921_v28 = vmul.f32 %v17926_v0, %v9851_v33 }
 0xba9   :  { %10125 = vst [vmem:[#allocation3 + $0xf0] sm:$0xff] %v10093_v8  ;;  %v9922_v16 = vmul.f32 %v17928_v58, %v9852_v5  ;;  %v18252_v34 = vor.u32 %v15905_v2, %v14838_v24  ;;  %v18254_v17 = vor.u32 %v15904_v32, %v14840_v53  ;;  %v18798_v32 = vld [vmem:[#allocation39_spill] sm:$0xff] }
 0xbaa   :  { %v9991_v27 = vadd.f32 %v17931_v42, %v9921_v28  ;;  %v9510_v53 = vadd.f32 %v18116_v43, %v18798_v32  ;;  %v18799_v28 = vld [vmem:[#allocation40_spill] sm:$0xff] }
 0xbab   :  { %v9992_v46 = vadd.f32 %v17934_v10, %v9922_v16  ;;  %10559 = vmatmul.bf16.gmra.mxu2 %v18252_v34  ;;  %10648 = vmatmul.bf16.gmra.mxu3 %v18254_v17  ;;  %v9511_v16 = vadd.f32 %v18118_v41, %v18799_v28 }
 0xbac   :  { %v10055_v31 = vmax.f32 %v9991_v27, 0.0 }
 0xbad   :  { %v10056_v6 = vmax.f32 %v9992_v46, 0.0  ;;  %v9699_v63 = vpop.f32.mrf.mxu0 }
 0xbae   :  { %v9788_v36 = vpop.f32.mrf.mxu1  ;;  %v9853_v21 = vadd.f32 %v9699_v63, %v18796_v18  ;;  %v10520_v8 = vpop.f32.mrf.mxu2 }
 0xbaf   :  { %v10094_v20 = vpack.c.bf16 %v10056_v6, %v10055_v31  ;;  %v9854_v14 = vadd.f32 %v9788_v36, %v18797_v29  ;;  %v10609_v33 = vpop.f32.mrf.mxu3 }
 0xbb0   :  { %v18262_v5 = vadd.f32 %v10609_v33, %v10520_v8  ;;  %v9923_v13 = vmul.f32 %v17926_v0, %v9853_v21  ;;  %10813 = vmatmul.bf16.gmra.mxu0 %v18076_v15  ;;  %v14846_v29 = vld [vmem:[#allocation3 + $0xf0] sm:$0xf]  ;;  %v15906_v33 = vld [vmem:[#allocation3 + $0xf4] sm:$0xf] }
 0xbb1   :  { %10126 = vst [vmem:[#allocation3 + $0xf8] sm:$0xff] %v10094_v20  ;;  %v9924_v38 = vmul.f32 %v17928_v58, %v9854_v14  ;;  %10902 = vmatmul.bf16.gmra.mxu1 %v18078_v47 }
 0xbb2   :  { %v9993_v24 = vadd.f32 %v17931_v42, %v9923_v13 }
 0xbb3   :  { %v9994_v2 = vadd.f32 %v17934_v10, %v9924_v38 }
 0xbb4   :  { %v10057_v27 = vmax.f32 %v9993_v24, 0.0 }
 0xbb5   :  { %v10058_v46 = vmax.f32 %v9994_v2, 0.0  ;;  %v9701_v31 = vpop.f32.mrf.mxu0 }
 0xbb6   :  { %v9790_v6 = vpop.f32.mrf.mxu1  ;;  %v9855_v36 = vadd.f32 %v9701_v31, %v9510_v53  ;;  %v10522_v18 = vpop.f32.mrf.mxu2 }
 0xbb7   :  { %v10095_v63 = vpack.c.bf16 %v10058_v46, %v10057_v27  ;;  %v9856_v20 = vadd.f32 %v9790_v6, %v9511_v16  ;;  %v10611_v21 = vpop.f32.mrf.mxu3 }
 0xbb8   :  { %v18274_v14 = vadd.f32 %v10611_v21, %v10522_v18  ;;  %v15907_v8 = vld [vmem:[#allocation3 + $0xf4] sm:$0xf0]  ;;  %v14848_v13 = vld [vmem:[#allocation3 + $0xf8] sm:$0xf0]  ;;  %v9925_v43 = vmul.f32 %v17926_v0, %v9855_v36 }
 0xbb9   :  { %10127 = vst [vmem:[#allocation3 + $0x100] sm:$0xff] %v10095_v63  ;;  %v9926_v41 = vmul.f32 %v17928_v58, %v9856_v20  ;;  %v18278_v38 = vor.u32 %v15907_v8, %v14846_v29  ;;  %v18280_v24 = vor.u32 %v15906_v33, %v14848_v13 }
 0xbba   :  { %v9995_v2 = vadd.f32 %v17931_v42, %v9925_v43 }
 0xbbb   :  { %v9996_v32 = vadd.f32 %v17934_v10, %v9926_v41  ;;  %10564 = vmatmul.bf16.gmra.mxu2 %v18278_v38  ;;  %10653 = vmatmul.bf16.gmra.mxu3 %v18280_v24 }
 0xbbc   :  { %v10059_v53 = vmax.f32 %v9995_v2, 0.0 }
 0xbbd   :  { %v10060_v28 = vmax.f32 %v9996_v32, 0.0  ;;  %v10779_v16 = vpop.f32.mrf.mxu0 }
 0xbbe   :  { %v10868_v27 = vpop.f32.mrf.mxu1  ;;  %v10525_v0 = vpop.f32.mrf.mxu2  ;;  %v10780_v58 = vadd.f32 %v10779_v16, %v18132_v50 }
 0xbbf   :  { %v10096_v46 = vpack.c.bf16 %v10060_v28, %v10059_v53  ;;  %v10614_v31 = vpop.f32.mrf.mxu3 }
 0xbc0   :  { %v18287_v6 = vadd.f32 %v10614_v31, %v10525_v0  ;;  %v18289_v63 = vadd.f32 %v10868_v27, %v10780_v58  ;;  %10818 = vmatmul.bf16.gmra.mxu0 %v18096_v30  ;;  %v14854_v21 = vld [vmem:[#allocation3 + $0x100] sm:$0xf]  ;;  %v15908_v50 = vld [vmem:[#allocation3 + $0x104] sm:$0xf] }
 0xbc1   :  { %10128 = vst [vmem:[#allocation3 + $0x108] sm:$0xff] %v10096_v46  ;;  %10907 = vmatmul.bf16.gmra.mxu1 %v18098_v37 }
 0xbc5   :  { %v10781_v42 = vpop.f32.mrf.mxu0 }
 0xbc6   :  { %v10870_v10 = vpop.f32.mrf.mxu1  ;;  %v10527_v36 = vpop.f32.mrf.mxu2  ;;  %v10782_v18 = vadd.f32 %v10781_v42, %v18144_v23 }
 0xbc7   :  { %v10616_v20 = vpop.f32.mrf.mxu3 }
 0xbc8   :  { %v18294_v29 = vadd.f32 %v10616_v20, %v10527_v36  ;;  %v15909_v8 = vld [vmem:[#allocation3 + $0x104] sm:$0xf0]  ;;  %v14856_v33 = vld [vmem:[#allocation3 + $0x108] sm:$0xf0]  ;;  %v18296_v13 = vadd.f32 %v10870_v10, %v10782_v18 }
 0xbc9   :  { %v18298_v43 = vor.u32 %v15909_v8, %v14854_v21  ;;  %v18300_v41 = vor.u32 %v15908_v50, %v14856_v33 }
 0xbcb   :  { %10569 = vmatmul.bf16.gmra.mxu2 %v18298_v43  ;;  %10658 = vmatmul.bf16.gmra.mxu3 %v18300_v41 }
 0xbcd   :  { %v10784_v2 = vpop.f32.mrf.mxu0 }
 0xbce   :  { %v10873_v32 = vpop.f32.mrf.mxu1  ;;  %v10530_v53 = vpop.f32.mrf.mxu2  ;;  %v10785_v28 = vadd.f32 %v10784_v2, %v18158_v54 }
 0xbcf   :  { %v10619_v23 = vpop.f32.mrf.mxu3 }
 0xbd0   :  { %v18305_v16 = vadd.f32 %v10619_v23, %v10530_v53  ;;  %v18307_v27 = vadd.f32 %v10873_v32, %v10785_v28  ;;  %10823 = vmatmul.bf16.gmra.mxu0 %v18122_v4 }
 0xbd1   :  { %10912 = vmatmul.bf16.gmra.mxu1 %v18124_v35 }
 0xbd5   :  { %v10786_v46 = vpop.f32.mrf.mxu0 }
 0xbd6   :  { %v10875_v0 = vpop.f32.mrf.mxu1  ;;  %v10532_v31 = vpop.f32.mrf.mxu2  ;;  %v10787_v42 = vadd.f32 %v10786_v46, %v18170_v49 }
 0xbd7   :  { %v10621_v58 = vpop.f32.mrf.mxu3 }
 0xbd8   :  { %v18312_v10 = vadd.f32 %v10621_v58, %v10532_v31  ;;  %v18314_v36 = vadd.f32 %v10875_v0, %v10787_v42 }
 0xbdb   :  { %11095 = vmatmul.bf16.vlgmr.msrb.gmra.mxu2 %v17974_v1  ;;  %11184 = vmatmul.bf16.vlgmr.msrb.gmra.mxu3 %v17976_v19 }
 0xbdd   :  { %v10789_v54 = vpop.f32.mrf.mxu0 }
 0xbde   :  { %v10878_v20 = vpop.f32.mrf.mxu1  ;;  %v10535_v18 = vpop.f32.mrf.mxu2  ;;  %v10790_v8 = vadd.f32 %v10789_v54, %v18184_v44 }
 0xbdf   :  { %v10624_v21 = vpop.f32.mrf.mxu3 }
 0xbe0   :  { %v18319_v50 = vadd.f32 %v10624_v21, %v10535_v18  ;;  %v18321_v33 = vadd.f32 %v10878_v20, %v10790_v8  ;;  %10828 = vmatmul.bf16.gmra.mxu0 %v18148_v22 }
 0xbe1   :  { %10917 = vmatmul.bf16.gmra.mxu1 %v18150_v25 }
 0xbe5   :  { %v10791_v49 = vpop.f32.mrf.mxu0 }
 0xbe6   :  { %v10880_v2 = vpop.f32.mrf.mxu1  ;;  %v10537_v32 = vpop.f32.mrf.mxu2  ;;  %v10792_v19 = vadd.f32 %v10791_v49, %v18196_v56 }
 0xbe7   :  { %v10626_v1 = vpop.f32.mrf.mxu3 }
 0xbe8   :  { %v18326_v53 = vadd.f32 %v10626_v1, %v10537_v32  ;;  %v18328_v23 = vadd.f32 %v10880_v2, %v10792_v19 }
 0xbeb   :  { %11100 = vmatmul.bf16.gmra.mxu2 %v17992_v57  ;;  %11189 = vmatmul.bf16.gmra.mxu3 %v17994_v40 }
 0xbed   :  { %v10794_v44 = vpop.f32.mrf.mxu0 }
 0xbee   :  { %v10883_v28 = vpop.f32.mrf.mxu1  ;;  %v10540_v46 = vpop.f32.mrf.mxu2  ;;  %v10795_v31 = vadd.f32 %v10794_v44, %v18210_v11 }
 0xbef   :  { %v10629_v0 = vpop.f32.mrf.mxu3 }
 0xbf0   :  { %v18333_v58 = vadd.f32 %v10629_v0, %v10540_v46  ;;  %v18335_v42 = vadd.f32 %v10883_v28, %v10795_v31  ;;  %10833 = vmatmul.bf16.gmra.mxu0 %v18174_v52 }
 0xbf1   :  { %10922 = vmatmul.bf16.gmra.mxu1 %v18176_v26 }
 0xbf5   :  { %v10796_v56 = vpop.f32.mrf.mxu0 }
 0xbf6   :  { %v10885_v54 = vpop.f32.mrf.mxu1  ;;  %v10542_v20 = vpop.f32.mrf.mxu2  ;;  %v10797_v40 = vadd.f32 %v10796_v56, %v18222_v55 }
 0xbf7   :  { %v10631_v57 = vpop.f32.mrf.mxu3 }
 0xbf8   :  { %v18340_v18 = vadd.f32 %v10631_v57, %v10542_v20  ;;  %v18342_v21 = vadd.f32 %v10885_v54, %v10797_v40 }
 0xbfb   :  { %11105 = vmatmul.bf16.gmra.mxu2 %v18012_v9  ;;  %11194 = vmatmul.bf16.gmra.mxu3 %v18014_v39 }
 0xbfd   :  { %v18346_v11 = vpop.f32.mrf.mxu0 }
 0xbfe   :  { %v18348_v8 = vpop.f32.mrf.mxu1  ;;  %v10545_v49 = vpop.f32.mrf.mxu2 }
 0xbff   :  { %v10634_v2 = vpop.f32.mrf.mxu3 }
 0xc00   :  { %v18350_v32 = vadd.f32 %v10634_v2, %v10545_v49  ;;  %10838 = vmatmul.bf16.gmra.mxu0 %v18200_v61 }
 0xc01   :  { %10927 = vmatmul.bf16.gmra.mxu1 %v18202_v60 }
 0xc05   :  { %v10801_v55 = vpop.f32.mrf.mxu0 }
 0xc06   :  { %v10890_v1 = vpop.f32.mrf.mxu1  ;;  %v10547_v19 = vpop.f32.mrf.mxu2  ;;  %v10802_v9 = vadd.f32 %v10801_v55, %v18248_v3 }
 0xc07   :  { %v10636_v44 = vpop.f32.mrf.mxu3 }
 0xc08   :  { %v18355_v28 = vadd.f32 %v10636_v44, %v10547_v19  ;;  %v18357_v39 = vadd.f32 %v10890_v1, %v10802_v9 }
 0xc0b   :  { %11110 = vmatmul.bf16.gmra.mxu2 %v18034_v62  ;;  %11199 = vmatmul.bf16.gmra.mxu3 %v18036_v45 }
 0xc0d   :  { %v10804_v46 = vpop.f32.mrf.mxu0 }
 0xc0e   :  { %v10893_v0 = vpop.f32.mrf.mxu1  ;;  %v10550_v31 = vpop.f32.mrf.mxu2  ;;  %v10805_v54 = vadd.f32 %v10804_v46, %v18262_v5 }
 0xc0f   :  { %v10639_v56 = vpop.f32.mrf.mxu3 }
 0xc10   :  { %v18362_v20 = vadd.f32 %v10639_v56, %v10550_v31  ;;  %v18364_v57 = vadd.f32 %v10893_v0, %v10805_v54  ;;  %10843 = vmatmul.bf16.gmra.mxu0 %v18226_v59 }
 0xc11   :  { %10932 = vmatmul.bf16.gmra.mxu1 %v18228_v51 }
 0xc15   :  { %v10806_v3 = vpop.f32.mrf.mxu0 }
 0xc16   :  { %v10895_v40 = vpop.f32.mrf.mxu1  ;;  %v10552_v49 = vpop.f32.mrf.mxu2  ;;  %v10807_v45 = vadd.f32 %v10806_v3, %v18274_v14 }
 0xc17   :  { %v10641_v62 = vpop.f32.mrf.mxu3 }
 0xc18   :  { %v18369_v2 = vadd.f32 %v10641_v62, %v10552_v49  ;;  %v18371_v55 = vadd.f32 %v10895_v40, %v10807_v45 }
 0xc1b   :  { %11115 = vmatmul.bf16.gmra.mxu2 %v18056_v48  ;;  %11204 = vmatmul.bf16.gmra.mxu3 %v18058_v12 }
 0xc1d   :  { %v10809_v5 = vpop.f32.mrf.mxu0 }
 0xc1e   :  { %v10898_v1 = vpop.f32.mrf.mxu1  ;;  %v10555_v19 = vpop.f32.mrf.mxu2  ;;  %v10810_v9 = vadd.f32 %v10809_v5, %v18287_v6 }
 0xc1f   :  { %v10644_v44 = vpop.f32.mrf.mxu3 }
 0xc20   :  { %v18376_v46 = vadd.f32 %v10644_v44, %v10555_v19  ;;  %v18378_v0 = vadd.f32 %v10898_v1, %v10810_v9  ;;  %10848 = vmatmul.bf16.gmra.mxu0 %v18252_v34 }
 0xc21   :  { %10937 = vmatmul.bf16.gmra.mxu1 %v18254_v17 }
 0xc25   :  { %v10811_v14 = vpop.f32.mrf.mxu0 }
 0xc26   :  { %v10900_v31 = vpop.f32.mrf.mxu1  ;;  %v10557_v56 = vpop.f32.mrf.mxu2  ;;  %v10812_v12 = vadd.f32 %v10811_v14, %v18294_v29 }
 0xc27   :  { %v10646_v48 = vpop.f32.mrf.mxu3 }
 0xc28   :  { %v18383_v54 = vadd.f32 %v10646_v48, %v10557_v56  ;;  %v18385_v3 = vadd.f32 %v10900_v31, %v10812_v12 }
 0xc2b   :  { %11120 = vmatmul.bf16.gmra.mxu2 %v18076_v15  ;;  %11209 = vmatmul.bf16.gmra.mxu3 %v18078_v47 }
 0xc2d   :  { %v10814_v6 = vpop.f32.mrf.mxu0 }
 0xc2e   :  { %v10903_v40 = vpop.f32.mrf.mxu1  ;;  %v10560_v49 = vpop.f32.mrf.mxu2  ;;  %v10815_v45 = vadd.f32 %v10814_v6, %v18305_v16 }
 0xc2f   :  { %v10649_v62 = vpop.f32.mrf.mxu3 }
 0xc30   :  { %v18390_v5 = vadd.f32 %v10649_v62, %v10560_v49  ;;  %v18392_v1 = vadd.f32 %v10903_v40, %v10815_v45  ;;  %10853 = vmatmul.bf16.gmra.mxu0 %v18278_v38 }
 0xc31   :  { %10942 = vmatmul.bf16.gmra.mxu1 %v18280_v24 }
 0xc35   :  { %v10816_v29 = vpop.f32.mrf.mxu0 }
 0xc36   :  { %v10905_v19 = vpop.f32.mrf.mxu1  ;;  %v10562_v44 = vpop.f32.mrf.mxu2  ;;  %v10817_v47 = vadd.f32 %v10816_v29, %v18312_v10 }
 0xc37   :  { %v10651_v15 = vpop.f32.mrf.mxu3 }
 0xc38   :  { %v18397_v9 = vadd.f32 %v10651_v15, %v10562_v44  ;;  %v18399_v14 = vadd.f32 %v10905_v19, %v10817_v47 }
 0xc3b   :  { %11125 = vmatmul.bf16.gmra.mxu2 %v18096_v30  ;;  %11214 = vmatmul.bf16.gmra.mxu3 %v18098_v37  ;;  %v11448_v30 = vld [vmem:[#allocation15 + $0x78] sm:$0xff] }
 0xc3c   :  { %11453 = vmatpush.msra.mxu0 %v11448_v30  ;;  %16056 = vmatpush.msra.mxu1 %v11448_v30 }
 0xc3d   :  { %v10819_v16 = vpop.f32.mrf.mxu0 }
 0xc3e   :  { %v10908_v31 = vpop.f32.mrf.mxu1  ;;  %v10565_v56 = vpop.f32.mrf.mxu2  ;;  %v10820_v12 = vadd.f32 %v10819_v16, %v18319_v50 }
 0xc3f   :  { %v10654_v48 = vpop.f32.mrf.mxu3 }
 0xc40   :  { %v18404_v6 = vadd.f32 %v10654_v48, %v10565_v56  ;;  %v18406_v40 = vadd.f32 %v10908_v31, %v10820_v12 }
 0xc45   :  { %v10821_v49 = vpop.f32.mrf.mxu0 }
 0xc46   :  { %v10910_v10 = vpop.f32.mrf.mxu1  ;;  %v10567_v62 = vpop.f32.mrf.mxu2  ;;  %v10822_v29 = vadd.f32 %v10821_v49, %v18326_v53 }
 0xc47   :  { %v10656_v45 = vpop.f32.mrf.mxu3 }
 0xc48   :  { %v18409_v19 = vadd.f32 %v10656_v45, %v10567_v62  ;;  %v18411_v37 = vadd.f32 %v10910_v10, %v10822_v29 }
 0xc4b   :  { %11130 = vmatmul.bf16.gmra.mxu2 %v18122_v4  ;;  %11219 = vmatmul.bf16.gmra.mxu3 %v18124_v35  ;;  %v11447_v35 = vld [vmem:[#allocation15 + $0x70] sm:$0xff] }
 0xc4c   :  { %11454 = vmatpush.msra.mxu0 %v11447_v35  ;;  %16057 = vmatpush.msra.mxu1 %v11447_v35 }
 0xc4d   :  { %v10824_v50 = vpop.f32.mrf.mxu0 }
 0xc4e   :  { %v10913_v44 = vpop.f32.mrf.mxu1  ;;  %v10570_v15 = vpop.f32.mrf.mxu2  ;;  %v10825_v16 = vadd.f32 %v10824_v50, %v18333_v58 }
 0xc4f   :  { %v10659_v47 = vpop.f32.mrf.mxu3 }
 0xc50   :  { %v18416_v31 = vadd.f32 %v10659_v47, %v10570_v15  ;;  %v18418_v53 = vadd.f32 %v10913_v44, %v10825_v16 }
 0xc55   :  { %v10826_v56 = vpop.f32.mrf.mxu0 }
 0xc56   :  { %v10915_v48 = vpop.f32.mrf.mxu1  ;;  %v10572_v12 = vpop.f32.mrf.mxu2  ;;  %v10827_v10 = vadd.f32 %v10826_v56, %v18340_v18 }
 0xc57   :  { %v10661_v49 = vpop.f32.mrf.mxu3 }
 0xc58   :  { %v18421_v62 = vadd.f32 %v10661_v49, %v10572_v12  ;;  %v18423_v4 = vadd.f32 %v10915_v48, %v10827_v10  ;;  %v11446_v10 = vld [vmem:[#allocation15 + $0x68] sm:$0xff] }
 0xc59   :  { %11455 = vmatpush.msra.mxu0 %v11446_v10  ;;  %16058 = vmatpush.msra.mxu1 %v11446_v10 }
 0xc5b   :  { %11135 = vmatmul.bf16.gmra.mxu2 %v18148_v22  ;;  %11224 = vmatmul.bf16.gmra.mxu3 %v18150_v25 }
 0xc5d   :  { %v10829_v58 = vpop.f32.mrf.mxu0 }
 0xc5e   :  { %v10918_v45 = vpop.f32.mrf.mxu1  ;;  %v10830_v29 = vadd.f32 %v10829_v58, %v18350_v32  ;;  %v11096_v30 = vpop.f32.mrf.mxu2 }
 0xc5f   :  { %v11185_v50 = vpop.f32.mrf.mxu3 }
 0xc60   :  { %v11186_v44 = vadd.f32 %v11185_v50, %v11096_v30  ;;  %v18428_v15 = vadd.f32 %v10918_v45, %v10830_v29 }
 0xc62   :  { %v11265_v18 = vadd.f32 %v11186_v44, %v18289_v63  ;;  %v18440_v63 = vld [vmem:[%s18570_s8] ss:$0 sm:$0xff] }
 0xc64   :  { %v11301_v35 = vmul.f32 %v18440_v63, %v11265_v18 }
 0xc65   :  { %v10831_v47 = vpop.f32.mrf.mxu0 }
 0xc66   :  { %v10832_v16 = vadd.f32 %v10831_v47, %v18355_v28  ;;  %v11098_v56 = vpop.f32.mrf.mxu2  ;;  %v10920_v48 = vpop.f32.mrf.mxu1 }
 0xc67   :  { %v11187_v22 = vpop.f32.mrf.mxu3 }
 0xc68   :  { %v11188_v25 = vadd.f32 %v11187_v22, %v11098_v56  ;;  %v18432_v12 = vadd.f32 %v10920_v48, %v10832_v16  ;;  %v11445_v48 = vld [vmem:[#allocation15 + $0x60] sm:$0xff] }
 0xc69   :  { %11456 = vmatpush.msra.mxu0 %v11445_v48  ;;  %16059 = vmatpush.msra.mxu1 %v11445_v48 }
 0xc6a   :  { %v11266_v49 = vadd.f32 %v11188_v25, %v18296_v13  ;;  %v18446_v13 = vld [vmem:[%s18571_s9] ss:$0 sm:$0xff] }
 0xc6b   :  { %11140 = vmatmul.bf16.gmra.mxu2 %v18174_v52  ;;  %11229 = vmatmul.bf16.gmra.mxu3 %v18176_v26  ;;  %v11337_v26 = vadd.f32 %v18446_v13, %v11301_v35 }
 0xc6c   :  { %v11302_v47 = vmul.f32 %v18440_v63, %v11266_v49 }
 0xc6d   :  { %v11369_v44 = vmax.f32 %v11337_v26, 0.0 }
 0xc6e   :  { %v11101_v32 = vpop.f32.mrf.mxu2 }
 0xc6f   :  { %v11190_v28 = vpop.f32.mrf.mxu3 }
 0xc70   :  { %v11191_v58 = vadd.f32 %v11190_v28, %v11101_v32 }
 0xc72   :  { %v11267_v52 = vadd.f32 %v11191_v58, %v18307_v27  ;;  %v11338_v27 = vadd.f32 %v18446_v13, %v11302_v47  ;;  %v11444_v47 = vld [vmem:[#allocation15 + $0x58] sm:$0xff] }
 0xc73   :  { %11457 = vmatpush.msra.mxu0 %v11444_v47  ;;  %16060 = vmatpush.msra.mxu1 %v11444_v47 }
 0xc74   :  { %v11303_v45 = vmul.f32 %v18440_v63, %v11267_v52  ;;  %v11370_v28 = vmax.f32 %v11338_v27, 0.0 }
 0xc76   :  { %v11339_v29 = vadd.f32 %v18446_v13, %v11303_v45  ;;  %v11103_v30 = vpop.f32.mrf.mxu2 }
 0xc77   :  { %v11192_v50 = vpop.f32.mrf.mxu3 }
 0xc78   :  { %v11371_v18 = vmax.f32 %v11339_v29, 0.0  ;;  %v11193_v16 = vadd.f32 %v11192_v50, %v11103_v30 }
 0xc7a   :  { %v11401_v56 = vadd.f32 %v11371_v18, %v11369_v44  ;;  %v11268_v22 = vadd.f32 %v11193_v16, %v18314_v36 }
 0xc7b   :  { %11145 = vmatmul.bf16.gmra.mxu2 %v18200_v61  ;;  %11234 = vmatmul.bf16.gmra.mxu3 %v18202_v60 }
 0xc7c   :  { %v11304_v25 = vmul.f32 %v18440_v63, %v11268_v22 }
 0xc7e   :  { %v11340_v10 = vadd.f32 %v18446_v13, %v11304_v25  ;;  %v11106_v32 = vpop.f32.mrf.mxu2 }
 0xc7f   :  { %v11195_v49 = vpop.f32.mrf.mxu3 }
 0xc80   :  { %v11372_v35 = vmax.f32 %v11340_v10, 0.0  ;;  %v11196_v58 = vadd.f32 %v11195_v49, %v11106_v32 }
 0xc82   :  { %v11402_v52 = vadd.f32 %v11372_v35, %v11370_v28  ;;  %v11269_v36 = vadd.f32 %v11196_v58, %v18321_v33  ;;  %v11443_v58 = vld [vmem:[#allocation15 + $0x50] sm:$0xff] }
 0xc83   :  { %11458 = vmatpush.msra.mxu0 %v11443_v58  ;;  %16061 = vmatpush.msra.mxu1 %v11443_v58 }
 0xc84   :  { %v11305_v61 = vmul.f32 %v18440_v63, %v11269_v36 }
 0xc86   :  { %v11341_v60 = vadd.f32 %v18446_v13, %v11305_v61  ;;  %v11108_v26 = vpop.f32.mrf.mxu2 }
 0xc87   :  { %v11197_v45 = vpop.f32.mrf.mxu3 }
 0xc88   :  { %v11373_v29 = vmax.f32 %v11341_v60, 0.0  ;;  %v11198_v30 = vadd.f32 %v11197_v45, %v11108_v26 }
 0xc8a   :  { %v11403_v50 = vadd.f32 %v11401_v56, %v11373_v29  ;;  %v11270_v44 = vadd.f32 %v11198_v30, %v18328_v23 }
 0xc8b   :  { %11150 = vmatmul.bf16.gmra.mxu2 %v18226_v59  ;;  %11239 = vmatmul.bf16.gmra.mxu3 %v18228_v51 }
 0xc8c   :  { %v11306_v18 = vmul.f32 %v18440_v63, %v11270_v44 }
 0xc8e   :  { %v11342_v33 = vadd.f32 %v18446_v13, %v11306_v18  ;;  %v11111_v16 = vpop.f32.mrf.mxu2 }
 0xc8f   :  { %v11200_v22 = vpop.f32.mrf.mxu3 }
 0xc90   :  { %v11374_v48 = vmax.f32 %v11342_v33, 0.0  ;;  %v11201_v27 = vadd.f32 %v11200_v22, %v11111_v16  ;;  %v11442_v33 = vld [vmem:[#allocation15 + $0x48] sm:$0xff] }
 0xc91   :  { %11459 = vmatpush.msra.mxu0 %v11442_v33  ;;  %16062 = vmatpush.msra.mxu1 %v11442_v33 }
 0xc92   :  { %v11404_v25 = vadd.f32 %v11402_v52, %v11374_v48  ;;  %v11271_v56 = vadd.f32 %v11201_v27, %v18335_v42  ;;  %v10800_v52 = vadd.f32 %v18346_v11, %v18236_v7 }
 0xc94   :  { %v11307_v23 = vmul.f32 %v18440_v63, %v11271_v56  ;;  %v10889_v26 = vadd.f32 %v18348_v8, %v10800_v52 }
 0xc96   :  { %v11343_v10 = vadd.f32 %v18446_v13, %v11307_v23  ;;  %v11113_v59 = vpop.f32.mrf.mxu2 }
 0xc97   :  { %v11202_v32 = vpop.f32.mrf.mxu3 }
 0xc98   :  { %v11375_v51 = vmax.f32 %v11343_v10, 0.0  ;;  %v11203_v49 = vadd.f32 %v11202_v32, %v11113_v59 }
 0xc9a   :  { %v11405_v28 = vadd.f32 %v11403_v50, %v11375_v51  ;;  %v11272_v35 = vadd.f32 %v11203_v49, %v18342_v21 }
 0xc9b   :  { %11155 = vmatmul.bf16.gmra.mxu2 %v18252_v34  ;;  %11244 = vmatmul.bf16.gmra.mxu3 %v18254_v17 }
 0xc9c   :  { %v11308_v42 = vmul.f32 %v18440_v63, %v11272_v35 }
 0xc9e   :  { %v11344_v36 = vadd.f32 %v18446_v13, %v11308_v42  ;;  %v11116_v61 = vpop.f32.mrf.mxu2 }
 0xc9f   :  { %v11205_v60 = vpop.f32.mrf.mxu3 }
 0xca0   :  { %v11376_v45 = vmax.f32 %v11344_v36, 0.0  ;;  %v11206_v21 = vadd.f32 %v11205_v60, %v11116_v61 }
 0xca2   :  { %v11406_v29 = vadd.f32 %v11404_v25, %v11376_v45  ;;  %v11273_v30 = vadd.f32 %v11206_v21, %v10889_v26  ;;  %v14998_v26 = vld [vmem:[#allocation3 + $0x110] sm:$0xf]  ;;  %v15911_v45 = vld [vmem:[#allocation3 + $0x114] sm:$0xf0]  ;;  %v15000_v21 = vld [vmem:[#allocation3 + $0x118] sm:$0xf0] }
 0xca4   :  { %v11309_v34 = vmul.f32 %v18440_v63, %v11273_v30 }
 0xca6   :  { %v11345_v17 = vadd.f32 %v18446_v13, %v11309_v34  ;;  %v11118_v50 = vpop.f32.mrf.mxu2  ;;  %v14999_v34 = vor.u32 %v15911_v45, %v14998_v26  ;;  %v11438_v45 = vld [vmem:[#allocation15 + $0x28] sm:$0xff] }
 0xca7   :  { %v11207_v7 = vpop.f32.mrf.mxu3 }
 0xca8   :  { %v11377_v11 = vmax.f32 %v11345_v17, 0.0  ;;  %v11208_v44 = vadd.f32 %v11207_v7, %v11118_v50 }
 0xcaa   :  { %v11407_v47 = vadd.f32 %v11405_v28, %v11377_v11  ;;  %v11274_v18 = vadd.f32 %v11208_v44, %v18357_v39  ;;  %v11441_v28 = vld [vmem:[#allocation15 + $0x40] sm:$0xff] }
 0xcab   :  { %11160 = vmatmul.bf16.gmra.mxu2 %v18278_v38  ;;  %11249 = vmatmul.bf16.gmra.mxu3 %v18280_v24 }
 0xcac   :  { %v11310_v8 = vmul.f32 %v18440_v63, %v11274_v18  ;;  %11460 = vmatpush.msra.mxu0 %v11441_v28  ;;  %16063 = vmatpush.msra.mxu1 %v11441_v28 }
 0xcae   :  { %v11346_v16 = vadd.f32 %v18446_v13, %v11310_v8  ;;  %v11121_v22 = vpop.f32.mrf.mxu2 }
 0xcaf   :  { %v11210_v48 = vpop.f32.mrf.mxu3 }
 0xcb0   :  { %v11378_v27 = vmax.f32 %v11346_v16, 0.0  ;;  %v11211_v25 = vadd.f32 %v11210_v48, %v11121_v22 }
 0xcb2   :  { %v11408_v56 = vadd.f32 %v11406_v29, %v11378_v27  ;;  %v11275_v23 = vadd.f32 %v11211_v25, %v18364_v57 }
 0xcb4   :  { %v11311_v39 = vmul.f32 %v18440_v63, %v11275_v23 }
 0xcb6   :  { %v11347_v10 = vadd.f32 %v18446_v13, %v11311_v39  ;;  %v11123_v38 = vpop.f32.mrf.mxu2 }
 0xcb7   :  { %v11212_v59 = vpop.f32.mrf.mxu3 }
 0xcb8   :  { %v11379_v24 = vmax.f32 %v11347_v10, 0.0  ;;  %v11213_v32 = vadd.f32 %v11212_v59, %v11123_v38 }
 0xcba   :  { %v11409_v51 = vadd.f32 %v11407_v47, %v11379_v24  ;;  %v11276_v49 = vadd.f32 %v11213_v32, %v18371_v55  ;;  %v11440_v47 = vld [vmem:[#allocation15 + $0x38] sm:$0xff]  ;;  %v11439_v24 = vld [vmem:[#allocation15 + $0x30] sm:$0xff] }
 0xcbb   :  { %11165 = vmatmul.bf16.gmra.mxu2 %v18298_v43  ;;  %11254 = vmatmul.bf16.gmra.mxu3 %v18300_v41  ;;  %v15910_v43 = vld [vmem:[#allocation3 + $0x114] sm:$0xf] }
 0xcbc   :  { %v11312_v35 = vmul.f32 %v18440_v63, %v11276_v49  ;;  %v15003_v17 = vor.u32 %v15910_v43, %v15000_v21  ;;  %11461 = vmatpush.msra.mxu0 %v11440_v47  ;;  %16064 = vmatpush.msra.mxu1 %v11440_v47 }
 0xcbe   :  { %v11348_v57 = vadd.f32 %v18446_v13, %v11312_v35  ;;  %v11126_v58 = vpop.f32.mrf.mxu2  ;;  %11462 = vmatpush.msra.mxu0 %v11439_v24  ;;  %16065 = vmatpush.msra.mxu1 %v11439_v24 }
 0xcbf   :  { %v11215_v52 = vpop.f32.mrf.mxu3 }
 0xcc0   :  { %v11380_v42 = vmax.f32 %v11348_v57, 0.0  ;;  %v11216_v36 = vadd.f32 %v11215_v52, %v11126_v58  ;;  %11463 = vmatpush.msra.mxu0 %v11438_v45  ;;  %16066 = vmatpush.msra.mxu1 %v11438_v45 }
 0xcc2   :  { %v11410_v61 = vadd.f32 %v11408_v56, %v11380_v42  ;;  %v11277_v60 = vadd.f32 %v11216_v36, %v18378_v0 }
 0xcc4   :  { %v11313_v55 = vmul.f32 %v18440_v63, %v11277_v60 }
 0xcc6   :  { %v11349_v41 = vadd.f32 %v18446_v13, %v11313_v55  ;;  %v11128_v29 = vpop.f32.mrf.mxu2 }
 0xcc7   :  { %v11217_v30 = vpop.f32.mrf.mxu3 }
 0xcc8   :  { %v11381_v50 = vmax.f32 %v11349_v41, 0.0  ;;  %v11218_v7 = vadd.f32 %v11217_v30, %v11128_v29 }
 0xcca   :  { %v11411_v11 = vadd.f32 %v11409_v51, %v11381_v50  ;;  %v11278_v44 = vadd.f32 %v11218_v7, %v18385_v3  ;;  %v10834_v7 = vpop.f32.mrf.mxu0 }
 0xccb   :  { %11170 = vmatmul.bf16.gmra.mxu2 %v14999_v34  ;;  %11259 = vmatmul.bf16.gmra.mxu3 %v15003_v17 }
 0xccc   :  { %v11314_v0 = vmul.f32 %v18440_v63, %v11278_v44 }
 0xcce   :  { %v11350_v18 = vadd.f32 %v18446_v13, %v11314_v0  ;;  %v11131_v33 = vpop.f32.mrf.mxu2 }
 0xccf   :  { %v11220_v8 = vpop.f32.mrf.mxu3 }
 0xcd0   :  { %v11382_v16 = vmax.f32 %v11350_v18, 0.0  ;;  %v11221_v22 = vadd.f32 %v11220_v8, %v11131_v33  ;;  %v11437_v8 = vld [vmem:[#allocation15 + $0x20] sm:$0xff] }
 0xcd1   :  { %11464 = vmatpush.msra.mxu0 %v11437_v8  ;;  %16067 = vmatpush.msra.mxu1 %v11437_v8 }
 0xcd2   :  { %v11412_v48 = vadd.f32 %v11410_v61, %v11382_v16  ;;  %v11279_v27 = vadd.f32 %v11221_v22, %v18392_v1  ;;  %v10923_v16 = vpop.f32.mrf.mxu1 }
 0xcd4   :  { %v11315_v25 = vmul.f32 %v18440_v63, %v11279_v27 }
 0xcd6   :  { %v11351_v3 = vadd.f32 %v18446_v13, %v11315_v25  ;;  %v11133_v56 = vpop.f32.mrf.mxu2  ;;  %v10836_v25 = vpop.f32.mrf.mxu0 }
 0xcd7   :  { %v11222_v23 = vpop.f32.mrf.mxu3  ;;  %v10837_v45 = vadd.f32 %v10836_v25, %v18369_v2 }
 0xcd8   :  { %v11383_v39 = vmax.f32 %v11351_v3, 0.0  ;;  %v11223_v10 = vadd.f32 %v11222_v23, %v11133_v56 }
 0xcda   :  { %v11413_v38 = vadd.f32 %v11411_v11, %v11383_v39  ;;  %v11280_v59 = vadd.f32 %v11223_v10, %v18399_v14 }
 0xcdc   :  { %v11316_v32 = vmul.f32 %v18440_v63, %v11280_v59 }
 0xcde   :  { %v11352_v51 = vadd.f32 %v18446_v13, %v11316_v32  ;;  %v11136_v49 = vpop.f32.mrf.mxu2 }
 0xcdf   :  { %v11225_v1 = vpop.f32.mrf.mxu3 }
 0xce0   :  { %v11384_v28 = vmax.f32 %v11352_v51, 0.0  ;;  %v11226_v35 = vadd.f32 %v11225_v1, %v11136_v49  ;;  %v10839_v49 = vpop.f32.mrf.mxu0 }
 0xce2   :  { %v11414_v57 = vadd.f32 %v11412_v48, %v11384_v28  ;;  %v11281_v58 = vadd.f32 %v11226_v35, %v18406_v40  ;;  %v11436_v35 = vld [vmem:[#allocation15 + $0x18] sm:$0xff] }
 0xce3   :  { %11465 = vmatpush.msra.mxu0 %v11436_v35  ;;  %16068 = vmatpush.msra.mxu1 %v11436_v35 }
 0xce4   :  { %v11317_v52 = vmul.f32 %v18440_v63, %v11281_v58 }
 0xce6   :  { %v11353_v42 = vadd.f32 %v18446_v13, %v11317_v52  ;;  %v11138_v36 = vpop.f32.mrf.mxu2 }
 0xce7   :  { %v11227_v14 = vpop.f32.mrf.mxu3 }
 0xce8   :  { %v11385_v61 = vmax.f32 %v11353_v42, 0.0  ;;  %v11228_v60 = vadd.f32 %v11227_v14, %v11138_v36 }
 0xcea   :  { %v11415_v26 = vadd.f32 %v11413_v38, %v11385_v61  ;;  %v11282_v55 = vadd.f32 %v11228_v60, %v18411_v37  ;;  %v10925_v38 = vpop.f32.mrf.mxu1 }
 0xcec   :  { %v11318_v43 = vmul.f32 %v18440_v63, %v11282_v55 }
 0xcee   :  { %v11354_v21 = vadd.f32 %v18446_v13, %v11318_v43  ;;  %v11141_v41 = vpop.f32.mrf.mxu2 }
 0xcef   :  { %v11230_v40 = vpop.f32.mrf.mxu3 }
 0xcf0   :  { %v11386_v29 = vmax.f32 %v11354_v21, 0.0  ;;  %v11231_v30 = vadd.f32 %v11230_v40, %v11141_v41  ;;  %v10926_v40 = vadd.f32 %v10925_v38, %v10837_v45 }
 0xcf2   :  { %v11416_v34 = vadd.f32 %v11414_v57, %v11386_v29  ;;  %v11283_v17 = vadd.f32 %v11231_v30, %v18418_v53  ;;  %v10835_v57 = vadd.f32 %v10834_v7, %v18362_v20  ;;  %v10928_v14 = vpop.f32.mrf.mxu1  ;;  %v11435_v7 = vld [vmem:[#allocation15 + $0x10] sm:$0xff] }
 0xcf3   :  { %11466 = vmatpush.msra.mxu0 %v11435_v7  ;;  %16069 = vmatpush.msra.mxu1 %v11435_v7 }
 0xcf4   :  { %v11319_v50 = vmul.f32 %v18440_v63, %v11283_v17  ;;  %v10924_v36 = vadd.f32 %v10923_v16, %v10835_v57 }
 0xcf6   :  { %v11355_v11 = vadd.f32 %v18446_v13, %v11319_v50  ;;  %v11143_v37 = vpop.f32.mrf.mxu2 }
 0xcf7   :  { %v11232_v44 = vpop.f32.mrf.mxu3 }
 0xcf8   :  { %v11387_v47 = vmax.f32 %v11355_v11, 0.0  ;;  %v11233_v0 = vadd.f32 %v11232_v44, %v11143_v37  ;;  %v10840_v11 = vadd.f32 %v10839_v49, %v18376_v46 }
 0xcfa   :  { %v11417_v18 = vadd.f32 %v11415_v26, %v11387_v47  ;;  %v11284_v33 = vadd.f32 %v11233_v0, %v18423_v4 }
 0xcfc   :  { %v11320_v22 = vmul.f32 %v18440_v63, %v11284_v33 }
 0xcfe   :  { %v11356_v53 = vadd.f32 %v18446_v13, %v11320_v22  ;;  %v11146_v48 = vpop.f32.mrf.mxu2 }
 0xcff   :  { %v11235_v27 = vpop.f32.mrf.mxu3 }
 0xd00   :  { %v11388_v3 = vmax.f32 %v11356_v53, 0.0  ;;  %v11236_v56 = vadd.f32 %v11235_v27, %v11146_v48 }
 0xd02   :  { %v11418_v23 = vadd.f32 %v11416_v34, %v11388_v3  ;;  %v11285_v39 = vadd.f32 %v11236_v56, %v18428_v15  ;;  %v10930_v34 = vpop.f32.mrf.mxu1 }
 0xd04   :  { %v11321_v10 = vmul.f32 %v18440_v63, %v11285_v39 }
 0xd06   :  { %v11357_v4 = vadd.f32 %v18446_v13, %v11321_v10  ;;  %v11148_v59 = vpop.f32.mrf.mxu2 }
 0xd07   :  { %v11237_v24 = vpop.f32.mrf.mxu3 }
 0xd08   :  { %v11389_v32 = vmax.f32 %v11357_v4, 0.0  ;;  %v11238_v51 = vadd.f32 %v11237_v24, %v11148_v59  ;;  %v11434_v59 = vld [vmem:[#allocation15 + $0x8] sm:$0xff] }
 0xd09   :  { %11467 = vmatpush.msra.mxu0 %v11434_v59  ;;  %16070 = vmatpush.msra.mxu1 %v11434_v59 }
 0xd0a   :  { %v11419_v1 = vadd.f32 %v11417_v18, %v11389_v32  ;;  %v11286_v28 = vadd.f32 %v11238_v51, %v18432_v12  ;;  %v10841_v12 = vpop.f32.mrf.mxu0  ;;  %v10929_v18 = vadd.f32 %v10928_v14, %v10840_v11  ;;  %v10933_v48 = vpop.f32.mrf.mxu1 }
 0xd0b   :  { %v10842_v53 = vadd.f32 %v10841_v12, %v18383_v54 }
 0xd0c   :  { %v11322_v15 = vmul.f32 %v18440_v63, %v11286_v28 }
 0xd0d   :  { %v10931_v56 = vadd.f32 %v10930_v34, %v10842_v53 }
 0xd0e   :  { %v11358_v58 = vadd.f32 %v18446_v13, %v11322_v15  ;;  %v11151_v52 = vpop.f32.mrf.mxu2 }
 0xd0f   :  { %v11240_v42 = vpop.f32.mrf.mxu3 }
 0xd10   :  { %v11390_v61 = vmax.f32 %v11358_v58, 0.0  ;;  %v11241_v60 = vadd.f32 %v11240_v42, %v11151_v52 }
 0xd12   :  { %v11420_v26 = vadd.f32 %v11418_v23, %v11390_v61  ;;  %v11287_v55 = vadd.f32 %v11241_v60, %v10924_v36  ;;  %v10844_v37 = vpop.f32.mrf.mxu0  ;;  %v10935_v32 = vpop.f32.mrf.mxu1 }
 0xd13   :  { %v10845_v24 = vadd.f32 %v10844_v37, %v18390_v5 }
 0xd14   :  { %v11323_v43 = vmul.f32 %v18440_v63, %v11287_v55 }
 0xd15   :  { %v10934_v28 = vadd.f32 %v10933_v48, %v10845_v24 }
 0xd16   :  { %v11359_v21 = vadd.f32 %v18446_v13, %v11323_v43  ;;  %v11153_v20 = vpop.f32.mrf.mxu2 }
 0xd17   :  { %v11242_v41 = vpop.f32.mrf.mxu3 }
 0xd18   :  { %v11391_v29 = vmax.f32 %v11359_v21, 0.0  ;;  %v11243_v30 = vadd.f32 %v11242_v41, %v11153_v20 }
 0xd1a   :  { %v11421_v17 = vadd.f32 %v11419_v1, %v11391_v29  ;;  %v11288_v50 = vadd.f32 %v11243_v30, %v10926_v40  ;;  %v10846_v23 = vpop.f32.mrf.mxu0  ;;  %v11433_v40 = vld [vmem:[#allocation15] sm:$0xff] }
 0xd1b   :  { %v10847_v42 = vadd.f32 %v10846_v23, %v18397_v9  ;;  %11468 = vmatpush.msra.mxu0 %v11433_v40  ;;  %16071 = vmatpush.msra.mxu1 %v11433_v40 }
 0xd1c   :  { %v11324_v2 = vmul.f32 %v18440_v63, %v11288_v50 }
 0xd1d   :  { %v10936_v60 = vadd.f32 %v10935_v32, %v10847_v42 }
 0xd1e   :  { %v11360_v44 = vadd.f32 %v18446_v13, %v11324_v2  ;;  %v11156_v47 = vpop.f32.mrf.mxu2 }
 0xd1f   :  { %v11245_v0 = vpop.f32.mrf.mxu3 }
 0xd20   :  { %v11392_v33 = vmax.f32 %v11360_v44, 0.0  ;;  %v11246_v8 = vadd.f32 %v11245_v0, %v11156_v47 }
 0xd22   :  { %v11422_v16 = vadd.f32 %v11420_v26, %v11392_v33  ;;  %v11289_v22 = vadd.f32 %v11246_v8, %v10929_v18  ;;  %v10849_v15 = vpop.f32.mrf.mxu0  ;;  %v10938_v26 = vpop.f32.mrf.mxu1 }
 0xd23   :  { %v10850_v21 = vadd.f32 %v10849_v15, %v18404_v6 }
 0xd24   :  { %v11325_v27 = vmul.f32 %v18440_v63, %v11289_v22 }
 0xd25   :  { %v10939_v34 = vadd.f32 %v10938_v26, %v10850_v21 }
 0xd26   :  { %v11361_v25 = vadd.f32 %v18446_v13, %v11325_v27  ;;  %v11158_v46 = vpop.f32.mrf.mxu2 }
 0xd27   :  { %v11247_v3 = vpop.f32.mrf.mxu3 }
 0xd28   :  { %v11393_v39 = vmax.f32 %v11361_v25, 0.0  ;;  %v11248_v10 = vadd.f32 %v11247_v3, %v11158_v46 }
 0xd2a   :  { %v11423_v38 = vadd.f32 %v11421_v17, %v11393_v39  ;;  %v11290_v4 = vadd.f32 %v11248_v10, %v10931_v56  ;;  %v10851_v20 = vpop.f32.mrf.mxu0  ;;  %v10940_v7 = vpop.f32.mrf.mxu1 }
 0xd2b   :  { %v10852_v37 = vadd.f32 %v10851_v20, %v18409_v19 }
 0xd2c   :  { %v11326_v54 = vmul.f32 %v18440_v63, %v11290_v4 }
 0xd2d   :  { %v10941_v33 = vadd.f32 %v10940_v7, %v10852_v37 }
 0xd2e   :  { %v11362_v51 = vadd.f32 %v18446_v13, %v11326_v54  ;;  %v11161_v49 = vpop.f32.mrf.mxu2 }
 0xd2f   :  { %v11250_v1 = vpop.f32.mrf.mxu3 }
 0xd30   :  { %v11394_v35 = vmax.f32 %v11362_v51, 0.0  ;;  %v11251_v57 = vadd.f32 %v11250_v1, %v11161_v49 }
 0xd32   :  { %v11424_v58 = vadd.f32 %v11422_v16, %v11394_v35  ;;  %v11291_v52 = vadd.f32 %v11251_v57, %v10934_v28  ;;  %v10854_v44 = vpop.f32.mrf.mxu0  ;;  %v10943_v27 = vpop.f32.mrf.mxu1 }
 0xd33   :  { %v10855_v48 = vadd.f32 %v10854_v44, %v18416_v31 }
 0xd34   :  { %v11327_v36 = vmul.f32 %v18440_v63, %v11291_v52 }
 0xd35   :  { %v10944_v56 = vadd.f32 %v10943_v27, %v10855_v48 }
 0xd36   :  { %v11363_v14 = vadd.f32 %v18446_v13, %v11327_v36  ;;  %v11163_v5 = vpop.f32.mrf.mxu2 }
 0xd37   :  { %v11252_v61 = vpop.f32.mrf.mxu3 }
 0xd38   :  { %v11395_v55 = vmax.f32 %v11363_v14, 0.0  ;;  %v11253_v45 = vadd.f32 %v11252_v61, %v11163_v5  ;;  %v16091_v14 = vld [vmem:[%s18573_s11] ss:$0 sm:$0xff] }
 0xd3a   :  { %v11425_v12 = vadd.f32 %v11423_v38, %v11395_v55  ;;  %v11292_v43 = vadd.f32 %v11253_v45, %v10936_v60  ;;  %v10856_v10 = vpop.f32.mrf.mxu0  ;;  %v10945_v54 = vpop.f32.mrf.mxu1 }
 0xd3b   :  { %v10857_v59 = vadd.f32 %v10856_v10, %v18421_v62 }
 0xd3c   :  { %v11328_v41 = vmul.f32 %v18440_v63, %v11292_v43 }
 0xd3d   :  { %v10946_v49 = vadd.f32 %v10945_v54, %v10857_v59 }
 0xd3e   :  { %v11364_v9 = vadd.f32 %v18446_v13, %v11328_v41  ;;  %v11166_v29 = vpop.f32.mrf.mxu2 }
 0xd3f   :  { %v11255_v30 = vpop.f32.mrf.mxu3 }
 0xd40   :  { %v11396_v17 = vmax.f32 %v11364_v9, 0.0  ;;  %v11256_v50 = vadd.f32 %v11255_v30, %v11166_v29 }
 0xd42   :  { %v11426_v11 = vadd.f32 %v11424_v58, %v11396_v17  ;;  %v11293_v2 = vadd.f32 %v11256_v50, %v10939_v34 }
 0xd44   :  { %v11329_v6 = vmul.f32 %v18440_v63, %v11293_v2 }
 0xd46   :  { %v11365_v47 = vadd.f32 %v18446_v13, %v11329_v6  ;;  %v11168_v0 = vpop.f32.mrf.mxu2 }
 0xd47   :  { %v11257_v18 = vpop.f32.mrf.mxu3 }
 0xd48   :  { %v11397_v8 = vmax.f32 %v11365_v47, 0.0  ;;  %v11258_v16 = vadd.f32 %v11257_v18, %v11168_v0 }
 0xd4a   :  { %v11427_v22 = vadd.f32 %v11425_v12, %v11397_v8  ;;  %v11294_v53 = vadd.f32 %v11258_v16, %v10941_v33 }
 0xd4c   :  { %v11330_v25 = vmul.f32 %v18440_v63, %v11294_v53 }
 0xd4e   :  { %v11366_v46 = vadd.f32 %v18446_v13, %v11330_v25  ;;  %v11171_v19 = vpop.f32.mrf.mxu2 }
 0xd4f   :  { %v11260_v3 = vpop.f32.mrf.mxu3 }
 0xd50   :  { %v11398_v23 = vmax.f32 %v11366_v46, 0.0  ;;  %v11261_v39 = vadd.f32 %v11260_v3, %v11171_v19 }
 0xd52   :  { %v11428_v38 = vadd.f32 %v11426_v11, %v11398_v23  ;;  %v11295_v4 = vadd.f32 %v11261_v39, %v10944_v56 }
 0xd54   :  { %v11331_v24 = vmul.f32 %v18440_v63, %v11295_v4 }
 0xd56   :  { %v11367_v31 = vadd.f32 %v18446_v13, %v11331_v24  ;;  %v11173_v32 = vpop.f32.mrf.mxu2 }
 0xd57   :  { %v11262_v51 = vpop.f32.mrf.mxu3 }
 0xd58   :  { %v11399_v1 = vmax.f32 %v11367_v31, 0.0  ;;  %v11263_v28 = vadd.f32 %v11262_v51, %v11173_v32 }
 0xd5a   :  { %v11429_v35 = vadd.f32 %v11427_v22, %v11399_v1  ;;  %v11296_v57 = vadd.f32 %v11263_v28, %v10946_v49 }
 0xd5c   :  { %v11431_v15 = vmul.f32 0.0625, %v11429_v35  ;;  %v11332_v58 = vmul.f32 %v18440_v63, %v11296_v57 }
 0xd5e   :  { %v11368_v52 = vadd.f32 %v18446_v13, %v11332_v58  ;;  %11469 = vmatmul.f32.vlgmr.msra.gmra.mxu0 %v11431_v15 }
 0xd60   :  { %v11400_v42 = vmax.f32 %v11368_v52, 0.0 }
 0xd62   :  { %v11430_v62 = vadd.f32 %v11428_v38, %v11400_v42 }
 0xd64   :  { %v11432_v36 = vmul.f32 0.0625, %v11430_v62 }
 0xd66   :  { %11472 = vmatmul.f32.vlgmr.msra.gmra.mxu1 %v11432_v36 }
 0xddb   :  { %v11470_v5 = vpop.f32.mrf.mxu0 }
 0xddc   :  { %v11471_v61 = vadd.f32 %v16091_v14, %v11470_v5 }
 0xdde   :  { %11476 = vst [vmem:[#allocation16] sm:$0xff] %v11471_v61 }
 0xde3   :  { %v11473_v63 = vpop.f32.mrf.mxu1 }
 0xde4   :  { %v11474_v13 = vadd.f32 %v16091_v14, %v11473_v63 }
 0xde6   :  { %11477 = vst [vmem:[#allocation16 + $0x8] sm:$0xff] %v11474_v13 }
 0xde7   :  { %11490 = dma.vmem_to_hbm [thread:$0]  %s11483_s24, 256, %s11485_s26, [#allocation6], %s16318_s13, %s16318_s13, %s16319_s14  }
 0xde8   :  { %16307 = dma.done.wait [#allocation6], 256  }
 0xde9   :  { %16308 = vsyncadd [#allocation6], 4294967040 }
 0xdea   :  { %11495 = vsyncpa [#allocation5], 1 }
 0xdeb   :  { %11496 = vsyncpa [#allocation8], 1 }
 0xdec   :  { %11497 = vsyncpa [#allocation11], 1 }
 0xded   :  { %11498 = vsyncpa [#allocation14], 1 }
 0xdee   :  { %11499 = vsyncpa [#allocation6], 1 }

</bundles_post_ra>
